<compile_context>
chip_gen: v5e
topology: v5e:2x2
jax: 0.10.0
libtpu: 0.0.40
codegen_flags: <defaults>
</compile_context>

<pallas_src>
import math

import jax
import jax.numpy as jnp
from jax import lax
from jax.experimental import pallas as pl
from jax.experimental.pallas import tpu as pltpu


# ---------------------------------------------------------------------------
# in-kernel math helpers (explicit, numerically stable, always lower)
# ---------------------------------------------------------------------------
def _sigmoid(x):
    e = jnp.exp(-jnp.abs(x))                      # only exponentiates <= 0
    return jnp.where(x >= 0, 1.0 / (1.0 + e), e / (1.0 + e))


def _softplus(x):
    return jnp.maximum(x, 0.0) + jnp.log(1.0 + jnp.exp(-jnp.abs(x)))


def _layernorm(x, g, b, eps=1e-5):
    mu = jnp.mean(x, axis=-1, keepdims=True)
    xc = x - mu
    var = jnp.mean(xc * xc, axis=-1, keepdims=True)
    return xc * lax.rsqrt(var + eps) * g + b


# ---------------------------------------------------------------------------
# fused PVMLayer kernel (one grid step == one sequence of L tokens)
# ---------------------------------------------------------------------------
def _pvm_fused_kernel(x_ref, lng_ref, lnb_ref, win_ref, convw_ref, convb_ref,
                      wxp_ref, xpb_ref, at_ref, dvec_ref, eb1_ref, eb2_ref,
                      wout_ref, projw_ref, projb_ref, scale_ref,
                      o_ref,
                      dt_sc, dtu_sc, b_sc, c_sc, ys_sc):
    f32 = jnp.float32
    L, C = x_ref.shape
    S, D4 = at_ref.shape            # D4 = 4 * d_inner (feature-folded chunks)
    K = convw_ref.shape[0]
    FS = b_sc.shape[1]              # 4 * d_state
    TBLK = 8

    g = lng_ref[...]
    bvec = lnb_ref[...]

    # ---- Phase 1: LN -> in_proj -> causal conv + SiLU -> x_proj (dt folded)
    x = x_ref[...].astype(f32)
    xn = _layernorm(x, g, bvec)                                  # (L, C)

    xz = jnp.dot(xn, win_ref[...], preferred_element_type=f32)   # (L, 2*D4)
    xc = xz[:, :D4]
    z = xz[:, D4:]

    # causal depthwise conv (halo built in VMEM) + SiLU
    w = convw_ref[...]
    xpad = jnp.concatenate([jnp.zeros((K - 1, D4), f32), xc], axis=0)
    acc = jnp.zeros((L, D4), f32) + convb_ref[...]
    for k in range(K):                           # d_conv is tiny: unrolled
        acc = acc + xpad[k:k + L, :] * w[k:k + 1, :]
    u = acc * _sigmoid(acc)                                      # (L, D4)

    # x_proj with dt_proj folded in:  [dt | B | C] = u @ Wxp + bias
    xdbl = jnp.dot(u, wxp_ref[...], preferred_element_type=f32)  # (L, D4+2FS)
    xdbl = xdbl + xpb_ref[...]
    dt = _softplus(xdbl[:, :D4])
    dt_sc[...] = dt
    dtu_sc[...] = dt * u
    b_sc[...] = xdbl[:, D4:D4 + FS]
    c_sc[...] = xdbl[:, D4 + FS:D4 + 2 * FS]

    # ---- Phase 2: selective scan, all 4 chunks folded onto 64 lanes -------
    A = at_ref[...]                      # (S, D4), A = -exp(A_log) tiled
    E1 = eb1_ref[...]                    # (S, FS)  one-hot: j % S == s
    E2 = eb2_ref[...]                    # (FS, D4) one-hot: chunk(j)==chunk(d)

    def blk_body(blk, h):
        base = pl.multiple_of(blk * TBLK, TBLK)
        dt_blk = dt_sc[pl.ds(base, TBLK), :]
        du_blk = dtu_sc[pl.ds(base, TBLK), :]
        b_blk = b_sc[pl.ds(base, TBLK), :]
        c_blk = c_sc[pl.ds(base, TBLK), :]
        rows = []
        for r in range(TBLK):                     # unrolled: scheduler overlap
            dt_r = dt_blk[r:r + 1, :]             # (1, D4)
            du_r = du_blk[r:r + 1, :]             # (1, D4)  dt * u
            b_r = b_blk[r:r + 1, :]               # (1, FS)
            c_r = c_blk[r:r + 1, :]               # (1, FS)
            dA = jnp.exp(dt_r * A)                # (S, D4)
            # expand per-chunk B_t / C_t across d_inner lanes on the MXU
            bsd = jnp.dot(E1 * b_r, E2, preferred_element_type=f32)  # (S, D4)
            h = dA * h + bsd * du_r
            csd = jnp.dot(E1 * c_r, E2, preferred_element_type=f32)  # (S, D4)
            rows.append(jnp.sum(h * csd, axis=0, keepdims=True))     # (1, D4)
        ys_sc[pl.ds(base, TBLK), :] = jnp.concatenate(rows, axis=0)
        return h

    lax.fori_loop(0, L // TBLK, blk_body, jnp.zeros((S, D4), f32))

    # ---- Phase 3: D-skip, SiLU gate, out_proj + skip, LN, final proj ------
    y = ys_sc[...] + u * dvec_ref[...]
    y = y * (z * _sigmoid(z))
    m = jnp.dot(y, wout_ref[...], preferred_element_type=f32)     # (L, C)
    m = m + scale_ref[...] * xn                                   # skip_scale
    mn = _layernorm(m, g, bvec)                                   # shared norm
    out = jnp.dot(mn, projw_ref[...], preferred_element_type=f32)
    o_ref[...] = (out + projb_ref[...]).astype(o_ref.dtype)


# ---------------------------------------------------------------------------
# wrapper: block-diagonal (feature-folded) weight construction + pallas_call
# ---------------------------------------------------------------------------
def _block_diag(w, n):
    a, b = w.shape
    out = jnp.zeros((n * a, n * b), w.dtype)
    for c in range(n):
        out = out.at[c * a:(c + 1) * a, c * b:(c + 1) * b].set(w)
    return out


def _full2(arr):
    return pl.BlockSpec(arr.shape, lambda b: (0, 0))


def pvm_forward(x, params):
    """x: (B, C, *img_dims) -> (B, output_dim, *img_dims)."""
    x = x.astype(jnp.float32)
    B, C = x.shape[0], x.shape[1]
    img_dims = x.shape[2:]
    L = math.prod(img_dims)

    mp = params["mamba"]
    dm = mp["in_w"].shape[0]
    d_inner = mp["in_w"].shape[1] // 2
    dt_rank = mp["dtproj_w"].shape[0]
    S = mp["A_T"].shape[0]
    Nout = params["proj_w"].shape[-1]
    D4 = 4 * d_inner
    FS = 4 * S
    assert C == 4 * dm == params["ln_g"].shape[0]
    assert L % 8 == 0

    # token-major layout: (B, L, C)  (reshape is free; transpose stays in XLA)
    x_t = jnp.transpose(x.reshape(B, C, L), (0, 2, 1))

    # -- fold the 4 shared-weight chunks onto the feature (lane) axis --------
    win_bd = jnp.concatenate(
        [_block_diag(mp["in_w"][:, :d_inner], 4),
         _block_diag(mp["in_w"][:, d_inner:], 4)], axis=1)        # (C, 2*D4)
    convw_t = jnp.tile(mp["conv_w"], (1, 4))                      # (K, D4)
    convb_t = jnp.tile(mp["conv_b"], 4).reshape(1, D4)

    w_dt = mp["xproj_w"][:, :dt_rank] @ mp["dtproj_w"]            # dt folded
    w_b = mp["xproj_w"][:, dt_rank:dt_rank + S]
    w_c = mp["xproj_w"][:, dt_rank + S:]
    wxp_bd = jnp.concatenate([_block_diag(w_dt, 4),
                              _block_diag(w_b, 4),
                              _block_diag(w_c, 4)], axis=1)       # (D4, D4+2FS)
    xp_b = jnp.concatenate([jnp.tile(mp["dtproj_b"], 4),
                            jnp.zeros((2 * FS,), jnp.float32)]).reshape(1, -1)

    a_tiled = jnp.tile(mp["A_T"], (1, 4))                         # (S, D4)
    d_tiled = jnp.tile(mp["D"], 4).reshape(1, D4)
    wout_bd = _block_diag(mp["outproj_w"], 4)                     # (D4, C)

    # one-hot expansion matrices used on the MXU inside the scan
    jj = jnp.arange(FS)
    eb1 = (jj[None, :] % S == jnp.arange(S)[:, None]).astype(jnp.float32)
    eb2 = ((jj[:, None] // S) ==
           (jnp.arange(D4)[None, :] // d_inner)).astype(jnp.float32)

    ln_g2 = params["ln_g"].reshape(1, C)
    ln_b2 = params["ln_b"].reshape(1, C)
    proj_b2 = params["proj_b"].reshape(1, Nout)
    scale2 = params["skip_scale"].reshape(1, 1)

    out = pl.pallas_call(
        _pvm_fused_kernel,
        out_shape=jax.ShapeDtypeStruct((B, L, Nout), jnp.float32),
        grid=(B,),
        in_specs=[
            pl.BlockSpec((None, L, C), lambda b: (b, 0, 0)),      # x
            _full2(ln_g2), _full2(ln_b2), _full2(win_bd),
            _full2(convw_t), _full2(convb_t), _full2(wxp_bd), _full2(xp_b),
            _full2(a_tiled), _full2(d_tiled), _full2(eb1), _full2(eb2),
            _full2(wout_bd), _full2(params["proj_w"]), _full2(proj_b2),
            _full2(scale2),
        ],
        out_specs=pl.BlockSpec((None, L, Nout), lambda b: (b, 0, 0)),
        scratch_shapes=[
            pltpu.VMEM((L, D4), jnp.float32),   # dt
            pltpu.VMEM((L, D4), jnp.float32),   # dt * u
            pltpu.VMEM((L, FS), jnp.float32),   # B_t (chunk-major)
            pltpu.VMEM((L, FS), jnp.float32),   # C_t (chunk-major)
            pltpu.VMEM((L, D4), jnp.float32),   # scan output y
        ],
        compiler_params=pltpu.CompilerParams(
            dimension_semantics=("parallel",)),
    )(x_t, ln_g2, ln_b2, win_bd, convw_t, convb_t, wxp_bd, xp_b,
      a_tiled, d_tiled, eb1, eb2, wout_bd, params["proj_w"], proj_b2, scale2)

    return jnp.transpose(out, (0, 2, 1)).reshape(B, Nout, *img_dims)


# ---------------------------------------------------------------------------
# Parameters (synthetic, deterministic; mamba_ssm-style shapes/init)
# ---------------------------------------------------------------------------
def init_params(key, input_dim, output_dim, d_state=16, d_conv=4, expand=2):
    dm = input_dim // 4
    d_inner = expand * dm
    dt_rank = max(1, -(-dm // 16))          # ceil(dm / 16)
    ks = jax.random.split(key, 7)

    def dense(k, fan_in, shape):
        return jax.random.normal(k, shape, jnp.float32) / jnp.sqrt(
            jnp.float32(fan_in))

    return {
        "ln_g": jnp.ones((input_dim,), jnp.float32),
        "ln_b": jnp.zeros((input_dim,), jnp.float32),
        "skip_scale": jnp.ones((1,), jnp.float32),
        "proj_w": dense(ks[0], input_dim, (input_dim, output_dim)),
        "proj_b": jnp.zeros((output_dim,), jnp.float32),
        "mamba": {
            "in_w": dense(ks[1], dm, (dm, 2 * d_inner)),
            "conv_w": dense(ks[2], d_conv, (d_conv, d_inner)),
            "conv_b": jnp.zeros((d_inner,), jnp.float32),
            "xproj_w": dense(ks[3], d_inner, (d_inner, dt_rank + 2 * d_state)),
            "dtproj_w": dense(ks[4], dt_rank, (dt_rank, d_inner)),
            "dtproj_b": jax.random.uniform(ks[5], (d_inner,), jnp.float32,
                                           -4.0, -2.0),
            # A = -exp(A_log), passed pre-transposed as A^T: (S, d_inner)
            "A_T": -jnp.tile(
                jnp.arange(1, d_state + 1, dtype=jnp.float32)[:, None],
                (1, d_inner)),
            "D": jnp.ones((d_inner,), jnp.float32),
            "outproj_w": dense(ks[6], d_inner, (d_inner, dm)),
        },
    }


if __name__ == "__main__":
    key = jax.random.PRNGKey(0)
    kp, kx = jax.random.split(key)

    input_dim, output_dim = 32, 32
    B, H, W = 2, 16, 16

    params = init_params(kp, input_dim, output_dim)
    x = jax.random.normal(kx, (B, input_dim, H, W), jnp.float32)

    fwd = jax.jit(pvm_forward)
    out = fwd(x, params)
    jax.block_until_ready(out)

    assert out.shape == (B, output_dim, H, W)
    assert bool(jnp.all(jnp.isfinite(out)))
    print("KERNEL_OK")
</pallas_src>

<mosaic_0001>
module attributes {stable_mosaic.version = 11 : i64} {
  func.func @_pvm_fused_kernel(%arg0: i32, %arg1: memref<1x256x32xf32, #tpu.memory_space<vmem>>, %arg2: memref<1x32xf32, #tpu.memory_space<vmem>>, %arg3: memref<1x32xf32, #tpu.memory_space<vmem>>, %arg4: memref<32x128xf32, #tpu.memory_space<vmem>>, %arg5: memref<4x64xf32, #tpu.memory_space<vmem>>, %arg6: memref<1x64xf32, #tpu.memory_space<vmem>>, %arg7: memref<64x192xf32, #tpu.memory_space<vmem>>, %arg8: memref<1x192xf32, #tpu.memory_space<vmem>>, %arg9: memref<16x64xf32, #tpu.memory_space<vmem>>, %arg10: memref<1x64xf32, #tpu.memory_space<vmem>>, %arg11: memref<16x64xf32, #tpu.memory_space<vmem>>, %arg12: memref<64x64xf32, #tpu.memory_space<vmem>>, %arg13: memref<64x32xf32, #tpu.memory_space<vmem>>, %arg14: memref<32x32xf32, #tpu.memory_space<vmem>>, %arg15: memref<1x32xf32, #tpu.memory_space<vmem>>, %arg16: memref<1x1xf32, #tpu.memory_space<vmem>>, %arg17: memref<1x256x32xf32, #tpu.memory_space<vmem>>, %arg18: memref<256x64xf32, #tpu.memory_space<vmem>>, %arg19: memref<256x64xf32, #tpu.memory_space<vmem>>, %arg20: memref<256x64xf32, #tpu.memory_space<vmem>>, %arg21: memref<256x64xf32, #tpu.memory_space<vmem>>, %arg22: memref<256x64xf32, #tpu.memory_space<vmem>>) attributes {dimension_semantics = [#tpu.dimension_semantics<parallel>], iteration_bounds = array<i64: 2>, scalar_prefetch = 0 : i64, scratch_operands = 5 : i64, tpu.core_type = #tpu.core_type<tc>, window_params = [{transform_indices = @transform_0, window_bounds = array<i64: 1, 256, 32>}, {pipeline_mode = #tpu.pipeline_mode<synchronous>, transform_indices = @transform_1, window_bounds = array<i64: 1, 32>}, {pipeline_mode = #tpu.pipeline_mode<synchronous>, transform_indices = @transform_2, window_bounds = array<i64: 1, 32>}, {pipeline_mode = #tpu.pipeline_mode<synchronous>, transform_indices = @transform_3, window_bounds = array<i64: 32, 128>}, {pipeline_mode = #tpu.pipeline_mode<synchronous>, transform_indices = @transform_4, window_bounds = array<i64: 4, 64>}, {pipeline_mode = #tpu.pipeline_mode<synchronous>, transform_indices = @transform_5, window_bounds = array<i64: 1, 64>}, {pipeline_mode = #tpu.pipeline_mode<synchronous>, transform_indices = @transform_6, window_bounds = array<i64: 64, 192>}, {pipeline_mode = #tpu.pipeline_mode<synchronous>, transform_indices = @transform_7, window_bounds = array<i64: 1, 192>}, {pipeline_mode = #tpu.pipeline_mode<synchronous>, transform_indices = @transform_8, window_bounds = array<i64: 16, 64>}, {pipeline_mode = #tpu.pipeline_mode<synchronous>, transform_indices = @transform_9, window_bounds = array<i64: 1, 64>}, {pipeline_mode = #tpu.pipeline_mode<synchronous>, transform_indices = @transform_10, window_bounds = array<i64: 16, 64>}, {pipeline_mode = #tpu.pipeline_mode<synchronous>, transform_indices = @transform_11, window_bounds = array<i64: 64, 64>}, {pipeline_mode = #tpu.pipeline_mode<synchronous>, transform_indices = @transform_12, window_bounds = array<i64: 64, 32>}, {pipeline_mode = #tpu.pipeline_mode<synchronous>, transform_indices = @transform_13, window_bounds = array<i64: 32, 32>}, {pipeline_mode = #tpu.pipeline_mode<synchronous>, transform_indices = @transform_14, window_bounds = array<i64: 1, 32>}, {pipeline_mode = #tpu.pipeline_mode<synchronous>, transform_indices = @transform_15, window_bounds = array<i64: 1, 1>}, {transform_indices = @transform_16, window_bounds = array<i64: 1, 256, 32>}]} {
    %c0 = arith.constant 0 : index
    %c0_0 = arith.constant 0 : index
    %0 = vector.load %arg2[%c0, %c0_0] : memref<1x32xf32, #tpu.memory_space<vmem>>, vector<1x32xf32>
    %c0_1 = arith.constant 0 : index
    %c0_2 = arith.constant 0 : index
    %1 = vector.load %arg3[%c0_1, %c0_2] : memref<1x32xf32, #tpu.memory_space<vmem>>, vector<1x32xf32>
    %c0_3 = arith.constant 0 : index
    %c0_4 = arith.constant 0 : index
    %c0_5 = arith.constant 0 : index
    %2 = vector.load %arg1[%c0_3, %c0_4, %c0_5] : memref<1x256x32xf32, #tpu.memory_space<vmem>>, vector<1x256x32xf32>
    %3 = vector.shape_cast %2 : vector<1x256x32xf32> to vector<256x32xf32>
    %cst = arith.constant dense<0.000000e+00> : vector<256xf32>
    %4 = vector.multi_reduction <add>, %3, %cst [1] : vector<256x32xf32> to vector<256xf32>
    %5 = vector.shape_cast %4 : vector<256xf32> to vector<256x1xf32>
    %cst_6 = arith.constant 3.200000e+01 : f32
    %6 = vector.broadcast %cst_6 : f32 to vector<256x1xf32>
    %7 = arith.divf %5, %6 : vector<256x1xf32>
    %8 = vector.broadcast %7 : vector<256x1xf32> to vector<256x32xf32>
    %9 = arith.subf %3, %8 : vector<256x32xf32>
    %10 = arith.mulf %9, %9 : vector<256x32xf32>
    %cst_7 = arith.constant dense<0.000000e+00> : vector<256xf32>
    %11 = vector.multi_reduction <add>, %10, %cst_7 [1] : vector<256x32xf32> to vector<256xf32>
    %12 = vector.shape_cast %11 : vector<256xf32> to vector<256x1xf32>
    %cst_8 = arith.constant 3.200000e+01 : f32
    %13 = vector.broadcast %cst_8 : f32 to vector<256x1xf32>
    %14 = arith.divf %12, %13 : vector<256x1xf32>
    %cst_9 = arith.constant 9.99999974E-6 : f32
    %15 = vector.broadcast %cst_9 : f32 to vector<256x1xf32>
    %16 = arith.addf %14, %15 : vector<256x1xf32>
    %17 = math.rsqrt %16 : vector<256x1xf32>
    %18 = vector.broadcast %17 : vector<256x1xf32> to vector<256x32xf32>
    %19 = arith.mulf %9, %18 : vector<256x32xf32>
    %20 = vector.broadcast %0 : vector<1x32xf32> to vector<256x32xf32>
    %21 = arith.mulf %19, %20 : vector<256x32xf32>
    %22 = vector.broadcast %1 : vector<1x32xf32> to vector<256x32xf32>
    %23 = arith.addf %21, %22 : vector<256x32xf32>
    %c0_10 = arith.constant 0 : index
    %c0_11 = arith.constant 0 : index
    %24 = vector.load %arg4[%c0_10, %c0_11] : memref<32x128xf32, #tpu.memory_space<vmem>>, vector<32x128xf32>
    %cst_12 = arith.constant dense<0.000000e+00> : vector<256x128xf32>
    %25 = tpu.matmul %23, %24, %cst_12 {dimension_numbers = #tpu.dot_dimension_numbers<[1], [0], [0], [1], [0, 0, 1, 1], [], []>} : vector<256x32xf32>, vector<32x128xf32>, vector<256x128xf32> -> vector<256x128xf32>
    %26 = vector.extract_strided_slice %25 {offsets = [0, 0], sizes = [256, 64], strides = [1, 1]} : vector<256x128xf32> to vector<256x64xf32>
    %27 = vector.extract_strided_slice %25 {offsets = [0, 64], sizes = [256, 64], strides = [1, 1]} : vector<256x128xf32> to vector<256x64xf32>
    %c0_13 = arith.constant 0 : index
    %c0_14 = arith.constant 0 : index
    %28 = vector.load %arg5[%c0_13, %c0_14] : memref<4x64xf32, #tpu.memory_space<vmem>>, vector<4x64xf32>
    %cst_15 = arith.constant 0.000000e+00 : f32
    %29 = vector.broadcast %cst_15 : f32 to vector<3x64xf32>
    %30 = tpu.concatenate %29, %26 in 0 : vector<3x64xf32>, vector<256x64xf32> -> vector<259x64xf32>
    %cst_16 = arith.constant 0.000000e+00 : f32
    %31 = vector.broadcast %cst_16 : f32 to vector<256x64xf32>
    %c0_17 = arith.constant 0 : index
    %c0_18 = arith.constant 0 : index
    %32 = vector.load %arg6[%c0_17, %c0_18] : memref<1x64xf32, #tpu.memory_space<vmem>>, vector<1x64xf32>
    %33 = vector.broadcast %32 : vector<1x64xf32> to vector<256x64xf32>
    %34 = arith.addf %31, %33 : vector<256x64xf32>
    %35 = vector.extract_strided_slice %30 {offsets = [0, 0], sizes = [256, 64], strides = [1, 1]} : vector<259x64xf32> to vector<256x64xf32>
    %36 = vector.extract_strided_slice %28 {offsets = [0, 0], sizes = [1, 64], strides = [1, 1]} : vector<4x64xf32> to vector<1x64xf32>
    %37 = vector.broadcast %36 : vector<1x64xf32> to vector<256x64xf32>
    %38 = arith.mulf %35, %37 : vector<256x64xf32>
    %39 = arith.addf %34, %38 : vector<256x64xf32>
    %40 = vector.extract_strided_slice %30 {offsets = [1, 0], sizes = [256, 64], strides = [1, 1]} : vector<259x64xf32> to vector<256x64xf32>
    %41 = vector.extract_strided_slice %28 {offsets = [1, 0], sizes = [1, 64], strides = [1, 1]} : vector<4x64xf32> to vector<1x64xf32>
    %42 = vector.broadcast %41 : vector<1x64xf32> to vector<256x64xf32>
    %43 = arith.mulf %40, %42 : vector<256x64xf32>
    %44 = arith.addf %39, %43 : vector<256x64xf32>
    %45 = vector.extract_strided_slice %30 {offsets = [2, 0], sizes = [256, 64], strides = [1, 1]} : vector<259x64xf32> to vector<256x64xf32>
    %46 = vector.extract_strided_slice %28 {offsets = [2, 0], sizes = [1, 64], strides = [1, 1]} : vector<4x64xf32> to vector<1x64xf32>
    %47 = vector.broadcast %46 : vector<1x64xf32> to vector<256x64xf32>
    %48 = arith.mulf %45, %47 : vector<256x64xf32>
    %49 = arith.addf %44, %48 : vector<256x64xf32>
    %50 = vector.extract_strided_slice %30 {offsets = [3, 0], sizes = [256, 64], strides = [1, 1]} : vector<259x64xf32> to vector<256x64xf32>
    %51 = vector.extract_strided_slice %28 {offsets = [3, 0], sizes = [1, 64], strides = [1, 1]} : vector<4x64xf32> to vector<1x64xf32>
    %52 = vector.broadcast %51 : vector<1x64xf32> to vector<256x64xf32>
    %53 = arith.mulf %50, %52 : vector<256x64xf32>
    %54 = arith.addf %49, %53 : vector<256x64xf32>
    %55 = math.absf %54 : vector<256x64xf32>
    %cst_19 = arith.constant 0.000000e+00 : f32
    %56 = vector.broadcast %cst_19 : f32 to vector<256x64xf32>
    %57 = arith.subf %56, %55 : vector<256x64xf32>
    %58 = math.exp %57 : vector<256x64xf32>
    %cst_20 = arith.constant 0.000000e+00 : f32
    %59 = vector.broadcast %cst_20 : f32 to vector<256x64xf32>
    %60 = arith.cmpf oge, %54, %59 : vector<256x64xf32>
    %cst_21 = arith.constant 1.000000e+00 : f32
    %61 = vector.broadcast %cst_21 : f32 to vector<256x64xf32>
    %62 = arith.addf %61, %58 : vector<256x64xf32>
    %cst_22 = arith.constant 1.000000e+00 : f32
    %63 = vector.broadcast %cst_22 : f32 to vector<256x64xf32>
    %64 = arith.divf %63, %62 : vector<256x64xf32>
    %cst_23 = arith.constant 1.000000e+00 : f32
    %65 = vector.broadcast %cst_23 : f32 to vector<256x64xf32>
    %66 = arith.addf %65, %58 : vector<256x64xf32>
    %67 = arith.divf %58, %66 : vector<256x64xf32>
    %68 = arith.select %60, %64, %67 : vector<256x64xi1>, vector<256x64xf32>
    %69 = arith.mulf %54, %68 : vector<256x64xf32>
    %c0_24 = arith.constant 0 : index
    %c0_25 = arith.constant 0 : index
    %70 = vector.load %arg7[%c0_24, %c0_25] : memref<64x192xf32, #tpu.memory_space<vmem>>, vector<64x192xf32>
    %cst_26 = arith.constant dense<0.000000e+00> : vector<256x192xf32>
    %71 = tpu.matmul %69, %70, %cst_26 {dimension_numbers = #tpu.dot_dimension_numbers<[1], [0], [0], [1], [0, 0, 1, 1], [], []>} : vector<256x64xf32>, vector<64x192xf32>, vector<256x192xf32> -> vector<256x192xf32>
    %c0_27 = arith.constant 0 : index
    %c0_28 = arith.constant 0 : index
    %72 = vector.load %arg8[%c0_27, %c0_28] : memref<1x192xf32, #tpu.memory_space<vmem>>, vector<1x192xf32>
    %73 = vector.broadcast %72 : vector<1x192xf32> to vector<256x192xf32>
    %74 = arith.addf %71, %73 : vector<256x192xf32>
    %75 = vector.extract_strided_slice %74 {offsets = [0, 0], sizes = [256, 64], strides = [1, 1]} : vector<256x192xf32> to vector<256x64xf32>
    %cst_29 = arith.constant 0.000000e+00 : f32
    %76 = vector.broadcast %cst_29 : f32 to vector<256x64xf32>
    %77 = arith.maximumf %75, %76 : vector<256x64xf32>
    %78 = math.absf %75 : vector<256x64xf32>
    %cst_30 = arith.constant 0.000000e+00 : f32
    %79 = vector.broadcast %cst_30 : f32 to vector<256x64xf32>
    %80 = arith.subf %79, %78 : vector<256x64xf32>
    %81 = math.exp %80 : vector<256x64xf32>
    %cst_31 = arith.constant 1.000000e+00 : f32
    %82 = vector.broadcast %cst_31 : f32 to vector<256x64xf32>
    %83 = arith.addf %82, %81 : vector<256x64xf32>
    %84 = math.log %83 : vector<256x64xf32>
    %85 = arith.addf %77, %84 : vector<256x64xf32>
    %c0_32 = arith.constant 0 : index
    %c0_33 = arith.constant 0 : index
    %86 = vector.load %arg18[%c0_32, %c0_33] : memref<256x64xf32, #tpu.memory_space<vmem>>, vector<256x64xf32>
    tpu.vector_store %arg18[%c0_32, %c0_33], %85 {strides = array<i32>} : memref<256x64xf32, #tpu.memory_space<vmem>>, vector<256x64xf32>,
    %87 = arith.mulf %85, %69 : vector<256x64xf32>
    %c0_34 = arith.constant 0 : index
    %c0_35 = arith.constant 0 : index
    %88 = vector.load %arg19[%c0_34, %c0_35] : memref<256x64xf32, #tpu.memory_space<vmem>>, vector<256x64xf32>
    tpu.vector_store %arg19[%c0_34, %c0_35], %87 {strides = array<i32>} : memref<256x64xf32, #tpu.memory_space<vmem>>, vector<256x64xf32>,
    %89 = vector.extract_strided_slice %74 {offsets = [0, 64], sizes = [256, 64], strides = [1, 1]} : vector<256x192xf32> to vector<256x64xf32>
    %c0_36 = arith.constant 0 : index
    %c0_37 = arith.constant 0 : index
    %90 = vector.load %arg20[%c0_36, %c0_37] : memref<256x64xf32, #tpu.memory_space<vmem>>, vector<256x64xf32>
    tpu.vector_store %arg20[%c0_36, %c0_37], %89 {strides = array<i32>} : memref<256x64xf32, #tpu.memory_space<vmem>>, vector<256x64xf32>,
    %91 = vector.extract_strided_slice %74 {offsets = [0, 128], sizes = [256, 64], strides = [1, 1]} : vector<256x192xf32> to vector<256x64xf32>
    %c0_38 = arith.constant 0 : index
    %c0_39 = arith.constant 0 : index
    %92 = vector.load %arg21[%c0_38, %c0_39] : memref<256x64xf32, #tpu.memory_space<vmem>>, vector<256x64xf32>
    tpu.vector_store %arg21[%c0_38, %c0_39], %91 {strides = array<i32>} : memref<256x64xf32, #tpu.memory_space<vmem>>, vector<256x64xf32>,
    %c0_40 = arith.constant 0 : index
    %c0_41 = arith.constant 0 : index
    %93 = vector.load %arg9[%c0_40, %c0_41] : memref<16x64xf32, #tpu.memory_space<vmem>>, vector<16x64xf32>
    %c0_42 = arith.constant 0 : index
    %c0_43 = arith.constant 0 : index
    %94 = vector.load %arg11[%c0_42, %c0_43] : memref<16x64xf32, #tpu.memory_space<vmem>>, vector<16x64xf32>
    %c0_44 = arith.constant 0 : index
    %c0_45 = arith.constant 0 : index
    %95 = vector.load %arg12[%c0_44, %c0_45] : memref<64x64xf32, #tpu.memory_space<vmem>>, vector<64x64xf32>
    %cst_46 = arith.constant 0.000000e+00 : f32
    %96 = vector.broadcast %cst_46 : f32 to vector<16x64xf32>
    %c0_i32 = arith.constant 0 : i32
    %c32_i32 = arith.constant 32 : i32
    %97 = arith.addi %c0_i32, %c32_i32 : i32
    %c1_i32 = arith.constant 1 : i32
    %98 = scf.for %arg23 = %c0_i32 to %97 step %c1_i32 iter_args(%arg24 = %96) -> (vector<16x64xf32>)  : i32 {
      %c8_i32 = arith.constant 8 : i32
      %154 = arith.muli %arg23, %c8_i32 : i32
      %155 = tpu.assume_multiple %154, 8 : i32
      %156 = arith.index_cast %155 : i32 to index
      %c0_75 = arith.constant 0 : index
      %157 = vector.load %arg18[%156, %c0_75] : memref<256x64xf32, #tpu.memory_space<vmem>>, vector<8x64xf32>
      %158 = arith.index_cast %155 : i32 to index
      %c0_76 = arith.constant 0 : index
      %159 = vector.load %arg19[%158, %c0_76] : memref<256x64xf32, #tpu.memory_space<vmem>>, vector<8x64xf32>
      %160 = arith.index_cast %155 : i32 to index
      %c0_77 = arith.constant 0 : index
      %161 = vector.load %arg20[%160, %c0_77] : memref<256x64xf32, #tpu.memory_space<vmem>>, vector<8x64xf32>
      %162 = arith.index_cast %155 : i32 to index
      %c0_78 = arith.constant 0 : index
      %163 = vector.load %arg21[%162, %c0_78] : memref<256x64xf32, #tpu.memory_space<vmem>>, vector<8x64xf32>
      %164 = vector.extract_strided_slice %157 {offsets = [0, 0], sizes = [1, 64], strides = [1, 1]} : vector<8x64xf32> to vector<1x64xf32>
      %165 = vector.extract_strided_slice %159 {offsets = [0, 0], sizes = [1, 64], strides = [1, 1]} : vector<8x64xf32> to vector<1x64xf32>
      %166 = vector.extract_strided_slice %161 {offsets = [0, 0], sizes = [1, 64], strides = [1, 1]} : vector<8x64xf32> to vector<1x64xf32>
      %167 = vector.extract_strided_slice %163 {offsets = [0, 0], sizes = [1, 64], strides = [1, 1]} : vector<8x64xf32> to vector<1x64xf32>
      %168 = vector.broadcast %164 : vector<1x64xf32> to vector<16x64xf32>
      %169 = arith.mulf %168, %93 : vector<16x64xf32>
      %170 = math.exp %169 : vector<16x64xf32>
      %171 = vector.broadcast %166 : vector<1x64xf32> to vector<16x64xf32>
      %172 = arith.mulf %94, %171 : vector<16x64xf32>
      %cst_79 = arith.constant dense<0.000000e+00> : vector<16x64xf32>
      %173 = tpu.matmul %172, %95, %cst_79 {dimension_numbers = #tpu.dot_dimension_numbers<[1], [0], [0], [1], [0, 0, 1, 1], [], []>} : vector<16x64xf32>, vector<64x64xf32>, vector<16x64xf32> -> vector<16x64xf32>
      %174 = arith.mulf %170, %arg24 : vector<16x64xf32>
      %175 = vector.broadcast %165 : vector<1x64xf32> to vector<16x64xf32>
      %176 = arith.mulf %173, %175 : vector<16x64xf32>
      %177 = arith.addf %174, %176 : vector<16x64xf32>
      %178 = vector.broadcast %167 : vector<1x64xf32> to vector<16x64xf32>
      %179 = arith.mulf %94, %178 : vector<16x64xf32>
      %cst_80 = arith.constant dense<0.000000e+00> : vector<16x64xf32>
      %180 = tpu.matmul %179, %95, %cst_80 {dimension_numbers = #tpu.dot_dimension_numbers<[1], [0], [0], [1], [0, 0, 1, 1], [], []>} : vector<16x64xf32>, vector<64x64xf32>, vector<16x64xf32> -> vector<16x64xf32>
      %181 = arith.mulf %177, %180 : vector<16x64xf32>
      %cst_81 = arith.constant dense<0.000000e+00> : vector<64xf32>
      %182 = vector.multi_reduction <add>, %181, %cst_81 [0] : vector<16x64xf32> to vector<64xf32>
      %183 = vector.shape_cast %182 : vector<64xf32> to vector<1x64xf32>
      %184 = vector.extract_strided_slice %157 {offsets = [1, 0], sizes = [1, 64], strides = [1, 1]} : vector<8x64xf32> to vector<1x64xf32>
      %185 = vector.extract_strided_slice %159 {offsets = [1, 0], sizes = [1, 64], strides = [1, 1]} : vector<8x64xf32> to vector<1x64xf32>
      %186 = vector.extract_strided_slice %161 {offsets = [1, 0], sizes = [1, 64], strides = [1, 1]} : vector<8x64xf32> to vector<1x64xf32>
      %187 = vector.extract_strided_slice %163 {offsets = [1, 0], sizes = [1, 64], strides = [1, 1]} : vector<8x64xf32> to vector<1x64xf32>
      %188 = vector.broadcast %184 : vector<1x64xf32> to vector<16x64xf32>
      %189 = arith.mulf %188, %93 : vector<16x64xf32>
      %190 = math.exp %189 : vector<16x64xf32>
      %191 = vector.broadcast %186 : vector<1x64xf32> to vector<16x64xf32>
      %192 = arith.mulf %94, %191 : vector<16x64xf32>
      %cst_82 = arith.constant dense<0.000000e+00> : vector<16x64xf32>
      %193 = tpu.matmul %192, %95, %cst_82 {dimension_numbers = #tpu.dot_dimension_numbers<[1], [0], [0], [1], [0, 0, 1, 1], [], []>} : vector<16x64xf32>, vector<64x64xf32>, vector<16x64xf32> -> vector<16x64xf32>
      %194 = arith.mulf %190, %177 : vector<16x64xf32>
      %195 = vector.broadcast %185 : vector<1x64xf32> to vector<16x64xf32>
      %196 = arith.mulf %193, %195 : vector<16x64xf32>
      %197 = arith.addf %194, %196 : vector<16x64xf32>
      %198 = vector.broadcast %187 : vector<1x64xf32> to vector<16x64xf32>
      %199 = arith.mulf %94, %198 : vector<16x64xf32>
      %cst_83 = arith.constant dense<0.000000e+00> : vector<16x64xf32>
      %200 = tpu.matmul %199, %95, %cst_83 {dimension_numbers = #tpu.dot_dimension_numbers<[1], [0], [0], [1], [0, 0, 1, 1], [], []>} : vector<16x64xf32>, vector<64x64xf32>, vector<16x64xf32> -> vector<16x64xf32>
      %201 = arith.mulf %197, %200 : vector<16x64xf32>
      %cst_84 = arith.constant dense<0.000000e+00> : vector<64xf32>
      %202 = vector.multi_reduction <add>, %201, %cst_84 [0] : vector<16x64xf32> to vector<64xf32>
      %203 = vector.shape_cast %202 : vector<64xf32> to vector<1x64xf32>
      %204 = vector.extract_strided_slice %157 {offsets = [2, 0], sizes = [1, 64], strides = [1, 1]} : vector<8x64xf32> to vector<1x64xf32>
      %205 = vector.extract_strided_slice %159 {offsets = [2, 0], sizes = [1, 64], strides = [1, 1]} : vector<8x64xf32> to vector<1x64xf32>
      %206 = vector.extract_strided_slice %161 {offsets = [2, 0], sizes = [1, 64], strides = [1, 1]} : vector<8x64xf32> to vector<1x64xf32>
      %207 = vector.extract_strided_slice %163 {offsets = [2, 0], sizes = [1, 64], strides = [1, 1]} : vector<8x64xf32> to vector<1x64xf32>
      %208 = vector.broadcast %204 : vector<1x64xf32> to vector<16x64xf32>
      %209 = arith.mulf %208, %93 : vector<16x64xf32>
      %210 = math.exp %209 : vector<16x64xf32>
      %211 = vector.broadcast %206 : vector<1x64xf32> to vector<16x64xf32>
      %212 = arith.mulf %94, %211 : vector<16x64xf32>
      %cst_85 = arith.constant dense<0.000000e+00> : vector<16x64xf32>
      %213 = tpu.matmul %212, %95, %cst_85 {dimension_numbers = #tpu.dot_dimension_numbers<[1], [0], [0], [1], [0, 0, 1, 1], [], []>} : vector<16x64xf32>, vector<64x64xf32>, vector<16x64xf32> -> vector<16x64xf32>
      %214 = arith.mulf %210, %197 : vector<16x64xf32>
      %215 = vector.broadcast %205 : vector<1x64xf32> to vector<16x64xf32>
      %216 = arith.mulf %213, %215 : vector<16x64xf32>
      %217 = arith.addf %214, %216 : vector<16x64xf32>
      %218 = vector.broadcast %207 : vector<1x64xf32> to vector<16x64xf32>
      %219 = arith.mulf %94, %218 : vector<16x64xf32>
      %cst_86 = arith.constant dense<0.000000e+00> : vector<16x64xf32>
      %220 = tpu.matmul %219, %95, %cst_86 {dimension_numbers = #tpu.dot_dimension_numbers<[1], [0], [0], [1], [0, 0, 1, 1], [], []>} : vector<16x64xf32>, vector<64x64xf32>, vector<16x64xf32> -> vector<16x64xf32>
      %221 = arith.mulf %217, %220 : vector<16x64xf32>
      %cst_87 = arith.constant dense<0.000000e+00> : vector<64xf32>
      %222 = vector.multi_reduction <add>, %221, %cst_87 [0] : vector<16x64xf32> to vector<64xf32>
      %223 = vector.shape_cast %222 : vector<64xf32> to vector<1x64xf32>
      %224 = vector.extract_strided_slice %157 {offsets = [3, 0], sizes = [1, 64], strides = [1, 1]} : vector<8x64xf32> to vector<1x64xf32>
      %225 = vector.extract_strided_slice %159 {offsets = [3, 0], sizes = [1, 64], strides = [1, 1]} : vector<8x64xf32> to vector<1x64xf32>
      %226 = vector.extract_strided_slice %161 {offsets = [3, 0], sizes = [1, 64], strides = [1, 1]} : vector<8x64xf32> to vector<1x64xf32>
      %227 = vector.extract_strided_slice %163 {offsets = [3, 0], sizes = [1, 64], strides = [1, 1]} : vector<8x64xf32> to vector<1x64xf32>
      %228 = vector.broadcast %224 : vector<1x64xf32> to vector<16x64xf32>
      %229 = arith.mulf %228, %93 : vector<16x64xf32>
      %230 = math.exp %229 : vector<16x64xf32>
      %231 = vector.broadcast %226 : vector<1x64xf32> to vector<16x64xf32>
      %232 = arith.mulf %94, %231 : vector<16x64xf32>
      %cst_88 = arith.constant dense<0.000000e+00> : vector<16x64xf32>
      %233 = tpu.matmul %232, %95, %cst_88 {dimension_numbers = #tpu.dot_dimension_numbers<[1], [0], [0], [1], [0, 0, 1, 1], [], []>} : vector<16x64xf32>, vector<64x64xf32>, vector<16x64xf32> -> vector<16x64xf32>
      %234 = arith.mulf %230, %217 : vector<16x64xf32>
      %235 = vector.broadcast %225 : vector<1x64xf32> to vector<16x64xf32>
      %236 = arith.mulf %233, %235 : vector<16x64xf32>
      %237 = arith.addf %234, %236 : vector<16x64xf32>
      %238 = vector.broadcast %227 : vector<1x64xf32> to vector<16x64xf32>
      %239 = arith.mulf %94, %238 : vector<16x64xf32>
      %cst_89 = arith.constant dense<0.000000e+00> : vector<16x64xf32>
      %240 = tpu.matmul %239, %95, %cst_89 {dimension_numbers = #tpu.dot_dimension_numbers<[1], [0], [0], [1], [0, 0, 1, 1], [], []>} : vector<16x64xf32>, vector<64x64xf32>, vector<16x64xf32> -> vector<16x64xf32>
      %241 = arith.mulf %237, %240 : vector<16x64xf32>
      %cst_90 = arith.constant dense<0.000000e+00> : vector<64xf32>
      %242 = vector.multi_reduction <add>, %241, %cst_90 [0] : vector<16x64xf32> to vector<64xf32>
      %243 = vector.shape_cast %242 : vector<64xf32> to vector<1x64xf32>
      %244 = vector.extract_strided_slice %157 {offsets = [4, 0], sizes = [1, 64], strides = [1, 1]} : vector<8x64xf32> to vector<1x64xf32>
      %245 = vector.extract_strided_slice %159 {offsets = [4, 0], sizes = [1, 64], strides = [1, 1]} : vector<8x64xf32> to vector<1x64xf32>
      %246 = vector.extract_strided_slice %161 {offsets = [4, 0], sizes = [1, 64], strides = [1, 1]} : vector<8x64xf32> to vector<1x64xf32>
      %247 = vector.extract_strided_slice %163 {offsets = [4, 0], sizes = [1, 64], strides = [1, 1]} : vector<8x64xf32> to vector<1x64xf32>
      %248 = vector.broadcast %244 : vector<1x64xf32> to vector<16x64xf32>
      %249 = arith.mulf %248, %93 : vector<16x64xf32>
      %250 = math.exp %249 : vector<16x64xf32>
      %251 = vector.broadcast %246 : vector<1x64xf32> to vector<16x64xf32>
      %252 = arith.mulf %94, %251 : vector<16x64xf32>
      %cst_91 = arith.constant dense<0.000000e+00> : vector<16x64xf32>
      %253 = tpu.matmul %252, %95, %cst_91 {dimension_numbers = #tpu.dot_dimension_numbers<[1], [0], [0], [1], [0, 0, 1, 1], [], []>} : vector<16x64xf32>, vector<64x64xf32>, vector<16x64xf32> -> vector<16x64xf32>
      %254 = arith.mulf %250, %237 : vector<16x64xf32>
      %255 = vector.broadcast %245 : vector<1x64xf32> to vector<16x64xf32>
      %256 = arith.mulf %253, %255 : vector<16x64xf32>
      %257 = arith.addf %254, %256 : vector<16x64xf32>
      %258 = vector.broadcast %247 : vector<1x64xf32> to vector<16x64xf32>
      %259 = arith.mulf %94, %258 : vector<16x64xf32>
      %cst_92 = arith.constant dense<0.000000e+00> : vector<16x64xf32>
      %260 = tpu.matmul %259, %95, %cst_92 {dimension_numbers = #tpu.dot_dimension_numbers<[1], [0], [0], [1], [0, 0, 1, 1], [], []>} : vector<16x64xf32>, vector<64x64xf32>, vector<16x64xf32> -> vector<16x64xf32>
      %261 = arith.mulf %257, %260 : vector<16x64xf32>
      %cst_93 = arith.constant dense<0.000000e+00> : vector<64xf32>
      %262 = vector.multi_reduction <add>, %261, %cst_93 [0] : vector<16x64xf32> to vector<64xf32>
      %263 = vector.shape_cast %262 : vector<64xf32> to vector<1x64xf32>
      %264 = vector.extract_strided_slice %157 {offsets = [5, 0], sizes = [1, 64], strides = [1, 1]} : vector<8x64xf32> to vector<1x64xf32>
      %265 = vector.extract_strided_slice %159 {offsets = [5, 0], sizes = [1, 64], strides = [1, 1]} : vector<8x64xf32> to vector<1x64xf32>
      %266 = vector.extract_strided_slice %161 {offsets = [5, 0], sizes = [1, 64], strides = [1, 1]} : vector<8x64xf32> to vector<1x64xf32>
      %267 = vector.extract_strided_slice %163 {offsets = [5, 0], sizes = [1, 64], strides = [1, 1]} : vector<8x64xf32> to vector<1x64xf32>
      %268 = vector.broadcast %264 : vector<1x64xf32> to vector<16x64xf32>
      %269 = arith.mulf %268, %93 : vector<16x64xf32>
      %270 = math.exp %269 : vector<16x64xf32>
      %271 = vector.broadcast %266 : vector<1x64xf32> to vector<16x64xf32>
      %272 = arith.mulf %94, %271 : vector<16x64xf32>
      %cst_94 = arith.constant dense<0.000000e+00> : vector<16x64xf32>
      %273 = tpu.matmul %272, %95, %cst_94 {dimension_numbers = #tpu.dot_dimension_numbers<[1], [0], [0], [1], [0, 0, 1, 1], [], []>} : vector<16x64xf32>, vector<64x64xf32>, vector<16x64xf32> -> vector<16x64xf32>
      %274 = arith.mulf %270, %257 : vector<16x64xf32>
      %275 = vector.broadcast %265 : vector<1x64xf32> to vector<16x64xf32>
      %276 = arith.mulf %273, %275 : vector<16x64xf32>
      %277 = arith.addf %274, %276 : vector<16x64xf32>
      %278 = vector.broadcast %267 : vector<1x64xf32> to vector<16x64xf32>
      %279 = arith.mulf %94, %278 : vector<16x64xf32>
      %cst_95 = arith.constant dense<0.000000e+00> : vector<16x64xf32>
      %280 = tpu.matmul %279, %95, %cst_95 {dimension_numbers = #tpu.dot_dimension_numbers<[1], [0], [0], [1], [0, 0, 1, 1], [], []>} : vector<16x64xf32>, vector<64x64xf32>, vector<16x64xf32> -> vector<16x64xf32>
      %281 = arith.mulf %277, %280 : vector<16x64xf32>
      %cst_96 = arith.constant dense<0.000000e+00> : vector<64xf32>
      %282 = vector.multi_reduction <add>, %281, %cst_96 [0] : vector<16x64xf32> to vector<64xf32>
      %283 = vector.shape_cast %282 : vector<64xf32> to vector<1x64xf32>
      %284 = vector.extract_strided_slice %157 {offsets = [6, 0], sizes = [1, 64], strides = [1, 1]} : vector<8x64xf32> to vector<1x64xf32>
      %285 = vector.extract_strided_slice %159 {offsets = [6, 0], sizes = [1, 64], strides = [1, 1]} : vector<8x64xf32> to vector<1x64xf32>
      %286 = vector.extract_strided_slice %161 {offsets = [6, 0], sizes = [1, 64], strides = [1, 1]} : vector<8x64xf32> to vector<1x64xf32>
      %287 = vector.extract_strided_slice %163 {offsets = [6, 0], sizes = [1, 64], strides = [1, 1]} : vector<8x64xf32> to vector<1x64xf32>
      %288 = vector.broadcast %284 : vector<1x64xf32> to vector<16x64xf32>
      %289 = arith.mulf %288, %93 : vector<16x64xf32>
      %290 = math.exp %289 : vector<16x64xf32>
      %291 = vector.broadcast %286 : vector<1x64xf32> to vector<16x64xf32>
      %292 = arith.mulf %94, %291 : vector<16x64xf32>
      %cst_97 = arith.constant dense<0.000000e+00> : vector<16x64xf32>
      %293 = tpu.matmul %292, %95, %cst_97 {dimension_numbers = #tpu.dot_dimension_numbers<[1], [0], [0], [1], [0, 0, 1, 1], [], []>} : vector<16x64xf32>, vector<64x64xf32>, vector<16x64xf32> -> vector<16x64xf32>
      %294 = arith.mulf %290, %277 : vector<16x64xf32>
      %295 = vector.broadcast %285 : vector<1x64xf32> to vector<16x64xf32>
      %296 = arith.mulf %293, %295 : vector<16x64xf32>
      %297 = arith.addf %294, %296 : vector<16x64xf32>
      %298 = vector.broadcast %287 : vector<1x64xf32> to vector<16x64xf32>
      %299 = arith.mulf %94, %298 : vector<16x64xf32>
      %cst_98 = arith.constant dense<0.000000e+00> : vector<16x64xf32>
      %300 = tpu.matmul %299, %95, %cst_98 {dimension_numbers = #tpu.dot_dimension_numbers<[1], [0], [0], [1], [0, 0, 1, 1], [], []>} : vector<16x64xf32>, vector<64x64xf32>, vector<16x64xf32> -> vector<16x64xf32>
      %301 = arith.mulf %297, %300 : vector<16x64xf32>
      %cst_99 = arith.constant dense<0.000000e+00> : vector<64xf32>
      %302 = vector.multi_reduction <add>, %301, %cst_99 [0] : vector<16x64xf32> to vector<64xf32>
      %303 = vector.shape_cast %302 : vector<64xf32> to vector<1x64xf32>
      %304 = vector.extract_strided_slice %157 {offsets = [7, 0], sizes = [1, 64], strides = [1, 1]} : vector<8x64xf32> to vector<1x64xf32>
      %305 = vector.extract_strided_slice %159 {offsets = [7, 0], sizes = [1, 64], strides = [1, 1]} : vector<8x64xf32> to vector<1x64xf32>
      %306 = vector.extract_strided_slice %161 {offsets = [7, 0], sizes = [1, 64], strides = [1, 1]} : vector<8x64xf32> to vector<1x64xf32>
      %307 = vector.extract_strided_slice %163 {offsets = [7, 0], sizes = [1, 64], strides = [1, 1]} : vector<8x64xf32> to vector<1x64xf32>
      %308 = vector.broadcast %304 : vector<1x64xf32> to vector<16x64xf32>
      %309 = arith.mulf %308, %93 : vector<16x64xf32>
      %310 = math.exp %309 : vector<16x64xf32>
      %311 = vector.broadcast %306 : vector<1x64xf32> to vector<16x64xf32>
      %312 = arith.mulf %94, %311 : vector<16x64xf32>
      %cst_100 = arith.constant dense<0.000000e+00> : vector<16x64xf32>
      %313 = tpu.matmul %312, %95, %cst_100 {dimension_numbers = #tpu.dot_dimension_numbers<[1], [0], [0], [1], [0, 0, 1, 1], [], []>} : vector<16x64xf32>, vector<64x64xf32>, vector<16x64xf32> -> vector<16x64xf32>
      %314 = arith.mulf %310, %297 : vector<16x64xf32>
      %315 = vector.broadcast %305 : vector<1x64xf32> to vector<16x64xf32>
      %316 = arith.mulf %313, %315 : vector<16x64xf32>
      %317 = arith.addf %314, %316 : vector<16x64xf32>
      %318 = vector.broadcast %307 : vector<1x64xf32> to vector<16x64xf32>
      %319 = arith.mulf %94, %318 : vector<16x64xf32>
      %cst_101 = arith.constant dense<0.000000e+00> : vector<16x64xf32>
      %320 = tpu.matmul %319, %95, %cst_101 {dimension_numbers = #tpu.dot_dimension_numbers<[1], [0], [0], [1], [0, 0, 1, 1], [], []>} : vector<16x64xf32>, vector<64x64xf32>, vector<16x64xf32> -> vector<16x64xf32>
      %321 = arith.mulf %317, %320 : vector<16x64xf32>
      %cst_102 = arith.constant dense<0.000000e+00> : vector<64xf32>
      %322 = vector.multi_reduction <add>, %321, %cst_102 [0] : vector<16x64xf32> to vector<64xf32>
      %323 = vector.shape_cast %322 : vector<64xf32> to vector<1x64xf32>
      %324 = tpu.concatenate %183, %203, %223, %243, %263, %283, %303, %323 in 0 : vector<1x64xf32>, vector<1x64xf32>, vector<1x64xf32>, vector<1x64xf32>, vector<1x64xf32>, vector<1x64xf32>, vector<1x64xf32>, vector<1x64xf32> -> vector<8x64xf32>
      %325 = arith.index_cast %155 : i32 to index
      %c0_103 = arith.constant 0 : index
      %326 = vector.load %arg22[%325, %c0_103] : memref<256x64xf32, #tpu.memory_space<vmem>>, vector<8x64xf32>
      tpu.vector_store %arg22[%325, %c0_103], %324 {strides = array<i32>} : memref<256x64xf32, #tpu.memory_space<vmem>>, vector<8x64xf32>,
      scf.yield %317 : vector<16x64xf32>
    }
    %c32_i32_47 = arith.constant 32 : i32
    %c0_48 = arith.constant 0 : index
    %c0_49 = arith.constant 0 : index
    %99 = vector.load %arg22[%c0_48, %c0_49] : memref<256x64xf32, #tpu.memory_space<vmem>>, vector<256x64xf32>
    %c0_50 = arith.constant 0 : index
    %c0_51 = arith.constant 0 : index
    %100 = vector.load %arg10[%c0_50, %c0_51] : memref<1x64xf32, #tpu.memory_space<vmem>>, vector<1x64xf32>
    %101 = vector.broadcast %100 : vector<1x64xf32> to vector<256x64xf32>
    %102 = arith.mulf %69, %101 : vector<256x64xf32>
    %103 = arith.addf %99, %102 : vector<256x64xf32>
    %104 = math.absf %27 : vector<256x64xf32>
    %cst_52 = arith.constant 0.000000e+00 : f32
    %105 = vector.broadcast %cst_52 : f32 to vector<256x64xf32>
    %106 = arith.subf %105, %104 : vector<256x64xf32>
    %107 = math.exp %106 : vector<256x64xf32>
    %cst_53 = arith.constant 0.000000e+00 : f32
    %108 = vector.broadcast %cst_53 : f32 to vector<256x64xf32>
    %109 = arith.cmpf oge, %27, %108 : vector<256x64xf32>
    %cst_54 = arith.constant 1.000000e+00 : f32
    %110 = vector.broadcast %cst_54 : f32 to vector<256x64xf32>
    %111 = arith.addf %110, %107 : vector<256x64xf32>
    %cst_55 = arith.constant 1.000000e+00 : f32
    %112 = vector.broadcast %cst_55 : f32 to vector<256x64xf32>
    %113 = arith.divf %112, %111 : vector<256x64xf32>
    %cst_56 = arith.constant 1.000000e+00 : f32
    %114 = vector.broadcast %cst_56 : f32 to vector<256x64xf32>
    %115 = arith.addf %114, %107 : vector<256x64xf32>
    %116 = arith.divf %107, %115 : vector<256x64xf32>
    %117 = arith.select %109, %113, %116 : vector<256x64xi1>, vector<256x64xf32>
    %118 = arith.mulf %27, %117 : vector<256x64xf32>
    %119 = arith.mulf %103, %118 : vector<256x64xf32>
    %c0_57 = arith.constant 0 : index
    %c0_58 = arith.constant 0 : index
    %120 = vector.load %arg13[%c0_57, %c0_58] : memref<64x32xf32, #tpu.memory_space<vmem>>, vector<64x32xf32>
    %cst_59 = arith.constant dense<0.000000e+00> : vector<256x32xf32>
    %121 = tpu.matmul %119, %120, %cst_59 {dimension_numbers = #tpu.dot_dimension_numbers<[1], [0], [0], [1], [0, 0, 1, 1], [], []>} : vector<256x64xf32>, vector<64x32xf32>, vector<256x32xf32> -> vector<256x32xf32>
    %c0_60 = arith.constant 0 : index
    %c0_61 = arith.constant 0 : index
    %122 = vector.load %arg16[%c0_60, %c0_61] : memref<1x1xf32, #tpu.memory_space<vmem>>, vector<1x1xf32>
    %123 = vector.broadcast %122 : vector<1x1xf32> to vector<256x32xf32>
    %124 = arith.mulf %123, %23 : vector<256x32xf32>
    %125 = arith.addf %121, %124 : vector<256x32xf32>
    %cst_62 = arith.constant dense<0.000000e+00> : vector<256xf32>
    %126 = vector.multi_reduction <add>, %125, %cst_62 [1] : vector<256x32xf32> to vector<256xf32>
    %127 = vector.shape_cast %126 : vector<256xf32> to vector<256x1xf32>
    %cst_63 = arith.constant 3.200000e+01 : f32
    %128 = vector.broadcast %cst_63 : f32 to vector<256x1xf32>
    %129 = arith.divf %127, %128 : vector<256x1xf32>
    %130 = vector.broadcast %129 : vector<256x1xf32> to vector<256x32xf32>
    %131 = arith.subf %125, %130 : vector<256x32xf32>
    %132 = arith.mulf %131, %131 : vector<256x32xf32>
    %cst_64 = arith.constant dense<0.000000e+00> : vector<256xf32>
    %133 = vector.multi_reduction <add>, %132, %cst_64 [1] : vector<256x32xf32> to vector<256xf32>
    %134 = vector.shape_cast %133 : vector<256xf32> to vector<256x1xf32>
    %cst_65 = arith.constant 3.200000e+01 : f32
    %135 = vector.broadcast %cst_65 : f32 to vector<256x1xf32>
    %136 = arith.divf %134, %135 : vector<256x1xf32>
    %cst_66 = arith.constant 9.99999974E-6 : f32
    %137 = vector.broadcast %cst_66 : f32 to vector<256x1xf32>
    %138 = arith.addf %136, %137 : vector<256x1xf32>
    %139 = math.rsqrt %138 : vector<256x1xf32>
    %140 = vector.broadcast %139 : vector<256x1xf32> to vector<256x32xf32>
    %141 = arith.mulf %131, %140 : vector<256x32xf32>
    %142 = vector.broadcast %0 : vector<1x32xf32> to vector<256x32xf32>
    %143 = arith.mulf %141, %142 : vector<256x32xf32>
    %144 = vector.broadcast %1 : vector<1x32xf32> to vector<256x32xf32>
    %145 = arith.addf %143, %144 : vector<256x32xf32>
    %c0_67 = arith.constant 0 : index
    %c0_68 = arith.constant 0 : index
    %146 = vector.load %arg14[%c0_67, %c0_68] : memref<32x32xf32, #tpu.memory_space<vmem>>, vector<32x32xf32>
    %cst_69 = arith.constant dense<0.000000e+00> : vector<256x32xf32>
    %147 = tpu.matmul %145, %146, %cst_69 {dimension_numbers = #tpu.dot_dimension_numbers<[1], [0], [0], [1], [0, 0, 1, 1], [], []>} : vector<256x32xf32>, vector<32x32xf32>, vector<256x32xf32> -> vector<256x32xf32>
    %c0_70 = arith.constant 0 : index
    %c0_71 = arith.constant 0 : index
    %148 = vector.load %arg15[%c0_70, %c0_71] : memref<1x32xf32, #tpu.memory_space<vmem>>, vector<1x32xf32>
    %149 = vector.broadcast %148 : vector<1x32xf32> to vector<256x32xf32>
    %150 = arith.addf %147, %149 : vector<256x32xf32>
    %c0_72 = arith.constant 0 : index
    %c0_73 = arith.constant 0 : index
    %c0_74 = arith.constant 0 : index
    %151 = vector.load %arg17[%c0_72, %c0_73, %c0_74] : memref<1x256x32xf32, #tpu.memory_space<vmem>>, vector<1x256x32xf32>
    %152 = vector.shape_cast %151 : vector<1x256x32xf32> to vector<256x32xf32>
    %153 = vector.shape_cast %150 : vector<256x32xf32> to vector<1x256x32xf32>
    tpu.vector_store %arg17[%c0_72, %c0_73, %c0_74], %153 {strides = array<i32>} : memref<1x256x32xf32, #tpu.memory_space<vmem>>, vector<1x256x32xf32>,
    return
  }
  func.func @transform_0(%arg0: i32) -> (i32, i32, i32) {
    %c0_i32 = arith.constant 0 : i32
    %c0_i32_0 = arith.constant 0 : i32
    %c0_i32_1 = arith.constant 0 : i32
    return %arg0, %c0_i32, %c0_i32_0 : i32, i32, i32
  }
  func.func @transform_1(%arg0: i32) -> (i32, i32) {
    %c0_i32 = arith.constant 0 : i32
    %c0_i32_0 = arith.constant 0 : i32
    %c0_i32_1 = arith.constant 0 : i32
    return %c0_i32, %c0_i32_0 : i32, i32
  }
  func.func @transform_2(%arg0: i32) -> (i32, i32) {
    %c0_i32 = arith.constant 0 : i32
    %c0_i32_0 = arith.constant 0 : i32
    %c0_i32_1 = arith.constant 0 : i32
    return %c0_i32, %c0_i32_0 : i32, i32
  }
  func.func @transform_3(%arg0: i32) -> (i32, i32) {
    %c0_i32 = arith.constant 0 : i32
    %c0_i32_0 = arith.constant 0 : i32
    %c0_i32_1 = arith.constant 0 : i32
    return %c0_i32, %c0_i32_0 : i32, i32
  }
  func.func @transform_4(%arg0: i32) -> (i32, i32) {
    %c0_i32 = arith.constant 0 : i32
    %c0_i32_0 = arith.constant 0 : i32
    %c0_i32_1 = arith.constant 0 : i32
    return %c0_i32, %c0_i32_0 : i32, i32
  }
  func.func @transform_5(%arg0: i32) -> (i32, i32) {
    %c0_i32 = arith.constant 0 : i32
    %c0_i32_0 = arith.constant 0 : i32
    %c0_i32_1 = arith.constant 0 : i32
    return %c0_i32, %c0_i32_0 : i32, i32
  }
  func.func @transform_6(%arg0: i32) -> (i32, i32) {
    %c0_i32 = arith.constant 0 : i32
    %c0_i32_0 = arith.constant 0 : i32
    %c0_i32_1 = arith.constant 0 : i32
    return %c0_i32, %c0_i32_0 : i32, i32
  }
  func.func @transform_7(%arg0: i32) -> (i32, i32) {
    %c0_i32 = arith.constant 0 : i32
    %c0_i32_0 = arith.constant 0 : i32
    %c0_i32_1 = arith.constant 0 : i32
    return %c0_i32, %c0_i32_0 : i32, i32
  }
  func.func @transform_8(%arg0: i32) -> (i32, i32) {
    %c0_i32 = arith.constant 0 : i32
    %c0_i32_0 = arith.constant 0 : i32
    %c0_i32_1 = arith.constant 0 : i32
    return %c0_i32, %c0_i32_0 : i32, i32
  }
  func.func @transform_9(%arg0: i32) -> (i32, i32) {
    %c0_i32 = arith.constant 0 : i32
    %c0_i32_0 = arith.constant 0 : i32
    %c0_i32_1 = arith.constant 0 : i32
    return %c0_i32, %c0_i32_0 : i32, i32
  }
  func.func @transform_10(%arg0: i32) -> (i32, i32) {
    %c0_i32 = arith.constant 0 : i32
    %c0_i32_0 = arith.constant 0 : i32
    %c0_i32_1 = arith.constant 0 : i32
    return %c0_i32, %c0_i32_0 : i32, i32
  }
  func.func @transform_11(%arg0: i32) -> (i32, i32) {
    %c0_i32 = arith.constant 0 : i32
    %c0_i32_0 = arith.constant 0 : i32
    %c0_i32_1 = arith.constant 0 : i32
    return %c0_i32, %c0_i32_0 : i32, i32
  }
  func.func @transform_12(%arg0: i32) -> (i32, i32) {
    %c0_i32 = arith.constant 0 : i32
    %c0_i32_0 = arith.constant 0 : i32
    %c0_i32_1 = arith.constant 0 : i32
    return %c0_i32, %c0_i32_0 : i32, i32
  }
  func.func @transform_13(%arg0: i32) -> (i32, i32) {
    %c0_i32 = arith.constant 0 : i32
    %c0_i32_0 = arith.constant 0 : i32
    %c0_i32_1 = arith.constant 0 : i32
    return %c0_i32, %c0_i32_0 : i32, i32
  }
  func.func @transform_14(%arg0: i32) -> (i32, i32) {
    %c0_i32 = arith.constant 0 : i32
    %c0_i32_0 = arith.constant 0 : i32
    %c0_i32_1 = arith.constant 0 : i32
    return %c0_i32, %c0_i32_0 : i32, i32
  }
  func.func @transform_15(%arg0: i32) -> (i32, i32) {
    %c0_i32 = arith.constant 0 : i32
    %c0_i32_0 = arith.constant 0 : i32
    %c0_i32_1 = arith.constant 0 : i32
    return %c0_i32, %c0_i32_0 : i32, i32
  }
  func.func @transform_16(%arg0: i32) -> (i32, i32, i32) {
    %c0_i32 = arith.constant 0 : i32
    %c0_i32_0 = arith.constant 0 : i32
    %c0_i32_1 = arith.constant 0 : i32
    return %arg0, %c0_i32, %c0_i32_0 : i32, i32, i32
  }
}

</mosaic_0001>

<bundles_post_ra>
// kernel: tile.48
= control target key start
LH: loop header
LB: loop body
LE: loop exit
PB: predicated region body
PF: predicated region fallthrough
CT: control target
= control target key end

     0   :  { %s22_s0 = inlined_call_operand.vmem [shape: f32[16], index: 0, kind: input, shape index: {}]   ;;  %s23_s1 = inlined_call_operand.vmem [shape: f32[4,16], index: 1, kind: output, shape index: {}]  }
   0x1   :  { %v4_v0 = vld [vmem:[%s22_s0] ss:$0 sm:$0xff] }
   0x2   :  { %5 = vst [vmem:[%s23_s1] sm:$0xf] %v4_v0 }

// kernel: tile.39
= control target key start
LH: loop header
LB: loop body
LE: loop exit
PB: predicated region body
PF: predicated region fallthrough
CT: control target
= control target key end

     0   :  { %s37_s8 = smov 16   ;;  %s38_s9 = smov 32   ;;  %vm7_vm0 = vcmask 130048   ;;  %vm13_vm1 = vcmask 523648   ;;  %vm19_vm2 = vcmask 392448   ;;  %vm25_vm3 = vcmask 261248   ;;  %s55_s0 = inlined_call_operand.vmem [shape: f32[4,16], index: 0, kind: input, shape index: {}]   ;;  %s56_s1 = inlined_call_operand.vmem [shape: f32[64], index: 1, kind: output, shape index: {}]  }
   0x1   :  { %v4_v0 = vld [vmem:[%s55_s0] sm:$0xf]  ;;  %s36_s0 = smov 48  }
   0x2   :  { %5 = vst [vmem:[#allocation1] sm:$0xf] %v4_v0 }
   0x9   :  { %v10_v1 = vld [vmem:[#allocation1 + $0x3] sm:$0x1]   ;;  %v22_v2 = vld [vmem:[#allocation1 + $0x1] sm:$0x1]   ;;  %v16_v3 = vld [vmem:[#allocation1 + $0x2] sm:$0x1]  }
   0xa   :  { %11 = vrot.lane.b32.xlu0 %v10_v1, %s36_s0  ;;  %23 = vrot.lane.b32.xlu1 %v22_v2, %s37_s8  ;;  %v6_v4 = vld [vmem:[#allocation1] sm:$0x1]  }
   0xb   :  { %8 = vst.msk [vmem:[#allocation0] sm:$0x1] %vm7_vm0, %v6_v4  }
  0x12   :  { %17 = vrot.lane.b32.xlu0 %v16_v3, %s38_s9 }
  0x7c   :  { %v12_v5 = vpop.permute.xlu0 %11   ;;  %v24_v6 = vpop.permute.xlu1 %23  }
  0x7d   :  { %14 = vst.msk [vmem:[#allocation0] sm:$0x1] %vm13_vm1, %v12_v5  }
  0x84   :  { %v18_v7 = vpop.permute.xlu0 %17  }
  0x85   :  { %20 = vst.msk [vmem:[#allocation0] sm:$0x1] %vm19_vm2, %v18_v7  }
  0x86   :  { %26 = vst.msk [vmem:[#allocation0] sm:$0x1] %vm25_vm3, %v24_v6  }
  0x8d   :  { %v29_v8 = vld [vmem:[#allocation0] sm:$0x1] }
  0x8e   :  { %32 = vst [vmem:[%s56_s1] sm:$0x1] %v29_v8 }

// kernel: tile.49
= control target key start
LH: loop header
LB: loop body
LE: loop exit
PB: predicated region body
PF: predicated region fallthrough
CT: control target
= control target key end

     0   :  { %s37_s8 = smov 16   ;;  %s38_s9 = smov 32   ;;  %vm7_vm0 = vcmask 130048   ;;  %vm13_vm1 = vcmask 523648   ;;  %vm19_vm2 = vcmask 392448   ;;  %vm25_vm3 = vcmask 261248   ;;  %s55_s0 = inlined_call_operand.vmem [shape: f32[4,16], index: 0, kind: input, shape index: {}]   ;;  %s56_s1 = inlined_call_operand.vmem [shape: f32[1,64], index: 1, kind: output, shape index: {}]  }
   0x1   :  { %v4_v0 = vld [vmem:[%s55_s0] sm:$0xf]  ;;  %s36_s0 = smov 48  }
   0x2   :  { %5 = vst [vmem:[#allocation1] sm:$0xf] %v4_v0 }
   0x9   :  { %v10_v1 = vld [vmem:[#allocation1 + $0x3] sm:$0x1]   ;;  %v22_v2 = vld [vmem:[#allocation1 + $0x1] sm:$0x1]   ;;  %v16_v3 = vld [vmem:[#allocation1 + $0x2] sm:$0x1]  }
   0xa   :  { %11 = vrot.lane.b32.xlu0 %v10_v1, %s36_s0  ;;  %23 = vrot.lane.b32.xlu1 %v22_v2, %s37_s8  ;;  %v6_v4 = vld [vmem:[#allocation1] sm:$0x1]  }
   0xb   :  { %8 = vst.msk [vmem:[#allocation0] sm:$0x1] %vm7_vm0, %v6_v4  }
  0x12   :  { %17 = vrot.lane.b32.xlu0 %v16_v3, %s38_s9 }
  0x7c   :  { %v12_v5 = vpop.permute.xlu0 %11   ;;  %v24_v6 = vpop.permute.xlu1 %23  }
  0x7d   :  { %14 = vst.msk [vmem:[#allocation0] sm:$0x1] %vm13_vm1, %v12_v5  }
  0x84   :  { %v18_v7 = vpop.permute.xlu0 %17  }
  0x85   :  { %20 = vst.msk [vmem:[#allocation0] sm:$0x1] %vm19_vm2, %v18_v7  }
  0x86   :  { %26 = vst.msk [vmem:[#allocation0] sm:$0x1] %vm25_vm3, %v24_v6  }
  0x8d   :  { %v29_v8 = vld [vmem:[#allocation0] sm:$0x1] }
  0x8e   :  { %32 = vst [vmem:[%s56_s1] sm:$0x1] %v29_v8 }

// kernel: tile.29
= control target key start
LH: loop header
LB: loop body
LE: loop exit
PB: predicated region body
PF: predicated region fallthrough
CT: control target
= control target key end

     0   :  { %s52_s14 = smov 16   ;;  %s53_s15 = smov 32   ;;  %vm19_vm0 = vcmask 130048   ;;  %vm25_vm1 = vcmask 523648   ;;  %vm31_vm2 = vcmask 392448   ;;  %vm37_vm3 = vcmask 261248   ;;  %s79_s0 = inlined_call_operand.vmem [shape: f32[4,4,16], index: 0, kind: input, shape index: {}]   ;;  %s80_s1 = inlined_call_operand.vmem [shape: f32[4,64], index: 1, kind: output, shape index: {}]  }
   0x1   :  { %v45_v0 = vld [vmem:[%s79_s0 + $0xc] sm:$0xf]  ;;  %v46_v1 = vld [vmem:[%s79_s0 + $0x8] sm:$0xf]  ;;  %v47_v2 = vld [vmem:[%s79_s0 + $0x4] sm:$0xf] }
   0x2   :  { %7 = vst [vmem:[#allocation1 + $0x18] sm:$0xf] %v45_v0  ;;  %v16_v3 = vld [vmem:[%s79_s0] sm:$0xf]  ;;  %s51_s0 = smov 48  }
   0x3   :  { %11 = vst [vmem:[#allocation1 + $0x10] sm:$0xf] %v46_v1 }
   0x4   :  { %15 = vst [vmem:[#allocation1 + $0x8] sm:$0xf] %v47_v2 }
   0x5   :  { %17 = vst [vmem:[#allocation1] sm:$0xf] %v16_v3 }
   0xc   :  { %v22_v4 = vld [vmem:[#allocation1 + $0x3] ss:$8 sm:$0xf]   ;;  %v34_v5 = vld [vmem:[#allocation1 + $0x1] ss:$8 sm:$0xf]  }
   0xd   :  { %23 = vrot.lane.b32.xlu0 %v22_v4, %s51_s0  ;;  %35 = vrot.lane.b32.xlu1 %v34_v5, %s52_s14  ;;  %v28_v6 = vld [vmem:[#allocation1 + $0x2] ss:$8 sm:$0xf]   ;;  %v18_v7 = vld [vmem:[#allocation1] ss:$8 sm:$0xf]  }
   0xe   :  { %20 = vst.msk [vmem:[#allocation0] sm:$0xf] %vm19_vm0, %v18_v7  }
  0x15   :  { %29 = vrot.lane.b32.xlu0 %v28_v6, %s53_s15 }
  0x7f   :  { %v24_v8 = vpop.permute.xlu0 %23   ;;  %v36_v9 = vpop.permute.xlu1 %35  }
  0x80   :  { %26 = vst.msk [vmem:[#allocation0] sm:$0xf] %vm25_vm1, %v24_v8  }
  0x87   :  { %v30_v10 = vpop.permute.xlu0 %29  }
  0x88   :  { %32 = vst.msk [vmem:[#allocation0] sm:$0xf] %vm31_vm2, %v30_v10  }
  0x89   :  { %38 = vst.msk [vmem:[#allocation0] sm:$0xf] %vm37_vm3, %v36_v9  }
  0x90   :  { %v41_v11 = vld [vmem:[#allocation0] sm:$0xf] }
  0x91   :  { %44 = vst [vmem:[%s80_s1] sm:$0xf] %v41_v11 }

// kernel: tile.44
= control target key start
LH: loop header
LB: loop body
LE: loop exit
PB: predicated region body
PF: predicated region fallthrough
CT: control target
= control target key end

     0   :  { %vm68_vm0 = vcmask 1047556   ;;  %s167_s9 = smov 32   ;;  %s168_s10 = smov 16   ;;  %vm70_vm1 = vcmask 130048   ;;  %vm89_vm2 = vcmask 523648   ;;  %vm110_vm3 = vcmask 392448   ;;  %s259_s0 = inlined_call_operand.vmem [shape: f32[16,4,16], index: 0, kind: input, shape index: {}]   ;;  %s260_s1 = inlined_call_operand.vmem [shape: f32[16,64], index: 1, kind: output, shape index: {}]  }
   0x1   :  { %v152_v0 = vld [vmem:[%s259_s0 + $0x1c] sm:$0xf]  ;;  %v153_v1 = vld [vmem:[%s259_s0 + $0x18] sm:$0xf]  ;;  %v154_v2 = vld [vmem:[%s259_s0 + $0x14] sm:$0xf] }
   0x2   :  { %39 = vst [vmem:[#allocation0 + $0x38] sm:$0xf] %v152_v0  ;;  %v155_v3 = vld [vmem:[%s259_s0 + $0x10] sm:$0xf]  ;;  %v156_v4 = vld [vmem:[%s259_s0 + $0xc] sm:$0xf] }
   0x3   :  { %43 = vst [vmem:[#allocation0 + $0x30] sm:$0xf] %v153_v1  ;;  %v157_v5 = vld [vmem:[%s259_s0 + $0x8] sm:$0xf]  ;;  %v158_v6 = vld [vmem:[%s259_s0 + $0x4] sm:$0xf] }
   0x4   :  { %47 = vst [vmem:[#allocation0 + $0x28] sm:$0xf] %v154_v2  ;;  %v64_v7 = vld [vmem:[%s259_s0] sm:$0xf]  ;;  %v144_v8 = vld [vmem:[%s259_s0 + $0x3c] sm:$0xf] }
   0x5   :  { %51 = vst [vmem:[#allocation0 + $0x20] sm:$0xf] %v155_v3  ;;  %v145_v9 = vld [vmem:[%s259_s0 + $0x38] sm:$0xf]  ;;  %v146_v10 = vld [vmem:[%s259_s0 + $0x34] sm:$0xf] }
   0x6   :  { %55 = vst [vmem:[#allocation0 + $0x18] sm:$0xf] %v156_v4  ;;  %v147_v11 = vld [vmem:[%s259_s0 + $0x30] sm:$0xf]  ;;  %v148_v12 = vld [vmem:[%s259_s0 + $0x2c] sm:$0xf] }
   0x7   :  { %59 = vst [vmem:[#allocation0 + $0x10] sm:$0xf] %v157_v5  ;;  %v149_v13 = vld [vmem:[%s259_s0 + $0x28] sm:$0xf]  ;;  %v150_v15 = vld [vmem:[%s259_s0 + $0x24] sm:$0xf] }
   0x8   :  { %63 = vst [vmem:[#allocation0 + $0x8] sm:$0xf] %v158_v6  ;;  %v151_v17 = vld [vmem:[%s259_s0 + $0x20] sm:$0xf]  ;;  %s166_s0 = smov 48   ;;  %vm131_vm4 = vcmask 261248  }
   0x9   :  { %65 = vst [vmem:[#allocation0] sm:$0xf] %v64_v7 }
   0xa   :  { %7 = vst [vmem:[#allocation0 + $0x78] sm:$0xf] %v144_v8 }
   0xb   :  { %11 = vst [vmem:[#allocation0 + $0x70] sm:$0xf] %v145_v9 }
   0xc   :  { %v84_v14 = vld [vmem:[#allocation0 + $0x3] ss:$8 sm:$0xf0]   ;;  %15 = vst [vmem:[#allocation0 + $0x68] sm:$0xf] %v146_v10 }
   0xd   :  { %v105_v16 = vld [vmem:[#allocation0 + $0x2] ss:$8 sm:$0xf0]   ;;  %19 = vst [vmem:[#allocation0 + $0x60] sm:$0xf] %v147_v11 }
   0xe   :  { %23 = vst [vmem:[#allocation0 + $0x58] sm:$0xf] %v148_v12  ;;  %v126_v18 = vld [vmem:[#allocation0 + $0x1] ss:$8 sm:$0xf0]  }
   0xf   :  { %27 = vst [vmem:[#allocation0 + $0x50] sm:$0xf] %v149_v13  ;;  %v67_v35 = vld [vmem:[#allocation0] ss:$8 sm:$0xf0]  }
  0x10   :  { %v82_v19 = vld [vmem:[#allocation0 + $0x3] ss:$8 sm:$0xf]   ;;  %v103_v20 = vld [vmem:[#allocation0 + $0x2] ss:$8 sm:$0xf]  }
  0x11   :  { %v86_v21 = vsel %vm68_vm0, %v84_v14, %v82_v19  ;;  %v107_v22 = vsel %vm68_vm0, %v105_v16, %v103_v20  ;;  %v124_v23 = vld [vmem:[#allocation0 + $0x1] ss:$8 sm:$0xf]   ;;  %31 = vst [vmem:[#allocation0 + $0x48] sm:$0xf] %v150_v15 }
  0x12   :  { %87 = vrot.lane.b32.xlu0 %v86_v21, %s166_s0  ;;  %108 = vrot.lane.b32.xlu1 %v107_v22, %s167_s9  ;;  %v128_v24 = vsel %vm68_vm0, %v126_v18, %v124_v23  ;;  %35 = vst [vmem:[#allocation0 + $0x40] sm:$0xf] %v151_v17  ;;  %v66_v34 = vld [vmem:[#allocation0] ss:$8 sm:$0xf]  }
  0x13   :  { %129 = vrot.lane.b32.xlu2 %v128_v24, %s168_s10  ;;  %v69_v36 = vsel %vm68_vm0, %v67_v35, %v66_v34 }
  0x14   :  { %v94_v25 = vld [vmem:[#allocation0 + $0x43] ss:$8 sm:$0xf0]   ;;  %v115_v26 = vld [vmem:[#allocation0 + $0x42] ss:$8 sm:$0xf0]  }
  0x15   :  { %v136_v27 = vld [vmem:[#allocation0 + $0x41] ss:$8 sm:$0xf0]   ;;  %71 = vst.msk [vmem:[%s260_s1] sm:$0xff] %vm70_vm1, %v69_v36  }
  0x16   :  { %v75_v38 = vld [vmem:[#allocation0 + $0x40] ss:$8 sm:$0xf0]  }
  0x19   :  { %v92_v28 = vld [vmem:[#allocation0 + $0x43] ss:$8 sm:$0xf]   ;;  %v113_v29 = vld [vmem:[#allocation0 + $0x42] ss:$8 sm:$0xf]  }
  0x1a   :  { %v96_v30 = vsel %vm68_vm0, %v94_v25, %v92_v28  ;;  %v117_v31 = vsel %vm68_vm0, %v115_v26, %v113_v29  ;;  %v134_v32 = vld [vmem:[#allocation0 + $0x41] ss:$8 sm:$0xf]   ;;  %v73_v37 = vld [vmem:[#allocation0 + $0x40] ss:$8 sm:$0xf]  }
  0x1b   :  { %97 = vrot.lane.b32.xlu0 %v96_v30, %s166_s0  ;;  %118 = vrot.lane.b32.xlu1 %v117_v31, %s167_s9  ;;  %v138_v33 = vsel %vm68_vm0, %v136_v27, %v134_v32  ;;  %v77_v40 = vsel %vm68_vm0, %v75_v38, %v73_v37 }
  0x1c   :  { %139 = vrot.lane.b32.xlu2 %v138_v33, %s168_s10  ;;  %159 = vst.msk [vmem:[%s260_s1 + $0x8] sm:$0xff] %vm70_vm1, %v77_v40  }
  0x6d   :  { %v130_v39 = vpop.permute.xlu2 %129  }
  0x76   :  { %v140_v41 = vpop.permute.xlu2 %139  }
  0x84   :  { %v88_v42 = vpop.permute.xlu0 %87   ;;  %v109_v43 = vpop.permute.xlu1 %108  }
  0x85   :  { %90 = vst.msk [vmem:[%s260_s1] sm:$0xff] %vm89_vm2, %v88_v42  }
  0x86   :  { %111 = vst.msk [vmem:[%s260_s1] sm:$0xff] %vm110_vm3, %v109_v43  }
  0x87   :  { %132 = vst.msk [vmem:[%s260_s1] sm:$0xff] %vm131_vm4, %v130_v39  }
  0x8d   :  { %v98_v44 = vpop.permute.xlu0 %97   ;;  %v119_v45 = vpop.permute.xlu1 %118  }
  0x8e   :  { %160 = vst.msk [vmem:[%s260_s1 + $0x8] sm:$0xff] %vm89_vm2, %v98_v44  }
  0x8f   :  { %161 = vst.msk [vmem:[%s260_s1 + $0x8] sm:$0xff] %vm110_vm3, %v119_v45  }
  0x90   :  { %162 = vst.msk [vmem:[%s260_s1 + $0x8] sm:$0xff] %vm131_vm4, %v140_v41  }

// kernel: pvm_forward.1
= control target key start
LH: loop header
LB: loop body
LE: loop exit
PB: predicated region body
PF: predicated region fallthrough
CT: control target
= control target key end

     0   :  { %s14059_s0 = inlined_call_operand.vmem [shape: f32[2,256,32], index: 0, kind: input, shape index: {}]   ;;  %s14060_s1 = inlined_call_operand.vmem [shape: f32[1,32], index: 1, kind: input, shape index: {}]   ;;  %s14061_s2 = inlined_call_operand.vmem [shape: f32[1,32], index: 2, kind: input, shape index: {}]   ;;  %s14062_s3 = inlined_call_operand.vmem [shape: f32[32,128], index: 3, kind: input, shape index: {}]   ;;  %s14063_s4 = inlined_call_operand.vmem [shape: f32[4,64], index: 4, kind: input, shape index: {}]   ;;  %s14064_s5 = inlined_call_operand.vmem [shape: f32[1,64], index: 5, kind: input, shape index: {}]   ;;  %s14065_s6 = inlined_call_operand.vmem [shape: f32[64,192], index: 6, kind: input, shape index: {}]   ;;  %s14066_s7 = inlined_call_operand.vmem [shape: f32[1,192], index: 7, kind: input, shape index: {}]   ;;  %s14067_s8 = inlined_call_operand.vmem [shape: f32[16,64], index: 8, kind: input, shape index: {}]   ;;  %s14068_s9 = inlined_call_operand.vmem [shape: f32[1,64], index: 9, kind: input, shape index: {}]   ;;  %s14069_s10 = inlined_call_operand.vmem [shape: f32[16,64], index: 10, kind: input, shape index: {}]   ;;  %s14070_s11 = inlined_call_operand.vmem [shape: f32[64,64], index: 11, kind: input, shape index: {}]   ;;  %s14071_s12 = inlined_call_operand.vmem [shape: f32[64,32], index: 12, kind: input, shape index: {}]   ;;  %s14072_s13 = inlined_call_operand.vmem [shape: f32[32,32], index: 13, kind: input, shape index: {}]   ;;  %s14073_s14 = inlined_call_operand.vmem [shape: f32[1,32], index: 14, kind: input, shape index: {}]   ;;  %s14074_s15 = inlined_call_operand.<no memory space> [shape: f32[1,1], index: 15, kind: input, shape index: {}]   ;;  %s14075_s16 = inlined_call_operand.hbm [shape: f32[2,256,32], index: 16, kind: output, shape index: {}]  }
   0x1   :  { %14227 = sst [smem:[#allocation109_spill]] %s14059_s0  ;;  %v21_v0 = vstv %s14074_s15 }
   0x2   :  { %14228 = sst [smem:[#allocation110_spill]] %s14060_s1  ;;  %22 = vst [vmem:[#allocation7] sm:$0x1] %v21_v0 }
   0x3   :  { %23 = vsyncpa [#allocation9], 0 }
   0x4   :  { %25 = vsyncpa [#allocation9 + $0x1], 0  ;;  %s8249_s23 = smov 0   ;;  %s8251_s24 = smov 0  }
   0x5   :  { %s8253_s25 = smov 0   ;;  %s8255_s26 = smov 0  }
   0x6 LB: > { %14229 = sst [smem:[#allocation11_spill]] %s8138_s25  ;;  %s8270_s15 = sadd.s32 4294967295, %s8142_s26   ;;  %s8142_s26 = sphi %s8255_s26, %s14854_s26   ;;  %s8138_s25 = sphi %s8253_s25, %s14859_s25   ;;  %s8134_s24 = sphi %s8251_s24, %s14858_s24   ;;  %s8130_s23 = sphi %s8249_s23, %s14857_s23  }
   0x7   : > { %s7185_s27 = sadd.s32 4294967294, %s8142_s26   ;;  %s8274_s28 = sadd.s32 1, %s8142_s26  }
   0x8   : > { %14230 = sst [smem:[#allocation12_spill]] %s8274_s28  ;;  %s379_s29 = sadd.s32 1, %s8138_s25 }
   0x9   : > { %s376_s30 = ssub.s32 %s8142_s26, %s8274_s28  ;;  %p389_p0 = scmp.ne.s32.totalorder %s8138_s25, %s8134_s24 }
   0xa   : > { %p377_p1 = scmp.eq.s32.totalorder %s376_s30, 0  ;;  %p390_p2 = scmp.eq.s32.totalorder %s8270_s15, 1 }
   0xb   : > { %p395_p3 = scmp.ne.s32.totalorder %s8134_s24, %s8130_s23  ;;  %p396_p4 = scmp.eq.s32.totalorder %s7185_s27, 1 }
   0xc   : > { %s8285_s0 = scalar_select %p377_p1, %s8138_s25, %s379_s29  }
   0xd   : > { %p8287_p5 = por %p390_p2, %p389_p0  ;;  %p8291_p6 = por %p396_p4, %p395_p3 }
   0xe   : > { %14231 = sst [smem:[#allocation13_spill]] %s8285_s0  ;;  %p7188_p7 = scmp.ge.s32.totalorder %s8142_s26, 1 }
   0xf   : > { %p467_p8 = scmp.lt.s32.totalorder %s8142_s26, 3 }
  0x11   : > { %p468_p9 = pnand %p7188_p7, %p467_p8 }
  0x13   : > { %471 = sbr.rel (%p468_p9) target bundleno = 2414 (0x96e), region = 84 }
  0x18   : > { %p517_p10 = scmp.lt.s32.totalorder %s8270_s15, 1  ;;  %vm14219_vm0 = vcmask 261120   ;;  %s14234_s27 = sld [smem:[#allocation109_spill]]  ;;  %v8156_v15 = vmov 32.0  }
  0x19   : > { %7495 = vrcp.f32 %v8156_v15  ;;  %s14076_s30 = sand.u32 1, %s8134_s24   ;;  %s14236_s1 = sld [smem:[#allocation110_spill]] }
  0x1a   : > { %s518_s19 = scalar_select %p517_p10, %s8270_s15, 1 }
  0x1b   : > { %s14199_s25 = smov 64  }
  0x1c   : > { %s7390_s20 = sshll.u32 %s518_s19, 8  ;;  %s8396_s19 = sshll.u32 %s14076_s30, 8 }
  0x1d   : > { %s11658_s0 = scalar_lea.vmem [#allocation8], %s8396_s19  ;;  %s11664_s30 = smov 0  }
  0x1e   : > { %s8302_s29 = scalar_lea.vmem %s14234_s27, %s7390_s20 }
  0x1f   : > { %v526_v1 = vld [vmem:[%s8302_s29 + $0x10] sm:$0xff]  ;;  %v524_v2 = vld [vmem:[%s8302_s29] sm:$0xff]  ;;  %v525_v7 = vld [vmem:[%s8302_s29 + $0x8] sm:$0xff]  ;;  %v7496_v16 = vpop.eup %7495 }
  0x20   : > { %v8307_v3 = vld [vmem:[%s8302_s29 + $0x20] sm:$0xff]  ;;  %v563_v4 = vsel %vm14219_vm0, %v526_v1, 0.0  ;;  %v557_v5 = vsel %vm14219_vm0, %v524_v2, 0.0  ;;  %v527_v8 = vld [vmem:[%s8302_s29 + $0x18] sm:$0xff]  ;;  %v529_v9 = vld [vmem:[%s8302_s29 + $0x28] sm:$0xff]  ;;  %v560_v10 = vsel %vm14219_vm0, %v525_v7, 0.0  ;;  %vm658_vm1 = vweird.f32 %v7496_v16 }
  0x21   : > { %v569_v6 = vsel %vm14219_vm0, %v8307_v3, 0.0  ;;  %564 = vadd.xlane.f32.xlu1 %v563_v4  ;;  %558 = vadd.xlane.f32.xlu0 %v557_v5  ;;  %v566_v11 = vsel %vm14219_vm0, %v527_v8, 0.0  ;;  %v572_v12 = vsel %vm14219_vm0, %v529_v9, 0.0  ;;  %v530_v13 = vld [vmem:[%s8302_s29 + $0x30] sm:$0xff]  ;;  %v654_v17 = vmul.f32 32.0, %v7496_v16  ;;  %v8337_v37 = vld [vmem:[%s8302_s29 + $0x48] sm:$0xff] }
  0x22   : > { %570 = vadd.xlane.f32.xlu2 %v569_v6  ;;  %v575_v14 = vsel %vm14219_vm0, %v530_v13, 0.0  ;;  %v8342_v40 = vld [vmem:[%s8302_s29 + $0x38] sm:$0xff]  ;;  %v584_v42 = vsel %vm14219_vm0, %v8337_v37, 0.0  ;;  %v8363_v51 = vld [vmem:[%s8302_s29 + $0x40] sm:$0xff]  ;;  %v8377_v59 = vld [vmem:[%s8302_s29 + $0x50] sm:$0xff] }
  0x23   : > { %v655_v18 = vsub.f32 1.0, %v654_v17  ;;  %v578_v45 = vsel %vm14219_vm0, %v8342_v40, 0.0  ;;  %v581_v55 = vsel %vm14219_vm0, %v8363_v51, 0.0  ;;  %v8374_v58 = vld [vmem:[%s8302_s29 + $0x60] sm:$0xff]  ;;  %v587_v63 = vsel %vm14219_vm0, %v8377_v59, 0.0  ;;  %v8402_v5 = vld [vmem:[%s8302_s29 + $0x68] sm:$0xff] }
  0x24   : > { %v593_v61 = vsel %vm14219_vm0, %v8374_v58, 0.0  ;;  %v596_v6 = vsel %vm14219_vm0, %v8402_v5, 0.0 }
  0x25   : > { %v656_v19 = vmul.f32 %v7496_v16, %v655_v18 }
  0x27   : > { %v657_v20 = vadd.f32 %v7496_v16, %v656_v19 }
  0x29   : > { %561 = vadd.xlane.f32.xlu0 %v560_v10  ;;  %567 = vadd.xlane.f32.xlu1 %v566_v11  ;;  %v8321_v21 = vsel %vm658_vm1, %v7496_v16, %v657_v20  ;;  %v1338_v10 = vld [vmem:[%s14062_s3] sm:$0xff] }
  0x2a   : > { %573 = vadd.xlane.f32.xlu2 %v572_v12  ;;  %14235 = vst [vmem:[#allocation14_spill] sm:$0xff] %v8321_v21 }
  0x31   : > { %576 = vadd.xlane.f32.xlu1 %v575_v14 }
  0x94   : > { %v565_v22 = vpop.xlane.xlu1 %564  ;;  %v559_v23 = vpop.xlane.xlu0 %558 }
  0x95   : > { %v662_v24 = vmul.f32 %v8321_v21, %v565_v22  ;;  %v660_v25 = vmul.f32 %v8321_v21, %v559_v23  ;;  %v571_v26 = vpop.xlane.xlu2 %570 }
  0x96   : > { %v664_v50 = vmul.f32 %v8321_v21, %v571_v26 }
  0x97   : > { %v8325_v27 = vsub.f32 %v526_v1, %v662_v24  ;;  %v8327_v28 = vsub.f32 %v524_v2, %v660_v25  ;;  %v8392_v2 = vld [vmem:[%s8302_s29 + $0x58] sm:$0xff] }
  0x98   : > { %v8368_v54 = vsub.f32 %v8307_v3, %v664_v50  ;;  %v590_v4 = vsel %vm14219_vm0, %v8392_v2, 0.0 }
  0x99   : > { %v726_v29 = vmul.f32 %v8325_v27, %v8325_v27  ;;  %v724_v30 = vmul.f32 %v8327_v28, %v8327_v28 }
  0x9a   : > { %v728_v60 = vmul.f32 %v8368_v54, %v8368_v54 }
  0x9b   : > { %v762_v31 = vsel %vm14219_vm0, %v726_v29, 0.0  ;;  %v756_v32 = vsel %vm14219_vm0, %v724_v30, 0.0 }
  0x9c   : > { %763 = vadd.xlane.f32.xlu1 %v762_v31  ;;  %757 = vadd.xlane.f32.xlu0 %v756_v32  ;;  %v562_v33 = vpop.xlane.xlu0 %561  ;;  %v568_v34 = vpop.xlane.xlu1 %567  ;;  %v768_v0 = vsel %vm14219_vm0, %v728_v60, 0.0 }
  0x9d   : > { %v661_v35 = vmul.f32 %v8321_v21, %v562_v33  ;;  %v574_v36 = vpop.xlane.xlu2 %573  ;;  %v663_v38 = vmul.f32 %v8321_v21, %v568_v34 }
  0x9e   : > { %v665_v39 = vmul.f32 %v8321_v21, %v574_v36 }
  0x9f   : > { %v8344_v41 = vsub.f32 %v525_v7, %v661_v35  ;;  %v8350_v44 = vsub.f32 %v527_v8, %v663_v38  ;;  %v1341_v7 = vld [vmem:[%s14062_s3 + $0x18] sm:$0xff]  ;;  %v1340_v8 = vld [vmem:[%s14062_s3 + $0x10] sm:$0xff] }
  0xa0   : > { %v8348_v43 = vsub.f32 %v529_v9, %v665_v39  ;;  %1450 = vmatpush.msra.mxu0 %v1341_v7  ;;  %7392 = vmatpush.msra.mxu3 %v1341_v7  ;;  %v1339_v9 = vld [vmem:[%s14062_s3 + $0x8] sm:$0xff] }
  0xa1   : > { %v725_v46 = vmul.f32 %v8344_v41, %v8344_v41  ;;  %v727_v49 = vmul.f32 %v8350_v44, %v8350_v44 }
  0xa2   : > { %v729_v48 = vmul.f32 %v8348_v43, %v8348_v43  ;;  %1451 = vmatpush.msra.mxu0 %v1340_v8  ;;  %7393 = vmatpush.msra.mxu3 %v1340_v8 }
  0xa3   : > { %v759_v47 = vsel %vm14219_vm0, %v725_v46, 0.0  ;;  %v765_v53 = vsel %vm14219_vm0, %v727_v49, 0.0  ;;  %v8449_v49 = vld [vmem:[%s8302_s29 + $0x70] sm:$0xff] }
  0xa4   : > { %585 = vadd.xlane.f32.xlu1 %v584_v42  ;;  %579 = vadd.xlane.f32.xlu0 %v578_v45  ;;  %v771_v52 = vsel %vm14219_vm0, %v729_v48, 0.0  ;;  %v577_v56 = vpop.xlane.xlu1 %576 }
  0xa5   : > { %760 = vadd.xlane.f32.xlu2 %v759_v47  ;;  %v666_v57 = vmul.f32 %v8321_v21, %v577_v56  ;;  %1452 = vmatpush.msra.mxu0 %v1339_v9  ;;  %v8445_v47 = vld [vmem:[%s8302_s29 + $0x80] sm:$0xff] }
  0xa6   : > { %7394 = vmatpush.msra.mxu3 %v1339_v9  ;;  %v605_v60 = vsel %vm14219_vm0, %v8445_v47, 0.0 }
  0xa7   : > { %v8383_v62 = vsub.f32 %v530_v13, %v666_v57  ;;  %1453 = vmatpush.msra.mxu0 %v1338_v10 }
  0xa8   : > { %7395 = vmatpush.msra.mxu3 %v1338_v10 }
  0xa9   : > { %v730_v1 = vmul.f32 %v8383_v62, %v8383_v62 }
  0xab   : > { %v774_v3 = vsel %vm14219_vm0, %v730_v1, 0.0  ;;  %v8465_v1 = vld [vmem:[%s14236_s1] ss:$0 sm:$0xff] }
  0xac   : > { %772 = vadd.xlane.f32.xlu1 %v771_v52  ;;  %766 = vadd.xlane.f32.xlu0 %v765_v53  ;;  %14237 = vst [vmem:[#allocation15_spill] sm:$0xff] %v8465_v1 }
  0xad   : > { %582 = vadd.xlane.f32.xlu2 %v581_v55 }
  0xb4   : > { %594 = vadd.xlane.f32.xlu1 %v593_v61  ;;  %588 = vadd.xlane.f32.xlu0 %v587_v63 }
  0xb5   : > { %769 = vadd.xlane.f32.xlu2 %v768_v0  ;;  %v599_v0 = vsel %vm14219_vm0, %v8449_v49, 0.0 }
  0xbc   : > { %775 = vadd.xlane.f32.xlu0 %v774_v3 }
  0xbd   : > { %591 = vadd.xlane.f32.xlu2 %v590_v4 }
  0xc4   : > { %597 = vadd.xlane.f32.xlu0 %v596_v6 }
 0x10f   : > { %v764_v11 = vpop.xlane.xlu1 %763  ;;  %v758_v12 = vpop.xlane.xlu0 %757 }
 0x110   : > { %v854_v13 = vmul.f32 %v764_v11, %v8321_v21  ;;  %v852_v14 = vmul.f32 %v758_v12, %v8321_v21  ;;  %v8475_v11 = vld [vmem:[%s14061_s2] ss:$0 sm:$0xff] }
 0x111   : > { %14238 = vst [vmem:[#allocation16_spill] sm:$0xff] %v8475_v11 }
 0x112   : > { %v8420_v15 = vadd.f32 1e-05, %v854_v13  ;;  %v884_v16 = vadd.f32 1e-05, %v852_v14 }
 0x114   : > { %7497 = vrsqrt.f32 %v8420_v15  ;;  %vm922_vm3 = vweird.f32 %v884_v16  ;;  %vm942_vm7 = vweird.f32 %v8420_v15 }
 0x115   : > { %7499 = vrsqrt.f32 %v884_v16 }
 0x117   : > { %v586_v17 = vpop.xlane.xlu1 %585  ;;  %v580_v18 = vpop.xlane.xlu0 %579 }
 0x118   : > { %v669_v19 = vmul.f32 %v8321_v21, %v586_v17  ;;  %v761_v20 = vpop.xlane.xlu2 %760  ;;  %v667_v22 = vmul.f32 %v8321_v21, %v580_v18 }
 0x119   : > { %v853_v23 = vmul.f32 %v761_v20, %v8321_v21 }
 0x11a   : > { %v8426_v24 = vpop.eup %7497  ;;  %v8429_v25 = vsub.f32 %v8337_v37, %v669_v19  ;;  %v8432_v26 = vsub.f32 %v8342_v40, %v667_v22 }
 0x11b   : > { %v7500_v29 = vpop.eup %7499  ;;  %v937_v30 = vmul.f32 %v8426_v24, %v8420_v15  ;;  %v885_v31 = vadd.f32 1e-05, %v853_v23  ;;  %vm943_vm8 = vweird.f32 %v8426_v24 }
 0x11c   : > { %v917_v32 = vmul.f32 %v7500_v29, %v884_v16  ;;  %v733_v33 = vmul.f32 %v8429_v25, %v8429_v25  ;;  %v731_v34 = vmul.f32 %v8432_v26, %v8432_v26  ;;  %vm923_vm2 = vweird.f32 %v7500_v29  ;;  %vm8514_vm10 = vmor %vm942_vm7, %vm943_vm8 }
 0x11d   : > { %7501 = vrsqrt.f32 %v885_v31  ;;  %v938_v38 = vmul.f32 %v8426_v24, %v937_v30  ;;  %vm924_vm4 = vmor %vm922_vm3, %vm923_vm2  ;;  %vm932_vm5 = vweird.f32 %v885_v31 }
 0x11e   : > { %v918_v35 = vmul.f32 %v7500_v29, %v917_v32  ;;  %v783_v36 = vsel %vm14219_vm0, %v733_v33, 0.0  ;;  %v777_v37 = vsel %vm14219_vm0, %v731_v34, 0.0 }
 0x11f   : > { %v773_v39 = vpop.xlane.xlu1 %772  ;;  %784 = vadd.xlane.f32.xlu0 %v783_v36  ;;  %778 = vadd.xlane.f32.xlu2 %v777_v37  ;;  %v767_v40 = vpop.xlane.xlu0 %766  ;;  %v939_v55 = vmul.f32 0.5, %v938_v38 }
 0x120   : > { %v919_v42 = vmul.f32 0.5, %v918_v35  ;;  %v583_v45 = vpop.xlane.xlu2 %582  ;;  %v855_v46 = vmul.f32 %v767_v40, %v8321_v21  ;;  %v857_v56 = vmul.f32 %v773_v39, %v8321_v21 }
 0x121   : > { %v668_v48 = vmul.f32 %v8321_v21, %v583_v45  ;;  %v940_v6 = vsub.f32 1.5, %v939_v55  ;;  %v8536_v55 = vld [vmem:[%s8302_s29 + $0x98] sm:$0xff] }
 0x122   : > { %v920_v50 = vsub.f32 1.5, %v919_v42  ;;  %v8451_v52 = vadd.f32 1e-05, %v855_v46  ;;  %v8469_v7 = vadd.f32 1e-05, %v857_v56 }
 0x123   : > { %v7502_v53 = vpop.eup %7501  ;;  %v8455_v57 = vsub.f32 %v8363_v51, %v668_v48 }
 0x124   : > { %v921_v61 = vmul.f32 %v7500_v29, %v920_v50  ;;  %v927_v63 = vmul.f32 %v7502_v53, %v885_v31  ;;  %7503 = vrsqrt.f32 %v8451_v52  ;;  %vm933_vm6 = vweird.f32 %v7502_v53 }
 0x125   : > { %v732_v4 = vmul.f32 %v8455_v57, %v8455_v57  ;;  %vm8494_vm9 = vmor %vm932_vm5, %vm933_vm6  ;;  %7505 = vrsqrt.f32 %v8469_v7  ;;  %vm952_vm11 = vweird.f32 %v8451_v52  ;;  %vm972_vm2 = vweird.f32 %v8469_v7 }
 0x126   : > { %v925_v3 = vsel %vm924_vm4, %v7500_v29, %v921_v61  ;;  %v928_v51 = vmul.f32 %v7502_v53, %v927_v63 }
 0x127   : > { %v595_v8 = vpop.xlane.xlu1 %594  ;;  %606 = vadd.xlane.f32.xlu0 %v605_v60  ;;  %600 = vadd.xlane.f32.xlu2 %v599_v0  ;;  %v589_v9 = vpop.xlane.xlu0 %588  ;;  %v1236_v10 = vmul.f32 %v925_v3, %v8327_v28  ;;  %v780_v14 = vsel %vm14219_vm0, %v732_v4, 0.0 }
 0x128   : > { %v929_v12 = vmul.f32 0.5, %v928_v51  ;;  %v672_v13 = vmul.f32 %v8321_v21, %v595_v8  ;;  %v770_v16 = vpop.xlane.xlu2 %769  ;;  %v670_v17 = vmul.f32 %v8321_v21, %v589_v9  ;;  %781 = vadd.xlane.f32.xlu1 %v780_v14 }
 0x129   : > { %v856_v18 = vmul.f32 %v770_v16, %v8321_v21  ;;  %v1271_v28 = vmul.f32 %v8465_v1, %v1236_v10 }
 0x12a   : > { %v930_v19 = vsub.f32 1.5, %v929_v12  ;;  %v8485_v20 = vsub.f32 %v8374_v58, %v672_v13  ;;  %v8488_v22 = vsub.f32 %v8377_v59, %v670_v17  ;;  %v8490_v23 = vpop.eup %7503  ;;  %v8505_v58 = vld [vmem:[%s8302_s29 + $0x78] sm:$0xff]  ;;  %v941_v59 = vmul.f32 %v8426_v24, %v940_v6 }
 0x12b   : > { %v8499_v30 = vadd.f32 1e-05, %v856_v18  ;;  %v8502_v32 = vadd.f32 %v8475_v11, %v1271_v28  ;;  %v947_v34 = vmul.f32 %v8490_v23, %v8451_v52  ;;  %v602_v39 = vsel %vm14219_vm0, %v8505_v58, 0.0  ;;  %v8538_v56 = vpop.eup %7505 }
 0x12c   : > { %v931_v33 = vmul.f32 %v7502_v53, %v930_v19  ;;  %v736_v31 = vmul.f32 %v8485_v20, %v8485_v20  ;;  %v734_v36 = vmul.f32 %v8488_v22, %v8488_v22  ;;  %v945_v46 = vsel %vm8514_vm10, %v8426_v24, %v941_v59  ;;  %v8547_v24 = vld [vmem:[%s8302_s29 + $0x88] sm:$0xff] }
 0x12d   : > { %14241 = vst [vmem:[#allocation17_spill] sm:$0xff] %v8502_v32  ;;  %7507 = vrsqrt.f32 %v8499_v30  ;;  %7192 = vmatmul.msk.f32.vlgmr.msra.gmra.mxu0 %vm14219_vm0, %v8502_v32  ;;  %v948_v38 = vmul.f32 %v8490_v23, %v947_v34  ;;  %vm953_vm12 = vweird.f32 %v8490_v23  ;;  %v1238_v4 = vmul.f32 %v945_v46, %v8325_v27 }
 0x12e   : > { %v935_v37 = vsel %vm8494_vm9, %v7502_v53, %v931_v33  ;;  %v792_v15 = vsel %vm14219_vm0, %v736_v31, 0.0  ;;  %v786_v40 = vsel %vm14219_vm0, %v734_v36, 0.0  ;;  %v614_v6 = vsel %vm14219_vm0, %v8536_v55, 0.0  ;;  %vm8563_vm13 = vmor %vm952_vm11, %vm953_vm12  ;;  %v8588_v31 = vld [vmem:[%s8302_s29 + $0x90] sm:$0xff] }
 0x12f   : > { %793 = vadd.xlane.f32.xlu0 %v792_v15  ;;  %v776_v42 = vpop.xlane.xlu0 %775  ;;  %v1237_v45 = vmul.f32 %v935_v37, %v8344_v41  ;;  %v949_v48 = vmul.f32 0.5, %v948_v38  ;;  %787 = vadd.xlane.f32.xlu2 %v786_v40  ;;  %v967_v52 = vmul.f32 %v8538_v56, %v8469_v7  ;;  %v608_v10 = vsel %vm14219_vm0, %v8547_v24, 0.0 }
 0x130   : > { %v592_v50 = vpop.xlane.xlu2 %591  ;;  %v858_v53 = vmul.f32 %v776_v42, %v8321_v21  ;;  %603 = vadd.xlane.f32.xlu1 %v602_v39  ;;  %v1273_v16 = vmul.f32 %v8465_v1, %v1238_v4  ;;  %vm962_vm14 = vweird.f32 %v8499_v30  ;;  %vm973_vm3 = vweird.f32 %v8538_v56  ;;  %v8603_v42 = vld [vmem:[%s8302_s29 + $0xa0] sm:$0xff] }
 0x131   : > { %v671_v60 = vmul.f32 %v8321_v21, %v592_v50  ;;  %v1272_v61 = vmul.f32 %v8465_v1, %v1237_v45  ;;  %v950_v63 = vsub.f32 1.5, %v949_v48  ;;  %v968_v17 = vmul.f32 %v8538_v56, %v967_v52  ;;  %vm974_vm4 = vmor %vm972_vm2, %vm973_vm3 }
 0x132   : > { %v8544_v41 = vadd.f32 1e-05, %v858_v53  ;;  %v8585_v34 = vadd.f32 %v8475_v11, %v1273_v16  ;;  %v617_v53 = vsel %vm14219_vm0, %v8603_v42, 0.0 }
 0x133   : > { %v7508_v0 = vpop.eup %7507  ;;  %v8550_v3 = vsub.f32 %v8392_v2, %v671_v60  ;;  %v8553_v51 = vadd.f32 %v8475_v11, %v1272_v61  ;;  %v951_v8 = vmul.f32 %v8490_v23, %v950_v63  ;;  %v969_v35 = vmul.f32 0.5, %v968_v17 }
 0x134   : > { %v957_v9 = vmul.f32 %v7508_v0, %v8499_v30  ;;  %7509 = vrsqrt.f32 %v8544_v41  ;;  %vm963_vm15 = vweird.f32 %v7508_v0  ;;  %14247 = vst [vmem:[#allocation19_spill] sm:$0xff] %v8585_v34  ;;  %vm982_vm5 = vweird.f32 %v8544_v41 }
 0x135   : > { %14244 = vst [vmem:[#allocation18_spill] sm:$0xff] %v8553_v51  ;;  %7193 = vmatmul.msk.f32.gmra.mxu0 %vm14219_vm0, %v8553_v51  ;;  %v735_v27 = vmul.f32 %v8550_v3, %v8550_v3  ;;  %v955_v18 = vsel %vm8563_vm13, %v8490_v23, %v951_v8  ;;  %vm964_vm1 = vmor %vm962_vm14, %vm963_vm15  ;;  %vm1584_vm13 = vcmask 1042432  }
 0x136   : > { %v958_v12 = vmul.f32 %v7508_v0, %v957_v9  ;;  %v1239_v23 = vmul.f32 %v955_v18, %v8350_v44  ;;  %v970_v44 = vsub.f32 1.5, %v969_v35 }
 0x137   : > { %v789_v13 = vsel %vm14219_vm0, %v735_v27, 0.0  ;;  %v598_v14 = vpop.xlane.xlu0 %597  ;;  %615 = vadd.xlane.f32.xlu0 %v614_v6  ;;  %609 = vadd.xlane.f32.xlu2 %v608_v10 }
 0x138   : > { %v959_v28 = vmul.f32 0.5, %v958_v12  ;;  %v673_v19 = vmul.f32 %v8321_v21, %v598_v14  ;;  %790 = vadd.xlane.f32.xlu1 %v789_v13  ;;  %v1274_v15 = vmul.f32 %v8465_v1, %v1239_v23  ;;  %v971_v48 = vmul.f32 %v8538_v56, %v970_v44 }
 0x13a   : > { %v7510_v29 = vpop.eup %7509  ;;  %v960_v59 = vsub.f32 1.5, %v959_v28  ;;  %v8582_v33 = vsub.f32 %v8402_v5, %v673_v19  ;;  %v611_v5 = vsel %vm14219_vm0, %v8588_v31, 0.0  ;;  %v8606_v45 = vadd.f32 %v8475_v11, %v1274_v15 }
 0x13b   : > { %v977_v37 = vmul.f32 %v7510_v29, %v8544_v41  ;;  %v975_v60 = vsel %vm974_vm4, %v8538_v56, %v971_v48  ;;  %vm983_vm6 = vweird.f32 %v7510_v29 }
 0x13c   : > { %v961_v36 = vmul.f32 %v7508_v0, %v960_v59  ;;  %v737_v38 = vmul.f32 %v8582_v33, %v8582_v33  ;;  %14248 = vst [vmem:[#allocation20_spill] sm:$0xff] %v8606_v45  ;;  %v1241_v63 = vmul.f32 %v975_v60, %v8348_v43  ;;  %vm984_vm7 = vmor %vm982_vm5, %vm983_vm6  ;;  %vm1819_vm6 = vcmask 1046528  }
 0x13d   : > { %7194 = vmatmul.msk.f32.gmra.mxu0 %vm14219_vm0, %v8585_v34  ;;  %v978_v40 = vmul.f32 %v7510_v29, %v977_v37  ;;  %v8969_v34 = vld [vmem:[%s8302_s29 + $0xe0] sm:$0xff] }
 0x13e   : > { %v795_v30 = vsel %vm14219_vm0, %v737_v38, 0.0  ;;  %v965_v39 = vsel %vm964_vm1, %v7508_v0, %v961_v36  ;;  %v1276_v4 = vmul.f32 %v8465_v1, %v1241_v63  ;;  %v8673_v63 = vld [vmem:[%s8302_s29 + $0xb8] sm:$0xff] }
 0x13f   : > { %796 = vadd.xlane.f32.xlu2 %v795_v30  ;;  %v1240_v46 = vmul.f32 %v965_v39, %v8368_v54  ;;  %v979_v50 = vmul.f32 0.5, %v978_v40 }
 0x140   : > { %612 = vadd.xlane.f32.xlu1 %v611_v5  ;;  %v8625_v56 = vadd.f32 %v8475_v11, %v1276_v4 }
 0x141   : > { %v1275_v7 = vmul.f32 %v8465_v1, %v1240_v46  ;;  %v980_v61 = vsub.f32 1.5, %v979_v50 }
 0x142   : > { %14250 = vst [vmem:[#allocation22_spill] sm:$0xff] %v8625_v56 }
 0x143   : > { %v8618_v54 = vadd.f32 %v8475_v11, %v1275_v7  ;;  %v981_v0 = vmul.f32 %v7510_v29, %v980_v61  ;;  %v8667_v7 = vld [vmem:[%s8302_s29 + $0xa8] sm:$0xff] }
 0x145   : > { %7195 = vmatmul.msk.f32.gmra.mxu0 %vm14219_vm0, %v8606_v45  ;;  %14249 = vst [vmem:[#allocation21_spill] sm:$0xff] %v8618_v54  ;;  %v985_v6 = vsel %vm984_vm7, %v7510_v29, %v981_v0 }
 0x146   : > { %v1242_v52 = vmul.f32 %v985_v6, %v8383_v62 }
 0x147   : > { %618 = vadd.xlane.f32.xlu2 %v617_v53 }
 0x148   : > { %v1277_v41 = vmul.f32 %v8465_v1, %v1242_v52 }
 0x14a   : > { %v8632_v43 = vadd.f32 %v8475_v11, %v1277_v41 }
 0x14c   : > { %14251 = vst [vmem:[#allocation23_spill] sm:$0xff] %v8632_v43 }
 0x14d   : > { %7196 = vmatmul.msk.f32.gmra.mxu0 %vm14219_vm0, %v8618_v54 }
 0x155   : > { %7197 = vmatmul.msk.f32.gmra.mxu0 %vm14219_vm0, %v8625_v56 }
 0x15d   : > { %7198 = vmatmul.msk.f32.gmra.mxu0 %vm14219_vm0, %v8632_v43 }
 0x192   : > { %v779_v8 = vpop.xlane.xlu2 %778  ;;  %v785_v9 = vpop.xlane.xlu0 %784 }
 0x193   : > { %v859_v2 = vmul.f32 %v779_v8, %v8321_v21  ;;  %v861_v27 = vmul.f32 %v785_v9, %v8321_v21  ;;  %v620_v8 = vsel %vm14219_vm0, %v8667_v7, 0.0 }
 0x195   : > { %v891_v10 = vadd.f32 1e-05, %v859_v2  ;;  %v8638_v12 = vadd.f32 1e-05, %v861_v27  ;;  %v626_v27 = vsel %vm14219_vm0, %v8673_v63, 0.0 }
 0x197   : > { %7511 = vrsqrt.f32 %v891_v10  ;;  %vm992_vm9 = vweird.f32 %v891_v10  ;;  %vm1012_vm11 = vweird.f32 %v8638_v12 }
 0x198   : > { %7513 = vrsqrt.f32 %v8638_v12 }
 0x19a   : > { %v601_v62 = vpop.xlane.xlu2 %600  ;;  %v607_v13 = vpop.xlane.xlu0 %606 }
 0x19b   : > { %v674_v14 = vmul.f32 %v8321_v21, %v601_v62  ;;  %v676_v16 = vmul.f32 %v8321_v21, %v607_v13  ;;  %v782_v17 = vpop.xlane.xlu1 %781 }
 0x19c   : > { %v860_v28 = vmul.f32 %v782_v17, %v8321_v21 }
 0x19d   : > { %v7512_v18 = vpop.eup %7511  ;;  %v8645_v19 = vsub.f32 %v8449_v49, %v674_v14  ;;  %v8648_v29 = vsub.f32 %v8445_v47, %v676_v16 }
 0x19e   : > { %v8650_v59 = vpop.eup %7513  ;;  %v987_v23 = vmul.f32 %v7512_v18, %v891_v10  ;;  %v8654_v36 = vadd.f32 1e-05, %v860_v28  ;;  %vm993_vm8 = vweird.f32 %v7512_v18 }
 0x19f   : > { %v1007_v35 = vmul.f32 %v8650_v59, %v8638_v12  ;;  %v738_v37 = vmul.f32 %v8645_v19, %v8645_v19  ;;  %v740_v5 = vmul.f32 %v8648_v29, %v8648_v29  ;;  %vm994_vm10 = vmor %vm992_vm9, %vm993_vm8  ;;  %vm1013_vm12 = vweird.f32 %v8650_v59 }
 0x1a0   : > { %v988_v38 = vmul.f32 %v7512_v18, %v987_v23  ;;  %7515 = vrsqrt.f32 %v8654_v36  ;;  %vm8704_vm14 = vmor %vm1012_vm11, %vm1013_vm12  ;;  %vm1002_vm15 = vweird.f32 %v8654_v36  ;;  %vm2016_vm8 = vcmask 1045504  }
 0x1a1   : > { %v1008_v49 = vmul.f32 %v8650_v59, %v1007_v35  ;;  %v798_v47 = vsel %vm14219_vm0, %v738_v37, 0.0  ;;  %v804_v15 = vsel %vm14219_vm0, %v740_v5, 0.0  ;;  %v8713_v37 = vld [vmem:[%s8302_s29 + $0xb0] sm:$0xff] }
 0x1a2   : > { %v989_v30 = vmul.f32 0.5, %v988_v38  ;;  %799 = vadd.xlane.f32.xlu1 %v798_v47  ;;  %v794_v44 = vpop.xlane.xlu0 %793  ;;  %v788_v40 = vpop.xlane.xlu2 %787  ;;  %805 = vadd.xlane.f32.xlu2 %v804_v15  ;;  %v8725_v15 = vld [vmem:[%s8302_s29 + $0xc0] sm:$0xff] }
 0x1a3   : > { %v1009_v39 = vmul.f32 0.5, %v1008_v49  ;;  %v864_v46 = vmul.f32 %v794_v44, %v8321_v21  ;;  %v604_v50 = vpop.xlane.xlu1 %603  ;;  %v862_v53 = vmul.f32 %v788_v40, %v8321_v21  ;;  %v549_v44 = vld [vmem:[%s8302_s29 + $0xc8] sm:$0xff] }
 0x1a4   : > { %v990_v48 = vsub.f32 1.5, %v989_v30  ;;  %v675_v60 = vmul.f32 %v8321_v21, %v604_v50 }
 0x1a5   : > { %v8670_v61 = vadd.f32 1e-05, %v864_v46  ;;  %v8675_v4 = vadd.f32 1e-05, %v862_v53  ;;  %v1010_v52 = vsub.f32 1.5, %v1009_v39 }
 0x1a6   : > { %v991_v0 = vmul.f32 %v7512_v18, %v990_v48  ;;  %v8677_v6 = vpop.eup %7515  ;;  %v8680_v41 = vsub.f32 %v8505_v58, %v675_v60  ;;  %v1551_v58 = vld [vmem:[%s14063_s4] sm:$0xf] }
 0x1a7   : > { %7517 = vrsqrt.f32 %v8670_v61  ;;  %v997_v2 = vmul.f32 %v8677_v6, %v8654_v36  ;;  %v1011_v16 = vmul.f32 %v8650_v59, %v1010_v52  ;;  %vm1003_vm1 = vweird.f32 %v8677_v6 }
 0x1a8   : > { %v995_v9 = vsel %vm994_vm10, %v7512_v18, %v991_v0  ;;  %7519 = vrsqrt.f32 %v8675_v4  ;;  %v739_v10 = vmul.f32 %v8680_v41, %v8680_v41  ;;  %v8710_v23 = vperm.slane %v1551_v58, 0  ;;  %vm8742_vm2 = vmor %vm1002_vm15, %vm1003_vm1 }
 0x1a9   : > { %v1243_v62 = vmul.f32 %v995_v9, %v8432_v26  ;;  %v998_v13 = vmul.f32 %v8677_v6, %v997_v2  ;;  %v8718_v49 = vperm.slane %v1551_v58, 1  ;;  %v8732_v48 = vperm.slane %v1551_v58, 2 }
 0x1aa   : > { %v8699_v14 = vpop.f32.mrf.mxu0  ;;  %621 = vadd.xlane.f32.xlu1 %v620_v8  ;;  %v801_v12 = vsel %vm14219_vm0, %v739_v10, 0.0  ;;  %v610_v17 = vpop.xlane.xlu2 %609  ;;  %627 = vadd.xlane.f32.xlu2 %v626_v27  ;;  %v1015_v53 = vsel %vm8704_vm14, %v8650_v59, %v1011_v16  ;;  %v8748_v52 = vperm.slane %v1551_v58, 3  ;;  %v623_v8 = vsel %vm14219_vm0, %v8713_v37, 0.0 }
 0x1ab   : > { %v1278_v18 = vmul.f32 %v8465_v1, %v1243_v62  ;;  %v999_v26 = vmul.f32 0.5, %v998_v13  ;;  %802 = vadd.xlane.f32.xlu0 %v801_v12  ;;  %v791_v35 = vpop.xlane.xlu1 %790  ;;  %v1585_v5 = vrot.slane %v8699_v14, 5  ;;  %v677_v50 = vmul.f32 %v8321_v21, %v610_v17  ;;  %v616_v62 = vpop.xlane.xlu0 %615  ;;  %v550_v13 = vld [vmem:[%s8302_s29 + $0xd0] sm:$0xff] }
 0x1ac   : > { %v863_v47 = vmul.f32 %v791_v35, %v8321_v21  ;;  %v629_v36 = vsel %vm14219_vm0, %v8725_v15, 0.0  ;;  %v8759_v2 = vsel %vm14219_vm0, %v549_v44, 0.0  ;;  %vm1042_vm3 = vweird.f32 %v8670_v61  ;;  %v8780_v44 = vld [vmem:[%s8302_s29 + $0xd8] sm:$0xff] }
 0x1ad   : > { %v8715_v38 = vpop.eup %7517  ;;  %v8722_v30 = vadd.f32 %v8475_v11, %v1278_v18  ;;  %v1000_v40 = vsub.f32 1.5, %v999_v26  ;;  %v1681_v58 = vsel %vm1584_vm13, 0.0, %v1585_v5  ;;  %vm1022_vm4 = vweird.f32 %v8675_v4 }
 0x1ae   : > { %v8728_v39 = vpop.eup %7519  ;;  %v1037_v46 = vmul.f32 %v8715_v38, %v8670_v61  ;;  %v8764_v10 = vadd.f32 1e-05, %v863_v47  ;;  %v8772_v12 = vsub.f32 %v8547_v24, %v677_v50  ;;  %v1245_v18 = vmul.f32 %v1015_v53, %v8429_v25 }
 0x1af   : > { %14254 = vst [vmem:[#allocation24_spill] sm:$0xff] %v8722_v30  ;;  %v1017_v0 = vmul.f32 %v8728_v39, %v8675_v4  ;;  %7199 = vmatmul.msk.f32.gmra.mxu0 %vm14219_vm0, %v8722_v30  ;;  %v1001_v59 = vmul.f32 %v8677_v6, %v1000_v40  ;;  %v1688_v24 = vmul.f32 %v8710_v23, %v1681_v58  ;;  %v8792_v50 = vsel %vm14219_vm0, %v550_v13, 0.0 }
 0x1b0   : > { %v1038_v9 = vmul.f32 %v8715_v38, %v1037_v46  ;;  %7521 = vrsqrt.f32 %v8764_v10  ;;  %v741_v25 = vmul.f32 %v8772_v12, %v8772_v12  ;;  %v679_v46 = vmul.f32 %v8321_v21, %v616_v62 }
 0x1b1   : > { %v1018_v27 = vmul.f32 %v8728_v39, %v1017_v0  ;;  %v1005_v16 = vsel %vm8742_vm2, %v8677_v6, %v1001_v59  ;;  %v8785_v6 = vld [vmem:[%s14064_s5] ss:$0 sm:$0xff]  ;;  %vm1023_vm5 = vweird.f32 %v8728_v39  ;;  %vm1043_vm7 = vweird.f32 %v8715_v38 }
 0x1b2   : > { %v8774_v17 = vpop.f32.mrf.mxu0  ;;  %v1039_v26 = vmul.f32 0.5, %v1038_v9  ;;  %v797_v47 = vpop.xlane.xlu2 %796  ;;  %630 = vadd.xlane.f32.xlu2 %v629_v36  ;;  %v1244_v59 = vmul.f32 %v1005_v16, %v8455_v57  ;;  %v1280_v9 = vmul.f32 %v8465_v1, %v1245_v18  ;;  %v638_v36 = vsel %vm14219_vm0, %v8780_v44, 0.0  ;;  %vm8838_vm9 = vmor %vm1022_vm4, %vm1023_vm5 }
 0x1b3   : > { %14257 = vst [vmem:[#allocation25_spill] sm:$0xff] %v8774_v17  ;;  %v1019_v28 = vmul.f32 0.5, %v1018_v27  ;;  %v1586_v35 = vrot.slane %v8774_v17, 5  ;;  %624 = vadd.xlane.f32.xlu0 %v623_v8  ;;  %v613_v40 = vpop.xlane.xlu1 %612  ;;  %v865_v0 = vmul.f32 %v797_v47, %v8321_v21  ;;  %v8799_v8 = vmul.f32 %v8718_v49, %v1681_v58  ;;  %vm8864_vm11 = vmor %vm1042_vm3, %vm1043_vm7 }
 0x1b4   : > { %v678_v60 = vmul.f32 %v8321_v21, %v613_v40  ;;  %v1040_v27 = vsub.f32 1.5, %v1039_v26  ;;  %v8811_v57 = vadd.f32 %v8785_v6, %v1688_v24  ;;  %v8814_v16 = vmul.f32 %v8732_v48, %v1681_v58 }
 0x1b5   : > { %v1020_v53 = vsub.f32 1.5, %v1019_v28  ;;  %v1587_v62 = vsel %vm1584_vm13, %v1585_v5, %v1586_v35  ;;  %v807_v28 = vsel %vm14219_vm0, %v741_v25, 0.0  ;;  %v8817_v18 = vsub.f32 %v8536_v55, %v679_v46  ;;  %v3126_v5 = vld [vmem:[%s14065_s6 + $0x78] sm:$0xff] }
 0x1b6   : > { %v8806_v13 = vsub.f32 %v8588_v31, %v678_v60  ;;  %808 = vadd.xlane.f32.xlu1 %v807_v28  ;;  %v3125_v31 = vld [vmem:[%s14065_s6 + $0x70] sm:$0xff]  ;;  %v8825_v26 = vpop.eup %7521  ;;  %v8829_v24 = vmul.f32 %v8748_v52, %v1681_v58  ;;  %v8831_v40 = vadd.f32 1e-05, %v865_v0  ;;  %v1279_v55 = vmul.f32 %v8465_v1, %v1244_v59  ;;  %3351 = vmatpush.msra.mxu2 %v3126_v5 }
 0x1b7   : > { %v1021_v47 = vmul.f32 %v8728_v39, %v1020_v53  ;;  %3238 = vmatpush.msra.mxu1 %v3125_v31  ;;  %v1820_v46 = vrot.slane %v8799_v8, 1  ;;  %v1027_v58 = vmul.f32 %v8825_v26, %v8764_v10  ;;  %v8846_v53 = vmul.f32 %v8718_v49, %v1587_v62  ;;  %7396 = vmatpush.msrb.mxu3 %v3125_v31 }
 0x1b8   : > { %v742_v0 = vmul.f32 %v8806_v13, %v8806_v13  ;;  %v8853_v4 = vmul.f32 %v8715_v38, %v1040_v27  ;;  %7523 = vrsqrt.f32 %v8831_v40  ;;  %v8857_v59 = vadd.f32 %v8475_v11, %v1279_v55 }
 0x1b9   : > { %vm2213_vm10 = vcmask 1044480   ;;  %v1028_v27 = vmul.f32 %v8825_v26, %v1027_v58  ;;  %v1689_v31 = vmul.f32 %v8710_v23, %v1587_v62  ;;  %v8871_v55 = vmul.f32 %v8732_v48, %v1587_v62 }
 0x1ba   : > { %v8848_v60 = vpop.f32.mrf.mxu0  ;;  %14261 = vst [vmem:[#allocation27_spill] sm:$0xff] %v8857_v59  ;;  %v619_v28 = vpop.xlane.xlu2 %618  ;;  %639 = vadd.xlane.f32.xlu2 %v638_v36  ;;  %v8874_v8 = vmul.f32 %v8748_v52, %v1587_v62  ;;  %v1025_v61 = vsel %vm8838_vm9, %v8728_v39, %v1021_v47  ;;  %7200 = vmatmul.msk.f32.gmra.mxu0 %vm14219_vm0, %v8857_v59  ;;  %v810_v30 = vsel %vm14219_vm0, %v742_v0, 0.0  ;;  %v3123_v62 = vld [vmem:[%s14065_s6 + $0x60] sm:$0xff]  ;;  %v2017_v39 = vrot.slane %v8814_v16, 2 }
 0x1bb   : > { %14260 = vst [vmem:[#allocation26_spill] sm:$0xff] %v8848_v60  ;;  %633 = vadd.xlane.f32.xlu0 %v8759_v2  ;;  %v14264_v36 = vrot.slane %v8848_v60, 5  ;;  %v680_v43 = vmul.f32 %v8321_v21, %v619_v28  ;;  %v3124_v2 = vld [vmem:[%s14065_s6 + $0x68] sm:$0xff]  ;;  %v2214_v47 = vrot.slane %v8829_v24, 3  ;;  %v1029_v25 = vmul.f32 0.5, %v1028_v27  ;;  %3239 = vmatpush.msra.mxu1 %v3123_v62 }
 0x1bc   : > { %3352 = vmatpush.msra.mxu2 %v3124_v2  ;;  %vm1032_vm12 = vweird.f32 %v8764_v10  ;;  %v8905_v28 = vadd.f32 %v8475_v11, %v1280_v9  ;;  %7397 = vmatpush.msrb.mxu3 %v3123_v62  ;;  %vm1033_vm14 = vweird.f32 %v8825_v26  ;;  %v1246_v27 = vmul.f32 %v1025_v61, %v8488_v22  ;;  %v3122_v2 = vld [vmem:[%s14065_s6 + $0x58] sm:$0xff]  ;;  %v3119_v9 = vld [vmem:[%s14065_s6 + $0x40] sm:$0xff] }
 0x1bd   : > { %v1589_v58 = vsel %vm1584_vm13, %v1586_v35, %v14264_v36  ;;  %v1030_v16 = vsub.f32 1.5, %v1029_v25  ;;  %v3121_v36 = vld [vmem:[%s14065_s6 + $0x50] sm:$0xff]  ;;  %v8922_v25 = vadd.f32 %v8785_v6, %v1689_v31  ;;  %v8926_v22 = vsub.f32 %v8603_v42, %v680_v43  ;;  %v3120_v35 = vld [vmem:[%s14065_s6 + $0x48] sm:$0xff]  ;;  %vm8949_vm15 = vmor %vm1032_vm12, %vm1033_vm14 }
 0x1be   : > { %v8902_v0 = vmul.f32 %v8718_v49, %v1589_v58  ;;  %14265 = vst [vmem:[#allocation28_spill] sm:$0xff] %v8905_v28  ;;  %811 = vadd.xlane.f32.xlu1 %v810_v30  ;;  %v8919_v62 = vpop.eup %7523  ;;  %v743_v61 = vmul.f32 %v8817_v18, %v8817_v18  ;;  %3240 = vmatpush.msra.mxu1 %v3121_v36  ;;  %v3117_v42 = vld [vmem:[%s14065_s6 + $0x30] sm:$0xff]  ;;  %v14267_v43 = vrot.slane %v8846_v53, 1  ;;  %v14270_v45 = vrot.slane %v8871_v55, 2 }
 0x1bf   : > { %3353 = vmatpush.msra.mxu2 %v3122_v2  ;;  %v1031_v24 = vmul.f32 %v8825_v26, %v1030_v16  ;;  %v1047_v31 = vmul.f32 %v8919_v62, %v8831_v40  ;;  %v1690_v59 = vmul.f32 %v8710_v23, %v1589_v58  ;;  %7398 = vmatpush.msrb.mxu3 %v3121_v36  ;;  %vm1052_vm1 = vweird.f32 %v8831_v40 }
 0x1c0   : > { %v1822_v2 = vsel %vm1819_vm6, %v1820_v46, %v14267_v43  ;;  %v1823_v56 = vrot.slane %v8902_v0, 1  ;;  %v8955_v54 = vmul.f32 %v8732_v48, %v1589_v58  ;;  %3241 = vmatpush.msra.mxu1 %v3119_v9  ;;  %v3118_v46 = vld [vmem:[%s14065_s6 + $0x38] sm:$0xff]  ;;  %v8964_v43 = vmul.f32 %v8748_v52, %v1589_v58 }
 0x1c1   : > { %3354 = vmatpush.msra.mxu2 %v3120_v35  ;;  %v1917_v36 = vadd.f32 %v1822_v2, %v8811_v57  ;;  %v1048_v10 = vmul.f32 %v8919_v62, %v1047_v31  ;;  %v1281_v0 = vmul.f32 %v8465_v1, %v1246_v27  ;;  %v2019_v35 = vsel %vm2016_vm8, %v2017_v39, %v14270_v45  ;;  %v3115_v27 = vld [vmem:[%s14065_s6 + $0x20] sm:$0xff]  ;;  %v3116_v45 = vld [vmem:[%s14065_s6 + $0x28] sm:$0xff] }
 0x1c2   : > { %v8937_v30 = vpop.f32.mrf.mxu0  ;;  %7201 = vmatmul.msk.f32.gmra.mxu0 %vm14219_vm0, %v8905_v28  ;;  %v14272_v31 = vrot.slane %v8848_v60, 5  ;;  %v813_v2 = vsel %vm14219_vm0, %v743_v61, 0.0  ;;  %3242 = vmatpush.msra.mxu1 %v3117_v42  ;;  %v1035_v28 = vsel %vm8949_vm15, %v8825_v26, %v1031_v24  ;;  %v641_v26 = vsel %vm14219_vm0, %v8969_v34, 0.0  ;;  %v3114_v24 = vld [vmem:[%s14065_s6 + $0x18] sm:$0xff] }
 0x1c3   : > { %14266 = vst [vmem:[#allocation29_spill] sm:$0xff] %v8937_v30  ;;  %636 = vadd.xlane.f32.xlu0 %v8792_v50  ;;  %v14271_v57 = vrot.slane %v8937_v30, 5  ;;  %v744_v50 = vmul.f32 %v8926_v22, %v8926_v22  ;;  %v2114_v39 = vadd.f32 %v2019_v35, %v1917_v36  ;;  %3355 = vmatpush.msra.mxu2 %v3118_v46  ;;  %v2020_v36 = vrot.slane %v8955_v54, 2 }
 0x1c4   : > { %7399 = vmatpush.msrb.mxu3 %v3119_v9  ;;  %3243 = vmatpush.msra.mxu1 %v3115_v27  ;;  %v14274_v46 = vrot.slane %v8846_v53, 1  ;;  %v1049_v32 = vmul.f32 0.5, %v1048_v10  ;;  %vm1053_vm2 = vweird.f32 %v8919_v62  ;;  %vm14220_vm14 = vcmask 523264  }
 0x1c5   : > { %v1591_v58 = vsel %vm1584_vm13, %v14272_v31, %v14271_v57  ;;  %v3113_v57 = vld [vmem:[%s14065_s6 + $0x10] sm:$0xff]  ;;  %v14273_v31 = vrot.slane %v8874_v8, 3  ;;  %3356 = vmatpush.msra.mxu2 %v3116_v45  ;;  %v816_v53 = vsel %vm14219_vm0, %v744_v50, 0.0  ;;  %vm9077_vm3 = vmor %vm1052_vm1, %vm1053_vm2 }
 0x1c6   : > { %v8995_v61 = vmul.f32 %v8718_v49, %v1591_v58  ;;  %v1824_v35 = vsel %vm1819_vm6, %v14274_v46, %v1823_v56  ;;  %v9017_v54 = vmul.f32 %v8732_v48, %v1591_v58  ;;  %814 = vadd.xlane.f32.xlu1 %v813_v2  ;;  %3244 = vmatpush.msra.mxu1 %v3113_v57  ;;  %v1050_v60 = vsub.f32 1.5, %v1049_v32 }
 0x1c7   : > { %v2216_v51 = vsel %vm2213_vm10, %v2214_v47, %v14273_v31  ;;  %v1722_v47 = vadd.f32 %v8785_v6, %v1690_v59  ;;  %v3111_v31 = vld [vmem:[%s14065_s6] sm:$0xff]  ;;  %v3112_v59 = vld [vmem:[%s14065_s6 + $0x8] sm:$0xff]  ;;  %7400 = vmatpush.msrb.mxu3 %v3117_v42  ;;  %v9031_v2 = vmul.f32 %v8748_v52, %v1591_v58  ;;  %3357 = vmatpush.msra.mxu2 %v3114_v24  ;;  %v14277_v42 = vrot.slane %v8871_v55, 2 }
 0x1c8   : > { %v9009_v16 = vadd.f32 %v2216_v51, %v2114_v39  ;;  %v1825_v9 = vrot.slane %v8995_v61, 1  ;;  %v2217_v51 = vrot.slane %v8964_v43, 3  ;;  %v1247_v39 = vmul.f32 %v1035_v28, %v8550_v3  ;;  %3245 = vmatpush.msra.mxu1 %v3111_v31  ;;  %v9047_v24 = vld [vmem:[%s8302_s29 + $0xe8] sm:$0xff] }
 0x1c9   : > { %v9034_v43 = vadd.f32 %v8475_v11, %v1281_v0  ;;  %v1918_v3 = vadd.f32 %v1824_v35, %v8922_v25  ;;  %v2021_v61 = vsel %vm2016_vm8, %v14277_v42, %v2020_v36  ;;  %7401 = vmatpush.msrb.mxu3 %v3115_v27  ;;  %v1691_v0 = vmul.f32 %v8710_v23, %v1591_v58 }
 0x1ca   : > { %v2343_v10 = vand.u32 2147483647, %v9009_v16  ;;  %v9036_v50 = vpop.f32.mrf.mxu0  ;;  %v1826_v46 = vsel %vm1819_vm6, %v1823_v56, %v1825_v9  ;;  %v2022_v17 = vrot.slane %v9017_v54, 2  ;;  %3358 = vmatpush.msra.mxu2 %v3112_v59  ;;  %v14278_v55 = vrot.slane %v8937_v30, 5 }
 0x1cb   : > { %14275 = vst [vmem:[#allocation30_spill] sm:$0xff] %v9034_v43  ;;  %v1592_v28 = vrot.slane %v9036_v50, 5  ;;  %817 = vadd.xlane.f32.xlu0 %v816_v53  ;;  %v2115_v25 = vadd.f32 %v2021_v61, %v1918_v3  ;;  %7202 = vmatmul.msk.f32.gmra.mxu0 %vm14219_vm0, %v9034_v43  ;;  %v1282_v56 = vmul.f32 %v8465_v1, %v1247_v39  ;;  %v2219_v58 = vrot.slane %v9031_v2, 3 }
 0x1cc   : > { %14276 = vst [vmem:[#allocation31_spill] sm:$0xff] %v9036_v50  ;;  %v2375_v45 = vsub.f32 0.0, %v2343_v10  ;;  %v1919_v32 = vadd.f32 %v1826_v46, %v1722_v47  ;;  %7402 = vmatpush.msrb.mxu3 %v3113_v57  ;;  %v14279_v59 = vrot.slane %v8874_v8, 3  ;;  %v644_v3 = vsel %vm14219_vm0, %v9047_v24, 0.0 }
 0x1cd   : > { %v1593_v35 = vsel %vm1584_vm13, %v14278_v55, %v1592_v28  ;;  %v1051_v47 = vmul.f32 %v8919_v62, %v1050_v60  ;;  %v14280_v39 = vsel %vm8864_vm11, %v8715_v38, %v8853_v4  ;;  %v2023_v2 = vsel %vm2016_vm8, %v2020_v36, %v2022_v17 }
 0x1ce   : > { %v2407_v27 = vmul.f32 1.442695, %v2375_v45  ;;  %v1757_v54 = vmul.f32 %v8718_v49, %v1593_v35  ;;  %v1954_v53 = vmul.f32 %v8732_v48, %v1593_v35  ;;  %v2218_v10 = vsel %vm2213_vm10, %v14279_v59, %v2217_v51  ;;  %7403 = vmatpush.msrb.mxu3 %v3111_v31  ;;  %642 = vadd.xlane.f32.xlu1 %v641_v26 }
 0x1cf   : > { %v9063_v42 = vadd.f32 %v2218_v10, %v2115_v25  ;;  %v1248_v8 = vmul.f32 %v14280_v39, %v8485_v20  ;;  %v1723_v60 = vadd.f32 %v8785_v6, %v1691_v0  ;;  %v2151_v26 = vmul.f32 %v8748_v52, %v1593_v35 }
 0x1d0   : > { %7525 = vpow2.f32 %v2407_v27  ;;  %v1827_v57 = vrot.slane %v1757_v54, 1  ;;  %v2116_v31 = vadd.f32 %v2023_v2, %v1919_v32  ;;  %v2024_v61 = vrot.slane %v1954_v53, 2 }
 0x1d1   : > { %v2344_v5 = vand.u32 2147483647, %v9063_v42  ;;  %v9085_v20 = vadd.f32 %v8475_v11, %v1282_v56  ;;  %v2220_v4 = vsel %vm2213_vm10, %v2217_v51, %v2219_v58  ;;  %v1055_v55 = vsel %vm9077_vm3, %v8919_v62, %v1051_v47 }
 0x1d2   : > { %v9087_v38 = vpop.f32.mrf.mxu0  ;;  %v1828_v40 = vsel %vm1819_vm6, %v1825_v9, %v1827_v57  ;;  %v9092_v25 = vadd.f32 %v2220_v4, %v2116_v31  ;;  %v1692_v27 = vmul.f32 %v8710_v23, %v1593_v35  ;;  %v1283_v56 = vmul.f32 %v8465_v1, %v1248_v8 }
 0x1d3   : > { %14283 = vst [vmem:[#allocation32_spill] sm:$0xff] %v9085_v20  ;;  %v1594_v36 = vrot.slane %v9087_v38, 5  ;;  %v2376_v46 = vsub.f32 0.0, %v2344_v5  ;;  %v1920_v0 = vadd.f32 %v1828_v40, %v1723_v60  ;;  %645 = vadd.xlane.f32.xlu0 %v644_v3  ;;  %v2221_v51 = vrot.slane %v2151_v26, 3  ;;  %7203 = vmatmul.msk.f32.gmra.mxu0 %vm14219_vm0, %v9085_v20 }
 0x1d4   : > { %14284 = vst [vmem:[#allocation33_spill] sm:$0xff] %v9087_v38  ;;  %v2345_v53 = vand.u32 2147483647, %v9092_v25  ;;  %v2025_v10 = vsel %vm2016_vm8, %v2022_v17, %v2024_v61  ;;  %v1724_v2 = vadd.f32 %v8785_v6, %v1692_v27  ;;  %v1249_v45 = vmul.f32 %v1055_v55, %v8582_v33 }
 0x1d5   : > { %v1595_v9 = vsel %vm1584_vm13, %v1592_v28, %v1594_v36  ;;  %v2409_v54 = vmul.f32 1.442695, %v2376_v46  ;;  %v2117_v39 = vadd.f32 %v2025_v10, %v1920_v0  ;;  %v2222_v60 = vsel %vm2213_vm10, %v2219_v58, %v2221_v51 }
 0x1d6   : > { %v9099_v32 = vpop.eup %7525  ;;  %v1758_v59 = vmul.f32 %v8718_v49, %v1595_v9  ;;  %v1955_v62 = vmul.f32 %v8732_v48, %v1595_v9  ;;  %v9108_v35 = vmul.f32 %v8748_v52, %v1595_v9  ;;  %v2377_v47 = vsub.f32 0.0, %v2345_v53 }
 0x1d7   : > { %v9112_v3 = vadd.f32 1.0, %v9099_v32  ;;  %7527 = vpow2.f32 %v2409_v54  ;;  %v9121_v31 = vadd.f32 %v2222_v60, %v2117_v39  ;;  %v9125_v40 = vadd.f32 %v8475_v11, %v1283_v56 }
 0x1d8   : > { %v1829_v8 = vrot.slane %v1758_v59, 1  ;;  %v2026_v28 = vrot.slane %v1955_v62, 2  ;;  %v2223_v26 = vrot.slane %v9108_v35, 3  ;;  %v2411_v17 = vmul.f32 1.442695, %v2377_v47 }
 0x1d9   : > { %7529 = vrcp.f32 %v9112_v3  ;;  %14286 = vst [vmem:[#allocation35_spill] sm:$0xff] %v9125_v40  ;;  %v2346_v33 = vand.u32 2147483647, %v9121_v31  ;;  %v1284_v27 = vmul.f32 %v8465_v1, %v1249_v45  ;;  %v1693_v54 = vmul.f32 %v8710_v23, %v1595_v9 }
 0x1da   : > { %v9119_v5 = vpop.f32.mrf.mxu0  ;;  %v1830_v4 = vsel %vm1819_vm6, %v1827_v57, %v1829_v8  ;;  %7531 = vpow2.f32 %v2411_v17  ;;  %v2027_v58 = vsel %vm2016_vm8, %v2024_v61, %v2026_v28  ;;  %v2224_v59 = vsel %vm2213_vm10, %v2221_v51, %v2223_v26 }
 0x1db   : > { %14285 = vst [vmem:[#allocation34_spill] sm:$0xff] %v9119_v5  ;;  %v14095_v46 = vrot.slane %v9119_v5, 5  ;;  %v1921_v0 = vadd.f32 %v1830_v4, %v1724_v2  ;;  %7204 = vmatmul.msk.f32.gmra.mxu0 %vm14219_vm0, %v9125_v40  ;;  %v1725_v45 = vadd.f32 %v8785_v6, %v1693_v54  ;;  %v9164_v60 = vadd.f32 %v8475_v11, %v1284_v27 }
 0x1dc   : > { %v2546_v54 = vand.u32 2147483648, %v9112_v3  ;;  %vm2540_vm5 = vweird.f32 %v9112_v3  ;;  %vm2471_vm11 = vcmp.ge.f32.partialorder %v9009_v16, 0.0 }
 0x1dd   : > { %v9130_v55 = vpop.eup %7527  ;;  %v9137_v57 = vsel %vm1584_vm13, %v1594_v36, %v14095_v46  ;;  %v2118_v56 = vadd.f32 %v2027_v58, %v1921_v0  ;;  %v2378_v36 = vsub.f32 0.0, %v2346_v33  ;;  %14287 = vst [vmem:[#allocation36_spill] sm:$0xff] %v9164_v60 }
 0x1de   : > { %v9143_v53 = vmul.f32 %v8718_v49, %v9137_v57  ;;  %v9147_v61 = vmul.f32 %v8732_v48, %v9137_v57  ;;  %v2504_v35 = vadd.f32 1.0, %v9130_v55  ;;  %v9156_v9 = vmul.f32 %v8748_v52, %v9137_v57 }
 0x1df   : > { %v7530_v62 = vpop.eup %7529  ;;  %v9151_v10 = vadd.f32 %v2224_v59, %v2118_v56  ;;  %v2413_v17 = vmul.f32 1.442695, %v2378_v36  ;;  %v2544_v36 = vand.u32 2147483647, %v9112_v3 }
 0x1e0   : > { %v14094_v47 = vrot.slane %v9143_v53, 1  ;;  %v2536_v39 = vmul.f32 %v7530_v62, %v9112_v3  ;;  %7533 = vrcp.f32 %v2504_v35  ;;  %v9159_v2 = vpop.eup %7531  ;;  %v14101_v51 = vrot.slane %v9147_v61, 2 }
 0x1e1   : > { %v9167_v0 = vadd.f32 1.0, %v9159_v2  ;;  %v2347_v33 = vand.u32 2147483647, %v9151_v10  ;;  %7535 = vpow2.f32 %v2413_v17  ;;  %vm2541_vm4 = vweird.f32 %v7530_v62 }
 0x1e2   : > { %v2537_v4 = vsub.f32 1.0, %v2536_v39  ;;  %v1832_v58 = vsel %vm1819_vm6, %v1829_v8, %v14094_v47  ;;  %v2029_v8 = vsel %vm2016_vm8, %v2026_v28, %v14101_v51  ;;  %vm2542_vm7 = vmor %vm2540_vm5, %vm2541_vm4  ;;  %vm2545_vm9 = vcmp.eq.f32.partialorder %v2544_v36, 8.507059e+37 }
 0x1e3   : > { %v1922_v59 = vadd.f32 %v1832_v58, %v1725_v45  ;;  %7205 = vmatmul.msk.f32.gmra.mxu0 %vm14219_vm0, %v9164_v60  ;;  %7537 = vrcp.f32 %v9167_v0  ;;  %v2379_v39 = vsub.f32 0.0, %v2347_v33  ;;  %v2547_v45 = vor.u32 1.1754944e-38, %v2546_v54 }
 0x1e4   : > { %v2538_v27 = vmul.f32 %v7530_v62, %v2537_v4  ;;  %v14288_v4 = vrot.slane %v9156_v9, 3  ;;  %v2561_v54 = vand.u32 2147483648, %v2504_v35  ;;  %vm2555_vm15 = vweird.f32 %v2504_v35 }
 0x1e5   : > { %v2119_v17 = vadd.f32 %v2029_v8, %v1922_v59  ;;  %v2415_v56 = vmul.f32 1.442695, %v2379_v39  ;;  %v2576_v36 = vand.u32 2147483648, %v9167_v0  ;;  %vm2570_vm4 = vweird.f32 %v9167_v0 }
 0x1e6   : > { %v7534_v47 = vpop.eup %7533  ;;  %v2539_v46 = vadd.f32 %v7530_v62, %v2538_v27  ;;  %v2226_v11 = vsel %vm2213_vm10, %v2223_v26, %v14288_v4  ;;  %v2559_v27 = vand.u32 2147483647, %v2504_v35  ;;  %vm2472_vm5 = vcmp.ge.f32.partialorder %v9063_v42, 0.0 }
 0x1e7   : > { %v2551_v58 = vmul.f32 %v7534_v47, %v2504_v35  ;;  %v9186_v33 = vadd.f32 %v2226_v11, %v2119_v17  ;;  %v9188_v60 = vpop.eup %7535  ;;  %7539 = vpow2.f32 %v2415_v56  ;;  %vm2556_vm12 = vweird.f32 %v7534_v47 }
 0x1e8   : > { %v2543_v1 = vsel %vm2542_vm7, %v7530_v62, %v2539_v46  ;;  %v9192_v39 = vadd.f32 1.0, %v9188_v60  ;;  %vm2557_vm1 = vmor %vm2555_vm15, %vm2556_vm12  ;;  %vm2560_vm2 = vcmp.eq.f32.partialorder %v2559_v27, 8.507059e+37  ;;  %v2562_v56 = vor.u32 1.1754944e-38, %v2561_v54 }
 0x1e9   : > { %v2548_v28 = vsel %vm2545_vm9, %v2547_v45, %v2543_v1  ;;  %v2552_v51 = vsub.f32 1.0, %v2551_v58  ;;  %v7538_v3 = vpop.eup %7537  ;;  %v2348_v8 = vand.u32 2147483647, %v9186_v33  ;;  %v2574_v35 = vand.u32 2147483647, %v9167_v0 }
 0x1ea   : > { %v3015_v59 = vmul.f32 %v9099_v32, %v2548_v28  ;;  %v2566_v11 = vmul.f32 %v7538_v3, %v9167_v0  ;;  %7541 = vrcp.f32 %v9192_v39  ;;  %vm2571_vm3 = vweird.f32 %v7538_v3 }
 0x1eb   : > { %v2553_v26 = vmul.f32 %v7534_v47, %v2552_v51  ;;  %v2380_v17 = vsub.f32 0.0, %v2348_v8  ;;  %vm2572_vm7 = vmor %vm2570_vm4, %vm2571_vm3  ;;  %v2577_v8 = vor.u32 1.1754944e-38, %v2576_v36  ;;  %vm2575_vm9 = vcmp.eq.f32.partialorder %v2574_v35, 8.507059e+37 }
 0x1ec   : > { %v3047_v46 = vsel %vm2471_vm11, %v2548_v28, %v3015_v59  ;;  %v2567_v62 = vsub.f32 1.0, %v2566_v11  ;;  %v2591_v0 = vand.u32 2147483648, %v9192_v39  ;;  %vm2473_vm11 = vcmp.ge.f32.partialorder %v9092_v25, 0.0 }
 0x1ed   : > { %v9199_v1 = vmul.f32 %v3047_v46, %v9009_v16  ;;  %v2554_v32 = vadd.f32 %v7534_v47, %v2553_v26  ;;  %v9202_v51 = vpop.eup %7539  ;;  %v2417_v59 = vmul.f32 1.442695, %v2380_v17  ;;  %vm2585_vm15 = vweird.f32 %v9192_v39 }
 0x1ee   : > { %v2568_v16 = vmul.f32 %v7538_v3, %v2567_v62  ;;  %v2507_v4 = vadd.f32 1.0, %v9202_v51  ;;  %vm2474_vm4 = vcmp.ge.f32.partialorder %v9121_v31, 0.0 }
 0x1ef   : > { %14289 = vst [vmem:[#allocation37_spill] sm:$0xff] %v9199_v1  ;;  %7224 = vmatmul.msk.f32.vlgmr.msra.gmra.mxu1 %vm14220_vm14, %v9199_v1  ;;  %7256 = vmatmul.msk.f32.vlgmr.msra.gmra.mxu2 %vm14220_vm14, %v9199_v1  ;;  %v2558_v45 = vsel %vm2557_vm1, %v7534_v47, %v2554_v32 }
 0x1f0   : > { %v2563_v58 = vsel %vm2560_vm2, %v2562_v56, %v2558_v45  ;;  %v2569_v27 = vadd.f32 %v7538_v3, %v2568_v16  ;;  %v7542_v54 = vpop.eup %7541  ;;  %7543 = vrcp.f32 %v2507_v4  ;;  %v2592_v45 = vor.u32 1.1754944e-38, %v2591_v0 }
 0x1f1   : > { %v3016_v28 = vmul.f32 %v9130_v55, %v2563_v58  ;;  %v2581_v11 = vmul.f32 %v7542_v54, %v9192_v39  ;;  %7545 = vpow2.f32 %v2417_v59  ;;  %vm2586_vm12 = vweird.f32 %v7542_v54 }
 0x1f2   : > { %v2573_v26 = vsel %vm2572_vm7, %v7538_v3, %v2569_v27  ;;  %vm2587_vm1 = vmor %vm2585_vm15, %vm2586_vm12  ;;  %v2606_v59 = vand.u32 2147483648, %v2507_v4 }
 0x1f3   : > { %v3048_v47 = vsel %vm2472_vm5, %v2563_v58, %v3016_v28  ;;  %v2578_v32 = vsel %vm2575_vm9, %v2577_v8, %v2573_v26  ;;  %v2582_v62 = vsub.f32 1.0, %v2581_v11  ;;  %v2604_v11 = vand.u32 2147483647, %v2507_v4 }
 0x1f4   : > { %v9215_v46 = vmul.f32 %v3048_v47, %v9063_v42  ;;  %v3017_v55 = vmul.f32 %v9159_v2, %v2578_v32  ;;  %v2589_v42 = vand.u32 2147483647, %v9192_v39  ;;  %vm2600_vm5 = vweird.f32 %v2507_v4 }
 0x1f5   : > { %v2583_v3 = vmul.f32 %v7542_v54, %v2582_v62  ;;  %vm2605_vm9 = vcmp.eq.f32.partialorder %v2604_v11, 8.507059e+37 }
 0x1f6   : > { %14290 = vst [vmem:[#allocation38_spill] sm:$0xff] %v9215_v46  ;;  %v7544_v56 = vpop.eup %7543  ;;  %v3049_v36 = vsel %vm2473_vm11, %v2578_v32, %v3017_v55  ;;  %vm2590_vm2 = vcmp.eq.f32.partialorder %v2589_v42, 8.507059e+37  ;;  %vm2475_vm11 = vcmp.ge.f32.partialorder %v9151_v10, 0.0 }
 0x1f7   : > { %7225 = vmatmul.msk.f32.gmra.mxu1 %vm14220_vm14, %v9215_v46  ;;  %7257 = vmatmul.msk.f32.gmra.mxu2 %vm14220_vm14, %v9215_v46  ;;  %v2584_v17 = vadd.f32 %v7542_v54, %v2583_v3  ;;  %v2596_v2 = vmul.f32 %v7544_v56, %v2507_v4  ;;  %v7546_v16 = vpop.eup %7545  ;;  %v9227_v35 = vmul.f32 %v3049_v36, %v9092_v25  ;;  %vm2601_vm3 = vweird.f32 %v7544_v56 }
 0x1f8   : > { %v2508_v8 = vadd.f32 1.0, %v7546_v16  ;;  %vm2602_vm7 = vmor %vm2600_vm5, %vm2601_vm3  ;;  %vm2476_vm3 = vcmp.ge.f32.partialorder %v9186_v33, 0.0 }
 0x1f9   : > { %14291 = vst [vmem:[#allocation39_spill] sm:$0xff] %v9227_v35  ;;  %v2588_v58 = vsel %vm2587_vm1, %v7542_v54, %v2584_v17  ;;  %v2597_v28 = vsub.f32 1.0, %v2596_v2  ;;  %v2607_v54 = vor.u32 1.1754944e-38, %v2606_v59 }
 0x1fa   : > { %v2593_v27 = vsel %vm2590_vm2, %v2592_v45, %v2588_v58  ;;  %7547 = vrcp.f32 %v2508_v8  ;;  %v2619_v17 = vand.u32 2147483647, %v2508_v8  ;;  %vm2615_vm15 = vweird.f32 %v2508_v8 }
 0x1fb   : > { %v3018_v47 = vmul.f32 %v9188_v60, %v2593_v27  ;;  %v2598_v26 = vmul.f32 %v7544_v56, %v2597_v28 }
 0x1fc   : > { %vm2620_vm2 = vcmp.eq.f32.partialorder %v2619_v17, 8.507059e+37 }
 0x1fd   : > { %v2599_v25 = vadd.f32 %v7544_v56, %v2598_v26  ;;  %v3050_v39 = vsel %vm2474_vm4, %v2593_v27, %v3018_v47 }
 0x1fe   : > { %v9236_v55 = vmul.f32 %v3050_v39, %v9121_v31 }
 0x1ff   : > { %7226 = vmatmul.msk.f32.gmra.mxu1 %vm14220_vm14, %v9227_v35  ;;  %7258 = vmatmul.msk.f32.gmra.mxu2 %vm14220_vm14, %v9227_v35  ;;  %v2603_v32 = vsel %vm2602_vm7, %v7544_v56, %v2599_v25  ;;  %v2621_v56 = vand.u32 2147483648, %v2508_v8 }
 0x200   : > { %v2608_v60 = vsel %vm2605_vm9, %v2607_v54, %v2603_v32  ;;  %14292 = vst [vmem:[#allocation40_spill] sm:$0xff] %v9236_v55  ;;  %v7548_v62 = vpop.eup %7547 }
 0x201   : > { %v3019_v0 = vmul.f32 %v9202_v51, %v2608_v60  ;;  %v2611_v3 = vmul.f32 %v7548_v62, %v2508_v8  ;;  %vm2616_vm12 = vweird.f32 %v7548_v62  ;;  %v2622_v51 = vor.u32 1.1754944e-38, %v2621_v56 }
 0x202   : > { %vm2617_vm1 = vmor %vm2615_vm15, %vm2616_vm12 }
 0x203   : > { %v2612_v4 = vsub.f32 1.0, %v2611_v3  ;;  %v3051_v42 = vsel %vm2475_vm11, %v2608_v60, %v3019_v0 }
 0x204   : > { %v9245_v31 = vmul.f32 %v3051_v42, %v9151_v10 }
 0x205   : > { %v2613_v36 = vmul.f32 %v7548_v62, %v2612_v4 }
 0x206   : > { %14293 = vst [vmem:[#allocation41_spill] sm:$0xff] %v9245_v31 }
 0x207   : > { %7227 = vmatmul.msk.f32.gmra.mxu1 %vm14220_vm14, %v9236_v55  ;;  %7259 = vmatmul.msk.f32.gmra.mxu2 %vm14220_vm14, %v9236_v55  ;;  %v2614_v2 = vadd.f32 %v7548_v62, %v2613_v36 }
 0x209   : > { %v2618_v45 = vsel %vm2617_vm1, %v7548_v62, %v2614_v2 }
 0x20a   : > { %v2623_v58 = vsel %vm2620_vm2, %v2622_v51, %v2618_v45 }
 0x20b   : > { %v3020_v28 = vmul.f32 %v7546_v16, %v2623_v58 }
 0x20d   : > { %v3052_v27 = vsel %vm2476_vm3, %v2623_v58, %v3020_v28 }
 0x20e   : > { %v9253_v10 = vmul.f32 %v3052_v27, %v9186_v33 }
 0x20f   : > { %7228 = vmatmul.msk.f32.gmra.mxu1 %vm14220_vm14, %v9245_v31  ;;  %7260 = vmatmul.msk.f32.gmra.mxu2 %vm14220_vm14, %v9245_v31 }
 0x210   : > { %14294 = vst [vmem:[#allocation42_spill] sm:$0xff] %v9253_v10 }
 0x215   : > { %v800_v59 = vpop.xlane.xlu1 %799  ;;  %v806_v47 = vpop.xlane.xlu2 %805 }
 0x216   : > { %v866_v8 = vmul.f32 %v800_v59, %v8321_v21  ;;  %v868_v26 = vmul.f32 %v806_v47, %v8321_v21  ;;  %v554_v47 = vld [vmem:[%s8302_s29 + $0xf0] sm:$0xff] }
 0x217   : > { %7229 = vmatmul.msk.f32.gmra.mxu1 %vm14220_vm14, %v9253_v10  ;;  %7261 = vmatmul.msk.f32.gmra.mxu2 %vm14220_vm14, %v9253_v10 }
 0x218   : > { %v898_v11 = vadd.f32 1e-05, %v866_v8  ;;  %v9261_v16 = vadd.f32 1e-05, %v868_v26 }
 0x21a   : > { %7549 = vrsqrt.f32 %v898_v11  ;;  %vm1062_vm5 = vweird.f32 %v898_v11  ;;  %vm1082_vm9 = vweird.f32 %v9261_v16 }
 0x21b   : > { %7551 = vrsqrt.f32 %v9261_v16 }
 0x21d   : > { %v622_v33 = vpop.xlane.xlu1 %621  ;;  %v628_v39 = vpop.xlane.xlu2 %627 }
 0x21e   : > { %v681_v25 = vmul.f32 %v8321_v21, %v622_v33  ;;  %v683_v54 = vmul.f32 %v8321_v21, %v628_v39  ;;  %v803_v32 = vpop.xlane.xlu0 %802 }
 0x21f   : > { %v867_v0 = vmul.f32 %v803_v32, %v8321_v21  ;;  %v1694_v32 = vmul.f32 %v8710_v23, %v9137_v57 }
 0x220   : > { %v7550_v60 = vpop.eup %7549  ;;  %v9267_v62 = vsub.f32 %v8667_v7, %v681_v25  ;;  %v9273_v42 = vsub.f32 %v8673_v63, %v683_v54 }
 0x221   : > { %v9270_v3 = vpop.eup %7551  ;;  %v1057_v4 = vmul.f32 %v7550_v60, %v898_v11  ;;  %v9277_v36 = vadd.f32 1e-05, %v867_v0  ;;  %vm1063_vm4 = vweird.f32 %v7550_v60 }
 0x222   : > { %v1077_v56 = vmul.f32 %v9270_v3, %v9261_v16  ;;  %v745_v17 = vmul.f32 %v9267_v62, %v9267_v62  ;;  %v747_v7 = vmul.f32 %v9273_v42, %v9273_v42  ;;  %vm1064_vm7 = vmor %vm1062_vm5, %vm1063_vm4  ;;  %vm1083_vm11 = vweird.f32 %v9270_v3 }
 0x223   : > { %v1058_v2 = vmul.f32 %v7550_v60, %v1057_v4  ;;  %7553 = vrsqrt.f32 %v9277_v36  ;;  %v647_v4 = vsel %vm14219_vm0, %v554_v47, 0.0  ;;  %vm1072_vm12 = vweird.f32 %v9277_v36  ;;  %vm9346_vm1 = vmor %vm1082_vm9, %vm1083_vm11 }
 0x224   : > { %v1078_v51 = vmul.f32 %v9270_v3, %v1077_v56  ;;  %v819_v63 = vsel %vm14219_vm0, %v745_v17, 0.0  ;;  %v825_v58 = vsel %vm14219_vm0, %v747_v7, 0.0  ;;  %v14296_v47 = vrot.slane %v9119_v5, 5 }
 0x225   : > { %v1059_v45 = vmul.f32 0.5, %v1058_v2  ;;  %820 = vadd.xlane.f32.xlu2 %v819_v63  ;;  %826 = vadd.xlane.f32.xlu0 %v825_v58  ;;  %v631_v28 = vpop.xlane.xlu2 %630 }
 0x226   : > { %v684_v59 = vmul.f32 %v8321_v21, %v631_v28  ;;  %v625_v8 = vpop.xlane.xlu0 %624  ;;  %v1079_v26 = vmul.f32 0.5, %v1078_v51 }
 0x227   : > { %v1060_v27 = vsub.f32 1.5, %v1059_v45  ;;  %v682_v33 = vmul.f32 %v8321_v21, %v625_v8 }
 0x228   : > { %v9291_v39 = vsub.f32 %v8725_v15, %v684_v59  ;;  %v1080_v2 = vsub.f32 1.5, %v1079_v26 }
 0x229   : > { %v1061_v25 = vmul.f32 %v7550_v60, %v1060_v27  ;;  %v9293_v54 = vpop.eup %7553  ;;  %v9298_v0 = vsub.f32 %v8713_v37, %v682_v33  ;;  %v809_v17 = vpop.xlane.xlu1 %808 }
 0x22a   : > { %v1067_v11 = vmul.f32 %v9293_v54, %v9277_v36  ;;  %v748_v15 = vmul.f32 %v9291_v39, %v9291_v39  ;;  %v869_v7 = vmul.f32 %v809_v17, %v8321_v21  ;;  %vm1073_vm15 = vweird.f32 %v9293_v54 }
 0x22b   : > { %v1065_v56 = vsel %vm1064_vm7, %v7550_v60, %v1061_v25  ;;  %v746_v37 = vmul.f32 %v9298_v0, %v9298_v0  ;;  %v555_v25 = vld [vmem:[%s8302_s29 + $0xf8] sm:$0xff]  ;;  %vm9361_vm2 = vmor %vm1072_vm12, %vm1073_vm15  ;;  %v1726_v36 = vadd.f32 %v8785_v6, %v1694_v32  ;;  %v14303_v6 = vrot.slane %v9143_v53, 1 }
 0x22c   : > { %v9307_v57 = vpop.f32.mrf.mxu0  ;;  %v1250_v51 = vmul.f32 %v1065_v56, %v8645_v19  ;;  %v1068_v60 = vmul.f32 %v9293_v54, %v1067_v11  ;;  %v828_v45 = vsel %vm14219_vm0, %v748_v15, 0.0  ;;  %v9317_v58 = vadd.f32 1e-05, %v869_v7  ;;  %v9323_v19 = vld [vmem:[%s14236_s1] ss:$0 sm:$0xff] }
 0x22d   : > { %14295 = vst [vmem:[#allocation43_spill] sm:$0xff] %v9307_v57  ;;  %v14102_v63 = vrot.slane %v9307_v57, 5  ;;  %648 = vadd.xlane.f32.xlu2 %v647_v4  ;;  %829 = vadd.xlane.f32.xlu0 %v828_v45  ;;  %v822_v28 = vsel %vm14219_vm0, %v746_v37, 0.0  ;;  %v640_v59 = vpop.xlane.xlu2 %639  ;;  %v1081_v56 = vmul.f32 %v9270_v3, %v1080_v2  ;;  %v14304_v53 = vrot.slane %v9147_v61, 2 }
 0x22e   : > { %v1285_v27 = vmul.f32 %v9323_v19, %v1250_v51  ;;  %v1069_v8 = vmul.f32 0.5, %v1068_v60  ;;  %823 = vadd.xlane.f32.xlu1 %v822_v28  ;;  %v634_v33 = vpop.xlane.xlu0 %633  ;;  %v687_v4 = vmul.f32 %v8321_v21, %v640_v59  ;;  %7555 = vrsqrt.f32 %v9317_v58  ;;  %v9369_v60 = vld [vmem:[%s14061_s2] ss:$0 sm:$0xff] }
 0x22f   : > { %v9332_v26 = vsel %vm1584_vm13, %v14296_v47, %v14102_v63  ;;  %v685_v37 = vmul.f32 %v8321_v21, %v634_v33  ;;  %v650_v28 = vsel %vm14219_vm0, %v555_v25, 0.0  ;;  %v7819_v63 = vld [vmem:[%s8302_s29 + $0xc8] sm:$0xff]  ;;  %v14305_v61 = vrot.slane %v9156_v9, 3 }
 0x230   : > { %v9340_v11 = vmul.f32 %v8718_v49, %v9332_v26  ;;  %v1070_v15 = vsub.f32 1.5, %v1069_v8  ;;  %v9352_v7 = vmul.f32 %v8732_v48, %v9332_v26  ;;  %v9356_v2 = vmul.f32 %v8748_v52, %v9332_v26 }
 0x231   : > { %v9372_v45 = vadd.f32 %v9369_v60, %v1285_v27  ;;  %v9376_v59 = vsub.f32 %v8780_v44, %v687_v4  ;;  %v812_v33 = vpop.xlane.xlu1 %811  ;;  %v9382_v51 = vsub.f32 %v7819_v63, %v685_v37  ;;  %v1085_v27 = vsel %vm9346_vm1, %v9270_v3, %v1081_v56 }
 0x232   : > { %v1071_v8 = vmul.f32 %v9293_v54, %v1070_v15  ;;  %v14105_v47 = vrot.slane %v9352_v7, 2  ;;  %v14104_v40 = vrot.slane %v9356_v2, 3  ;;  %v870_v25 = vmul.f32 %v812_v33, %v8321_v21 }
 0x233   : > { %14301 = vst [vmem:[#allocation44_spill] sm:$0xff] %v9372_v45  ;;  %7206 = vmatmul.msk.f32.gmra.mxu0 %vm14219_vm0, %v9372_v45  ;;  %v14302_v44 = vrot.slane %v9340_v11, 1  ;;  %v749_v3 = vmul.f32 %v9382_v51, %v9382_v51  ;;  %v751_v37 = vmul.f32 %v9376_v59, %v9376_v59  ;;  %vm1092_vm3 = vweird.f32 %v9317_v58 }
 0x234   : > { %v1075_v63 = vsel %vm9361_vm2, %v9293_v54, %v1071_v8  ;;  %v7556_v56 = vpop.eup %7555  ;;  %v9401_v17 = vadd.f32 1e-05, %v870_v25  ;;  %v2031_v54 = vsel %vm2016_vm8, %v14304_v53, %v14105_v47  ;;  %v1252_v8 = vmul.f32 %v1085_v27, %v8648_v29  ;;  %v7820_v27 = vld [vmem:[%s8302_s29 + $0xd0] sm:$0xff] }
 0x235   : > { %v1834_v32 = vsel %vm1819_vm6, %v14303_v6, %v14302_v44  ;;  %651 = vadd.xlane.f32.xlu2 %v650_v28  ;;  %v1251_v15 = vmul.f32 %v1075_v63, %v8680_v41  ;;  %v1087_v16 = vmul.f32 %v7556_v56, %v9317_v58  ;;  %v831_v28 = vsel %vm14219_vm0, %v749_v3, 0.0 }
 0x236   : > { %v1923_v4 = vadd.f32 %v1834_v32, %v1726_v36  ;;  %v637_v36 = vpop.xlane.xlu0 %636  ;;  %7557 = vrsqrt.f32 %v9401_v17  ;;  %832 = vadd.xlane.f32.xlu1 %v831_v28  ;;  %v2228_v44 = vsel %vm2213_vm10, %v14305_v61, %v14104_v40  ;;  %vm1093_vm4 = vweird.f32 %v7556_v56 }
 0x237   : > { %v686_v41 = vmul.f32 %v8321_v21, %v637_v36  ;;  %v1286_v25 = vmul.f32 %v9323_v19, %v1251_v15  ;;  %v1088_v6 = vmul.f32 %v7556_v56, %v1087_v16  ;;  %v9425_v29 = vpop.f32.mrf.mxu0  ;;  %v1287_v28 = vmul.f32 %v9323_v19, %v1252_v8  ;;  %vm9445_vm5 = vmor %vm1092_vm3, %vm1093_vm4 }
 0x238   : > { %v2120_v33 = vadd.f32 %v2031_v54, %v1923_v4  ;;  %14306 = vst [vmem:[#allocation45_spill] sm:$0xff] %v9425_v29  ;;  %v837_v4 = vsel %vm14219_vm0, %v751_v37, 0.0  ;;  %v1600_v9 = vrot.slane %v9425_v29, 5  ;;  %vm1102_vm7 = vweird.f32 %v9401_v17 }
 0x239   : > { %v9428_v63 = vsub.f32 %v7820_v27, %v686_v41  ;;  %v9431_v3 = vadd.f32 %v9369_v60, %v1286_v25  ;;  %v1089_v15 = vmul.f32 0.5, %v1088_v6  ;;  %v815_v53 = vpop.xlane.xlu1 %814  ;;  %v9460_v58 = vadd.f32 %v9369_v60, %v1287_v28 }
 0x23a   : > { %v9422_v32 = vadd.f32 %v2228_v44, %v2120_v33  ;;  %v871_v16 = vmul.f32 %v815_v53, %v8321_v21  ;;  %v14308_v33 = vrot.slane %v9307_v57, 5 }
 0x23b   : > { %14307 = vst [vmem:[#allocation46_spill] sm:$0xff] %v9431_v3  ;;  %7207 = vmatmul.msk.f32.gmra.mxu0 %vm14219_vm0, %v9431_v3  ;;  %v1090_v36 = vsub.f32 1.5, %v1089_v15  ;;  %v750_v61 = vmul.f32 %v9428_v63, %v9428_v63 }
 0x23c   : > { %v2349_v54 = vand.u32 2147483647, %v9422_v32  ;;  %v1601_v41 = vsel %vm1584_vm13, %v14308_v33, %v1600_v9  ;;  %v7558_v37 = vpop.eup %7557  ;;  %v9452_v27 = vadd.f32 1e-05, %v871_v16  ;;  %14311 = vst [vmem:[#allocation47_spill] sm:$0xff] %v9460_v58 }
 0x23d   : > { %838 = vadd.xlane.f32.xlu2 %v837_v4  ;;  %v1091_v6 = vmul.f32 %v7556_v56, %v1090_v36  ;;  %v1097_v8 = vmul.f32 %v7558_v37, %v9401_v17  ;;  %v1695_v4 = vmul.f32 %v8710_v23, %v9332_v26  ;;  %v9457_v53 = vmul.f32 %v8718_v49, %v1601_v41 }
 0x23e   : > { %v2381_v44 = vsub.f32 0.0, %v2349_v54  ;;  %v818_v15 = vpop.xlane.xlu0 %817  ;;  %7559 = vrsqrt.f32 %v9452_v27  ;;  %v834_v16 = vsel %vm14219_vm0, %v750_v61, 0.0  ;;  %vm1103_vm9 = vweird.f32 %v7558_v37 }
 0x23f   : > { %v1095_v33 = vsel %vm9445_vm5, %v7556_v56, %v1091_v6  ;;  %v1098_v40 = vmul.f32 %v7558_v37, %v1097_v8  ;;  %v9466_v54 = vpop.f32.mrf.mxu0  ;;  %v872_v26 = vmul.f32 %v818_v15, %v8321_v21  ;;  %v1696_v28 = vmul.f32 %v8710_v23, %v1601_v41  ;;  %835 = vadd.xlane.f32.xlu1 %v834_v16  ;;  %vm9487_vm11 = vmor %vm1102_vm7, %vm1103_vm9 }
 0x240   : > { %14312 = vst [vmem:[#allocation48_spill] sm:$0xff] %v9466_v54  ;;  %v1253_v36 = vmul.f32 %v1095_v33, %v8772_v12  ;;  %v2419_v47 = vmul.f32 1.442695, %v2381_v44  ;;  %v9473_v56 = vmul.f32 %v8732_v48, %v1601_v41  ;;  %v14111_v6 = vrot.slane %v9457_v53, 1 }
 0x241   : > { %v1099_v3 = vmul.f32 0.5, %v1098_v40  ;;  %v643_v25 = vpop.xlane.xlu1 %642  ;;  %v9477_v45 = vadd.f32 1e-05, %v872_v26  ;;  %v9482_v40 = vmul.f32 %v8748_v52, %v1601_v41  ;;  %v1602_v61 = vrot.slane %v9466_v54, 5 }
 0x242   : > { %v688_v8 = vmul.f32 %v8321_v21, %v643_v25  ;;  %7561 = vpow2.f32 %v2419_v47  ;;  %v1288_v15 = vmul.f32 %v9323_v19, %v1253_v36  ;;  %v9497_v47 = vld [vmem:[%s14064_s5] ss:$0 sm:$0xff]  ;;  %vm1112_vm12 = vweird.f32 %v9452_v27 }
 0x243   : > { %7208 = vmatmul.msk.f32.gmra.mxu0 %vm14219_vm0, %v9460_v58  ;;  %v1100_v12 = vsub.f32 1.5, %v1099_v3  ;;  %v1727_v3 = vadd.f32 %v9497_v47, %v1695_v4  ;;  %7563 = vrsqrt.f32 %v9477_v45  ;;  %v9505_v26 = vadd.f32 %v9497_v47, %v1696_v28 }
 0x244   : > { %v9492_v33 = vpop.eup %7559  ;;  %v9501_v16 = vsub.f32 %v8969_v34, %v688_v8  ;;  %v14315_v58 = vrot.slane %v9340_v11, 1  ;;  %vm1122_vm2 = vweird.f32 %v9477_v45  ;;  %vm2477_vm9 = vcmp.ge.f32.partialorder %v9422_v32, 0.0 }
 0x245   : > { %v1101_v41 = vmul.f32 %v7558_v37, %v1100_v12  ;;  %v1107_v25 = vmul.f32 %v9492_v33, %v9452_v27  ;;  %v1603_v12 = vsel %vm1584_vm13, %v1600_v9, %v1602_v61  ;;  %vm1113_vm15 = vweird.f32 %v9492_v33 }
 0x246   : > { %v646_v17 = vpop.xlane.xlu0 %645  ;;  %v1836_v4 = vsel %vm1819_vm6, %v14315_v58, %v14111_v6  ;;  %v752_v28 = vmul.f32 %v9501_v16, %v9501_v16  ;;  %v9528_v58 = vadd.f32 %v9369_v60, %v1288_v15  ;;  %v1697_v15 = vmul.f32 %v8710_v23, %v1603_v12  ;;  %vm9560_vm1 = vmor %vm1112_vm12, %vm1113_vm15 }
 0x247   : > { %v1105_v34 = vsel %vm9487_vm11, %v7558_v37, %v1101_v41  ;;  %v1108_v20 = vmul.f32 %v9492_v33, %v1107_v25  ;;  %v689_v11 = vmul.f32 %v8321_v21, %v646_v17  ;;  %v1924_v6 = vadd.f32 %v1836_v4, %v1727_v3 }
 0x248   : > { %v9521_v36 = vpop.eup %7561  ;;  %v9524_v43 = vpop.f32.mrf.mxu0  ;;  %14317 = vst [vmem:[#allocation50_spill] sm:$0xff] %v9528_v58  ;;  %v1254_v37 = vmul.f32 %v1105_v34, %v8806_v13  ;;  %v840_v9 = vsel %vm14219_vm0, %v752_v28, 0.0  ;;  %v9545_v25 = vmul.f32 %v8718_v49, %v1603_v12  ;;  %v14319_v27 = vrot.slane %v9352_v7, 2 }
 0x249   : > { %14316 = vst [vmem:[#allocation49_spill] sm:$0xff] %v9524_v43  ;;  %v1604_v44 = vrot.slane %v9524_v43, 5  ;;  %v9534_v41 = vadd.f32 1.0, %v9521_v36  ;;  %v1109_v8 = vmul.f32 0.5, %v1108_v20  ;;  %841 = vadd.xlane.f32.xlu0 %v840_v9  ;;  %v9539_v17 = vsub.f32 %v9047_v24, %v689_v11  ;;  %v7564_v13 = vpop.eup %7563 }
 0x24a   : > { %v14318_v20 = vrot.slane %v9473_v56, 2  ;;  %v1117_v24 = vmul.f32 %v7564_v13, %v9477_v45  ;;  %v1289_v34 = vmul.f32 %v9323_v19, %v1254_v37  ;;  %v14320_v28 = vrot.slane %v9482_v40, 3 }
 0x24b   : > { %7209 = vmatmul.msk.f32.gmra.mxu0 %vm14219_vm0, %v9528_v58  ;;  %7565 = vrcp.f32 %v9534_v41  ;;  %v1110_v4 = vsub.f32 1.5, %v1109_v8  ;;  %v14321_v11 = vrot.slane %v9356_v2, 3  ;;  %v9565_v29 = vmul.f32 %v8732_v48, %v1603_v12 }
 0x24c   : > { %v2033_v3 = vsel %vm2016_vm8, %v14319_v27, %v14318_v20  ;;  %v1605_v7 = vsel %vm1584_vm13, %v1602_v61, %v1604_v44  ;;  %v753_v8 = vmul.f32 %v9539_v17, %v9539_v17  ;;  %v9572_v27 = vmul.f32 %v8748_v52, %v1603_v12 }
 0x24d   : > { %v2230_v9 = vsel %vm2213_vm10, %v14321_v11, %v14320_v28  ;;  %v2121_v20 = vadd.f32 %v2033_v3, %v1924_v6  ;;  %v1111_v37 = vmul.f32 %v9492_v33, %v1110_v4  ;;  %v1118_v2 = vmul.f32 %v7564_v13, %v1117_v24 }
 0x24e   : > { %v1729_v28 = vadd.f32 %v9497_v47, %v1697_v15  ;;  %v1837_v11 = vrot.slane %v9545_v25, 1  ;;  %vm1123_vm3 = vweird.f32 %v7564_v13  ;;  %v843_v43 = vsel %vm14219_vm0, %v753_v8, 0.0 }
 0x24f   : > { %v1115_v61 = vsel %vm9560_vm1, %v9492_v33, %v1111_v37  ;;  %v1119_v6 = vmul.f32 0.5, %v1118_v2  ;;  %v1698_v3 = vmul.f32 %v8710_v23, %v1605_v7  ;;  %844 = vadd.xlane.f32.xlu1 %v843_v43  ;;  %v9585_v12 = vadd.f32 %v9369_v60, %v1289_v34  ;;  %vm9605_vm4 = vmor %vm1122_vm2, %vm1123_vm3 }
 0x250   : > { %v9582_v4 = vpop.f32.mrf.mxu0  ;;  %v2034_v15 = vrot.slane %v9565_v29, 2  ;;  %v1255_v8 = vmul.f32 %v1115_v61, %v8817_v18  ;;  %v9590_v54 = vadd.f32 %v2230_v9, %v2121_v20  ;;  %v9593_v33 = vmul.f32 %v8718_v49, %v1605_v7 }
 0x251   : > { %14324 = vst [vmem:[#allocation51_spill] sm:$0xff] %v9582_v4  ;;  %v7566_v24 = vpop.eup %7565  ;;  %v1606_v25 = vrot.slane %v9582_v4, 5  ;;  %v1120_v58 = vsub.f32 1.5, %v1119_v6  ;;  %v9596_v37 = vmul.f32 %v8732_v48, %v1605_v7  ;;  %v2231_v29 = vrot.slane %v9572_v27, 3 }
 0x252   : > { %14325 = vst [vmem:[#allocation52_spill] sm:$0xff] %v9585_v12  ;;  %v2626_v43 = vmul.f32 %v7566_v24, %v9534_v41  ;;  %vm2630_vm5 = vweird.f32 %v9534_v41  ;;  %v2634_v34 = vand.u32 2147483647, %v9534_v41  ;;  %v2350_v9 = vand.u32 2147483647, %v9590_v54 }
 0x253   : > { %7210 = vmatmul.msk.f32.gmra.mxu0 %vm14219_vm0, %v9585_v12  ;;  %v1121_v20 = vmul.f32 %v7564_v13, %v1120_v58  ;;  %v9613_v2 = vadd.f32 %v9497_v47, %v1698_v3  ;;  %v9616_v61 = vmul.f32 %v8748_v52, %v1605_v7  ;;  %v1290_v27 = vmul.f32 %v9323_v19, %v1255_v8 }
 0x254   : > { %v1607_v45 = vsel %vm1584_vm13, %v1604_v44, %v1606_v25  ;;  %v2627_v6 = vsub.f32 1.0, %v2626_v43  ;;  %v2382_v12 = vsub.f32 0.0, %v2350_v9  ;;  %v14328_v4 = vrot.slane %v9457_v53, 1 }
 0x255   : > { %v1125_v57 = vsel %vm9605_vm4, %v7564_v13, %v1121_v20  ;;  %v1839_v58 = vrot.slane %v9593_v33, 1  ;;  %v2036_v3 = vrot.slane %v9596_v37, 2  ;;  %v2636_v7 = vand.u32 2147483648, %v9534_v41 }
 0x256   : > { %v1838_v38 = vsel %vm1819_vm6, %v14328_v4, %v1837_v11  ;;  %v2628_v5 = vmul.f32 %v7566_v24, %v2627_v6  ;;  %vm2631_vm7 = vweird.f32 %v7566_v24  ;;  %v1256_v8 = vmul.f32 %v1125_v57, %v8926_v22 }
 0x257   : > { %v2421_v44 = vmul.f32 1.442695, %v2382_v12  ;;  %v9631_v53 = vmul.f32 %v8718_v49, %v1607_v45  ;;  %v9636_v13 = vadd.f32 %v9369_v60, %v1290_v27  ;;  %v1925_v33 = vadd.f32 %v1838_v38, %v9505_v26  ;;  %vm2632_vm11 = vmor %vm2630_vm5, %vm2631_vm7 }
 0x258   : > { %v9633_v4 = vpop.f32.mrf.mxu0  ;;  %v2629_v9 = vadd.f32 %v7566_v24, %v2628_v5  ;;  %v14331_v22 = vrot.slane %v9473_v56, 2  ;;  %v9645_v12 = vmul.f32 %v8732_v48, %v1607_v45  ;;  %v2637_v20 = vor.u32 1.1754944e-38, %v2636_v7 }
 0x259   : > { %14329 = vst [vmem:[#allocation53_spill] sm:$0xff] %v9633_v4  ;;  %v1608_v18 = vrot.slane %v9633_v4, 5  ;;  %7567 = vpow2.f32 %v2421_v44  ;;  %v1840_v26 = vsel %vm1819_vm6, %v1837_v11, %v1839_v58  ;;  %v1291_v56 = vmul.f32 %v9323_v19, %v1256_v8 }
 0x25a   : > { %14330 = vst [vmem:[#allocation54_spill] sm:$0xff] %v9636_v13  ;;  %v2035_v57 = vsel %vm2016_vm8, %v14331_v22, %v2034_v15  ;;  %v2633_v27 = vsel %vm2632_vm11, %v7566_v24, %v2629_v9  ;;  %v1926_v6 = vadd.f32 %v1840_v26, %v1729_v28  ;;  %v1841_v44 = vrot.slane %v9631_v53, 1 }
 0x25b   : > { %7211 = vmatmul.msk.f32.gmra.mxu0 %vm14219_vm0, %v9636_v13  ;;  %v2122_v38 = vadd.f32 %v2035_v57, %v1925_v33  ;;  %v1609_v5 = vsel %vm1584_vm13, %v1606_v25, %v1608_v18  ;;  %vm2635_vm12 = vcmp.eq.f32.partialorder %v2634_v34, 8.507059e+37  ;;  %v14332_v22 = vrot.slane %v9482_v40, 3 }
 0x25c   : > { %v2037_v41 = vsel %vm2016_vm8, %v2034_v15, %v2036_v3  ;;  %v1699_v7 = vmul.f32 %v8710_v23, %v1607_v45  ;;  %v2638_v11 = vsel %vm2635_vm12, %v2637_v20, %v2633_v27  ;;  %v2038_v19 = vrot.slane %v9645_v12, 2 }
 0x25d   : > { %v2232_v43 = vsel %vm2213_vm10, %v14332_v22, %v2231_v29  ;;  %v2123_v24 = vadd.f32 %v2037_v41, %v1926_v6  ;;  %v9667_v28 = vmul.f32 %v8748_v52, %v1607_v45  ;;  %v1765_v25 = vmul.f32 %v8718_v49, %v1609_v5 }
 0x25e   : > { %v9663_v33 = vadd.f32 %v2232_v43, %v2122_v38  ;;  %v14333_v40 = vrot.slane %v9616_v61, 3  ;;  %v3021_v15 = vmul.f32 %v9521_v36, %v2638_v11  ;;  %v9677_v53 = vadd.f32 %v9369_v60, %v1291_v56 }
 0x25f   : > { %v9673_v8 = vpop.eup %7567  ;;  %v1700_v45 = vmul.f32 %v8710_v23, %v1609_v5  ;;  %v1962_v57 = vmul.f32 %v8732_v48, %v1609_v5  ;;  %v1843_v27 = vrot.slane %v1765_v25, 1  ;;  %v9695_v56 = vmul.f32 %v8748_v52, %v1609_v5 }
 0x260   : > { %v2234_v34 = vsel %vm2213_vm10, %v2231_v29, %v14333_v40  ;;  %14334 = vst [vmem:[#allocation55_spill] sm:$0xff] %v9677_v53  ;;  %v2351_v43 = vand.u32 2147483647, %v9663_v33  ;;  %v9684_v12 = vpop.f32.mrf.mxu0  ;;  %v9687_v20 = vadd.f32 1.0, %v9673_v8  ;;  %v1842_v29 = vsel %vm1819_vm6, %v1839_v58, %v1841_v44 }
 0x261   : > { %v9680_v9 = vadd.f32 %v2234_v34, %v2123_v24  ;;  %14335 = vst [vmem:[#allocation56_spill] sm:$0xff] %v9684_v12  ;;  %v14130_v36 = vrot.slane %v9684_v12, 5  ;;  %v3053_v60 = vsel %vm2477_vm9, %v2638_v11, %v3021_v15  ;;  %v1927_v11 = vadd.f32 %v1842_v29, %v9613_v2  ;;  %v3127_v2 = vld [vmem:[%s14066_s7] sm:$0x3] }
 0x262   : > { %v2383_v38 = vsub.f32 0.0, %v2351_v43  ;;  %v9698_v6 = vmul.f32 %v3053_v60, %v9422_v32  ;;  %7569 = vrcp.f32 %v9687_v20  ;;  %v1731_v5 = vadd.f32 %v9497_v47, %v1699_v7 }
 0x263   : > { %v2352_v26 = vand.u32 2147483647, %v9680_v9  ;;  %7212 = vmatmul.msk.f32.gmra.mxu0 %vm14219_vm0, %v9677_v53  ;;  %v9706_v58 = vsel %vm1584_vm13, %v1608_v18, %v14130_v36  ;;  %v2235_v24 = vrot.slane %v9667_v28, 3  ;;  %v1732_v18 = vadd.f32 %v9497_v47, %v1700_v45 }
 0x264   : > { %14336 = vst [vmem:[#allocation57_spill] sm:$0xff] %v9698_v6  ;;  %v2423_v22 = vmul.f32 1.442695, %v2383_v38  ;;  %v9713_v32 = vmul.f32 %v8718_v49, %v9706_v58  ;;  %v9717_v25 = vmul.f32 %v8732_v48, %v9706_v58  ;;  %7230 = vmatmul.msk.f32.gmra.mxu1 %vm14220_vm14, %v9698_v6  ;;  %v2040_v40 = vrot.slane %v1962_v57, 2  ;;  %7262 = vmatmul.msk.f32.gmra.mxu2 %vm14220_vm14, %v9698_v6 }
 0x265   : > { %v2384_v41 = vsub.f32 0.0, %v2352_v26  ;;  %v2237_v28 = vrot.slane %v9695_v56, 3  ;;  %v9731_v15 = vmul.f32 %v8748_v52, %v9706_v58  ;;  %v2039_v47 = vsel %vm2016_vm8, %v2036_v3, %v2038_v19 }
 0x266   : > { %7571 = vpow2.f32 %v2423_v22  ;;  %v14128_v34 = vrot.slane %v9713_v32, 1  ;;  %v14129_v43 = vrot.slane %v9717_v25, 2  ;;  %v2124_v45 = vadd.f32 %v2039_v47, %v1927_v11 }
 0x267   : > { %v2425_v7 = vmul.f32 1.442695, %v2384_v41  ;;  %v1844_v57 = vsel %vm1819_vm6, %v1841_v44, %v1843_v27  ;;  %v9738_v60 = vperm.slane %v3127_v2, 0  ;;  %v14337_v38 = vrot.slane %v9616_v61, 3 }
 0x268   : > { %v7570_v29 = vpop.eup %7569  ;;  %v1928_v56 = vadd.f32 %v1844_v57, %v1731_v5  ;;  %v1846_v37 = vsel %vm1819_vm6, %v1843_v27, %v14128_v34  ;;  %v2041_v41 = vsel %vm2016_vm8, %v2038_v19, %v2040_v40  ;;  %v14131_v44 = vrot.slane %v9731_v15, 3 }
 0x269   : > { %7573 = vpow2.f32 %v2425_v7  ;;  %v2236_v26 = vsel %vm2213_vm10, %v14337_v38, %v2235_v24  ;;  %v2641_v3 = vmul.f32 %v7570_v29, %v9687_v20  ;;  %v1929_v11 = vadd.f32 %v1846_v37, %v1732_v18 }
 0x26a   : > { %v9747_v22 = vadd.f32 %v2236_v26, %v2124_v45  ;;  %v2651_v7 = vand.u32 2147483648, %v9687_v20  ;;  %v2125_v47 = vadd.f32 %v2041_v41, %v1928_v56  ;;  %v2238_v27 = vsel %vm2213_vm10, %v2235_v24, %v2237_v28 }
 0x26b   : > { %v2642_v5 = vsub.f32 1.0, %v2641_v3  ;;  %v2043_v45 = vsel %vm2016_vm8, %v2040_v40, %v14129_v43  ;;  %vm2646_vm15 = vweird.f32 %v7570_v29  ;;  %v2649_v41 = vand.u32 2147483647, %v9687_v20 }
 0x26c   : > { %v9752_v61 = vpop.eup %7571  ;;  %v3247_v38 = vpop.f32.mrf.mxu1  ;;  %v2353_v57 = vand.u32 2147483647, %v9747_v22  ;;  %v9765_v26 = vadd.f32 %v2238_v27, %v2125_v47  ;;  %v2126_v56 = vadd.f32 %v2043_v45, %v1929_v11  ;;  %vm2645_vm1 = vweird.f32 %v9687_v20 }
 0x26d   : > { %v9760_v19 = vadd.f32 %v3247_v38, %v9738_v60  ;;  %v9763_v18 = vadd.f32 1.0, %v9752_v61  ;;  %v2643_v3 = vmul.f32 %v7570_v29, %v2642_v5  ;;  %v9774_v40 = vperm.slane %v3127_v2, 1  ;;  %vm2647_vm2 = vmor %vm2645_vm1, %vm2646_vm15 }
 0x26e   : > { %v2385_v24 = vsub.f32 0.0, %v2353_v57  ;;  %v2652_v47 = vor.u32 1.1754944e-38, %v2651_v7  ;;  %v2240_v5 = vsel %vm2213_vm10, %v2237_v28, %v14131_v44  ;;  %v2354_v45 = vand.u32 2147483647, %v9765_v26 }
 0x26f   : > { %v9767_v37 = vpop.eup %7573  ;;  %v3488_v34 = vand.u32 2147483647, %v9760_v19  ;;  %3872 = vrot.lane.b32.xlu1 %v9760_v19, %s14199_s25  ;;  %7575 = vrcp.f32 %v9763_v18  ;;  %v2644_v11 = vadd.f32 %v7570_v29, %v2643_v3  ;;  %v9784_v43 = vadd.f32 %v2240_v5, %v2126_v56 }
 0x270   : > { %v9778_v38 = vadd.f32 1.0, %v9767_v37  ;;  %v2427_v27 = vmul.f32 1.442695, %v2385_v24  ;;  %vm2650_vm3 = vcmp.eq.f32.partialorder %v2649_v41, 8.507059e+37  ;;  %vm2478_vm4 = vcmp.ge.f32.partialorder %v9590_v54, 0.0 }
 0x271   : > { %v3520_v57 = vsub.f32 0.0, %v3488_v34  ;;  %v2648_v20 = vsel %vm2647_vm2, %v7570_v29, %v2644_v11  ;;  %v2666_v24 = vand.u32 2147483648, %v9763_v18  ;;  %v2386_v56 = vsub.f32 0.0, %v2354_v45 }
 0x272   : > { %v3360_v2 = vpop.f32.mrf.mxu2  ;;  %7577 = vrcp.f32 %v9778_v38  ;;  %v2653_v3 = vsel %vm2650_vm3, %v2652_v47, %v2648_v20  ;;  %v2355_v41 = vand.u32 2147483647, %v9784_v43  ;;  %vm2660_vm5 = vweird.f32 %v9763_v18 }
 0x273   : > { %v3552_v7 = vmul.f32 1.442695, %v3520_v57  ;;  %v3361_v36 = vadd.f32 %v3360_v2, %v9774_v40  ;;  %v3022_v28 = vmul.f32 %v9673_v8, %v2653_v3  ;;  %7579 = vpow2.f32 %v2427_v27 }
 0x274   : > { %v3250_v34 = vpop.f32.mrf.mxu1  ;;  %v2429_v20 = vmul.f32 1.442695, %v2386_v56  ;;  %v2664_v2 = vand.u32 2147483647, %v9763_v18  ;;  %v2679_v56 = vand.u32 2147483647, %v9778_v38  ;;  %vm2675_vm15 = vweird.f32 %v9778_v38 }
 0x275   : > { %v7576_v44 = vpop.eup %7575  ;;  %7581 = vpow2.f32 %v3552_v7  ;;  %4000 = vst.msk [vmem:[#allocation5] sm:$0xff] %vm14220_vm14, %v3361_v36  ;;  %v9793_v29 = vadd.f32 %v3250_v34, %v9738_v60  ;;  %v3054_v11 = vsel %vm2478_vm4, %v2653_v3, %v3022_v28  ;;  %v2387_v36 = vsub.f32 0.0, %v2355_v41 }
 0x276   : > { %v2656_v47 = vmul.f32 %v7576_v44, %v9763_v18  ;;  %v9798_v5 = vmul.f32 %v3054_v11, %v9590_v54  ;;  %v2667_v7 = vor.u32 1.1754944e-38, %v2666_v24  ;;  %vm2661_vm7 = vweird.f32 %v7576_v44 }
 0x277   : > { %v3489_v8 = vand.u32 2147483647, %v9793_v29  ;;  %7583 = vpow2.f32 %v2429_v20  ;;  %v2431_v13 = vmul.f32 1.442695, %v2387_v36  ;;  %v2681_v24 = vand.u32 2147483648, %v9778_v38  ;;  %vm2662_vm9 = vmor %vm2660_vm5, %vm2661_vm7 }
 0x278   : > { %14338 = vst [vmem:[#allocation58_spill] sm:$0xff] %v9798_v5  ;;  %v7578_v57 = vpop.eup %7577  ;;  %v2657_v27 = vsub.f32 1.0, %v2656_v47  ;;  %7231 = vmatmul.msk.f32.gmra.mxu1 %vm14220_vm14, %v9798_v5  ;;  %7263 = vmatmul.msk.f32.gmra.mxu2 %vm14220_vm14, %v9798_v5  ;;  %vm2665_vm12 = vcmp.eq.f32.partialorder %v2664_v2, 8.507059e+37  ;;  %vm2479_vm1 = vcmp.ge.f32.partialorder %v9663_v33, 0.0  ;;  %vm2680_vm3 = vcmp.eq.f32.partialorder %v2679_v56, 8.507059e+37 }
 0x279   : > { %v3521_v45 = vsub.f32 0.0, %v3489_v8  ;;  %v2671_v54 = vmul.f32 %v7578_v57, %v9778_v38  ;;  %v9808_v3 = vpop.eup %7579  ;;  %vm2676_vm11 = vweird.f32 %v7578_v57  ;;  %vm2480_vm4 = vcmp.ge.f32.partialorder %v9680_v9, 0.0 }
 0x27a   : > { %v2658_v28 = vmul.f32 %v7576_v44, %v2657_v27  ;;  %v3363_v34 = vpop.f32.mrf.mxu2  ;;  %v9814_v30 = vadd.f32 1.0, %v9808_v3  ;;  %vm2677_vm2 = vmor %vm2675_vm15, %vm2676_vm11  ;;  %vm2481_vm5 = vcmp.ge.f32.partialorder %v9747_v22, 0.0 }
 0x27b   : > { %v7582_v41 = vpop.eup %7581  ;;  %v3554_v11 = vmul.f32 1.442695, %v3521_v45  ;;  %v3364_v47 = vadd.f32 %v3363_v34, %v9774_v40  ;;  %v2672_v53 = vsub.f32 1.0, %v2671_v54 }
 0x27c   : > { %v3616_v8 = vadd.f32 1.0, %v7582_v41  ;;  %v2659_v4 = vadd.f32 %v7576_v44, %v2658_v28  ;;  %v3253_v50 = vpop.f32.mrf.mxu1 }
 0x27d   : > { %7585 = vpow2.f32 %v3554_v11  ;;  %4001 = vst.msk [vmem:[#allocation5 + $0x8] sm:$0xff] %vm14220_vm14, %v3364_v47  ;;  %v9821_v27 = vadd.f32 %v3253_v50, %v9738_v60  ;;  %v2673_v20 = vmul.f32 %v7578_v57, %v2672_v53  ;;  %v9825_v34 = vpop.eup %7583  ;;  %v2682_v50 = vor.u32 1.1754944e-38, %v2681_v24 }
 0x27e   : > { %7587 = vlog2.f32 %v3616_v8  ;;  %v2663_v36 = vsel %vm2662_vm9, %v7576_v44, %v2659_v4  ;;  %v9831_v44 = vadd.f32 1.0, %v9825_v34  ;;  %vm2690_vm9 = vweird.f32 %v9814_v30 }
 0x27f   : > { %v2668_v45 = vsel %vm2665_vm12, %v2667_v7, %v2663_v36  ;;  %v3490_v54 = vand.u32 2147483647, %v9821_v27  ;;  %v2674_v28 = vadd.f32 %v7578_v57, %v2673_v20  ;;  %7589 = vpow2.f32 %v2431_v13 }
 0x280   : > { %v3023_v18 = vmul.f32 %v9752_v61, %v2668_v45  ;;  %7591 = vrcp.f32 %v9814_v30  ;;  %v3456_v20 = vmax.f32 %v9760_v19, 0.0  ;;  %vm2705_vm15 = vweird.f32 %v9831_v44 }
 0x281   : > { %v3522_v53 = vsub.f32 0.0, %v3490_v54  ;;  %v2678_v4 = vsel %vm2677_vm2, %v7578_v57, %v2674_v28  ;;  %7593 = vrcp.f32 %v9831_v44 }
 0x282   : > { %v3055_v38 = vsel %vm2479_vm1, %v2668_v45, %v3023_v18  ;;  %v2683_v2 = vsel %vm2680_vm3, %v2682_v50, %v2678_v4  ;;  %v3366_v7 = vpop.f32.mrf.mxu2  ;;  %v2696_v18 = vand.u32 2147483648, %v9814_v30 }
 0x283   : > { %v7586_v13 = vpop.eup %7585  ;;  %v9834_v41 = vmul.f32 %v3055_v38, %v9663_v33  ;;  %v3556_v11 = vmul.f32 1.442695, %v3522_v53  ;;  %v3024_v61 = vmul.f32 %v9767_v37, %v2683_v2  ;;  %v3367_v47 = vadd.f32 %v3366_v7, %v9774_v40 }
 0x284   : > { %v7588_v8 = vpop.eup %7587  ;;  %v3617_v24 = vadd.f32 1.0, %v7586_v13  ;;  %v3256_v57 = vpop.f32.mrf.mxu1  ;;  %v3457_v13 = vmax.f32 %v9793_v29, 0.0 }
 0x285   : > { %14339 = vst [vmem:[#allocation59_spill] sm:$0xff] %v9834_v41  ;;  %v9840_v56 = vpop.eup %7589  ;;  %v3649_v36 = vmul.f32 0.6931472, %v7588_v8  ;;  %7232 = vmatmul.msk.f32.gmra.mxu1 %vm14220_vm14, %v9834_v41  ;;  %7264 = vmatmul.msk.f32.gmra.mxu2 %vm14220_vm14, %v9834_v41  ;;  %7595 = vpow2.f32 %v3556_v11  ;;  %v9849_v33 = vadd.f32 %v3256_v57, %v9738_v60  ;;  %v3056_v45 = vsel %vm2480_vm4, %v2683_v2, %v3024_v61 }
 0x286   : > { %4002 = vst.msk [vmem:[#allocation5 + $0x10] sm:$0xff] %vm14220_vm14, %v3367_v47  ;;  %v7592_v37 = vpop.eup %7591  ;;  %7597 = vlog2.f32 %v3617_v24  ;;  %v9855_v50 = vadd.f32 1.0, %v9840_v56  ;;  %v9860_v4 = vmul.f32 %v3056_v45, %v9680_v9  ;;  %v2694_v11 = vand.u32 2147483647, %v9814_v30 }
 0x287   : > { %v3712_v54 = vadd.f32 %v3649_v36, %v3456_v20  ;;  %v3491_v28 = vand.u32 2147483647, %v9849_v33  ;;  %v2686_v19 = vmul.f32 %v7592_v37, %v9814_v30  ;;  %v9862_v2 = vpop.eup %7593  ;;  %vm2691_vm7 = vweird.f32 %v7592_v37 }
 0x288   : > { %14340 = vst [vmem:[#allocation60_spill] sm:$0xff] %v9860_v4  ;;  %7599 = vrcp.f32 %v9855_v50  ;;  %v2701_v57 = vmul.f32 %v9862_v2, %v9831_v44  ;;  %v3458_v36 = vmax.f32 %v9821_v27, 0.0  ;;  %vm2692_vm11 = vmor %vm2690_vm9, %vm2691_vm7  ;;  %vm2695_vm12 = vcmp.eq.f32.partialorder %v2694_v11, 8.507059e+37 }
 0x289   : > { %3744 = vst.msk [vmem:[#allocation2] sm:$0xff] %vm14220_vm14, %v3712_v54  ;;  %v3776_v53 = vmul.f32 %v3712_v54, %v9199_v1  ;;  %v3523_v38 = vsub.f32 0.0, %v3491_v28  ;;  %v2687_v7 = vsub.f32 1.0, %v2686_v19  ;;  %v2697_v54 = vor.u32 1.1754944e-38, %v2696_v18 }
 0x28a   : > { %v3369_v61 = vpop.f32.mrf.mxu2  ;;  %v2702_v30 = vsub.f32 1.0, %v2701_v57  ;;  %v2709_v18 = vand.u32 2147483647, %v9831_v44  ;;  %vm2706_vm1 = vweird.f32 %v9862_v2  ;;  %v2726_v1 = vand.u32 2147483648, %v9855_v50 }
 0x28b   : > { %v7596_v47 = vpop.eup %7595  ;;  %3808 = vst.msk [vmem:[#allocation3] sm:$0xff] %vm14220_vm14, %v3776_v53  ;;  %v3558_v8 = vmul.f32 1.442695, %v3523_v38  ;;  %v2688_v9 = vmul.f32 %v7592_v37, %v2687_v7  ;;  %v3370_v24 = vadd.f32 %v3369_v61, %v9774_v40  ;;  %v2711_v7 = vand.u32 2147483648, %v9831_v44  ;;  %vm2707_vm3 = vmor %vm2705_vm15, %vm2706_vm1 }
 0x28c   : > { %v7598_v20 = vpop.eup %7597  ;;  %v3618_v45 = vadd.f32 1.0, %v7596_v47  ;;  %v3259_v28 = vpop.f32.mrf.mxu1  ;;  %vm9899_vm2 = vcmp.eq.f32.partialorder %v2709_v18, 8.507059e+37  ;;  %vm2720_vm7 = vweird.f32 %v9855_v50 }
 0x28d   : > { %v3651_v19 = vmul.f32 0.6931472, %v7598_v20  ;;  %7233 = vmatmul.msk.f32.gmra.mxu1 %vm14220_vm14, %v9860_v4  ;;  %7265 = vmatmul.msk.f32.gmra.mxu2 %vm14220_vm14, %v9860_v4  ;;  %7601 = vpow2.f32 %v3558_v8  ;;  %v2689_v53 = vadd.f32 %v7592_v37, %v2688_v9  ;;  %4003 = vst.msk [vmem:[#allocation5 + $0x18] sm:$0xff] %vm14220_vm14, %v3370_v24  ;;  %v9880_v38 = vadd.f32 %v3259_v28, %v9738_v60 }
 0x28e   : > { %7603 = vlog2.f32 %v3618_v45  ;;  %v9888_v8 = vpop.eup %7599  ;;  %v2703_v24 = vmul.f32 %v9862_v2, %v2702_v30  ;;  %v2712_v28 = vor.u32 1.1754944e-38, %v2711_v7 }
 0x28f   : > { %v3713_v61 = vadd.f32 %v3651_v19, %v3457_v13  ;;  %v2693_v47 = vsel %vm2692_vm11, %v7592_v37, %v2689_v53  ;;  %v3492_v20 = vand.u32 2147483647, %v9880_v38  ;;  %3880 = vrot.lane.b32.xlu1 %v9880_v38, %s14199_s25  ;;  %v2716_v57 = vmul.f32 %v9888_v8, %v9855_v50 }
 0x290   : > { %v2698_v9 = vsel %vm2695_vm12, %v2697_v54, %v2693_v47  ;;  %v2704_v45 = vadd.f32 %v9862_v2, %v2703_v24  ;;  %v2724_v53 = vand.u32 2147483647, %v9855_v50  ;;  %vm2721_vm4 = vweird.f32 %v9888_v8 }
 0x291   : > { %3745 = vst.msk [vmem:[#allocation2 + $0x8] sm:$0xff] %vm14220_vm14, %v3713_v61  ;;  %v3777_v13 = vmul.f32 %v3713_v61, %v9215_v46  ;;  %v3025_v37 = vmul.f32 %v9808_v3, %v2698_v9  ;;  %v3524_v11 = vsub.f32 0.0, %v3492_v20  ;;  %v2717_v47 = vsub.f32 1.0, %v2716_v57  ;;  %vm2722_vm9 = vmor %vm2720_vm7, %vm2721_vm4 }
 0x292   : > { %v3372_v19 = vpop.f32.mrf.mxu2  ;;  %v2708_v46 = vsel %vm2707_vm3, %v9862_v2, %v2704_v45  ;;  %vm2725_vm11 = vcmp.eq.f32.partialorder %v2724_v53, 8.507059e+37  ;;  %vm2483_vm12 = vcmp.ge.f32.partialorder %v9784_v43, 0.0 }
 0x293   : > { %v7602_v30 = vpop.eup %7601  ;;  %3809 = vst.msk [vmem:[#allocation3 + $0x8] sm:$0xff] %vm14220_vm14, %v3777_v13  ;;  %v3057_v3 = vsel %vm2481_vm5, %v2698_v9, %v3025_v37  ;;  %v3560_v61 = vmul.f32 1.442695, %v3524_v11  ;;  %v3373_v18 = vadd.f32 %v3372_v19, %v9774_v40  ;;  %v2713_v37 = vsel %vm9899_vm2, %v2712_v28, %v2708_v46 }
 0x294   : > { %v7604_v20 = vpop.eup %7603  ;;  %v3619_v7 = vadd.f32 1.0, %v7602_v30  ;;  %v9913_v24 = vmul.f32 %v3057_v3, %v9747_v22  ;;  %v3262_v13 = vpop.f32.mrf.mxu1  ;;  %v3026_v22 = vmul.f32 %v9825_v34, %v2713_v37  ;;  %v2718_v2 = vmul.f32 %v9888_v8, %v2717_v47 }
 0x295   : > { %v3653_v9 = vmul.f32 0.6931472, %v7604_v20  ;;  %7605 = vpow2.f32 %v3560_v61  ;;  %4004 = vst.msk [vmem:[#allocation5 + $0x20] sm:$0xff] %vm14220_vm14, %v3373_v18  ;;  %v9921_v44 = vadd.f32 %v3262_v13, %v9738_v60  ;;  %vm2482_vm5 = vcmp.ge.f32.partialorder %v9765_v26, 0.0 }
 0x296   : > { %14343 = vst [vmem:[#allocation61_spill] sm:$0xff] %v9913_v24  ;;  %7607 = vlog2.f32 %v3619_v7  ;;  %7234 = vmatmul.msk.f32.gmra.mxu1 %vm14220_vm14, %v9913_v24  ;;  %7266 = vmatmul.msk.f32.gmra.mxu2 %vm14220_vm14, %v9913_v24  ;;  %v3058_v45 = vsel %vm2482_vm5, %v2713_v37, %v3026_v22  ;;  %v2719_v54 = vadd.f32 %v9888_v8, %v2718_v2 }
 0x297   : > { %v3714_v11 = vadd.f32 %v3653_v9, %v3458_v36  ;;  %v3493_v46 = vand.u32 2147483647, %v9921_v44  ;;  %v2727_v36 = vor.u32 1.1754944e-38, %v2726_v1  ;;  %v9939_v61 = vmul.f32 %v3058_v45, %v9765_v26 }
 0x298   : > { %v821_v57 = vpop.xlane.xlu2 %820  ;;  %v827_v19 = vpop.xlane.xlu0 %826  ;;  %v2723_v18 = vsel %vm2722_vm9, %v9888_v8, %v2719_v54  ;;  %v3459_v8 = vmax.f32 %v9849_v33, 0.0 }
 0x299   : > { %v873_v28 = vmul.f32 %v821_v57, %v8321_v21  ;;  %3746 = vst.msk [vmem:[#allocation2 + $0x10] sm:$0xff] %vm14220_vm14, %v3714_v11  ;;  %v3778_v34 = vmul.f32 %v3714_v11, %v9227_v35  ;;  %v3525_v30 = vsub.f32 0.0, %v3493_v46  ;;  %v875_v3 = vmul.f32 %v827_v19, %v8321_v21 }
 0x29a   : > { %14344 = vst [vmem:[#allocation62_spill] sm:$0xff] %v9939_v61  ;;  %v3375_v47 = vpop.f32.mrf.mxu2  ;;  %v2728_v13 = vsel %vm2725_vm11, %v2727_v36, %v2723_v18 }
 0x29b   : > { %v9942_v50 = vadd.f32 1e-05, %v873_v28  ;;  %v7606_v20 = vpop.eup %7605  ;;  %3810 = vst.msk [vmem:[#allocation3 + $0x10] sm:$0xff] %vm14220_vm14, %v3778_v34  ;;  %v3562_v7 = vmul.f32 1.442695, %v3525_v30  ;;  %v3376_v9 = vadd.f32 %v3375_v47, %v9774_v40  ;;  %v3027_v26 = vmul.f32 %v9840_v56, %v2728_v13  ;;  %v7822_v30 = vld [vmem:[%s8302_s29 + $0xf0] sm:$0xff] }
 0x29c   : > { %v9946_v37 = vadd.f32 1e-05, %v875_v3  ;;  %v7608_v1 = vpop.eup %7607  ;;  %v3620_v22 = vadd.f32 1.0, %v7606_v20 }
 0x29d   : > { %7609 = vrsqrt.f32 %v9942_v50  ;;  %v3655_v53 = vmul.f32 0.6931472, %v7608_v1  ;;  %4005 = vst.msk [vmem:[#allocation5 + $0x28] sm:$0xff] %vm14220_vm14, %v3376_v9  ;;  %v3059_v56 = vsel %vm2483_vm12, %v2728_v13, %v3027_v26  ;;  %vm1132_vm1 = vweird.f32 %v9942_v50 }
 0x29e   : > { %7611 = vpow2.f32 %v3562_v7  ;;  %7235 = vmatmul.msk.f32.gmra.mxu1 %vm14220_vm14, %v9939_v61  ;;  %7267 = vmatmul.msk.f32.gmra.mxu2 %vm14220_vm14, %v9939_v61  ;;  %v9965_v34 = vmul.f32 %v3059_v56, %v9784_v43  ;;  %vm1152_vm3 = vweird.f32 %v9946_v37 }
 0x29f   : > { %7613 = vlog2.f32 %v3620_v22  ;;  %v3715_v2 = vadd.f32 %v3655_v53, %v3459_v8  ;;  %v3460_v22 = vmax.f32 %v9880_v38, 0.0 }
 0x2a0   : > { %7615 = vrsqrt.f32 %v9946_v37  ;;  %v649_v11 = vpop.xlane.xlu2 %648  ;;  %v830_v57 = vpop.xlane.xlu0 %829  ;;  %14345 = vst [vmem:[#allocation63_spill] sm:$0xff] %v9965_v34 }
 0x2a1   : > { %v690_v46 = vmul.f32 %v8321_v21, %v649_v11  ;;  %3747 = vst.msk [vmem:[#allocation2 + $0x18] sm:$0xff] %vm14220_vm14, %v3715_v2  ;;  %v3779_v45 = vmul.f32 %v3715_v2, %v9236_v55  ;;  %v824_v54 = vpop.xlane.xlu1 %823  ;;  %v876_v28 = vmul.f32 %v830_v57, %v8321_v21 }
 0x2a2   : > { %v874_v3 = vmul.f32 %v824_v54, %v8321_v21 }
 0x2a3   : > { %v9962_v19 = vpop.eup %7609  ;;  %v9968_v36 = vsub.f32 %v7822_v30, %v690_v46  ;;  %3811 = vst.msk [vmem:[#allocation3 + $0x18] sm:$0xff] %vm14220_vm14, %v3779_v45  ;;  %v9974_v20 = vadd.f32 1e-05, %v876_v28  ;;  %v7823_v30 = vld [vmem:[%s8302_s29 + $0xf8] sm:$0xff] }
 0x2a4   : > { %v7612_v18 = vpop.eup %7611  ;;  %v1127_v47 = vmul.f32 %v9962_v19, %v9942_v50  ;;  %v9976_v9 = vadd.f32 1e-05, %v874_v3  ;;  %vm1133_vm15 = vweird.f32 %v9962_v19 }
 0x2a5   : > { %v7614_v7 = vpop.eup %7613  ;;  %v3621_v13 = vadd.f32 1.0, %v7612_v18  ;;  %v754_v43 = vmul.f32 %v9968_v36, %v9968_v36  ;;  %7617 = vrsqrt.f32 %v9974_v20  ;;  %vm10014_vm2 = vmor %vm1132_vm1, %vm1133_vm15  ;;  %vm1162_vm12 = vweird.f32 %v9974_v20 }
 0x2a6   : > { %v9980_v1 = vpop.eup %7615  ;;  %v3657_v26 = vmul.f32 0.6931472, %v7614_v7  ;;  %v1128_v8 = vmul.f32 %v9962_v19, %v1127_v47  ;;  %7236 = vmatmul.msk.f32.gmra.mxu1 %vm14220_vm14, %v9965_v34  ;;  %7268 = vmatmul.msk.f32.gmra.mxu2 %vm14220_vm14, %v9965_v34  ;;  %vm1142_vm7 = vweird.f32 %v9976_v9 }
 0x2a7   : > { %7619 = vlog2.f32 %v3621_v13  ;;  %v1147_v53 = vmul.f32 %v9980_v1, %v9946_v37  ;;  %v846_v38 = vsel %vm14219_vm0, %v754_v43, 0.0  ;;  %vm1153_vm4 = vweird.f32 %v9980_v1 }
 0x2a8   : > { %v3716_v2 = vadd.f32 %v3657_v26, %v3460_v22  ;;  %v1129_v56 = vmul.f32 0.5, %v1128_v8  ;;  %7621 = vrsqrt.f32 %v9976_v9  ;;  %v652_v11 = vpop.xlane.xlu2 %651  ;;  %847 = vadd.xlane.f32.xlu2 %v846_v38  ;;  %vm10037_vm5 = vmor %vm1152_vm3, %vm1153_vm4  ;;  %v14351_v38 = vrot.slane %v9684_v12, 5 }
 0x2a9   : > { %v1148_v46 = vmul.f32 %v9980_v1, %v1147_v53  ;;  %v691_v57 = vmul.f32 %v8321_v21, %v652_v11  ;;  %v833_v18 = vpop.xlane.xlu1 %832 }
 0x2aa   : > { %3748 = vst.msk [vmem:[#allocation2 + $0x20] sm:$0xff] %vm14220_vm14, %v3716_v2  ;;  %v3780_v45 = vmul.f32 %v3716_v2, %v9245_v31  ;;  %v1130_v54 = vsub.f32 1.5, %v1129_v56  ;;  %v877_v13 = vmul.f32 %v833_v18, %v8321_v21  ;;  %v3461_v2 = vmax.f32 %v9921_v44, 0.0 }
 0x2ab   : > { %v1149_v28 = vmul.f32 0.5, %v1148_v46  ;;  %v9999_v3 = vsub.f32 %v7823_v30, %v691_v57  ;;  %v10001_v47 = vpop.eup %7617 }
 0x2ac   : > { %3812 = vst.msk [vmem:[#allocation3 + $0x20] sm:$0xff] %vm14220_vm14, %v3780_v45  ;;  %v1131_v7 = vmul.f32 %v9962_v19, %v1130_v54  ;;  %v1157_v26 = vmul.f32 %v10001_v47, %v9974_v20  ;;  %v10019_v50 = vadd.f32 1e-05, %v877_v13  ;;  %vm1163_vm15 = vweird.f32 %v10001_v47 }
 0x2ad   : > { %v7620_v43 = vpop.eup %7619  ;;  %v1150_v22 = vsub.f32 1.5, %v1149_v28  ;;  %v755_v8 = vmul.f32 %v9999_v3, %v9999_v3  ;;  %vm10113_vm3 = vmor %vm1162_vm12, %vm1163_vm15 }
 0x2ae   : > { %v7622_v53 = vpop.eup %7621  ;;  %v3659_v56 = vmul.f32 0.6931472, %v7620_v43  ;;  %v1135_v11 = vsel %vm10014_vm2, %v9962_v19, %v1131_v7  ;;  %v1158_v57 = vmul.f32 %v10001_v47, %v1157_v26  ;;  %7623 = vrsqrt.f32 %v10019_v50 }
 0x2af   : > { %v1137_v46 = vmul.f32 %v7622_v53, %v9976_v9  ;;  %v849_v28 = vsel %vm14219_vm0, %v755_v8, 0.0  ;;  %v1151_v30 = vmul.f32 %v9980_v1, %v1150_v22  ;;  %v1257_v22 = vmul.f32 %v1135_v11, %v9267_v62 }
 0x2b0   : > { %v3717_v45 = vadd.f32 %v3659_v56, %v3461_v2  ;;  %v839_v54 = vpop.xlane.xlu2 %838  ;;  %v10030_v13 = vpop.f32.mrf.mxu0  ;;  %850 = vadd.xlane.f32.xlu0 %v849_v28  ;;  %v1159_v26 = vmul.f32 0.5, %v1158_v57  ;;  %vm1143_vm9 = vweird.f32 %v7622_v53  ;;  %v10064_v28 = vld [vmem:[%s14236_s1] ss:$0 sm:$0xff]  ;;  %vm1172_vm1 = vweird.f32 %v10019_v50 }
 0x2b1   : > { %v1138_v18 = vmul.f32 %v7622_v53, %v1137_v46  ;;  %14348 = vst [vmem:[#allocation64_spill] sm:$0xff] %v10030_v13  ;;  %v879_v43 = vmul.f32 %v839_v54, %v8321_v21  ;;  %v1612_v8 = vrot.slane %v10030_v13, 5  ;;  %v1155_v46 = vsel %vm10037_vm5, %v9980_v1, %v1151_v30  ;;  %vm10056_vm11 = vmor %vm1142_vm7, %vm1143_vm9 }
 0x2b2   : > { %3749 = vst.msk [vmem:[#allocation2 + $0x28] sm:$0xff] %vm14220_vm14, %v3717_v45  ;;  %v3781_v19 = vmul.f32 %v3717_v45, %v9253_v10  ;;  %v1160_v11 = vsub.f32 1.5, %v1159_v26  ;;  %v836_v54 = vpop.xlane.xlu1 %835  ;;  %v1292_v1 = vmul.f32 %v10064_v28, %v1257_v22  ;;  %v1701_v30 = vmul.f32 %v8710_v23, %v9706_v58  ;;  %v10087_v10 = vld [vmem:[%s14061_s2] ss:$0 sm:$0xff] }
 0x2b3   : > { %v1139_v2 = vmul.f32 0.5, %v1138_v18  ;;  %v10044_v56 = vadd.f32 1e-05, %v879_v43  ;;  %v1613_v37 = vsel %vm1584_vm13, %v14351_v38, %v1612_v8  ;;  %v1259_v7 = vmul.f32 %v1155_v46, %v9273_v42 }
 0x2b4   : > { %3813 = vst.msk [vmem:[#allocation3 + $0x28] sm:$0xff] %vm14220_vm14, %v3781_v19  ;;  %v10054_v45 = vmul.f32 %v8718_v49, %v1613_v37  ;;  %v7624_v62 = vpop.eup %7623  ;;  %v878_v58 = vmul.f32 %v836_v54, %v8321_v21  ;;  %v10090_v42 = vadd.f32 %v10087_v10, %v1292_v1  ;;  %v10106_v1 = vld [vmem:[%s14064_s5] ss:$0 sm:$0xff]  ;;  %v1702_v31 = vmul.f32 %v8710_v23, %v1613_v37 }
 0x2b5   : > { %v1140_v57 = vsub.f32 1.5, %v1139_v2  ;;  %7625 = vrsqrt.f32 %v10044_v56  ;;  %v1167_v43 = vmul.f32 %v7624_v62, %v10019_v50  ;;  %v10078_v2 = vmul.f32 %v8732_v48, %v1613_v37 }
 0x2b6   : > { %v14143_v19 = vrot.slane %v10054_v45, 1  ;;  %14355 = vst [vmem:[#allocation66_spill] sm:$0xff] %v10090_v42  ;;  %vm1173_vm2 = vweird.f32 %v7624_v62  ;;  %7213 = vmatmul.msk.f32.gmra.mxu0 %vm14219_vm0, %v10090_v42  ;;  %vm1192_vm5 = vweird.f32 %v10044_v56 }
 0x2b7   : > { %v1141_v18 = vmul.f32 %v7622_v53, %v1140_v57  ;;  %v1168_v22 = vmul.f32 %v7624_v62, %v1167_v43  ;;  %v1161_v57 = vmul.f32 %v10001_v47, %v1160_v11  ;;  %v14356_v11 = vrot.slane %v9713_v32, 1  ;;  %vm10129_vm4 = vmor %vm1172_vm1, %vm1173_vm2 }
 0x2b8   : > { %v10081_v38 = vpop.f32.mrf.mxu0  ;;  %v10118_v32 = vmul.f32 %v8748_v52, %v1613_v37 }
 0x2b9   : > { %v1145_v26 = vsel %vm10056_vm11, %v7622_v53, %v1141_v18  ;;  %14354 = vst [vmem:[#allocation65_spill] sm:$0xff] %v10081_v38  ;;  %v1169_v9 = vmul.f32 0.5, %v1168_v22  ;;  %v10094_v18 = vadd.f32 1e-05, %v878_v58  ;;  %v1848_v54 = vsel %vm1819_vm6, %v14356_v11, %v14143_v19 }
 0x2ba   : > { %v1258_v46 = vmul.f32 %v1145_v26, %v9298_v0  ;;  %v1733_v53 = vadd.f32 %v10106_v1, %v1701_v30  ;;  %v14361_v11 = vrot.slane %v10081_v38, 5  ;;  %v1165_v58 = vsel %vm10113_vm3, %v10001_v47, %v1161_v57 }
 0x2bb   : > { %v10101_v43 = vpop.eup %7625  ;;  %v1170_v22 = vsub.f32 1.5, %v1169_v9  ;;  %7627 = vrsqrt.f32 %v10094_v18  ;;  %v14151_v35 = vrot.slane %v10118_v32, 3  ;;  %v14363_v57 = vrot.slane %v10078_v2, 2 }
 0x2bc   : > { %v1293_v26 = vmul.f32 %v10064_v28, %v1258_v46  ;;  %v1187_v30 = vmul.f32 %v10101_v43, %v10044_v56  ;;  %v1615_v19 = vsel %vm1584_vm13, %v1612_v8, %v14361_v11  ;;  %v1294_v46 = vmul.f32 %v10064_v28, %v1259_v7  ;;  %v842_v55 = vpop.xlane.xlu0 %841 }
 0x2bd   : > { %v1930_v9 = vadd.f32 %v1848_v54, %v1733_v53  ;;  %v1171_v42 = vmul.f32 %v7624_v62, %v1170_v22  ;;  %v880_v13 = vmul.f32 %v842_v55, %v8321_v21  ;;  %v10151_v47 = vmul.f32 %v8718_v49, %v1615_v19 }
 0x2be   : > { %v1188_v50 = vmul.f32 %v10101_v43, %v1187_v30  ;;  %v10146_v8 = vadd.f32 %v10087_v10, %v1293_v26  ;;  %v14364_v54 = vrot.slane %v9717_v25, 2  ;;  %v1260_v0 = vmul.f32 %v1165_v58, %v9291_v39 }
 0x2bf   : > { %v1175_v7 = vsel %vm10129_vm4, %v7624_v62, %v1171_v42  ;;  %v10163_v26 = vadd.f32 1e-05, %v880_v13  ;;  %v1734_v30 = vadd.f32 %v10106_v1, %v1702_v31  ;;  %vm1193_vm7 = vweird.f32 %v10101_v43 }
 0x2c0   : > { %14362 = vst [vmem:[#allocation67_spill] sm:$0xff] %v10146_v8  ;;  %v1189_v53 = vmul.f32 0.5, %v1188_v50  ;;  %v10153_v37 = vpop.f32.mrf.mxu0  ;;  %3874 = vrot.lane.b32.xlu2 %v9793_v29, %s14199_s25  ;;  %v2045_v55 = vsel %vm2016_vm8, %v14364_v54, %v14363_v57  ;;  %v1261_v62 = vmul.f32 %v1175_v7, %v9382_v51  ;;  %v1703_v29 = vmul.f32 %v8710_v23, %v1615_v19  ;;  %vm10203_vm9 = vmor %vm1192_vm5, %vm1193_vm7 }
 0x2c1   : > { %v2127_v42 = vadd.f32 %v2045_v55, %v1930_v9  ;;  %v10166_v22 = vpop.eup %7627  ;;  %7629 = vrsqrt.f32 %v10163_v26  ;;  %7214 = vmatmul.msk.f32.gmra.mxu0 %vm14219_vm0, %v10146_v8  ;;  %v1616_v39 = vrot.slane %v10153_v37, 5  ;;  %v14365_v51 = vrot.slane %v9731_v15, 3 }
 0x2c2   : > { %v1190_v20 = vsub.f32 1.5, %v1189_v53  ;;  %v1177_v25 = vmul.f32 %v10166_v22, %v10094_v18  ;;  %v14150_v13 = vrot.slane %v10151_v47, 1  ;;  %v10184_v58 = vmul.f32 %v8732_v48, %v1615_v19  ;;  %v845_v11 = vpop.xlane.xlu1 %844 }
 0x2c3   : > { %v2242_v31 = vsel %vm2213_vm10, %v14365_v51, %v14151_v35  ;;  %v1296_v9 = vmul.f32 %v10064_v28, %v1261_v62  ;;  %v10194_v15 = vmul.f32 %v8748_v52, %v1615_v19  ;;  %v10197_v57 = vadd.f32 %v10087_v10, %v1294_v46 }
 0x2c4   : > { %3876 = vrot.lane.b32.xlu0 %v9821_v27, %s14199_s25  ;;  %v10189_v50 = vadd.f32 %v2242_v31, %v2127_v42  ;;  %v1191_v7 = vmul.f32 %v10101_v43, %v1190_v20  ;;  %v1178_v53 = vmul.f32 %v10166_v22, %v1177_v25  ;;  %vm1182_vm11 = vweird.f32 %v10094_v18 }
 0x2c5   : > { %14366 = vst [vmem:[#allocation68_spill] sm:$0xff] %v10197_v57  ;;  %v881_v54 = vmul.f32 %v845_v11, %v8321_v21  ;;  %v10210_v55 = vadd.f32 %v10087_v10, %v1296_v9  ;;  %v1295_v19 = vmul.f32 %v10064_v28, %v1260_v0  ;;  %vm1183_vm12 = vweird.f32 %v10166_v22 }
 0x2c6   : > { %v1179_v62 = vmul.f32 0.5, %v1178_v53  ;;  %v10215_v46 = vadd.f32 %v10106_v1, %v1703_v29  ;;  %v14370_v56 = vrot.slane %v10081_v38, 5  ;;  %v14152_v20 = vrot.slane %v10184_v58, 2  ;;  %vm10249_vm15 = vmor %vm1182_vm11, %vm1183_vm12 }
 0x2c7   : > { %14369 = vst [vmem:[#allocation69_spill] sm:$0xff] %v10210_v55  ;;  %v10221_v25 = vadd.f32 1e-05, %v881_v54  ;;  %7217 = vmatmul.msk.f32.vlgmr.msra.gmra.mxu3 %vm14219_vm0, %v10210_v55  ;;  %v2356_v0 = vand.u32 2147483647, %v10189_v50  ;;  %v14371_v29 = vrot.slane %v10054_v45, 1  ;;  %v10235_v11 = vpop.eup %7629  ;;  %v1195_v9 = vsel %vm10203_vm9, %v10101_v43, %v1191_v7 }
 0x2c8   : > { %v1617_v42 = vsel %vm1584_vm13, %v14370_v56, %v1616_v39  ;;  %v10225_v51 = vpop.f32.mrf.mxu0  ;;  %3878 = vrot.lane.b32.xlu2 %v9849_v33, %s14199_s25  ;;  %v1180_v53 = vsub.f32 1.5, %v1179_v62  ;;  %v14153_v54 = vrot.slane %v10194_v15, 3  ;;  %v7827_v33 = vld [vmem:[%s14065_s6 + $0x78] sm:$0xff]  ;;  %v1197_v43 = vmul.f32 %v10235_v11, %v10163_v26 }
 0x2c9   : > { %v1850_v31 = vsel %vm1819_vm6, %v14371_v29, %v14150_v13  ;;  %v1618_v56 = vrot.slane %v10225_v51, 5  ;;  %7404 = vmatpush.msra.mxu3 %v7827_v33  ;;  %v1704_v7 = vmul.f32 %v8710_v23, %v1617_v42  ;;  %7631 = vrsqrt.f32 %v10221_v25  ;;  %7215 = vmatmul.msk.f32.gmra.mxu0 %vm14219_vm0, %v10197_v57  ;;  %v7828_v13 = vld [vmem:[%s14065_s6 + $0x68] sm:$0xff] }
 0x2ca   : > { %v10258_v27 = vadd.f32 %v10087_v10, %v1295_v19  ;;  %v1181_v62 = vmul.f32 %v10166_v22, %v1180_v53  ;;  %v10262_v29 = vmul.f32 %v8718_v49, %v1617_v42  ;;  %v2388_v18 = vsub.f32 0.0, %v2356_v0 }
 0x2cb   : > { %v1931_v33 = vadd.f32 %v1850_v31, %v1734_v30  ;;  %7405 = vmatpush.msra.mxu3 %v7828_v13  ;;  %v1198_v35 = vmul.f32 %v10235_v11, %v1197_v43  ;;  %v10271_v19 = vmul.f32 %v8732_v48, %v1617_v42  ;;  %v1263_v53 = vmul.f32 %v1195_v9, %v9376_v59  ;;  %v7829_v59 = vld [vmem:[%s14065_s6 + $0x58] sm:$0xff] }
 0x2cc   : > { %14374 = vst [vmem:[#allocation70_spill] sm:$0xff] %v10258_v27  ;;  %3882 = vrot.lane.b32.xlu0 %v9921_v44, %s14199_s25  ;;  %v14375_v0 = vrot.slane %v10078_v2, 2  ;;  %v1185_v13 = vsel %vm10249_vm15, %v10166_v22, %v1181_v62  ;;  %vm1202_vm1 = vweird.f32 %v10163_v26  ;;  %v1619_v31 = vsel %vm1584_vm13, %v1616_v39, %v1618_v56  ;;  %v7830_v62 = vld [vmem:[%s14065_s6 + $0x48] sm:$0xff]  ;;  %v7831_v26 = vld [vmem:[%s14065_s6 + $0x38] sm:$0xff] }
 0x2cd   : > { %v2433_v43 = vmul.f32 1.442695, %v2388_v18  ;;  %7406 = vmatpush.msra.mxu3 %v7829_v59  ;;  %v1199_v44 = vmul.f32 0.5, %v1198_v35  ;;  %vm1203_vm2 = vweird.f32 %v10235_v11  ;;  %v10293_v2 = vadd.f32 %v10106_v1, %v1704_v7 }
 0x2ce   : > { %v2047_v30 = vsel %vm2016_vm8, %v14375_v0, %v14152_v20  ;;  %v10296_v22 = vmul.f32 %v8748_v52, %v1617_v42  ;;  %v1851_v9 = vrot.slane %v10262_v29, 1  ;;  %v1262_v45 = vmul.f32 %v1185_v13, %v9428_v63  ;;  %vm10316_vm3 = vmor %vm1202_vm1, %vm1203_vm2 }
 0x2cf   : > { %7633 = vpow2.f32 %v2433_v43  ;;  %v2128_v39 = vadd.f32 %v2047_v30, %v1931_v33  ;;  %7407 = vmatpush.msra.mxu3 %v7830_v62  ;;  %v10303_v35 = vpop.eup %7631  ;;  %v1200_v18 = vsub.f32 1.5, %v1199_v44  ;;  %v14154_v7 = vrot.slane %v10271_v19, 2  ;;  %v7833_v44 = vld [vmem:[%s14065_s6 + $0x18] sm:$0xff] }
 0x2d0   : > { %v10307_v0 = vmul.f32 %v8718_v49, %v1619_v31  ;;  %v10309_v42 = vpop.f32.mrf.mxu0  ;;  %v1298_v29 = vmul.f32 %v10064_v28, %v1263_v53  ;;  %v1207_v33 = vmul.f32 %v10303_v35, %v10221_v25  ;;  %v1297_v30 = vmul.f32 %v10064_v28, %v1262_v45 }
 0x2d1   : > { %14376 = vst [vmem:[#allocation71_spill] sm:$0xff] %v10309_v42  ;;  %v1620_v13 = vrot.slane %v10309_v42, 5  ;;  %v14379_v43 = vrot.slane %v10118_v32, 3  ;;  %7408 = vmatpush.msra.mxu3 %v7831_v26  ;;  %v1201_v59 = vmul.f32 %v10235_v11, %v1200_v18  ;;  %v1705_v62 = vmul.f32 %v8710_v23, %v1619_v31  ;;  %7216 = vmatmul.msk.f32.gmra.mxu0 %vm14219_vm0, %v10258_v27 }
 0x2d2   : > { %v1208_v20 = vmul.f32 %v10303_v35, %v1207_v33  ;;  %vm1212_vm4 = vweird.f32 %v10221_v25  ;;  %v10342_v32 = vadd.f32 %v10087_v10, %v1297_v30  ;;  %v10352_v33 = vmul.f32 %v8732_v48, %v1619_v31  ;;  %v7832_v30 = vld [vmem:[%s14065_s6 + $0x28] sm:$0xff] }
 0x2d3   : > { %v2244_v53 = vsel %vm2213_vm10, %v14379_v43, %v14153_v54  ;;  %v14381_v43 = vrot.slane %v10151_v47, 1  ;;  %v1205_v26 = vsel %vm10316_vm3, %v10235_v11, %v1201_v59  ;;  %7409 = vmatpush.msra.mxu3 %v7832_v30  ;;  %v1621_v11 = vsel %vm1584_vm13, %v1618_v56, %v1620_v13 }
 0x2d4   : > { %v10335_v45 = vadd.f32 %v2244_v53, %v2128_v39  ;;  %14380 = vst [vmem:[#allocation72_spill] sm:$0xff] %v10342_v32  ;;  %v10355_v53 = vmul.f32 %v8748_v52, %v1619_v31  ;;  %7218 = vmatmul.msk.f32.gmra.mxu3 %vm14219_vm0, %v10342_v32  ;;  %v10368_v63 = vadd.f32 %v10087_v10, %v1298_v29  ;;  %vm1213_vm5 = vweird.f32 %v10303_v35 }
 0x2d5   : > { %v1852_v18 = vsel %vm1819_vm6, %v14381_v43, %v1851_v9  ;;  %v10360_v47 = vpop.eup %7633  ;;  %v1209_v43 = vmul.f32 0.5, %v1208_v20  ;;  %v10372_v59 = vadd.f32 %v10106_v1, %v1705_v62  ;;  %v1264_v30 = vmul.f32 %v1205_v26, %v9501_v16  ;;  %7410 = vmatpush.msra.mxu3 %v7833_v44  ;;  %vm10408_vm7 = vmor %vm1212_vm4, %vm1213_vm5 }
 0x2d6   : > { %14382 = vst [vmem:[#allocation73_spill] sm:$0xff] %v10368_v63  ;;  %v2357_v31 = vand.u32 2147483647, %v10335_v45  ;;  %v10376_v54 = vadd.f32 1.0, %v10360_v47  ;;  %v1932_v20 = vadd.f32 %v1852_v18, %v10215_v46  ;;  %v14383_v62 = vrot.slane %v10184_v58, 2 }
 0x2d7   : > { %v1210_v56 = vsub.f32 1.5, %v1209_v43  ;;  %v1706_v26 = vmul.f32 %v8710_v23, %v1621_v11  ;;  %v10390_v39 = vmul.f32 %v8718_v49, %v1621_v11  ;;  %v14384_v44 = vrot.slane %v10307_v0, 1  ;;  %v7834_v43 = vld [vmem:[%s14065_s6 + $0x8] sm:$0xff] }
 0x2d8   : > { %v2389_v29 = vsub.f32 0.0, %v2357_v31  ;;  %v2049_v16 = vsel %vm2016_vm8, %v14383_v62, %v14154_v7  ;;  %v10392_v46 = vpop.f32.mrf.mxu0  ;;  %7635 = vrcp.f32 %v10376_v54  ;;  %7411 = vmatpush.msra.mxu3 %v7834_v43  ;;  %v10403_v31 = vmul.f32 %v8732_v48, %v1621_v11 }
 0x2d9   : > { %v1854_v18 = vsel %vm1819_vm6, %v1851_v9, %v14384_v44  ;;  %v1211_v58 = vmul.f32 %v10303_v35, %v1210_v56  ;;  %v1622_v62 = vrot.slane %v10392_v46, 5  ;;  %v10414_v44 = vmul.f32 %v8748_v52, %v1621_v11 }
 0x2da   : > { %v2435_v7 = vmul.f32 1.442695, %v2389_v29  ;;  %v1299_v43 = vmul.f32 %v10064_v28, %v1264_v30  ;;  %v2129_v56 = vadd.f32 %v2049_v16, %v1932_v20  ;;  %v2739_v27 = vand.u32 2147483647, %v10376_v54 }
 0x2db   : > { %v1623_v55 = vsel %vm1584_vm13, %v1620_v13, %v1622_v62  ;;  %v2741_v29 = vand.u32 2147483648, %v10376_v54  ;;  %v10422_v57 = vadd.f32 %v10106_v1, %v1706_v26  ;;  %v14387_v9 = vrot.slane %v10296_v22, 3 }
 0x2dc   : > { %7637 = vpow2.f32 %v2435_v7  ;;  %v14388_v11 = vrot.slane %v10194_v15, 3  ;;  %v1933_v30 = vadd.f32 %v1854_v18, %v10293_v2  ;;  %v1215_v13 = vsel %vm10408_vm7, %v10303_v35, %v1211_v58  ;;  %7219 = vmatmul.msk.f32.gmra.mxu3 %vm14219_vm0, %v10368_v63 }
 0x2dd   : > { %v10442_v2 = vadd.f32 %v10087_v10, %v1299_v43  ;;  %vm2735_vm9 = vweird.f32 %v10376_v54  ;;  %vm10446_vm11 = vcmp.eq.f32.partialorder %v2739_v27, 8.507059e+37  ;;  %v2742_v18 = vor.u32 1.1754944e-38, %v2741_v29 }
 0x2de   : > { %v2246_v8 = vsel %vm2213_vm10, %v14388_v11, %v14387_v9  ;;  %v7636_v26 = vpop.eup %7635  ;;  %v1707_v9 = vmul.f32 %v8710_v23, %v1623_v55  ;;  %v14392_v58 = vrot.slane %v10352_v33, 2  ;;  %v10457_v43 = vmul.f32 %v8718_v49, %v1623_v55 }
 0x2df   : > { %v10437_v16 = vadd.f32 %v2246_v8, %v2129_v56  ;;  %14389 = vst [vmem:[#allocation74_spill] sm:$0xff] %v10442_v2  ;;  %v2731_v35 = vmul.f32 %v7636_v26, %v10376_v54  ;;  %v14393_v56 = vrot.slane %v10271_v19, 2  ;;  %v10460_v15 = vmul.f32 %v8732_v48, %v1623_v55 }
 0x2e0   : > { %v10462_v7 = vpop.f32.mrf.mxu0  ;;  %v1265_v27 = vmul.f32 %v1215_v13, %v9539_v17  ;;  %v10468_v25 = vmul.f32 %v8748_v52, %v1623_v55  ;;  %v10472_v38 = vadd.f32 %v10106_v1, %v1707_v9  ;;  %vm2484_vm12 = vcmp.ge.f32.partialorder %v10189_v50, 0.0 }
 0x2e1   : > { %v2358_v8 = vand.u32 2147483647, %v10437_v16  ;;  %v2051_v11 = vsel %vm2016_vm8, %v14393_v56, %v14392_v58  ;;  %14394 = vst [vmem:[#allocation75_spill] sm:$0xff] %v10462_v7  ;;  %v3873_v63 = vpop.permute.xlu1 %3872  ;;  %v14170_v19 = vrot.slane %v10462_v7, 5  ;;  %v2732_v58 = vsub.f32 1.0, %v2731_v35  ;;  %v3265_v12 = vpop.f32.mrf.mxu1 }
 0x2e2   : > { %v2130_v20 = vadd.f32 %v2051_v11, %v1933_v30  ;;  %v10465_v29 = vpop.eup %7637  ;;  %3968 = vst.msk [vmem:[#allocation4] sm:$0xff] %vm14220_vm14, %v3873_v63  ;;  %vm2736_vm15 = vweird.f32 %v7636_v26  ;;  %v14395_v55 = vrot.slane %v10355_v53, 3  ;;  %v14396_v30 = vrot.slane %v10296_v22, 3 }
 0x2e3   : > { %v2390_v56 = vsub.f32 0.0, %v2358_v8  ;;  %v10477_v17 = vadd.f32 1.0, %v10465_v29  ;;  %v10485_v35 = vadd.f32 %v3265_v12, %v9738_v60  ;;  %v10490_v1 = vsel %vm1584_vm13, %v1622_v62, %v14170_v19  ;;  %vm2737_vm1 = vmor %vm2735_vm9, %vm2736_vm15 }
 0x2e4   : > { %v2248_v13 = vsel %vm2213_vm10, %v14396_v30, %v14395_v55  ;;  %v2733_v63 = vmul.f32 %v7636_v26, %v2732_v58  ;;  %v14397_v9 = vrot.slane %v10390_v39, 1  ;;  %v14398_v8 = vrot.slane %v10307_v0, 1  ;;  %7220 = vmatmul.msk.f32.gmra.mxu3 %vm14219_vm0, %v10442_v2 }
 0x2e5   : > { %v1857_v42 = vrot.slane %v10457_v43, 1  ;;  %v1300_v22 = vmul.f32 %v10064_v28, %v1265_v27  ;;  %v2437_v55 = vmul.f32 1.442695, %v2390_v56  ;;  %v10499_v30 = vadd.f32 %v2248_v13, %v2130_v20  ;;  %3884 = vrot.lane.b32.xlu2 %v10485_v35, %s14199_s25 }
 0x2e6   : > { %v1856_v11 = vsel %vm1819_vm6, %v14398_v8, %v14397_v9  ;;  %v3494_v12 = vand.u32 2147483647, %v10485_v35  ;;  %v10506_v62 = vmul.f32 %v8718_v49, %v10490_v1  ;;  %v2734_v0 = vadd.f32 %v7636_v26, %v2733_v63 }
 0x2e7   : > { %7639 = vrcp.f32 %v10477_v17  ;;  %v2054_v28 = vrot.slane %v10460_v15, 2  ;;  %v2251_v20 = vrot.slane %v10468_v25, 3  ;;  %v10515_v43 = vmul.f32 %v8732_v48, %v10490_v1 }
 0x2e8   : > { %v1934_v27 = vadd.f32 %v1856_v11, %v10372_v59  ;;  %v3526_v58 = vsub.f32 0.0, %v3494_v12  ;;  %v10523_v56 = vmul.f32 %v8748_v52, %v10490_v1  ;;  %v2738_v13 = vsel %vm2737_vm1, %v7636_v26, %v2734_v0  ;;  %v3378_v12 = vpop.f32.mrf.mxu2 }
 0x2e9   : > { %v14399_v15 = vrot.slane %v10403_v31, 2  ;;  %v14400_v25 = vrot.slane %v10352_v33, 2  ;;  %v2743_v9 = vsel %vm10446_vm11, %v2742_v18, %v2738_v13  ;;  %v10533_v54 = vadd.f32 %v10087_v10, %v1300_v22 }
 0x2ea   : > { %7641 = vpow2.f32 %v2437_v55  ;;  %v2359_v59 = vand.u32 2147483647, %v10499_v30  ;;  %v3564_v8 = vmul.f32 1.442695, %v3526_v58  ;;  %v14169_v11 = vrot.slane %v10506_v62, 1 }
 0x2eb   : > { %v2053_v63 = vsel %vm2016_vm8, %v14400_v25, %v14399_v15  ;;  %14401 = vst [vmem:[#allocation76_spill] sm:$0xff] %v10533_v54  ;;  %v3028_v26 = vmul.f32 %v10360_v47, %v2743_v9  ;;  %v14402_v0 = vrot.slane %v10414_v44, 3  ;;  %v14403_v33 = vrot.slane %v10355_v53, 3 }
 0x2ec   : > { %v14168_v32 = vrot.slane %v10515_v43, 2  ;;  %v3379_v10 = vadd.f32 %v3378_v12, %v9774_v40  ;;  %v2391_v18 = vsub.f32 0.0, %v2359_v59  ;;  %v2131_v22 = vadd.f32 %v2053_v63, %v1934_v27  ;;  %7221 = vmatmul.msk.f32.gmra.mxu3 %vm14219_vm0, %v10533_v54 }
 0x2ed   : > { %v2250_v15 = vsel %vm2213_vm10, %v14403_v33, %v14402_v0  ;;  %v7640_v55 = vpop.eup %7639  ;;  %7643 = vpow2.f32 %v3564_v8  ;;  %v14167_v58 = vrot.slane %v10523_v56, 3  ;;  %v3060_v47 = vsel %vm2484_vm12, %v2743_v9, %v3028_v26 }
 0x2ee   : > { %v14404_v13 = vrot.slane %v10390_v39, 1  ;;  %v10552_v53 = vmul.f32 %v3060_v47, %v10189_v50  ;;  %4006 = vst.msk [vmem:[#allocation5 + $0x30] sm:$0xff] %vm14220_vm14, %v3379_v10  ;;  %v2746_v12 = vmul.f32 %v7640_v55, %v10477_v17  ;;  %v2754_v27 = vand.u32 2147483647, %v10477_v17 }
 0x2ef   : > { %v2439_v63 = vmul.f32 1.442695, %v2391_v18  ;;  %v2756_v59 = vand.u32 2147483648, %v10477_v17  ;;  %v10560_v9 = vadd.f32 %v2250_v15, %v2131_v22  ;;  %v1860_v50 = vsel %vm1819_vm6, %v1857_v42, %v14169_v11 }
 0x2f0   : > { %v1858_v25 = vsel %vm1819_vm6, %v14404_v13, %v1857_v42  ;;  %14405 = vst [vmem:[#allocation77_spill] sm:$0xff] %v10552_v53  ;;  %v10566_v8 = vpop.eup %7641  ;;  %7237 = vmatmul.msk.f32.gmra.mxu1 %vm14220_vm14, %v10552_v53  ;;  %7269 = vmatmul.msk.f32.gmra.mxu2 %vm14220_vm14, %v10552_v53  ;;  %v2747_v26 = vsub.f32 1.0, %v2746_v12  ;;  %v14406_v0 = vrot.slane %v10403_v31, 2  ;;  %v2057_v18 = vsel %vm2016_vm8, %v2054_v28, %v14168_v32 }
 0x2f1   : > { %v1935_v39 = vadd.f32 %v1858_v25, %v10422_v57  ;;  %7645 = vpow2.f32 %v2439_v63  ;;  %v1936_v57 = vadd.f32 %v1860_v50, %v10472_v38  ;;  %v10577_v15 = vadd.f32 1.0, %v10566_v8 }
 0x2f2   : > { %v2055_v33 = vsel %vm2016_vm8, %v14406_v0, %v2054_v28  ;;  %v2360_v42 = vand.u32 2147483647, %v10560_v9  ;;  %v2748_v22 = vmul.f32 %v7640_v55, %v2747_v26  ;;  %vm2751_vm2 = vweird.f32 %v7640_v55 }
 0x2f3   : > { %v2132_v10 = vadd.f32 %v2055_v33, %v1935_v39  ;;  %v2133_v47 = vadd.f32 %v2057_v18, %v1936_v57  ;;  %v7644_v13 = vpop.eup %7643  ;;  %vm2750_vm3 = vweird.f32 %v10477_v17  ;;  %7647 = vrcp.f32 %v10577_v15 }
 0x2f4   : > { %v14407_v38 = vrot.slane %v10414_v44, 3  ;;  %v2254_v25 = vsel %vm2213_vm10, %v2251_v20, %v14167_v58  ;;  %v3622_v12 = vadd.f32 1.0, %v7644_v13  ;;  %v2749_v63 = vadd.f32 %v7640_v55, %v2748_v22  ;;  %vm2752_vm4 = vmor %vm2750_vm3, %vm2751_vm2 }
 0x2f5   : > { %v2392_v39 = vsub.f32 0.0, %v2360_v42  ;;  %vm2755_vm5 = vcmp.eq.f32.partialorder %v2754_v27, 8.507059e+37  ;;  %v2757_v50 = vor.u32 1.1754944e-38, %v2756_v59  ;;  %v10593_v26 = vadd.f32 %v2254_v25, %v2133_v47  ;;  %v3268_v18 = vpop.f32.mrf.mxu1 }
 0x2f6   : > { %v2252_v31 = vsel %vm2213_vm10, %v14407_v38, %v2251_v20  ;;  %7649 = vlog2.f32 %v3622_v12  ;;  %v2753_v44 = vsel %vm2752_vm4, %v7640_v55, %v2749_v63  ;;  %v10604_v22 = vadd.f32 %v3268_v18, %v9738_v60 }
 0x2f7   : > { %v10591_v28 = vadd.f32 %v2252_v31, %v2132_v10  ;;  %v10595_v17 = vpop.eup %7645  ;;  %v2441_v0 = vmul.f32 1.442695, %v2392_v39  ;;  %v2758_v57 = vsel %vm2755_vm5, %v2757_v50, %v2753_v44  ;;  %v2362_v27 = vand.u32 2147483647, %v10593_v26 }
 0x2f8   : > { %v10599_v20 = vadd.f32 1.0, %v10595_v17  ;;  %v3029_v42 = vmul.f32 %v10465_v29, %v2758_v57  ;;  %vm2485_vm7 = vcmp.ge.f32.partialorder %v10335_v45, 0.0  ;;  %v3495_v13 = vand.u32 2147483647, %v10604_v22  ;;  %3886 = vrot.lane.b32.xlu1 %v10604_v22, %s14199_s25 }
 0x2f9   : > { %v2361_v33 = vand.u32 2147483647, %v10591_v28  ;;  %7651 = vpow2.f32 %v2441_v0  ;;  %v7648_v59 = vpop.eup %7647  ;;  %v3462_v31 = vmax.f32 %v10485_v35, 0.0  ;;  %v2394_v63 = vsub.f32 0.0, %v2362_v27 }
 0x2fa   : > { %7653 = vrcp.f32 %v10599_v20  ;;  %v3061_v55 = vsel %vm2485_vm7, %v2758_v57, %v3029_v42  ;;  %v2761_v47 = vmul.f32 %v7648_v59, %v10577_v15  ;;  %v3527_v50 = vsub.f32 0.0, %v3495_v13 }
 0x2fb   : > { %v2393_v10 = vsub.f32 0.0, %v2361_v33  ;;  %v10613_v29 = vmul.f32 %v3061_v55, %v10335_v45  ;;  %v2769_v44 = vand.u32 2147483647, %v10577_v15  ;;  %v2771_v0 = vand.u32 2147483648, %v10577_v15  ;;  %v3381_v33 = vpop.f32.mrf.mxu2 }
 0x2fc   : > { %v7650_v38 = vpop.eup %7649  ;;  %v2762_v25 = vsub.f32 1.0, %v2761_v47  ;;  %vm2766_vm9 = vweird.f32 %v7648_v59  ;;  %v2445_v35 = vmul.f32 1.442695, %v2394_v63  ;;  %v3382_v27 = vadd.f32 %v3381_v33, %v9774_v40 }
 0x2fd   : > { %14408 = vst [vmem:[#allocation78_spill] sm:$0xff] %v10613_v29  ;;  %v2443_v12 = vmul.f32 1.442695, %v2393_v10  ;;  %v3661_v39 = vmul.f32 0.6931472, %v7650_v38  ;;  %7238 = vmatmul.msk.f32.gmra.mxu1 %vm14220_vm14, %v10613_v29  ;;  %7270 = vmatmul.msk.f32.gmra.mxu2 %vm14220_vm14, %v10613_v29  ;;  %vm2765_vm11 = vweird.f32 %v10577_v15  ;;  %vm2770_vm15 = vcmp.eq.f32.partialorder %v2769_v44, 8.507059e+37 }
 0x2fe   : > { %v2763_v57 = vmul.f32 %v7648_v59, %v2762_v25  ;;  %v3566_v10 = vmul.f32 1.442695, %v3527_v50  ;;  %vm2767_vm12 = vmor %vm2765_vm11, %vm2766_vm9  ;;  %4007 = vst.msk [vmem:[#allocation5 + $0x38] sm:$0xff] %vm14220_vm14, %v3382_v27  ;;  %vm2486_vm2 = vcmp.ge.f32.partialorder %v10437_v16, 0.0  ;;  %vm2780_vm3 = vweird.f32 %v10599_v20 }
 0x2ff   : > { %v10622_v45 = vpop.eup %7651  ;;  %7655 = vpow2.f32 %v2443_v12  ;;  %v3718_v42 = vadd.f32 %v3661_v39, %v3462_v31  ;;  %v2772_v31 = vor.u32 1.1754944e-38, %v2771_v0  ;;  %v2786_v39 = vand.u32 2147483648, %v10599_v20 }
 0x300   : > { %v7654_v18 = vpop.eup %7653  ;;  %v10626_v55 = vadd.f32 1.0, %v10622_v45  ;;  %v2764_v47 = vadd.f32 %v7648_v59, %v2763_v57  ;;  %7657 = vpow2.f32 %v2445_v35  ;;  %vm2487_vm7 = vcmp.ge.f32.partialorder %v10499_v30, 0.0 }
 0x301   : > { %v2776_v13 = vmul.f32 %v7654_v18, %v10599_v20  ;;  %3750 = vst.msk [vmem:[#allocation2 + $0x30] sm:$0xff] %vm14220_vm14, %v3718_v42  ;;  %v3782_v38 = vmul.f32 %v3718_v42, %v9698_v6  ;;  %7659 = vpow2.f32 %v3566_v10  ;;  %v3881_v63 = vpop.permute.xlu1 %3880  ;;  %vm2781_vm1 = vweird.f32 %v7654_v18 }
 0x302   : > { %v2768_v25 = vsel %vm2767_vm12, %v7648_v59, %v2764_v47  ;;  %7661 = vrcp.f32 %v10626_v55  ;;  %v3271_v33 = vpop.f32.mrf.mxu1  ;;  %3972 = vst.msk [vmem:[#allocation4 + $0x20] sm:$0xff] %vm14220_vm14, %v3881_v63  ;;  %v2784_v59 = vand.u32 2147483647, %v10599_v20  ;;  %vm2782_vm4 = vmor %vm2780_vm3, %vm2781_vm1  ;;  %vm2488_vm11 = vcmp.ge.f32.partialorder %v10560_v9, 0.0 }
 0x303   : > { %v2777_v12 = vsub.f32 1.0, %v2776_v13  ;;  %3814 = vst.msk [vmem:[#allocation3 + $0x30] sm:$0xff] %vm14220_vm14, %v3782_v38  ;;  %v2773_v15 = vsel %vm2770_vm15, %v2772_v31, %v2768_v25  ;;  %v10643_v44 = vadd.f32 %v3271_v33, %v9738_v60  ;;  %v2787_v38 = vor.u32 1.1754944e-38, %v2786_v39 }
 0x304   : > { %v3030_v57 = vmul.f32 %v10566_v8, %v2773_v15  ;;  %vm2785_vm5 = vcmp.eq.f32.partialorder %v2784_v59, 8.507059e+37  ;;  %vm2795_vm12 = vweird.f32 %v10626_v55 }
 0x305   : > { %v10637_v50 = vpop.eup %7655  ;;  %v2778_v0 = vmul.f32 %v7654_v18, %v2777_v12  ;;  %v3496_v47 = vand.u32 2147483647, %v10643_v44  ;;  %3888 = vrot.lane.b32.xlu0 %v10643_v44, %s14199_s25 }
 0x306   : > { %v10647_v35 = vadd.f32 1.0, %v10637_v50  ;;  %v10649_v42 = vpop.eup %7657  ;;  %v3062_v10 = vsel %vm2486_vm2, %v2773_v15, %v3030_v57 }
 0x307   : > { %v2779_v27 = vadd.f32 %v7654_v18, %v2778_v0  ;;  %v7660_v8 = vpop.eup %7659  ;;  %v10656_v13 = vmul.f32 %v3062_v10, %v10437_v16  ;;  %v3528_v15 = vsub.f32 0.0, %v3496_v47  ;;  %v10668_v0 = vadd.f32 1.0, %v10649_v42 }
 0x308   : > { %7663 = vrcp.f32 %v10647_v35  ;;  %v7662_v31 = vpop.eup %7661  ;;  %v3623_v25 = vadd.f32 1.0, %v7660_v8  ;;  %v3384_v16 = vpop.f32.mrf.mxu2  ;;  %v2801_v8 = vand.u32 2147483648, %v10626_v55  ;;  %vm2810_vm2 = vweird.f32 %v10647_v35 }
 0x309   : > { %14409 = vst [vmem:[#allocation79_spill] sm:$0xff] %v10656_v13  ;;  %v2783_v12 = vsel %vm2782_vm4, %v7654_v18, %v2779_v27  ;;  %7239 = vmatmul.msk.f32.gmra.mxu1 %vm14220_vm14, %v10656_v13  ;;  %7271 = vmatmul.msk.f32.gmra.mxu2 %vm14220_vm14, %v10656_v13  ;;  %v2791_v63 = vmul.f32 %v7662_v31, %v10626_v55  ;;  %v3568_v33 = vmul.f32 1.442695, %v3528_v15  ;;  %vm2796_vm9 = vweird.f32 %v7662_v31 }
 0x30a   : > { %v2788_v20 = vsel %vm2785_vm5, %v2787_v38, %v2783_v12  ;;  %7665 = vlog2.f32 %v3623_v25  ;;  %v3385_v18 = vadd.f32 %v3384_v16, %v9774_v40  ;;  %v3274_v59 = vpop.f32.mrf.mxu1  ;;  %v2799_v27 = vand.u32 2147483647, %v10626_v55  ;;  %vm2797_vm15 = vmor %vm2795_vm12, %vm2796_vm9 }
 0x30b   : > { %v3031_v39 = vmul.f32 %v10595_v17, %v2788_v20  ;;  %v2792_v57 = vsub.f32 1.0, %v2791_v63  ;;  %7667 = vpow2.f32 %v3568_v33  ;;  %v10674_v17 = vadd.f32 %v3274_v59, %v9738_v60 }
 0x30c   : > { %4008 = vst.msk [vmem:[#allocation5 + $0x40] sm:$0xff] %vm14220_vm14, %v3385_v18  ;;  %7669 = vrcp.f32 %v10668_v0  ;;  %v3463_v15 = vmax.f32 %v10604_v22, 0.0  ;;  %v2814_v33 = vand.u32 2147483647, %v10647_v35  ;;  %v2816_v18 = vand.u32 2147483648, %v10647_v35 }
 0x30d   : > { %v3063_v10 = vsel %vm2487_vm7, %v2788_v20, %v3031_v39  ;;  %v2793_v25 = vmul.f32 %v7662_v31, %v2792_v57  ;;  %v3497_v20 = vand.u32 2147483647, %v10674_v17  ;;  %3890 = vrot.lane.b32.xlu2 %v10674_v17, %s14199_s25  ;;  %vm2800_vm1 = vcmp.eq.f32.partialorder %v2799_v27, 8.507059e+37 }
 0x30e   : > { %v7664_v47 = vpop.eup %7663  ;;  %v10677_v38 = vmul.f32 %v3063_v10, %v10499_v30  ;;  %v2802_v30 = vor.u32 1.1754944e-38, %v2801_v8  ;;  %vm2815_vm4 = vcmp.eq.f32.partialorder %v2814_v33, 8.507059e+37  ;;  %v2817_v54 = vor.u32 1.1754944e-38, %v2816_v18 }
 0x30f   : > { %v2806_v12 = vmul.f32 %v7664_v47, %v10647_v35  ;;  %v2794_v63 = vadd.f32 %v7662_v31, %v2793_v25  ;;  %v3529_v59 = vsub.f32 0.0, %v3497_v20  ;;  %vm2811_vm3 = vweird.f32 %v7664_v47 }
 0x310   : > { %v7666_v16 = vpop.eup %7665  ;;  %v3387_v55 = vpop.f32.mrf.mxu2  ;;  %vm2812_vm5 = vmor %vm2810_vm2, %vm2811_vm3  ;;  %v2831_v35 = vand.u32 2147483648, %v10668_v0  ;;  %vm2489_vm7 = vcmp.ge.f32.partialorder %v10591_v28, 0.0 }
 0x311   : > { %v2807_v39 = vsub.f32 1.0, %v2806_v12  ;;  %v3663_v57 = vmul.f32 0.6931472, %v7666_v16  ;;  %7240 = vmatmul.msk.f32.gmra.mxu1 %vm14220_vm14, %v10677_v38  ;;  %7272 = vmatmul.msk.f32.gmra.mxu2 %vm14220_vm14, %v10677_v38  ;;  %v2798_v22 = vsel %vm2797_vm15, %v7662_v31, %v2794_v63  ;;  %v7668_v8 = vpop.eup %7667  ;;  %v3570_v58 = vmul.f32 1.442695, %v3529_v59 }
 0x312   : > { %v2803_v10 = vsel %vm2800_vm1, %v2802_v30, %v2798_v22  ;;  %v3388_v16 = vadd.f32 %v3387_v55, %v9774_v40  ;;  %v7670_v32 = vpop.eup %7669  ;;  %v3624_v11 = vadd.f32 1.0, %v7668_v8  ;;  %v3464_v59 = vmax.f32 %v10643_v44, 0.0 }
 0x313   : > { %v2808_v25 = vmul.f32 %v7664_v47, %v2807_v39  ;;  %v3719_v12 = vadd.f32 %v3663_v57, %v3463_v15  ;;  %v3032_v20 = vmul.f32 %v10622_v45, %v2803_v10  ;;  %7671 = vpow2.f32 %v3570_v58  ;;  %v3277_v27 = vpop.f32.mrf.mxu1 }
 0x314   : > { %v2821_v45 = vmul.f32 %v7670_v32, %v10668_v0  ;;  %7673 = vlog2.f32 %v3624_v11  ;;  %4009 = vst.msk [vmem:[#allocation5 + $0x48] sm:$0xff] %vm14220_vm14, %v3388_v16  ;;  %v10707_v15 = vadd.f32 %v3277_v27, %v9738_v60  ;;  %vm2826_vm9 = vweird.f32 %v7670_v32 }
 0x315   : > { %v2809_v19 = vadd.f32 %v7664_v47, %v2808_v25  ;;  %3751 = vst.msk [vmem:[#allocation2 + $0x38] sm:$0xff] %vm14220_vm14, %v3719_v12  ;;  %v3783_v31 = vmul.f32 %v3719_v12, %v9798_v5  ;;  %v3064_v63 = vsel %vm2488_vm11, %v2803_v10, %v3032_v20  ;;  %vm2825_vm11 = vweird.f32 %v10668_v0 }
 0x316   : > { %v10710_v30 = vmul.f32 %v3064_v63, %v10560_v9  ;;  %v2822_v33 = vsub.f32 1.0, %v2821_v45  ;;  %v3498_v18 = vand.u32 2147483647, %v10707_v15  ;;  %3892 = vrot.lane.b32.xlu1 %v10707_v15, %s14199_s25  ;;  %vm2827_vm12 = vmor %vm2825_vm11, %vm2826_vm9  ;;  %v2832_v12 = vor.u32 1.1754944e-38, %v2831_v35 }
 0x317   : > { %v2813_v58 = vsel %vm2812_vm5, %v7664_v47, %v2809_v19  ;;  %3815 = vst.msk [vmem:[#allocation3 + $0x38] sm:$0xff] %vm14220_vm14, %v3783_v31  ;;  %vm2490_vm1 = vcmp.ge.f32.partialorder %v10593_v26, 0.0 }
 0x318   : > { %v2818_v39 = vsel %vm2815_vm4, %v2817_v54, %v2813_v58  ;;  %v2823_v19 = vmul.f32 %v7670_v32, %v2822_v33  ;;  %v2829_v54 = vand.u32 2147483647, %v10668_v0  ;;  %v3530_v9 = vsub.f32 0.0, %v3498_v18 }
 0x319   : > { %v3033_v11 = vmul.f32 %v10637_v50, %v2818_v39  ;;  %7241 = vmatmul.msk.f32.gmra.mxu1 %vm14220_vm14, %v10710_v30  ;;  %7273 = vmatmul.msk.f32.gmra.mxu2 %vm14220_vm14, %v10710_v30  ;;  %v7672_v57 = vpop.eup %7671  ;;  %v3390_v50 = vpop.f32.mrf.mxu2 }
 0x31a   : > { %v2824_v22 = vadd.f32 %v7670_v32, %v2823_v19  ;;  %v7674_v55 = vpop.eup %7673  ;;  %v3625_v10 = vadd.f32 1.0, %v7672_v57  ;;  %v3572_v25 = vmul.f32 1.442695, %v3530_v9  ;;  %v3391_v8 = vadd.f32 %v3390_v50, %v9774_v40 }
 0x31b   : > { %v3065_v47 = vsel %vm2489_vm7, %v2818_v39, %v3033_v11  ;;  %v3665_v16 = vmul.f32 0.6931472, %v7674_v55  ;;  %v3280_v20 = vpop.f32.mrf.mxu1  ;;  %vm2830_vm15 = vcmp.eq.f32.partialorder %v2829_v54, 8.507059e+37  ;;  %v848_v63 = vpop.xlane.xlu2 %847 }
 0x31c   : > { %v10728_v31 = vmul.f32 %v3065_v47, %v10591_v28  ;;  %v2828_v27 = vsel %vm2827_vm12, %v7670_v32, %v2824_v22  ;;  %7675 = vlog2.f32 %v3625_v10  ;;  %4010 = vst.msk [vmem:[#allocation5 + $0x50] sm:$0xff] %vm14220_vm14, %v3391_v8  ;;  %v10732_v44 = vadd.f32 %v3280_v20, %v9738_v60 }
 0x31d   : > { %v2833_v0 = vsel %vm2830_vm15, %v2832_v12, %v2828_v27  ;;  %v882_v45 = vmul.f32 %v848_v63, %v8321_v21  ;;  %v3720_v58 = vadd.f32 %v3665_v16, %v3464_v59  ;;  %7677 = vpow2.f32 %v3572_v25 }
 0x31e   : > { %v3034_v39 = vmul.f32 %v10649_v42, %v2833_v0  ;;  %v3499_v33 = vand.u32 2147483647, %v10732_v44  ;;  %3894 = vrot.lane.b32.xlu0 %v10732_v44, %s14199_s25  ;;  %v3465_v47 = vmax.f32 %v10674_v17, 0.0 }
 0x31f   : > { %v914_v32 = vadd.f32 1e-05, %v882_v45  ;;  %3752 = vst.msk [vmem:[#allocation2 + $0x40] sm:$0xff] %vm14220_vm14, %v3720_v58  ;;  %v3784_v28 = vmul.f32 %v3720_v58, %v9834_v41 }
 0x320   : > { %v3531_v18 = vsub.f32 0.0, %v3499_v33  ;;  %v3066_v42 = vsel %vm2490_vm1, %v2833_v0, %v3034_v39 }
 0x321   : > { %7242 = vmatmul.msk.f32.gmra.mxu1 %vm14220_vm14, %v10728_v31  ;;  %7274 = vmatmul.msk.f32.gmra.mxu2 %vm14220_vm14, %v10728_v31  ;;  %7679 = vrsqrt.f32 %v914_v32  ;;  %3816 = vst.msk [vmem:[#allocation3 + $0x40] sm:$0xff] %vm14220_vm14, %v3784_v28  ;;  %v3393_v11 = vpop.f32.mrf.mxu2  ;;  %v10750_v50 = vmul.f32 %v3066_v42, %v10593_v26  ;;  %vm1222_vm3 = vweird.f32 %v914_v32 }
 0x322   : > { %v7676_v35 = vpop.eup %7675  ;;  %v3574_v19 = vmul.f32 1.442695, %v3531_v18  ;;  %v3394_v54 = vadd.f32 %v3393_v11, %v9774_v40 }
 0x323   : > { %v7678_v9 = vpop.eup %7677  ;;  %v3667_v57 = vmul.f32 0.6931472, %v7676_v35  ;;  %v3283_v59 = vpop.f32.mrf.mxu1  ;;  %v3466_v35 = vmax.f32 %v10707_v15, 0.0 }
 0x324   : > { %v3875_v22 = vpop.permute.xlu2 %3874  ;;  %v3626_v55 = vadd.f32 1.0, %v7678_v9  ;;  %7681 = vpow2.f32 %v3574_v19  ;;  %4011 = vst.msk [vmem:[#allocation5 + $0x58] sm:$0xff] %vm14220_vm14, %v3394_v54  ;;  %v10754_v10 = vadd.f32 %v3283_v59, %v9738_v60  ;;  %v851_v25 = vpop.xlane.xlu0 %850 }
 0x325   : > { %v3721_v8 = vadd.f32 %v3667_v57, %v3465_v47  ;;  %3969 = vst.msk [vmem:[#allocation4 + $0x8] sm:$0xff] %vm14220_vm14, %v3875_v22  ;;  %v883_v12 = vmul.f32 %v851_v25, %v8321_v21 }
 0x326   : > { %7683 = vlog2.f32 %v3626_v55  ;;  %v3500_v16 = vand.u32 2147483647, %v10754_v10  ;;  %3896 = vrot.lane.b32.xlu2 %v10754_v10, %s14199_s25 }
 0x327   : > { %v7680_v17 = vpop.eup %7679  ;;  %3753 = vst.msk [vmem:[#allocation2 + $0x48] sm:$0xff] %vm14220_vm14, %v3721_v8  ;;  %v3785_v26 = vmul.f32 %v3721_v8, %v9860_v4  ;;  %v915_v27 = vadd.f32 1e-05, %v883_v12 }
 0x328   : > { %v1217_v20 = vmul.f32 %v7680_v17, %v914_v32  ;;  %v3532_v63 = vsub.f32 0.0, %v3500_v16  ;;  %vm1223_vm2 = vweird.f32 %v7680_v17  ;;  %v7835_v32 = vld [vmem:[%s14236_s1] ss:$0 sm:$0xff] }
 0x329   : > { %7243 = vmatmul.msk.f32.gmra.mxu1 %vm14220_vm14, %v10750_v50  ;;  %7275 = vmatmul.msk.f32.gmra.mxu2 %vm14220_vm14, %v10750_v50  ;;  %3817 = vst.msk [vmem:[#allocation3 + $0x48] sm:$0xff] %vm14220_vm14, %v3785_v26  ;;  %v3396_v0 = vpop.f32.mrf.mxu2  ;;  %7685 = vrsqrt.f32 %v915_v27  ;;  %vm1224_vm4 = vmor %vm1222_vm3, %vm1223_vm2  ;;  %v3467_v26 = vmax.f32 %v10732_v44, 0.0  ;;  %vm1232_vm7 = vweird.f32 %v915_v27 }
 0x32a   : > { %v1218_v45 = vmul.f32 %v7680_v17, %v1217_v20  ;;  %v7682_v58 = vpop.eup %7681  ;;  %v3576_v39 = vmul.f32 1.442695, %v3532_v63  ;;  %v3397_v33 = vadd.f32 %v3396_v0, %v9774_v40 }
 0x32b   : > { %v3627_v28 = vadd.f32 1.0, %v7682_v58 }
 0x32c   : > { %v1219_v18 = vmul.f32 0.5, %v1218_v45  ;;  %v3879_v42 = vpop.permute.xlu2 %3878  ;;  %v7684_v11 = vpop.eup %7683  ;;  %7687 = vpow2.f32 %v3576_v39  ;;  %4012 = vst.msk [vmem:[#allocation5 + $0x60] sm:$0xff] %vm14220_vm14, %v3397_v33 }
 0x32d   : > { %v3669_v19 = vmul.f32 0.6931472, %v7684_v11  ;;  %7689 = vlog2.f32 %v3627_v28  ;;  %3971 = vst.msk [vmem:[#allocation4 + $0x18] sm:$0xff] %vm14220_vm14, %v3879_v42 }
 0x32e   : > { %v1220_v54 = vsub.f32 1.5, %v1219_v18 }
 0x32f   : > { %v7686_v9 = vpop.eup %7685  ;;  %v3722_v47 = vadd.f32 %v3669_v19, %v3466_v35  ;;  %v1708_v35 = vmul.f32 %v8710_v23, %v10490_v1  ;;  %v14411_v19 = vrot.slane %v10462_v7, 5 }
 0x330   : > { %v1221_v57 = vmul.f32 %v7680_v17, %v1220_v54  ;;  %v1227_v59 = vmul.f32 %v7686_v9, %v915_v27  ;;  %vm1233_vm5 = vweird.f32 %v7686_v9 }
 0x331   : > { %3754 = vst.msk [vmem:[#allocation2 + $0x50] sm:$0xff] %vm14220_vm14, %v3722_v47  ;;  %v3786_v22 = vmul.f32 %v3722_v47, %v9913_v24  ;;  %vm1234_vm9 = vmor %vm1232_vm7, %vm1233_vm5  ;;  %v3468_v47 = vmax.f32 %v10754_v10, 0.0 }
 0x332   : > { %v1225_v15 = vsel %vm1224_vm4, %v7680_v17, %v1221_v57  ;;  %v7688_v55 = vpop.eup %7687  ;;  %v1228_v25 = vmul.f32 %v7686_v9, %v1227_v59 }
 0x333   : > { %v1266_v8 = vmul.f32 %v1225_v15, %v9968_v36  ;;  %v7690_v12 = vpop.eup %7689  ;;  %3818 = vst.msk [vmem:[#allocation3 + $0x50] sm:$0xff] %vm14220_vm14, %v3786_v22  ;;  %v3628_v16 = vadd.f32 1.0, %v7688_v55  ;;  %v7836_v36 = vld [vmem:[%s14061_s2] ss:$0 sm:$0xff]  ;;  %v10788_v28 = vpop.f32.mrf.mxu0 }
 0x334   : > { %v3671_v20 = vmul.f32 0.6931472, %v7690_v12  ;;  %v1229_v63 = vmul.f32 0.5, %v1228_v25  ;;  %v1626_v18 = vrot.slane %v10788_v28, 5  ;;  %v10807_v12 = vld [vmem:[%s14064_s5] ss:$0 sm:$0xff] }
 0x335   : > { %v1301_v0 = vmul.f32 %v7835_v32, %v1266_v8  ;;  %7691 = vlog2.f32 %v3628_v16 }
 0x336   : > { %v3723_v45 = vadd.f32 %v3671_v20, %v3467_v26  ;;  %v1230_v17 = vsub.f32 1.5, %v1229_v63  ;;  %v3877_v58 = vpop.permute.xlu0 %3876  ;;  %v1627_v54 = vsel %vm1584_vm13, %v14411_v19, %v1626_v18  ;;  %v14415_v19 = vrot.slane %v10523_v56, 3 }
 0x337   : > { %v10783_v39 = vadd.f32 %v7836_v36, %v1301_v0  ;;  %3970 = vst.msk [vmem:[#allocation4 + $0x10] sm:$0xff] %vm14220_vm14, %v3877_v58  ;;  %v1774_v59 = vmul.f32 %v8718_v49, %v1627_v54  ;;  %v1971_v22 = vmul.f32 %v8732_v48, %v1627_v54  ;;  %v2168_v15 = vmul.f32 %v8748_v52, %v1627_v54 }
 0x338   : > { %3755 = vst.msk [vmem:[#allocation2 + $0x58] sm:$0xff] %vm14220_vm14, %v3723_v45  ;;  %v3787_v44 = vmul.f32 %v3723_v45, %v9939_v61  ;;  %v1231_v33 = vmul.f32 %v7686_v9, %v1230_v17  ;;  %v14414_v58 = vrot.slane %v10515_v43, 2 }
 0x339   : > { %14410 = vst [vmem:[#allocation80_spill] sm:$0xff] %v10783_v39  ;;  %7222 = vmatmul.msk.f32.gmra.mxu3 %vm14219_vm0, %v10783_v39  ;;  %v1861_v25 = vrot.slane %v1774_v59, 1  ;;  %v2058_v8 = vrot.slane %v1971_v22, 2  ;;  %v2255_v20 = vrot.slane %v2168_v15, 3 }
 0x33a   : > { %3819 = vst.msk [vmem:[#allocation3 + $0x58] sm:$0xff] %vm14220_vm14, %v3787_v44  ;;  %v1235_v42 = vsel %vm1234_vm9, %v7686_v9, %v1231_v33  ;;  %v1709_v44 = vmul.f32 %v8710_v23, %v1627_v54 }
 0x33b   : > { %v7692_v11 = vpop.eup %7691  ;;  %v1267_v27 = vmul.f32 %v1235_v42, %v9999_v3  ;;  %v1740_v3 = vadd.f32 %v10807_v12, %v1708_v35 }
 0x33c   : > { %v3673_v57 = vmul.f32 0.6931472, %v7692_v11  ;;  %v1741_v59 = vadd.f32 %v10807_v12, %v1709_v44 }
 0x33d   : > { %v1302_v9 = vmul.f32 %v7835_v32, %v1267_v27  ;;  %v14413_v32 = vrot.slane %v10506_v62, 1  ;;  %v2256_v27 = vsel %vm2213_vm10, %v14415_v19, %v2255_v20 }
 0x33e   : > { %v3724_v55 = vadd.f32 %v3673_v57, %v3468_v47  ;;  %v3883_v1 = vpop.permute.xlu0 %3882  ;;  %v10815_v63 = vpop.f32.mrf.mxu0 }
 0x33f   : > { %v3885_v10 = vpop.permute.xlu2 %3884  ;;  %3973 = vst.msk [vmem:[#allocation4 + $0x28] sm:$0xff] %vm14220_vm14, %v3883_v1  ;;  %v10811_v16 = vadd.f32 %v7836_v36, %v1302_v9  ;;  %v1862_v0 = vsel %vm1819_vm6, %v14413_v32, %v1861_v25  ;;  %v1628_v45 = vrot.slane %v10815_v63, 5  ;;  %v2059_v36 = vsel %vm2016_vm8, %v14414_v58, %v2058_v8 }
 0x340   : > { %3756 = vst.msk [vmem:[#allocation2 + $0x60] sm:$0xff] %vm14220_vm14, %v3724_v55  ;;  %v3788_v26 = vmul.f32 %v3724_v55, %v9965_v34  ;;  %v1937_v17 = vadd.f32 %v1862_v0, %v1740_v3 }
 0x341   : > { %14412 = vst [vmem:[#allocation81_spill] sm:$0xff] %v10811_v16  ;;  %7223 = vmatmul.msk.f32.gmra.mxu3 %vm14219_vm0, %v10811_v16  ;;  %v1629_v62 = vsel %vm1584_vm13, %v1626_v18, %v1628_v45 }
 0x342   : > { %3974 = vst.msk [vmem:[#allocation4 + $0x30] sm:$0xff] %vm14220_vm14, %v3885_v10  ;;  %v2134_v33 = vadd.f32 %v2059_v36, %v1937_v17  ;;  %v1775_v42 = vmul.f32 %v8718_v49, %v1629_v62  ;;  %v1972_v11 = vmul.f32 %v8732_v48, %v1629_v62  ;;  %v2169_v35 = vmul.f32 %v8748_v52, %v1629_v62 }
 0x343   : > { %3820 = vst.msk [vmem:[#allocation3 + $0x60] sm:$0xff] %vm14220_vm14, %v3788_v26  ;;  %v1710_v3 = vmul.f32 %v8710_v23, %v1629_v62 }
 0x344   : > { %v10836_v47 = vadd.f32 %v2256_v27, %v2134_v33  ;;  %v1863_v43 = vrot.slane %v1775_v42, 1  ;;  %v2060_v57 = vrot.slane %v1972_v11, 2  ;;  %v2257_v18 = vrot.slane %v2169_v35, 3 }
 0x345   : > { %v1742_v33 = vadd.f32 %v10807_v12, %v1710_v3 }
 0x346   : > { %v2363_v54 = vand.u32 2147483647, %v10836_v47  ;;  %v10840_v22 = vpop.f32.mrf.mxu0  ;;  %v1864_v15 = vsel %vm1819_vm6, %v1861_v25, %v1863_v43  ;;  %v2061_v56 = vsel %vm2016_vm8, %v2058_v8, %v2060_v57  ;;  %v2258_v58 = vsel %vm2213_vm10, %v2255_v20, %v2257_v18 }
 0x347   : > { %14416 = vst [vmem:[#allocation82_spill] sm:$0xff] %v10840_v22  ;;  %v1630_v9 = vrot.slane %v10840_v22, 5  ;;  %v1938_v1 = vadd.f32 %v1864_v15, %v1741_v59  ;;  %vm2491_vm11 = vcmp.ge.f32.partialorder %v10836_v47, 0.0 }
 0x348   : > { %v2395_v55 = vsub.f32 0.0, %v2363_v54 }
 0x349   : > { %v1631_v10 = vsel %vm1584_vm13, %v1628_v45, %v1630_v9  ;;  %v2135_v32 = vadd.f32 %v2061_v56, %v1938_v1 }
 0x34a   : > { %v2447_v26 = vmul.f32 1.442695, %v2395_v55  ;;  %v1776_v0 = vmul.f32 %v8718_v49, %v1631_v10  ;;  %v1973_v17 = vmul.f32 %v8732_v48, %v1631_v10  ;;  %v10852_v44 = vpop.f32.mrf.mxu3  ;;  %v10856_v8 = vmul.f32 %v8748_v52, %v1631_v10 }
 0x34b   : > { %v10850_v36 = vadd.f32 %v2258_v58, %v2135_v32  ;;  %14417 = vst [vmem:[#allocation83_spill] sm:$0xff] %v10852_v44  ;;  %v1634_v20 = vrot.slane %v10852_v44, 5 }
 0x34c   : > { %v1865_v25 = vrot.slane %v1776_v0, 1  ;;  %7693 = vpow2.f32 %v2447_v26  ;;  %v2062_v62 = vrot.slane %v1973_v17, 2  ;;  %v2259_v59 = vrot.slane %v10856_v8, 3 }
 0x34d   : > { %v2364_v45 = vand.u32 2147483647, %v10850_v36  ;;  %v1711_v26 = vmul.f32 %v8710_v23, %v1631_v10  ;;  %vm2492_vm4 = vcmp.ge.f32.partialorder %v10850_v36, 0.0 }
 0x34e   : > { %v10859_v42 = vpop.f32.mrf.mxu0  ;;  %v1866_v11 = vsel %vm1819_vm6, %v1863_v43, %v1865_v25  ;;  %v2063_v43 = vsel %vm2016_vm8, %v2060_v57, %v2062_v62 }
 0x34f   : > { %14418 = vst [vmem:[#allocation84_spill] sm:$0xff] %v10859_v42  ;;  %v1632_v35 = vrot.slane %v10859_v42, 5  ;;  %v2396_v19 = vsub.f32 0.0, %v2364_v45  ;;  %v1939_v27 = vadd.f32 %v1866_v11, %v1742_v33  ;;  %v2260_v33 = vsel %vm2213_vm10, %v2257_v18, %v2259_v59 }
 0x350   : > { %v1743_v10 = vadd.f32 %v10807_v12, %v1711_v26 }
 0x351   : > { %v1633_v54 = vsel %vm1584_vm13, %v1630_v9, %v1632_v35  ;;  %v1635_v15 = vsel %vm1584_vm13, %v1632_v35, %v1634_v20  ;;  %v2449_v56 = vmul.f32 1.442695, %v2396_v19  ;;  %v2136_v32 = vadd.f32 %v2063_v43, %v1939_v27 }
 0x352   : > { %v1777_v55 = vmul.f32 %v8718_v49, %v1633_v54  ;;  %v10869_v1 = vmul.f32 %v8718_v49, %v1635_v15  ;;  %v10872_v3 = vpop.eup %7693  ;;  %v1712_v0 = vmul.f32 %v8710_v23, %v1633_v54  ;;  %v1974_v9 = vmul.f32 %v8732_v48, %v1633_v54 }
 0x353   : > { %v10881_v45 = vmul.f32 %v8732_v48, %v1635_v15  ;;  %v10886_v11 = vadd.f32 1.0, %v10872_v3  ;;  %7695 = vpow2.f32 %v2449_v56  ;;  %v10890_v19 = vadd.f32 %v2260_v33, %v2136_v32 }
 0x354   : > { %v1867_v17 = vrot.slane %v1777_v55, 1  ;;  %v1869_v58 = vrot.slane %v10869_v1, 1  ;;  %v1744_v27 = vadd.f32 %v10807_v12, %v1712_v0  ;;  %v2064_v18 = vrot.slane %v1974_v9, 2 }
 0x355   : > { %7697 = vrcp.f32 %v10886_v11  ;;  %v2365_v43 = vand.u32 2147483647, %v10890_v19  ;;  %v2066_v26 = vrot.slane %v10881_v45, 2  ;;  %v10900_v16 = vmul.f32 %v8748_v52, %v1635_v15 }
 0x356   : > { %v1868_v8 = vsel %vm1819_vm6, %v1865_v25, %v1867_v17  ;;  %v2171_v25 = vmul.f32 %v8748_v52, %v1633_v54  ;;  %v1870_v55 = vsel %vm1819_vm6, %v1867_v17, %v1869_v58  ;;  %v1713_v32 = vmul.f32 %v8710_v23, %v1635_v15 }
 0x357   : > { %v10883_v57 = vpop.f32.mrf.mxu3  ;;  %v1940_v56 = vadd.f32 %v1868_v8, %v1743_v10  ;;  %v2397_v0 = vsub.f32 0.0, %v2365_v43  ;;  %v1941_v54 = vadd.f32 %v1870_v55, %v1744_v27  ;;  %v2067_v15 = vsel %vm2016_vm8, %v2064_v18, %v2066_v26 }
 0x358   : > { %14419 = vst [vmem:[#allocation85_spill] sm:$0xff] %v10883_v57  ;;  %v1636_v35 = vrot.slane %v10883_v57, 5  ;;  %v2261_v33 = vrot.slane %v2171_v25, 3  ;;  %v2844_v25 = vand.u32 2147483647, %v10886_v11  ;;  %v2846_v55 = vand.u32 2147483648, %v10886_v11 }
 0x359   : > { %v10903_v9 = vpop.eup %7695  ;;  %v2451_v45 = vmul.f32 1.442695, %v2397_v0  ;;  %v2138_v24 = vadd.f32 %v2067_v15, %v1941_v54  ;;  %vm2840_vm12 = vweird.f32 %v10886_v11 }
 0x35a   : > { %v1637_v1 = vsel %vm1584_vm13, %v1634_v20, %v1636_v35  ;;  %v2065_v20 = vsel %vm2016_vm8, %v2062_v62, %v2064_v18  ;;  %v10913_v8 = vadd.f32 1.0, %v10903_v9  ;;  %v2262_v0 = vsel %vm2213_vm10, %v2259_v59, %v2261_v33 }
 0x35b   : > { %v10906_v39 = vmul.f32 %v8718_v49, %v1637_v1  ;;  %v10910_v17 = vmul.f32 %v8732_v48, %v1637_v1  ;;  %v2137_v10 = vadd.f32 %v2065_v20, %v1940_v56  ;;  %v7698_v2 = vpop.eup %7697  ;;  %v1714_v62 = vmul.f32 %v8710_v23, %v1637_v1 }
 0x35c   : > { %v10923_v21 = vmul.f32 %v8748_v52, %v1637_v1  ;;  %v2836_v34 = vmul.f32 %v7698_v2, %v10886_v11  ;;  %7699 = vrcp.f32 %v10913_v8  ;;  %v1745_v1 = vadd.f32 %v10807_v12, %v1713_v32 }
 0x35d   : > { %7701 = vpow2.f32 %v2451_v45  ;;  %v10931_v61 = vadd.f32 %v2262_v0, %v2137_v10  ;;  %vm10936_vm15 = vcmp.eq.f32.partialorder %v2844_v25, 8.507059e+37  ;;  %v2847_v56 = vor.u32 1.1754944e-38, %v2846_v55 }
 0x35e   : > { %v2837_v43 = vsub.f32 1.0, %v2836_v34  ;;  %v10941_v45 = vadd.f32 %v10807_v12, %v1714_v62  ;;  %vm2841_vm1 = vweird.f32 %v7698_v2  ;;  %v14423_v10 = vrot.slane %v10900_v16, 3 }
 0x35f   : > { %v10917_v27 = vpop.f32.mrf.mxu3  ;;  %v2366_v34 = vand.u32 2147483647, %v10931_v61  ;;  %v14424_v25 = vrot.slane %v10906_v39, 1  ;;  %vm2855_vm2 = vweird.f32 %v10913_v8  ;;  %v14425_v54 = vrot.slane %v10910_v17, 2  ;;  %vm2842_vm3 = vmor %vm2840_vm12, %vm2841_vm1 }
 0x360   : > { %14420 = vst [vmem:[#allocation86_spill] sm:$0xff] %v10917_v27  ;;  %v1638_v18 = vrot.slane %v10917_v27, 5  ;;  %v2838_v59 = vmul.f32 %v7698_v2, %v2837_v43  ;;  %v2264_v15 = vsel %vm2213_vm10, %v2261_v33, %v14423_v10  ;;  %vm2493_vm12 = vcmp.ge.f32.partialorder %v10890_v19, 0.0 }
 0x361   : > { %v1872_v0 = vsel %vm1819_vm6, %v1869_v58, %v14424_v25  ;;  %v10955_v43 = vadd.f32 %v2264_v15, %v2138_v24  ;;  %v2859_v24 = vand.u32 2147483647, %v10913_v8  ;;  %v2398_v10 = vsub.f32 0.0, %v2366_v34 }
 0x362   : > { %v1639_v32 = vsel %vm1584_vm13, %v1636_v35, %v1638_v18  ;;  %v10952_v55 = vpop.eup %7699  ;;  %v2839_v20 = vadd.f32 %v7698_v2, %v2838_v59  ;;  %v2069_v35 = vsel %vm2016_vm8, %v2066_v26, %v14425_v54  ;;  %v2861_v59 = vand.u32 2147483648, %v10913_v8 }
 0x363   : > { %v10960_v41 = vpop.eup %7701  ;;  %v2851_v58 = vmul.f32 %v10952_v55, %v10913_v8  ;;  %v1715_v26 = vmul.f32 %v8710_v23, %v1639_v32  ;;  %v10981_v11 = vmul.f32 %v8732_v48, %v1639_v32  ;;  %v10986_v34 = vmul.f32 %v8748_v52, %v1639_v32 }
 0x364   : > { %v2843_v15 = vsel %vm2842_vm3, %v7698_v2, %v2839_v20  ;;  %v10975_v25 = vadd.f32 1.0, %v10960_v41  ;;  %v2367_v20 = vand.u32 2147483647, %v10955_v43  ;;  %vm2856_vm5 = vweird.f32 %v10952_v55 }
 0x365   : > { %v2848_v5 = vsel %vm10936_vm15, %v2847_v56, %v2843_v15  ;;  %v2852_v6 = vsub.f32 1.0, %v2851_v58  ;;  %vm10994_vm7 = vcmp.eq.f32.partialorder %v2859_v24, 8.507059e+37  ;;  %v2453_v56 = vmul.f32 1.442695, %v2398_v10  ;;  %vm2857_vm9 = vmor %vm2855_vm2, %vm2856_vm5 }
 0x366   : > { %v3035_v2 = vmul.f32 %v10872_v3, %v2848_v5  ;;  %7703 = vrcp.f32 %v10975_v25  ;;  %v11008_v22 = vadd.f32 %v10807_v12, %v1715_v26  ;;  %v2874_v4 = vand.u32 2147483647, %v10975_v25 }
 0x367   : > { %v3891_v62 = vpop.permute.xlu2 %3890  ;;  %v10963_v33 = vpop.f32.mrf.mxu3  ;;  %v2853_v15 = vmul.f32 %v10952_v55, %v2852_v6  ;;  %7705 = vpow2.f32 %v2453_v56  ;;  %vm2494_vm3 = vcmp.ge.f32.partialorder %v10931_v61, 0.0 }
 0x368   : > { %3977 = vst.msk [vmem:[#allocation4 + $0x48] sm:$0xff] %vm14220_vm14, %v3891_v62  ;;  %v1640_v54 = vrot.slane %v10963_v33, 5  ;;  %v10978_v62 = vmul.f32 %v8718_v49, %v1639_v32  ;;  %v1942_v32 = vadd.f32 %v1872_v0, %v1745_v1  ;;  %v2862_v1 = vor.u32 1.1754944e-38, %v2861_v59 }
 0x369   : > { %14426 = vst [vmem:[#allocation87_spill] sm:$0xff] %v10963_v33  ;;  %vm2875_vm2 = vcmp.eq.f32.partialorder %v2874_v4, 8.507059e+37 }
 0x36a   : > { %v3887_v57 = vpop.permute.xlu1 %3886  ;;  %v1641_v3 = vsel %vm1584_vm13, %v1638_v18, %v1640_v54  ;;  %v2399_v18 = vsub.f32 0.0, %v2367_v20  ;;  %v2139_v59 = vadd.f32 %v2069_v35, %v1942_v32 }
 0x36b   : > { %3975 = vst.msk [vmem:[#allocation4 + $0x38] sm:$0xff] %vm14220_vm14, %v3887_v57  ;;  %v3067_v57 = vsel %vm2491_vm11, %v2848_v5, %v3035_v2  ;;  %v2854_v5 = vadd.f32 %v10952_v55, %v2853_v15  ;;  %v1716_v26 = vmul.f32 %v8710_v23, %v1641_v3  ;;  %v11028_v10 = vmul.f32 %v8718_v49, %v1641_v3 }
 0x36c   : > { %v11025_v2 = vpop.eup %7703  ;;  %vm2870_vm11 = vweird.f32 %v10975_v25  ;;  %v11039_v35 = vmul.f32 %v8732_v48, %v1641_v3 }
 0x36d   : > { %v3286_v27 = vpop.f32.mrf.mxu1  ;;  %v2858_v8 = vsel %vm2857_vm9, %v10952_v55, %v2854_v5  ;;  %v2866_v15 = vmul.f32 %v11025_v2, %v10975_v25  ;;  %v2455_v55 = vmul.f32 1.442695, %v2399_v18  ;;  %v11051_v5 = vadd.f32 %v10807_v12, %v1716_v26  ;;  %v11065_v12 = vpop.eup %7705 }
 0x36e   : > { %v11002_v58 = vadd.f32 %v3286_v27, %v9738_v60  ;;  %v11016_v27 = vmul.f32 %v3067_v57, %v10836_v47  ;;  %v2863_v32 = vsel %vm10994_vm7, %v2862_v1, %v2858_v8  ;;  %v14429_v1 = vrot.slane %v10923_v21, 3 }
 0x36f   : > { %v11034_v57 = vpop.f32.mrf.mxu3  ;;  %v3036_v24 = vmul.f32 %v10903_v9, %v2863_v32  ;;  %v14430_v8 = vrot.slane %v10900_v16, 3  ;;  %v2867_v18 = vsub.f32 1.0, %v2866_v15  ;;  %vm2871_vm15 = vweird.f32 %v11025_v2 }
 0x370   : > { %v3501_v0 = vand.u32 2147483647, %v11002_v58  ;;  %3898 = vrot.lane.b32.xlu1 %v11002_v58, %s14199_s25  ;;  %7244 = vmatmul.msk.f32.gmra.mxu1 %vm14220_vm14, %v11016_v27  ;;  %v2876_v16 = vand.u32 2147483648, %v10975_v25  ;;  %vm2872_vm1 = vmor %vm2870_vm11, %vm2871_vm15 }
 0x371   : > { %7276 = vmatmul.msk.f32.gmra.mxu2 %vm14220_vm14, %v11016_v27  ;;  %v3068_v9 = vsel %vm2492_vm4, %v2863_v32, %v3036_v24  ;;  %v2868_v24 = vmul.f32 %v11025_v2, %v2867_v18 }
 0x372   : > { %v3533_v47 = vsub.f32 0.0, %v3501_v0  ;;  %v11047_v0 = vmul.f32 %v8748_v52, %v1641_v3  ;;  %v2266_v3 = vsel %vm2213_vm10, %v14430_v8, %v14429_v1 }
 0x373   : > { %v3399_v20 = vpop.f32.mrf.mxu2 }
 0x374   : > { %v3400_v56 = vadd.f32 %v3399_v20, %v9774_v40  ;;  %v3578_v6 = vmul.f32 1.442695, %v3533_v47  ;;  %v14190_v20 = vrot.slane %v11034_v57, 5  ;;  %v11063_v47 = vadd.f32 %v2266_v3, %v2139_v59 }
 0x375   : > { %v11077_v59 = vadd.f32 1.0, %v11065_v12  ;;  %v14432_v3 = vrot.slane %v10978_v62, 1 }
 0x376   : > { %4013 = vst.msk [vmem:[#allocation5 + $0x68] sm:$0xff] %vm14220_vm14, %v3400_v56  ;;  %7707 = vpow2.f32 %v3578_v6  ;;  %v11073_v6 = vmul.f32 %v3068_v9, %v10850_v36  ;;  %v11086_v15 = vsel %vm1584_vm13, %v1640_v54, %v14190_v20  ;;  %v2368_v36 = vand.u32 2147483647, %v11063_v47 }
 0x377   : > { %v3889_v1 = vpop.permute.xlu0 %3888  ;;  %7709 = vpow2.f32 %v2455_v55  ;;  %v14433_v9 = vrot.slane %v10906_v39, 1  ;;  %v2869_v54 = vadd.f32 %v11025_v2, %v2868_v24  ;;  %v2877_v39 = vor.u32 1.1754944e-38, %v2876_v16 }
 0x378   : > { %14431 = vst [vmem:[#allocation88_spill] sm:$0xff] %v11073_v6  ;;  %7245 = vmatmul.msk.f32.gmra.mxu1 %vm14220_vm14, %v11073_v6  ;;  %7711 = vrcp.f32 %v11077_v59  ;;  %v11111_v20 = vmul.f32 %v8718_v49, %v11086_v15  ;;  %v11115_v24 = vmul.f32 %v8732_v48, %v11086_v15  ;;  %v2889_v44 = vand.u32 2147483647, %v11077_v59 }
 0x379   : > { %3976 = vst.msk [vmem:[#allocation4 + $0x40] sm:$0xff] %vm14220_vm14, %v3889_v1  ;;  %v1874_v55 = vsel %vm1819_vm6, %v14433_v9, %v14432_v3  ;;  %7277 = vmatmul.msk.f32.gmra.mxu2 %vm14220_vm14, %v11073_v6  ;;  %v2400_v3 = vsub.f32 0.0, %v2368_v36  ;;  %v2873_v25 = vsel %vm2872_vm1, %v11025_v2, %v2869_v54  ;;  %v14434_v36 = vrot.slane %v10981_v11, 2 }
 0x37a   : > { %v3289_v8 = vpop.f32.mrf.mxu1  ;;  %v2878_v16 = vsel %vm2875_vm2, %v2877_v39, %v2873_v25  ;;  %v14436_v25 = vrot.slane %v11028_v10, 1  ;;  %vm2885_vm4 = vweird.f32 %v11077_v59  ;;  %vm11171_vm5 = vcmp.eq.f32.partialorder %v2889_v44, 8.507059e+37 }
 0x37b   : > { %v11096_v1 = vadd.f32 %v3289_v8, %v9738_v60  ;;  %v1943_v8 = vadd.f32 %v1874_v55, %v10941_v45  ;;  %v11123_v45 = vmul.f32 %v8748_v52, %v11086_v15  ;;  %v14435_v55 = vrot.slane %v10910_v17, 2 }
 0x37c   : > { %v7708_v9 = vpop.eup %7707  ;;  %v3037_v33 = vmul.f32 %v10960_v41, %v2878_v16  ;;  %v2457_v2 = vmul.f32 1.442695, %v2400_v3  ;;  %v14437_v17 = vrot.slane %v10978_v62, 1  ;;  %v1877_v3 = vrot.slane %v11111_v20, 1 }
 0x37d   : > { %v3502_v18 = vand.u32 2147483647, %v11096_v1  ;;  %3900 = vrot.lane.b32.xlu0 %v11096_v1, %s14199_s25  ;;  %v3629_v4 = vadd.f32 1.0, %v7708_v9  ;;  %v2071_v32 = vsel %vm2016_vm8, %v14435_v55, %v14434_v36  ;;  %v11130_v56 = vpop.eup %7709 }
 0x37e   : > { %v11135_v9 = vadd.f32 1.0, %v11130_v56  ;;  %v2140_v39 = vadd.f32 %v2071_v32, %v1943_v8  ;;  %v1876_v36 = vsel %vm1819_vm6, %v14437_v17, %v14436_v25  ;;  %v7712_v55 = vpop.eup %7711  ;;  %v3069_v41 = vsel %vm2493_vm12, %v2878_v16, %v3037_v33 }
 0x37f   : > { %v3534_v26 = vsub.f32 0.0, %v3502_v18  ;;  %7713 = vlog2.f32 %v3629_v4  ;;  %v11147_v7 = vmul.f32 %v3069_v41, %v10890_v19  ;;  %v2881_v32 = vmul.f32 %v7712_v55, %v11077_v59 }
 0x380   : > { %v3402_v54 = vpop.f32.mrf.mxu2  ;;  %7715 = vpow2.f32 %v2457_v2  ;;  %v3897_v4 = vpop.permute.xlu2 %3896  ;;  %v14439_v33 = vrot.slane %v10986_v34, 3  ;;  %v14440_v8 = vrot.slane %v10923_v21, 3  ;;  %v14443_v17 = vrot.slane %v11039_v35, 2 }
 0x381   : > { %v3580_v42 = vmul.f32 1.442695, %v3534_v26  ;;  %v3403_v18 = vadd.f32 %v3402_v54, %v9774_v40  ;;  %14438 = vst [vmem:[#allocation89_spill] sm:$0xff] %v11147_v7  ;;  %7717 = vrcp.f32 %v11135_v9  ;;  %v2891_v26 = vand.u32 2147483648, %v11077_v59  ;;  %7246 = vmatmul.msk.f32.gmra.mxu1 %vm14220_vm14, %v11147_v7  ;;  %7278 = vmatmul.msk.f32.gmra.mxu2 %vm14220_vm14, %v11147_v7 }
 0x382   : > { %3980 = vst.msk [vmem:[#allocation4 + $0x60] sm:$0xff] %vm14220_vm14, %v3897_v4  ;;  %v2268_v16 = vsel %vm2213_vm10, %v14440_v8, %v14439_v33  ;;  %v1944_v54 = vadd.f32 %v1876_v36, %v11008_v22  ;;  %vm2886_vm7 = vweird.f32 %v7712_v55  ;;  %vm2900_vm9 = vweird.f32 %v11135_v9 }
 0x383   : > { %7719 = vpow2.f32 %v3580_v42  ;;  %4014 = vst.msk [vmem:[#allocation5 + $0x70] sm:$0xff] %vm14220_vm14, %v3403_v18  ;;  %v2882_v42 = vsub.f32 1.0, %v2881_v32  ;;  %v11165_v2 = vadd.f32 %v2268_v16, %v2140_v39  ;;  %v14444_v18 = vrot.slane %v10981_v11, 2  ;;  %vm2887_vm11 = vmor %vm2885_vm4, %vm2886_vm7 }
 0x384   : > { %v2892_v16 = vor.u32 1.1754944e-38, %v2891_v26  ;;  %vm2495_vm12 = vcmp.ge.f32.partialorder %v10955_v43, 0.0 }
 0x385   : > { %v2073_v41 = vsel %vm2016_vm8, %v14444_v18, %v14443_v17  ;;  %v7714_v39 = vpop.eup %7713  ;;  %v2883_v32 = vmul.f32 %v7712_v55, %v2882_v42  ;;  %v2369_v22 = vand.u32 2147483647, %v11165_v2  ;;  %v14445_v42 = vrot.slane %v11047_v0, 3 }
 0x386   : > { %v3292_v4 = vpop.f32.mrf.mxu1  ;;  %v2141_v36 = vadd.f32 %v2073_v41, %v1944_v54  ;;  %v11181_v33 = vpop.eup %7715  ;;  %v3675_v8 = vmul.f32 0.6931472, %v7714_v39  ;;  %v14446_v18 = vrot.slane %v10986_v34, 3  ;;  %v14447_v41 = vrot.slane %v11028_v10, 1 }
 0x387   : > { %v11184_v44 = vadd.f32 %v3292_v4, %v9738_v60  ;;  %v7718_v25 = vpop.eup %7717  ;;  %v2884_v11 = vadd.f32 %v7712_v55, %v2883_v32  ;;  %v11188_v17 = vadd.f32 1.0, %v11181_v33  ;;  %v14448_v4 = vmax.f32 %v11002_v58, 0.0 }
 0x388   : > { %v2270_v54 = vsel %vm2213_vm10, %v14446_v18, %v14445_v42  ;;  %v1878_v39 = vsel %vm1819_vm6, %v14447_v41, %v1877_v3  ;;  %v2896_v34 = vmul.f32 %v7718_v25, %v11135_v9  ;;  %v2401_v42 = vsub.f32 0.0, %v2369_v22  ;;  %v3893_v10 = vpop.permute.xlu1 %3892 }
 0x389   : > { %v7720_v26 = vpop.eup %7719  ;;  %v3725_v19 = vadd.f32 %v3675_v8, %v14448_v4  ;;  %v3503_v32 = vand.u32 2147483647, %v11184_v44  ;;  %3902 = vrot.lane.b32.xlu2 %v11184_v44, %s14199_s25  ;;  %v2888_v62 = vsel %vm2887_vm11, %v7712_v55, %v2884_v11  ;;  %7721 = vrcp.f32 %v11188_v17  ;;  %3978 = vst.msk [vmem:[#allocation4 + $0x50] sm:$0xff] %vm14220_vm14, %v3893_v10 }
 0x38a   : > { %v3630_v18 = vadd.f32 1.0, %v7720_v26  ;;  %v11210_v41 = vadd.f32 %v2270_v54, %v2141_v36  ;;  %v2893_v4 = vsel %vm11171_vm5, %v2892_v16, %v2888_v62  ;;  %v2897_v59 = vsub.f32 1.0, %v2896_v34 }
 0x38b   : > { %3757 = vst.msk [vmem:[#allocation2 + $0x68] sm:$0xff] %vm14220_vm14, %v3725_v19  ;;  %v3789_v58 = vmul.f32 %v3725_v19, %v10552_v53  ;;  %v3535_v8 = vsub.f32 0.0, %v3503_v32  ;;  %v3038_v26 = vmul.f32 %v11065_v12, %v2893_v4  ;;  %v2904_v55 = vand.u32 2147483647, %v11135_v9 }
 0x38c   : > { %7723 = vlog2.f32 %v3630_v18  ;;  %v3405_v22 = vpop.f32.mrf.mxu2  ;;  %v2906_v36 = vand.u32 2147483648, %v11135_v9  ;;  %v2898_v21 = vmul.f32 %v7718_v25, %v2897_v59  ;;  %vm2901_vm15 = vweird.f32 %v7718_v25 }
 0x38d   : > { %3821 = vst.msk [vmem:[#allocation3 + $0x68] sm:$0xff] %vm14220_vm14, %v3789_v58  ;;  %v3582_v19 = vmul.f32 1.442695, %v3535_v8  ;;  %v3406_v11 = vadd.f32 %v3405_v22, %v9774_v40  ;;  %v3070_v16 = vsel %vm2494_vm3, %v2893_v4, %v3038_v26  ;;  %v2459_v54 = vmul.f32 1.442695, %v2401_v42  ;;  %vm2902_vm1 = vmor %vm2900_vm9, %vm2901_vm15 }
 0x38e   : > { %v3295_v62 = vpop.f32.mrf.mxu1  ;;  %v2370_v12 = vand.u32 2147483647, %v11210_v41  ;;  %v1945_v32 = vadd.f32 %v1878_v39, %v11051_v5  ;;  %v11232_v18 = vmul.f32 %v3070_v16, %v10931_v61  ;;  %v2899_v10 = vadd.f32 %v7718_v25, %v2898_v21 }
 0x38f   : > { %7725 = vpow2.f32 %v3582_v19  ;;  %4015 = vst.msk [vmem:[#allocation5 + $0x78] sm:$0xff] %vm14220_vm14, %v3406_v11  ;;  %v11229_v34 = vadd.f32 %v3295_v62, %v9738_v60  ;;  %v11234_v58 = vpop.eup %7721  ;;  %vm2905_vm2 = vcmp.eq.f32.partialorder %v2904_v55, 8.507059e+37  ;;  %v2907_v42 = vor.u32 1.1754944e-38, %v2906_v36 }
 0x390   : > { %14449 = vst [vmem:[#allocation90_spill] sm:$0xff] %v11232_v18  ;;  %7727 = vpow2.f32 %v2459_v54  ;;  %v2402_v8 = vsub.f32 0.0, %v2370_v12  ;;  %7247 = vmatmul.msk.f32.gmra.mxu1 %vm14220_vm14, %v11232_v18  ;;  %v2903_v61 = vsel %vm2902_vm1, %v7718_v25, %v2899_v10  ;;  %v2911_v39 = vmul.f32 %v11234_v58, %v11188_v17  ;;  %v3895_v26 = vpop.permute.xlu0 %3894  ;;  %7279 = vmatmul.msk.f32.gmra.mxu2 %vm14220_vm14, %v11232_v18 }
 0x391   : > { %v3504_v5 = vand.u32 2147483647, %v11229_v34  ;;  %3904 = vrot.lane.b32.xlu1 %v11229_v34, %s14199_s25  ;;  %v14450_v4 = vrot.slane %v11115_v24, 2  ;;  %v14451_v9 = vrot.slane %v11039_v35, 2  ;;  %v2908_v55 = vsel %vm2905_vm2, %v2907_v42, %v2903_v61  ;;  %3979 = vst.msk [vmem:[#allocation4 + $0x58] sm:$0xff] %vm14220_vm14, %v3895_v26 }
 0x392   : > { %v7724_v22 = vpop.eup %7723  ;;  %v2919_v36 = vand.u32 2147483647, %v11188_v17  ;;  %v2461_v19 = vmul.f32 1.442695, %v2402_v8  ;;  %v3039_v62 = vmul.f32 %v11130_v56, %v2908_v55  ;;  %v2912_v16 = vsub.f32 1.0, %v2911_v39 }
 0x393   : > { %v2075_v59 = vsel %vm2016_vm8, %v14451_v9, %v14450_v4  ;;  %v3677_v25 = vmul.f32 0.6931472, %v7724_v22  ;;  %v3536_v21 = vsub.f32 0.0, %v3504_v5  ;;  %vm2916_vm3 = vweird.f32 %v11234_v58 }
 0x394   : > { %v2142_v11 = vadd.f32 %v2075_v59, %v1945_v32  ;;  %v3408_v35 = vpop.f32.mrf.mxu2  ;;  %v2921_v54 = vand.u32 2147483648, %v11188_v17  ;;  %7729 = vpow2.f32 %v2461_v19  ;;  %v14452_v12 = vrot.slane %v11123_v45, 3 }
 0x395   : > { %v14453_v10 = vrot.slane %v11047_v0, 3  ;;  %v7726_v32 = vpop.eup %7725  ;;  %v14454_v8 = vmax.f32 %v11096_v1, 0.0  ;;  %v3584_v61 = vmul.f32 1.442695, %v3536_v21  ;;  %v3071_v56 = vsel %vm2495_vm12, %v2908_v55, %v3039_v62 }
 0x396   : > { %v3409_v39 = vadd.f32 %v3408_v35, %v9774_v40  ;;  %v11267_v4 = vpop.eup %7727  ;;  %v3631_v9 = vadd.f32 1.0, %v7726_v32  ;;  %v11270_v59 = vmul.f32 %v3071_v56, %v10955_v43  ;;  %v3298_v22 = vpop.f32.mrf.mxu1  ;;  %v2913_v0 = vmul.f32 %v11234_v58, %v2912_v16 }
 0x397   : > { %v2272_v42 = vsel %vm2213_vm10, %v14453_v10, %v14452_v12  ;;  %v3726_v5 = vadd.f32 %v3677_v25, %v14454_v8  ;;  %7731 = vpow2.f32 %v3584_v61  ;;  %v11278_v55 = vadd.f32 %v3298_v22, %v9738_v60 }
 0x398   : > { %14455 = vst [vmem:[#allocation91_spill] sm:$0xff] %v11270_v59  ;;  %v11273_v26 = vadd.f32 %v2272_v42, %v2142_v11  ;;  %v11281_v19 = vadd.f32 1.0, %v11267_v4  ;;  %7733 = vlog2.f32 %v3631_v9  ;;  %7248 = vmatmul.msk.f32.vlgmr.msrb.gmra.mxu3 %vm14220_vm14, %v11270_v59  ;;  %v2914_v43 = vadd.f32 %v11234_v58, %v2913_v0 }
 0x399   : > { %3758 = vst.msk [vmem:[#allocation2 + $0x70] sm:$0xff] %vm14220_vm14, %v3726_v5  ;;  %v3790_v1 = vmul.f32 %v3726_v5, %v10613_v29  ;;  %vm2915_vm4 = vweird.f32 %v11188_v17  ;;  %v3505_v25 = vand.u32 2147483647, %v11278_v55  ;;  %3906 = vrot.lane.b32.xlu0 %v11278_v55, %s14199_s25  ;;  %v2922_v21 = vor.u32 1.1754944e-38, %v2921_v54 }
 0x39a   : > { %4016 = vst.msk [vmem:[#allocation5 + $0x80] sm:$0xff] %vm14220_vm14, %v3409_v39  ;;  %v2371_v11 = vand.u32 2147483647, %v11273_v26  ;;  %vm2917_vm5 = vmor %vm2915_vm4, %vm2916_vm3  ;;  %7735 = vrcp.f32 %v11281_v19  ;;  %v11296_v62 = vpop.eup %7729  ;;  %vm2920_vm7 = vcmp.eq.f32.partialorder %v2919_v36, 8.507059e+37  ;;  %vm2496_vm9 = vcmp.ge.f32.partialorder %v11063_v47, 0.0 }
 0x39b   : > { %3822 = vst.msk [vmem:[#allocation3 + $0x70] sm:$0xff] %vm14220_vm14, %v3790_v1  ;;  %v2918_v16 = vsel %vm2917_vm5, %v11234_v58, %v2914_v43  ;;  %v3537_v35 = vsub.f32 0.0, %v3505_v25  ;;  %v11300_v10 = vadd.f32 1.0, %v11296_v62  ;;  %v3471_v58 = vmax.f32 %v11184_v44, 0.0 }
 0x39c   : > { %v2403_v17 = vsub.f32 0.0, %v2371_v11  ;;  %v2923_v12 = vsel %vm2920_vm7, %v2922_v21, %v2918_v16  ;;  %v3411_v32 = vpop.f32.mrf.mxu2  ;;  %v2936_v25 = vand.u32 2147483648, %v11281_v19  ;;  %vm2930_vm11 = vweird.f32 %v11281_v19 }
 0x39d   : > { %v3040_v42 = vmul.f32 %v11181_v33, %v2923_v12  ;;  %v7732_v8 = vpop.eup %7731  ;;  %v3586_v5 = vmul.f32 1.442695, %v3537_v35  ;;  %v3412_v54 = vadd.f32 %v3411_v32, %v9774_v40  ;;  %7737 = vrcp.f32 %v11300_v10 }
 0x39e   : > { %v7734_v61 = vpop.eup %7733  ;;  %v3632_v36 = vadd.f32 1.0, %v7732_v8  ;;  %v3301_v39 = vpop.f32.mrf.mxu1  ;;  %v2463_v9 = vmul.f32 1.442695, %v2403_v17  ;;  %v3472_v35 = vmax.f32 %v11229_v34, 0.0  ;;  %vm2945_vm3 = vweird.f32 %v11300_v10 }
 0x39f   : > { %v3072_v56 = vsel %vm2496_vm9, %v2923_v12, %v3040_v42  ;;  %v3679_v0 = vmul.f32 0.6931472, %v7734_v61  ;;  %7739 = vpow2.f32 %v3586_v5  ;;  %4017 = vst.msk [vmem:[#allocation5 + $0x88] sm:$0xff] %vm14220_vm14, %v3412_v54  ;;  %v11312_v1 = vadd.f32 %v3301_v39, %v9738_v60 }
 0x3a0   : > { %v7736_v22 = vpop.eup %7735  ;;  %v11308_v33 = vmul.f32 %v3072_v56, %v11063_v47  ;;  %7741 = vlog2.f32 %v3632_v36  ;;  %v2934_v47 = vand.u32 2147483647, %v11281_v19  ;;  %vm2497_vm4 = vcmp.ge.f32.partialorder %v11165_v2, 0.0 }
 0x3a1   : > { %v2926_v43 = vmul.f32 %v7736_v22, %v11281_v19  ;;  %v3727_v11 = vadd.f32 %v3679_v0, %v3471_v58  ;;  %v3506_v44 = vand.u32 2147483647, %v11312_v1  ;;  %3908 = vrot.lane.b32.xlu2 %v11312_v1, %s14199_s25  ;;  %7743 = vpow2.f32 %v2463_v9 }
 0x3a2   : > { %14456 = vst [vmem:[#allocation92_spill] sm:$0xff] %v11308_v33  ;;  %7249 = vmatmul.msk.f32.gmra.mxu3 %vm14220_vm14, %v11308_v33  ;;  %vm2931_vm12 = vweird.f32 %v7736_v22  ;;  %vm11328_vm15 = vcmp.eq.f32.partialorder %v2934_v47, 8.507059e+37  ;;  %v2937_v58 = vor.u32 1.1754944e-38, %v2936_v25  ;;  %v2951_v47 = vand.u32 2147483648, %v11300_v10 }
 0x3a3   : > { %v2927_v21 = vsub.f32 1.0, %v2926_v43  ;;  %v7738_v16 = vpop.eup %7737  ;;  %3759 = vst.msk [vmem:[#allocation2 + $0x78] sm:$0xff] %vm14220_vm14, %v3727_v11  ;;  %v3791_v17 = vmul.f32 %v3727_v11, %v10656_v13  ;;  %v3538_v12 = vsub.f32 0.0, %v3506_v44  ;;  %v2949_v43 = vand.u32 2147483647, %v11300_v10  ;;  %vm2932_vm1 = vmor %vm2930_vm11, %vm2931_vm12 }
 0x3a4   : > { %v3414_v32 = vpop.f32.mrf.mxu2  ;;  %v2941_v8 = vmul.f32 %v7738_v16, %v11300_v10  ;;  %vm2946_vm2 = vweird.f32 %v7738_v16  ;;  %vm2498_vm9 = vcmp.ge.f32.partialorder %v11210_v41, 0.0 }
 0x3a5   : > { %v2928_v42 = vmul.f32 %v7736_v22, %v2927_v21  ;;  %v7740_v5 = vpop.eup %7739  ;;  %3823 = vst.msk [vmem:[#allocation3 + $0x78] sm:$0xff] %vm14220_vm14, %v3791_v17  ;;  %v3588_v54 = vmul.f32 1.442695, %v3538_v12  ;;  %v3415_v36 = vadd.f32 %v3414_v32, %v9774_v40  ;;  %vm2947_vm5 = vmor %vm2945_vm3, %vm2946_vm2  ;;  %vm2950_vm7 = vcmp.eq.f32.partialorder %v2949_v43, 8.507059e+37 }
 0x3a6   : > { %v7742_v34 = vpop.eup %7741  ;;  %v3633_v56 = vadd.f32 1.0, %v7740_v5  ;;  %v3304_v9 = vpop.f32.mrf.mxu1  ;;  %v2942_v0 = vsub.f32 1.0, %v2941_v8  ;;  %vm2499_vm2 = vcmp.ge.f32.partialorder %v11273_v26, 0.0 }
 0x3a7   : > { %v2929_v39 = vadd.f32 %v7736_v22, %v2928_v42  ;;  %v3681_v11 = vmul.f32 0.6931472, %v7742_v34  ;;  %7745 = vpow2.f32 %v3588_v54  ;;  %4018 = vst.msk [vmem:[#allocation5 + $0x90] sm:$0xff] %vm14220_vm14, %v3415_v36  ;;  %v11339_v44 = vadd.f32 %v3304_v9, %v9738_v60  ;;  %v11342_v25 = vpop.eup %7743 }
 0x3a8   : > { %7747 = vlog2.f32 %v3633_v56  ;;  %v2943_v17 = vmul.f32 %v7738_v16, %v2942_v0  ;;  %v2531_v5 = vadd.f32 1.0, %v11342_v25  ;;  %v2952_v54 = vor.u32 1.1754944e-38, %v2951_v47 }
 0x3a9   : > { %v2933_v21 = vsel %vm2932_vm1, %v7736_v22, %v2929_v39  ;;  %v3728_v12 = vadd.f32 %v3681_v11, %v3472_v35  ;;  %v3507_v19 = vand.u32 2147483647, %v11339_v44  ;;  %3910 = vrot.lane.b32.xlu1 %v11339_v44, %s14199_s25  ;;  %v3473_v47 = vmax.f32 %v11278_v55, 0.0 }
 0x3aa   : > { %v2938_v42 = vsel %vm11328_vm15, %v2937_v58, %v2933_v21  ;;  %v2944_v8 = vadd.f32 %v7738_v16, %v2943_v17  ;;  %7749 = vrcp.f32 %v2531_v5  ;;  %vm2960_vm12 = vweird.f32 %v2531_v5 }
 0x3ab   : > { %v3041_v32 = vmul.f32 %v11267_v4, %v2938_v42  ;;  %3760 = vst.msk [vmem:[#allocation2 + $0x80] sm:$0xff] %vm14220_vm14, %v3728_v12  ;;  %v3792_v22 = vmul.f32 %v3728_v12, %v10677_v38  ;;  %v3539_v35 = vsub.f32 0.0, %v3507_v19 }
 0x3ac   : > { %v2948_v58 = vsel %vm2947_vm5, %v7738_v16, %v2944_v8  ;;  %v3417_v36 = vpop.f32.mrf.mxu2 }
 0x3ad   : > { %v3073_v61 = vsel %vm2497_vm4, %v2938_v42, %v3041_v32  ;;  %v7746_v4 = vpop.eup %7745  ;;  %3824 = vst.msk [vmem:[#allocation3 + $0x80] sm:$0xff] %vm14220_vm14, %v3792_v22  ;;  %v3590_v34 = vmul.f32 1.442695, %v3539_v35  ;;  %v2953_v56 = vsel %vm2950_vm7, %v2952_v54, %v2948_v58  ;;  %v3418_v39 = vadd.f32 %v3417_v36, %v9774_v40 }
 0x3ae   : > { %v11357_v10 = vmul.f32 %v3073_v61, %v11165_v2  ;;  %v7748_v9 = vpop.eup %7747  ;;  %v3634_v0 = vadd.f32 1.0, %v7746_v4  ;;  %v3042_v11 = vmul.f32 %v11296_v62, %v2953_v56  ;;  %v3474_v32 = vmax.f32 %v11312_v1, 0.0 }
 0x3af   : > { %v3683_v16 = vmul.f32 0.6931472, %v7748_v9  ;;  %7751 = vpow2.f32 %v3590_v34  ;;  %4019 = vst.msk [vmem:[#allocation5 + $0x98] sm:$0xff] %vm14220_vm14, %v3418_v39  ;;  %v2966_v22 = vand.u32 2147483648, %v2531_v5  ;;  %v2964_v61 = vand.u32 2147483647, %v2531_v5 }
 0x3b0   : > { %14459 = vst [vmem:[#allocation93_spill] sm:$0xff] %v11357_v10  ;;  %7250 = vmatmul.msk.f32.gmra.mxu3 %vm14220_vm14, %v11357_v10  ;;  %7753 = vlog2.f32 %v3634_v0  ;;  %v7750_v43 = vpop.eup %7749  ;;  %v3074_v21 = vsel %vm2498_vm9, %v2953_v56, %v3042_v11  ;;  %v3475_v0 = vmax.f32 %v11339_v44, 0.0 }
 0x3b1   : > { %v3729_v2 = vadd.f32 %v3683_v16, %v3473_v47  ;;  %v2956_v62 = vmul.f32 %v7750_v43, %v2531_v5  ;;  %v11370_v55 = vmul.f32 %v3074_v21, %v11210_v41  ;;  %vm2961_vm11 = vweird.f32 %v7750_v43 }
 0x3b2   : > { %vm2962_vm15 = vmor %vm2960_vm12, %vm2961_vm11  ;;  %v2967_v41 = vor.u32 1.1754944e-38, %v2966_v22  ;;  %vm2965_vm1 = vcmp.eq.f32.partialorder %v2964_v61, 8.507059e+37  ;;  %v7838_v22 = vld [vmem:[%s14064_s5] ss:$0 sm:$0xff] }
 0x3b3   : > { %3761 = vst.msk [vmem:[#allocation2 + $0x88] sm:$0xff] %vm14220_vm14, %v3729_v2  ;;  %v3793_v17 = vmul.f32 %v3729_v2, %v10710_v30  ;;  %v2957_v42 = vsub.f32 1.0, %v2956_v62  ;;  %v14462_v2 = vrot.slane %v11034_v57, 5 }
 0x3b4   : > { %14460 = vst [vmem:[#allocation94_spill] sm:$0xff] %v11370_v55 }
 0x3b5   : > { %v7752_v12 = vpop.eup %7751  ;;  %3825 = vst.msk [vmem:[#allocation3 + $0x88] sm:$0xff] %vm14220_vm14, %v3793_v17  ;;  %v2958_v54 = vmul.f32 %v7750_v43, %v2957_v42 }
 0x3b6   : > { %v7754_v19 = vpop.eup %7753  ;;  %v3635_v8 = vadd.f32 1.0, %v7752_v12 }
 0x3b7   : > { %v3685_v35 = vmul.f32 0.6931472, %v7754_v19  ;;  %v2959_v36 = vadd.f32 %v7750_v43, %v2958_v54 }
 0x3b8   : > { %7251 = vmatmul.msk.f32.gmra.mxu3 %vm14220_vm14, %v11370_v55  ;;  %7755 = vlog2.f32 %v3635_v8 }
 0x3b9   : > { %v3730_v58 = vadd.f32 %v3685_v35, %v3474_v32  ;;  %v2963_v1 = vsel %vm2962_vm15, %v7750_v43, %v2959_v36 }
 0x3ba   : > { %v2968_v34 = vsel %vm2965_vm1, %v2967_v41, %v2963_v1 }
 0x3bb   : > { %3762 = vst.msk [vmem:[#allocation2 + $0x90] sm:$0xff] %vm14220_vm14, %v3730_v58  ;;  %v3794_v4 = vmul.f32 %v3730_v58, %v10728_v31  ;;  %v3043_v56 = vmul.f32 %v11342_v25, %v2968_v34 }
 0x3bc   : > { %v11379_v39 = vpop.f32.mrf.mxu3 }
 0x3bd   : > { %3826 = vst.msk [vmem:[#allocation3 + $0x90] sm:$0xff] %vm14220_vm14, %v3794_v4  ;;  %v1644_v5 = vrot.slane %v11379_v39, 5  ;;  %v3075_v47 = vsel %vm2499_vm2, %v2968_v34, %v3043_v56  ;;  %v14463_v34 = vrot.slane %v11115_v24, 2 }
 0x3be   : > { %v7756_v9 = vpop.eup %7755  ;;  %v11385_v16 = vmul.f32 %v3075_v47, %v11273_v26  ;;  %v1717_v26 = vmul.f32 %v8710_v23, %v11086_v15 }
 0x3bf   : > { %v3687_v11 = vmul.f32 0.6931472, %v7756_v9  ;;  %v1645_v43 = vsel %vm1584_vm13, %v14462_v2, %v1644_v5 }
 0x3c0   : > { %14461 = vst [vmem:[#allocation95_spill] sm:$0xff] %v11385_v16  ;;  %7252 = vmatmul.msk.f32.gmra.mxu3 %vm14220_vm14, %v11385_v16  ;;  %v1783_v17 = vmul.f32 %v8718_v49, %v1645_v43  ;;  %v1980_v44 = vmul.f32 %v8732_v48, %v1645_v43  ;;  %v2177_v42 = vmul.f32 %v8748_v52, %v1645_v43 }
 0x3c1   : > { %v3731_v21 = vadd.f32 %v3687_v11, %v3475_v0  ;;  %v1749_v35 = vadd.f32 %v7838_v22, %v1717_v26  ;;  %v1718_v9 = vmul.f32 %v8710_v23, %v1645_v43  ;;  %v14464_v11 = vrot.slane %v11123_v45, 3 }
 0x3c2   : > { %v1879_v12 = vrot.slane %v1783_v17, 1  ;;  %v2076_v32 = vrot.slane %v1980_v44, 2  ;;  %v2273_v54 = vrot.slane %v2177_v42, 3 }
 0x3c3   : > { %3763 = vst.msk [vmem:[#allocation2 + $0x98] sm:$0xff] %vm14220_vm14, %v3731_v21  ;;  %v3795_v25 = vmul.f32 %v3731_v21, %v10750_v50 }
 0x3c4   : > { %v11399_v62 = vpop.f32.mrf.mxu3  ;;  %v1880_v58 = vsel %vm1819_vm6, %v1877_v3, %v1879_v12  ;;  %v2077_v56 = vsel %vm2016_vm8, %v14463_v34, %v2076_v32  ;;  %v2274_v47 = vsel %vm2213_vm10, %v14464_v11, %v2273_v54 }
 0x3c5   : > { %3827 = vst.msk [vmem:[#allocation3 + $0x98] sm:$0xff] %vm14220_vm14, %v3795_v25  ;;  %v1646_v19 = vrot.slane %v11399_v62, 5  ;;  %v1946_v36 = vadd.f32 %v1880_v58, %v1749_v35  ;;  %v1750_v25 = vadd.f32 %v7838_v22, %v1718_v9 }
 0x3c7   : > { %v1647_v8 = vsel %vm1584_vm13, %v1644_v5, %v1646_v19  ;;  %v1785_v15 = vmul.f32 %v8718_v49, %v1646_v19  ;;  %v1982_v1 = vmul.f32 %v8732_v48, %v1646_v19  ;;  %v2179_v5 = vmul.f32 %v8748_v52, %v1646_v19 }
 0x3c8   : > { %v1784_v61 = vmul.f32 %v8718_v49, %v1647_v8  ;;  %v1719_v41 = vmul.f32 %v8710_v23, %v1647_v8  ;;  %v1981_v4 = vmul.f32 %v8732_v48, %v1647_v8  ;;  %v2143_v49 = vadd.f32 %v2077_v56, %v1946_v36 }
 0x3c9   : > { %v1883_v20 = vrot.slane %v1785_v15, 1  ;;  %v2178_v3 = vmul.f32 %v8748_v52, %v1647_v8  ;;  %v2080_v21 = vrot.slane %v1982_v1, 2  ;;  %v2277_v43 = vrot.slane %v2179_v5, 3 }
 0x3ca   : > { %v1881_v0 = vrot.slane %v1784_v61, 1  ;;  %v11424_v2 = vadd.f32 %v2274_v47, %v2143_v49  ;;  %v2078_v48 = vrot.slane %v1981_v4, 2  ;;  %v1751_v24 = vadd.f32 %v7838_v22, %v1719_v41 }
 0x3cb   : > { %v2275_v23 = vrot.slane %v2178_v3, 3 }
 0x3cc   : > { %v2372_v17 = vand.u32 2147483647, %v11424_v2  ;;  %v1882_v44 = vsel %vm1819_vm6, %v1879_v12, %v1881_v0  ;;  %v1884_v26 = vsel %vm1819_vm6, %v1881_v0, %v1883_v20  ;;  %v2079_v45 = vsel %vm2016_vm8, %v2076_v32, %v2078_v48 }
 0x3cd   : > { %v1947_v52 = vadd.f32 %v1882_v44, %v1750_v25  ;;  %v1948_v19 = vadd.f32 %v1884_v26, %v1751_v24  ;;  %v2081_v8 = vsel %vm2016_vm8, %v2078_v48, %v2080_v21  ;;  %v2276_v22 = vsel %vm2213_vm10, %v2273_v54, %v2275_v23 }
 0x3ce   : > { %v2404_v42 = vsub.f32 0.0, %v2372_v17  ;;  %v2278_v58 = vsel %vm2213_vm10, %v2275_v23, %v2277_v43  ;;  %vm2500_vm9 = vcmp.ge.f32.partialorder %v11424_v2, 0.0 }
 0x3cf   : > { %v2144_v61 = vadd.f32 %v2079_v45, %v1947_v52  ;;  %v2145_v15 = vadd.f32 %v2081_v8, %v1948_v19 }
 0x3d0   : > { %v2465_v35 = vmul.f32 1.442695, %v2404_v42 }
 0x3d1   : > { %v11433_v36 = vadd.f32 %v2276_v22, %v2144_v61  ;;  %v11435_v12 = vadd.f32 %v2278_v58, %v2145_v15 }
 0x3d2   : > { %7757 = vpow2.f32 %v2465_v35 }
 0x3d3   : > { %v2373_v41 = vand.u32 2147483647, %v11433_v36  ;;  %v2374_v4 = vand.u32 2147483647, %v11435_v12 }
 0x3d5   : > { %v2405_v1 = vsub.f32 0.0, %v2373_v41  ;;  %v2406_v32 = vsub.f32 0.0, %v2374_v4 }
 0x3d7   : > { %v2467_v56 = vmul.f32 1.442695, %v2405_v1  ;;  %v2469_v9 = vmul.f32 1.442695, %v2406_v32 }
 0x3d8   : > { %v7758_v34 = vpop.eup %7757 }
 0x3d9   : > { %v2532_v5 = vadd.f32 1.0, %v7758_v34  ;;  %7759 = vpow2.f32 %v2467_v56 }
 0x3db   : > { %7761 = vrcp.f32 %v2532_v5  ;;  %v2981_v24 = vand.u32 2147483648, %v2532_v5  ;;  %v2979_v17 = vand.u32 2147483647, %v2532_v5  ;;  %vm2975_vm4 = vweird.f32 %v2532_v5 }
 0x3dc   : > { %7763 = vpow2.f32 %v2469_v9 }
 0x3dd   : > { %v2982_v26 = vor.u32 1.1754944e-38, %v2981_v24  ;;  %vm2980_vm7 = vcmp.eq.f32.partialorder %v2979_v17, 8.507059e+37 }
 0x3df   : > { %v7760_v0 = vpop.eup %7759 }
 0x3e0   : > { %v2533_v3 = vadd.f32 1.0, %v7760_v0 }
 0x3e1   : > { %v7762_v20 = vpop.eup %7761 }
 0x3e2   : > { %v3899_v49 = vpop.permute.xlu1 %3898  ;;  %v11441_v11 = vpop.eup %7763  ;;  %v2971_v47 = vmul.f32 %v7762_v20, %v2532_v5  ;;  %7765 = vrcp.f32 %v2533_v3  ;;  %vm2976_vm3 = vweird.f32 %v7762_v20  ;;  %v2996_v22 = vand.u32 2147483648, %v2533_v3 }
 0x3e3   : > { %v3903_v54 = vpop.permute.xlu2 %3902  ;;  %3981 = vst.msk [vmem:[#allocation4 + $0x68] sm:$0xff] %vm14220_vm14, %v3899_v49  ;;  %v11444_v21 = vadd.f32 1.0, %v11441_v11  ;;  %vm2977_vm5 = vmor %vm2975_vm4, %vm2976_vm3  ;;  %v2994_v32 = vand.u32 2147483647, %v2533_v3  ;;  %vm2990_vm12 = vweird.f32 %v2533_v3 }
 0x3e4   : > { %3983 = vst.msk [vmem:[#allocation4 + $0x78] sm:$0xff] %vm14220_vm14, %v3903_v54  ;;  %v2972_v48 = vsub.f32 1.0, %v2971_v47  ;;  %v2997_v49 = vor.u32 1.1754944e-38, %v2996_v22 }
 0x3e5   : > { %7767 = vrcp.f32 %v11444_v21  ;;  %v3011_v47 = vand.u32 2147483648, %v11444_v21  ;;  %vm2995_vm2 = vcmp.eq.f32.partialorder %v2994_v32, 8.507059e+37  ;;  %vm3005_vm3 = vweird.f32 %v11444_v21 }
 0x3e6   : > { %v2973_v25 = vmul.f32 %v7762_v20, %v2972_v48 }
 0x3e8   : > { %v2974_v23 = vadd.f32 %v7762_v20, %v2973_v25  ;;  %v7766_v43 = vpop.eup %7765 }
 0x3e9   : > { %v2986_v19 = vmul.f32 %v7766_v43, %v2533_v3  ;;  %vm2991_vm11 = vweird.f32 %v7766_v43 }
 0x3ea   : > { %v2978_v52 = vsel %vm2977_vm5, %v7762_v20, %v2974_v23  ;;  %v3009_v20 = vand.u32 2147483647, %v11444_v21  ;;  %vm2992_vm15 = vmor %vm2990_vm12, %vm2991_vm11  ;;  %vm2501_vm5 = vcmp.ge.f32.partialorder %v11433_v36, 0.0 }
 0x3eb   : > { %v2983_v8 = vsel %vm2980_vm7, %v2982_v26, %v2978_v52  ;;  %v7768_v35 = vpop.eup %7767  ;;  %v2987_v15 = vsub.f32 1.0, %v2986_v19 }
 0x3ec   : > { %v3044_v61 = vmul.f32 %v7758_v34, %v2983_v8  ;;  %v3001_v41 = vmul.f32 %v7768_v35, %v11444_v21  ;;  %vm3006_vm1 = vweird.f32 %v7768_v35  ;;  %vm3010_vm7 = vcmp.eq.f32.partialorder %v3009_v20, 8.507059e+37 }
 0x3ed   : > { %v3307_v42 = vpop.f32.mrf.mxu1  ;;  %v2988_v1 = vmul.f32 %v7766_v43, %v2987_v15  ;;  %vm3007_vm4 = vmor %vm3005_vm3, %vm3006_vm1 }
 0x3ee   : > { %v11449_v45 = vadd.f32 %v3307_v42, %v9738_v60  ;;  %v3076_v4 = vsel %vm2500_vm9, %v2983_v8, %v3044_v61  ;;  %v3002_v34 = vsub.f32 1.0, %v3001_v41  ;;  %v3012_v42 = vor.u32 1.1754944e-38, %v3011_v47 }
 0x3ef   : > { %v3901_v44 = vpop.permute.xlu0 %3900  ;;  %v11457_v9 = vmul.f32 %v3076_v4, %v11424_v2  ;;  %v2989_v54 = vadd.f32 %v7766_v43, %v2988_v1  ;;  %vm2502_vm9 = vcmp.ge.f32.partialorder %v11435_v12, 0.0 }
 0x3f0   : > { %3982 = vst.msk [vmem:[#allocation4 + $0x70] sm:$0xff] %vm14220_vm14, %v3901_v44  ;;  %v3508_v58 = vand.u32 2147483647, %v11449_v45  ;;  %3912 = vrot.lane.b32.xlu0 %v11449_v45, %s14199_s25  ;;  %v3003_v25 = vmul.f32 %v7768_v35, %v3002_v34 }
 0x3f1   : > { %14465 = vst [vmem:[#allocation96_spill] sm:$0xff] %v11457_v9  ;;  %7253 = vmatmul.msk.f32.gmra.mxu3 %vm14220_vm14, %v11457_v9  ;;  %v2993_v17 = vsel %vm2992_vm15, %v7766_v43, %v2989_v54 }
 0x3f2   : > { %v3540_v56 = vsub.f32 0.0, %v3508_v58  ;;  %v2998_v23 = vsel %vm2995_vm2, %v2997_v49, %v2993_v17  ;;  %v3004_v44 = vadd.f32 %v7768_v35, %v3003_v25  ;;  %v3476_v25 = vmax.f32 %v11449_v45, 0.0 }
 0x3f3   : > { %v3045_v26 = vmul.f32 %v7760_v0, %v2998_v23 }
 0x3f4   : > { %v3420_v5 = vpop.f32.mrf.mxu2  ;;  %v3592_v48 = vmul.f32 1.442695, %v3540_v56  ;;  %v3008_v21 = vsel %vm3007_vm4, %v7768_v35, %v3004_v44 }
 0x3f5   : > { %v3421_v24 = vadd.f32 %v3420_v5, %v9774_v40  ;;  %v3310_v2 = vpop.f32.mrf.mxu1  ;;  %v3077_v43 = vsel %vm2501_vm5, %v2998_v23, %v3045_v26  ;;  %v3013_v8 = vsel %vm3010_vm7, %v3012_v42, %v3008_v21 }
 0x3f6   : > { %7769 = vpow2.f32 %v3592_v48  ;;  %v11467_v3 = vadd.f32 %v3310_v2, %v9738_v60  ;;  %v11475_v15 = vmul.f32 %v3077_v43, %v11433_v36  ;;  %v3046_v22 = vmul.f32 %v11441_v11, %v3013_v8 }
 0x3f7   : > { %4020 = vst.msk [vmem:[#allocation5 + $0xa0] sm:$0xff] %vm14220_vm14, %v3421_v24 }
 0x3f8   : > { %v3509_v19 = vand.u32 2147483647, %v11467_v3  ;;  %3914 = vrot.lane.b32.xlu2 %v11467_v3, %s14199_s25  ;;  %14466 = vst [vmem:[#allocation97_spill] sm:$0xff] %v11475_v15  ;;  %v3078_v32 = vsel %vm2502_vm9, %v3013_v8, %v3046_v22 }
 0x3f9   : > { %7254 = vmatmul.msk.f32.gmra.mxu3 %vm14220_vm14, %v11475_v15  ;;  %v11487_v34 = vmul.f32 %v3078_v32, %v11435_v12 }
 0x3fa   : > { %v3541_v61 = vsub.f32 0.0, %v3509_v19 }
 0x3fb   : > { %v3909_v52 = vpop.permute.xlu2 %3908  ;;  %14467 = vst [vmem:[#allocation98_spill] sm:$0xff] %v11487_v34 }
 0x3fc   : > { %3986 = vst.msk [vmem:[#allocation4 + $0x90] sm:$0xff] %vm14220_vm14, %v3909_v52  ;;  %v3423_v0 = vpop.f32.mrf.mxu2  ;;  %v7770_v58 = vpop.eup %7769  ;;  %v3594_v41 = vmul.f32 1.442695, %v3541_v61  ;;  %v3477_v52 = vmax.f32 %v11467_v3, 0.0 }
 0x3fd   : > { %v3424_v4 = vadd.f32 %v3423_v0, %v9774_v40  ;;  %v3636_v35 = vadd.f32 1.0, %v7770_v58 }
 0x3fe   : > { %7771 = vpow2.f32 %v3594_v41  ;;  %v3313_v1 = vpop.f32.mrf.mxu1 }
 0x3ff   : > { %4021 = vst.msk [vmem:[#allocation5 + $0xa8] sm:$0xff] %vm14220_vm14, %v3424_v4  ;;  %7773 = vlog2.f32 %v3636_v35  ;;  %v3314_v36 = vadd.f32 %v3313_v1, %v9738_v60 }
 0x401   : > { %v3510_v11 = vand.u32 2147483647, %v3314_v36  ;;  %3916 = vrot.lane.b32.xlu1 %v3314_v36, %s14199_s25  ;;  %7255 = vmatmul.msk.f32.gmra.mxu3 %vm14220_vm14, %v11487_v34  ;;  %v3478_v4 = vmax.f32 %v3314_v36, 0.0 }
 0x403   : > { %v3905_v56 = vpop.permute.xlu1 %3904  ;;  %v3542_v5 = vsub.f32 0.0, %v3510_v11 }
 0x404   : > { %3984 = vst.msk [vmem:[#allocation4 + $0x80] sm:$0xff] %vm14220_vm14, %v3905_v56  ;;  %v7772_v54 = vpop.eup %7771  ;;  %v3426_v49 = vpop.f32.mrf.mxu2 }
 0x405   : > { %v7774_v20 = vpop.eup %7773  ;;  %v3637_v47 = vadd.f32 1.0, %v7772_v54  ;;  %v3596_v48 = vmul.f32 1.442695, %v3542_v5  ;;  %v3427_v24 = vadd.f32 %v3426_v49, %v9774_v40 }
 0x406   : > { %v3689_v2 = vmul.f32 0.6931472, %v7774_v20 }
 0x407   : > { %7775 = vlog2.f32 %v3637_v47  ;;  %4022 = vst.msk [vmem:[#allocation5 + $0xb0] sm:$0xff] %vm14220_vm14, %v3427_v24 }
 0x408   : > { %v3732_v17 = vadd.f32 %v3689_v2, %v3476_v25  ;;  %7777 = vpow2.f32 %v3596_v48 }
 0x409   : > { %7280 = vmatmul.msk.f32.vlgmr.msra.gmra.mxu3 %vm14220_vm14, %v11270_v59 }
 0x40a   : > { %3764 = vst.msk [vmem:[#allocation2 + $0xa0] sm:$0xff] %vm14220_vm14, %v3732_v17  ;;  %v3796_v23 = vmul.f32 %v3732_v17, %v11016_v27 }
 0x40b   : > { %v3907_v12 = vpop.permute.xlu0 %3906 }
 0x40c   : > { %3985 = vst.msk [vmem:[#allocation4 + $0x88] sm:$0xff] %vm14220_vm14, %v3907_v12 }
 0x40d   : > { %v3316_v44 = vpop.f32.mrf.mxu1  ;;  %3828 = vst.msk [vmem:[#allocation3 + $0xa0] sm:$0xff] %vm14220_vm14, %v3796_v23  ;;  %v7776_v45 = vpop.eup %7775 }
 0x40e   : > { %v3317_v26 = vadd.f32 %v3316_v44, %v9738_v60  ;;  %v7778_v42 = vpop.eup %7777  ;;  %v3691_v19 = vmul.f32 0.6931472, %v7776_v45 }
 0x40f   : > { %v3638_v43 = vadd.f32 1.0, %v7778_v42 }
 0x410   : > { %v3511_v21 = vand.u32 2147483647, %v3317_v26  ;;  %3918 = vrot.lane.b32.xlu0 %v3317_v26, %s14199_s25  ;;  %v3733_v8 = vadd.f32 %v3691_v19, %v3477_v52  ;;  %v3479_v2 = vmax.f32 %v3317_v26, 0.0 }
 0x411   : > { %7779 = vlog2.f32 %v3638_v43  ;;  %7281 = vmatmul.msk.f32.gmra.mxu3 %vm14220_vm14, %v11308_v33 }
 0x412   : > { %v3543_v61 = vsub.f32 0.0, %v3511_v21  ;;  %3765 = vst.msk [vmem:[#allocation2 + $0xa8] sm:$0xff] %vm14220_vm14, %v3733_v8  ;;  %v3797_v0 = vmul.f32 %v3733_v8, %v11073_v6 }
 0x413   : > { %v3429_v58 = vpop.f32.mrf.mxu2 }
 0x414   : > { %v3598_v22 = vmul.f32 1.442695, %v3543_v61  ;;  %v3430_v41 = vadd.f32 %v3429_v58, %v9774_v40  ;;  %3829 = vst.msk [vmem:[#allocation3 + $0xa8] sm:$0xff] %vm14220_vm14, %v3797_v0 }
 0x416   : > { %7781 = vpow2.f32 %v3598_v22  ;;  %4023 = vst.msk [vmem:[#allocation5 + $0xb8] sm:$0xff] %vm14220_vm14, %v3430_v41 }
 0x417   : > { %v7780_v3 = vpop.eup %7779 }
 0x418   : > { %v3693_v35 = vmul.f32 0.6931472, %v7780_v3 }
 0x419   : > { %7282 = vmatmul.msk.f32.gmra.mxu3 %vm14220_vm14, %v11357_v10 }
 0x41a   : > { %v3734_v5 = vadd.f32 %v3693_v35, %v3478_v4 }
 0x41b   : > { %v3319_v1 = vpop.f32.mrf.mxu3  ;;  %v3911_v32 = vpop.permute.xlu1 %3910 }
 0x41c   : > { %v3320_v56 = vadd.f32 %v3319_v1, %v9738_v60  ;;  %3987 = vst.msk [vmem:[#allocation4 + $0x98] sm:$0xff] %vm14220_vm14, %v3911_v32  ;;  %v7782_v11 = vpop.eup %7781  ;;  %v3798_v20 = vmul.f32 %v3734_v5, %v11147_v7 }
 0x41d   : > { %v3639_v54 = vadd.f32 1.0, %v7782_v11  ;;  %3766 = vst.msk [vmem:[#allocation2 + $0xb0] sm:$0xff] %vm14220_vm14, %v3734_v5 }
 0x41e   : > { %v3512_v49 = vand.u32 2147483647, %v3320_v56  ;;  %3920 = vrot.lane.b32.xlu2 %v3320_v56, %s14199_s25  ;;  %3830 = vst.msk [vmem:[#allocation3 + $0xb0] sm:$0xff] %vm14220_vm14, %v3798_v20  ;;  %v3480_v61 = vmax.f32 %v3320_v56, 0.0 }
 0x41f   : > { %7783 = vlog2.f32 %v3639_v54 }
 0x420   : > { %v3544_v36 = vsub.f32 0.0, %v3512_v49 }
 0x421   : > { %7283 = vmatmul.msk.f32.gmra.mxu3 %vm14220_vm14, %v11370_v55 }
 0x422   : > { %v3600_v47 = vmul.f32 1.442695, %v3544_v36 }
 0x424   : > { %7785 = vpow2.f32 %v3600_v47 }
 0x425   : > { %v3322_v48 = vpop.f32.mrf.mxu3  ;;  %v7784_v25 = vpop.eup %7783 }
 0x426   : > { %v3323_v24 = vadd.f32 %v3322_v48, %v9738_v60  ;;  %v3695_v17 = vmul.f32 0.6931472, %v7784_v25 }
 0x428   : > { %v3513_v12 = vand.u32 2147483647, %v3323_v24  ;;  %3922 = vrot.lane.b32.xlu1 %v3323_v24, %s14199_s25  ;;  %v3735_v23 = vadd.f32 %v3695_v17, %v3479_v2  ;;  %v3481_v5 = vmax.f32 %v3323_v24, 0.0 }
 0x429   : > { %7284 = vmatmul.msk.f32.gmra.mxu3 %vm14220_vm14, %v11385_v16 }
 0x42a   : > { %v3545_v44 = vsub.f32 0.0, %v3513_v12  ;;  %v7786_v45 = vpop.eup %7785  ;;  %3767 = vst.msk [vmem:[#allocation2 + $0xb8] sm:$0xff] %vm14220_vm14, %v3735_v23  ;;  %v3799_v42 = vmul.f32 %v3735_v23, %v11232_v18 }
 0x42b   : > { %v3640_v52 = vadd.f32 1.0, %v7786_v45 }
 0x42c   : > { %v3602_v19 = vmul.f32 1.442695, %v3545_v44  ;;  %3831 = vst.msk [vmem:[#allocation3 + $0xb8] sm:$0xff] %vm14220_vm14, %v3799_v42 }
 0x42d   : > { %7787 = vlog2.f32 %v3640_v52 }
 0x42e   : > { %7789 = vpow2.f32 %v3602_v19 }
 0x431   : > { %7285 = vmatmul.msk.f32.gmra.mxu3 %vm14220_vm14, %v11457_v9 }
 0x433   : > { %v3325_v26 = vpop.f32.mrf.mxu3  ;;  %v7788_v21 = vpop.eup %7787 }
 0x434   : > { %v3326_v43 = vadd.f32 %v3325_v26, %v9738_v60  ;;  %v7790_v8 = vpop.eup %7789  ;;  %v3697_v0 = vmul.f32 0.6931472, %v7788_v21 }
 0x435   : > { %v3641_v22 = vadd.f32 1.0, %v7790_v8 }
 0x436   : > { %v3514_v58 = vand.u32 2147483647, %v3326_v43  ;;  %3924 = vrot.lane.b32.xlu0 %v3326_v43, %s14199_s25  ;;  %v3736_v41 = vadd.f32 %v3697_v0, %v3480_v61  ;;  %v3482_v42 = vmax.f32 %v3326_v43, 0.0 }
 0x437   : > { %7791 = vlog2.f32 %v3641_v22 }
 0x438   : > { %v3546_v3 = vsub.f32 0.0, %v3514_v58  ;;  %3768 = vst.msk [vmem:[#allocation2 + $0xc0] sm:$0xff] %vm14220_vm14, %v3736_v41  ;;  %v3800_v4 = vmul.f32 %v3736_v41, %v11270_v59 }
 0x439   : > { %7286 = vmatmul.msk.f32.gmra.mxu3 %vm14220_vm14, %v11475_v15 }
 0x43a   : > { %v3604_v35 = vmul.f32 1.442695, %v3546_v3  ;;  %3832 = vst.msk [vmem:[#allocation3 + $0xc0] sm:$0xff] %vm14220_vm14, %v3800_v4 }
 0x43b   : > { %v3328_v1 = vpop.f32.mrf.mxu3 }
 0x43c   : > { %7793 = vpow2.f32 %v3604_v35  ;;  %v3329_v32 = vadd.f32 %v3328_v1, %v9738_v60 }
 0x43d   : > { %v7792_v56 = vpop.eup %7791 }
 0x43e   : > { %v3515_v11 = vand.u32 2147483647, %v3329_v32  ;;  %3926 = vrot.lane.b32.xlu2 %v3329_v32, %s14199_s25  ;;  %v3699_v54 = vmul.f32 0.6931472, %v7792_v56  ;;  %v3483_v61 = vmax.f32 %v3329_v32, 0.0 }
 0x440   : > { %v3547_v49 = vsub.f32 0.0, %v3515_v11  ;;  %v3737_v20 = vadd.f32 %v3699_v54, %v3481_v5 }
 0x441   : > { %7287 = vmatmul.msk.f32.gmra.mxu3 %vm14220_vm14, %v11487_v34 }
 0x442   : > { %v7794_v36 = vpop.eup %7793  ;;  %v3606_v47 = vmul.f32 1.442695, %v3547_v49  ;;  %3769 = vst.msk [vmem:[#allocation2 + $0xc8] sm:$0xff] %vm14220_vm14, %v3737_v20  ;;  %v3801_v48 = vmul.f32 %v3737_v20, %v11308_v33 }
 0x443   : > { %v3642_v25 = vadd.f32 1.0, %v7794_v36  ;;  %v3331_v2 = vpop.f32.mrf.mxu3 }
 0x444   : > { %7795 = vpow2.f32 %v3606_v47  ;;  %3833 = vst.msk [vmem:[#allocation3 + $0xc8] sm:$0xff] %vm14220_vm14, %v3801_v48  ;;  %v3332_v24 = vadd.f32 %v3331_v2, %v9738_v60 }
 0x445   : > { %7797 = vlog2.f32 %v3642_v25 }
 0x446   : > { %v3516_v17 = vand.u32 2147483647, %v3332_v24  ;;  %3928 = vrot.lane.b32.xlu1 %v3332_v24, %s14199_s25  ;;  %v3484_v35 = vmax.f32 %v3332_v24, 0.0 }
 0x448   : > { %v3548_v45 = vsub.f32 0.0, %v3516_v17 }
 0x44a   : > { %v7796_v12 = vpop.eup %7795  ;;  %v3608_v19 = vmul.f32 1.442695, %v3548_v45 }
 0x44b   : > { %v7798_v23 = vpop.eup %7797  ;;  %v3643_v44 = vadd.f32 1.0, %v7796_v12 }
 0x44c   : > { %v3701_v52 = vmul.f32 0.6931472, %v7798_v23 }
 0x44d   : > { %7799 = vlog2.f32 %v3643_v44 }
 0x44e   : > { %v3738_v26 = vadd.f32 %v3701_v52, %v3482_v42  ;;  %7801 = vpow2.f32 %v3608_v19 }
 0x450   : > { %3770 = vst.msk [vmem:[#allocation2 + $0xd0] sm:$0xff] %vm14220_vm14, %v3738_v26  ;;  %v3802_v21 = vmul.f32 %v3738_v26, %v11357_v10 }
 0x452   : > { %3834 = vst.msk [vmem:[#allocation3 + $0xd0] sm:$0xff] %vm14220_vm14, %v3802_v21  ;;  %v3915_v3 = vpop.permute.xlu2 %3914 }
 0x453   : > { %v7800_v8 = vpop.eup %7799  ;;  %3989 = vst.msk [vmem:[#allocation4 + $0xa8] sm:$0xff] %vm14220_vm14, %v3915_v3 }
 0x454   : > { %v3703_v0 = vmul.f32 0.6931472, %v7800_v8  ;;  %v7802_v22 = vpop.eup %7801 }
 0x455   : > { %v3644_v41 = vadd.f32 1.0, %v7802_v22 }
 0x456   : > { %v3739_v58 = vadd.f32 %v3703_v0, %v3483_v61 }
 0x457   : > { %7803 = vlog2.f32 %v3644_v41 }
 0x458   : > { %3771 = vst.msk [vmem:[#allocation2 + $0xd8] sm:$0xff] %vm14220_vm14, %v3739_v58  ;;  %v3803_v43 = vmul.f32 %v3739_v58, %v11370_v55 }
 0x45a   : > { %3835 = vst.msk [vmem:[#allocation3 + $0xd8] sm:$0xff] %vm14220_vm14, %v3803_v43 }
 0x45d   : > { %v7804_v4 = vpop.eup %7803 }
 0x45e   : > { %v3705_v1 = vmul.f32 0.6931472, %v7804_v4 }
 0x460   : > { %v3740_v56 = vadd.f32 %v3705_v1, %v3484_v35 }
 0x462   : > { %3772 = vst.msk [vmem:[#allocation2 + $0xe0] sm:$0xff] %vm14220_vm14, %v3740_v56  ;;  %v3804_v32 = vmul.f32 %v3740_v56, %v11385_v16  ;;  %v3913_v11 = vpop.permute.xlu0 %3912 }
 0x463   : > { %3988 = vst.msk [vmem:[#allocation4 + $0xa0] sm:$0xff] %vm14220_vm14, %v3913_v11 }
 0x464   : > { %3836 = vst.msk [vmem:[#allocation3 + $0xe0] sm:$0xff] %vm14220_vm14, %v3804_v32 }
 0x473   : > { %v3917_v5 = vpop.permute.xlu1 %3916 }
 0x474   : > { %3990 = vst.msk [vmem:[#allocation4 + $0xb0] sm:$0xff] %vm14220_vm14, %v3917_v5  ;;  %v3334_v49 = vpop.f32.mrf.mxu3 }
 0x475   : > { %v3335_v20 = vadd.f32 %v3334_v49, %v9738_v60 }
 0x477   : > { %v3517_v36 = vand.u32 2147483647, %v3335_v20  ;;  %3930 = vrot.lane.b32.xlu0 %v3335_v20, %s14199_s25  ;;  %v3485_v58 = vmax.f32 %v3335_v20, 0.0 }
 0x478   : > { %v3921_v54 = vpop.permute.xlu2 %3920 }
 0x479   : > { %3992 = vst.msk [vmem:[#allocation4 + $0xc0] sm:$0xff] %vm14220_vm14, %v3921_v54  ;;  %v3549_v47 = vsub.f32 0.0, %v3517_v36 }
 0x47b   : > { %v3610_v48 = vmul.f32 1.442695, %v3549_v47 }
 0x47c   : > { %v3337_v25 = vpop.f32.mrf.mxu3 }
 0x47d   : > { %7805 = vpow2.f32 %v3610_v48  ;;  %v3338_v24 = vadd.f32 %v3337_v25, %v9738_v60 }
 0x47f   : > { %v3518_v17 = vand.u32 2147483647, %v3338_v24  ;;  %3932 = vrot.lane.b32.xlu2 %v3338_v24, %s14199_s25  ;;  %v3486_v5 = vmax.f32 %v3338_v24, 0.0 }
 0x481   : > { %v3550_v12 = vsub.f32 0.0, %v3518_v17 }
 0x482   : > { %v3919_v2 = vpop.permute.xlu0 %3918 }
 0x483   : > { %3991 = vst.msk [vmem:[#allocation4 + $0xb8] sm:$0xff] %vm14220_vm14, %v3919_v2  ;;  %v7806_v23 = vpop.eup %7805  ;;  %v3612_v44 = vmul.f32 1.442695, %v3550_v12 }
 0x484   : > { %v3645_v45 = vadd.f32 1.0, %v7806_v23  ;;  %v3340_v42 = vpop.f32.mrf.mxu3 }
 0x485   : > { %7807 = vpow2.f32 %v3612_v44  ;;  %v3341_v52 = vadd.f32 %v3340_v42, %v9738_v60 }
 0x486   : > { %7809 = vlog2.f32 %v3645_v45 }
 0x487   : > { %v3519_v19 = vand.u32 2147483647, %v3341_v52  ;;  %3934 = vrot.lane.b32.xlu1 %v3341_v52, %s14199_s25  ;;  %v3487_v25 = vmax.f32 %v3341_v52, 0.0 }
 0x489   : > { %v3551_v26 = vsub.f32 0.0, %v3519_v19 }
 0x48b   : > { %v7808_v21 = vpop.eup %7807  ;;  %v3614_v8 = vmul.f32 1.442695, %v3551_v26 }
 0x48c   : > { %v7810_v61 = vpop.eup %7809  ;;  %v3646_v0 = vadd.f32 1.0, %v7808_v21  ;;  %v3432_v22 = vpop.f32.mrf.mxu3 }
 0x48d   : > { %v3707_v41 = vmul.f32 0.6931472, %v7810_v61  ;;  %7811 = vpow2.f32 %v3614_v8  ;;  %v3433_v3 = vadd.f32 %v3432_v22, %v9774_v40 }
 0x48e   : > { %7813 = vlog2.f32 %v3646_v0 }
 0x48f   : > { %v3741_v43 = vadd.f32 %v3707_v41, %v3485_v58  ;;  %4024 = vst.msk [vmem:[#allocation5 + $0xc0] sm:$0xff] %vm14220_vm14, %v3433_v3  ;;  %v11598_v41 = vld [vmem:[%s14067_s8] sm:$0xff]  ;;  %v11603_v3 = vld [vmem:[%s14067_s8 + $0x8] sm:$0xff] }
 0x491   : > { %3773 = vst.msk [vmem:[#allocation2 + $0xe8] sm:$0xff] %vm14220_vm14, %v3741_v43  ;;  %v3805_v60 = vmul.f32 %v3741_v43, %v11457_v9  ;;  %v11613_v43 = vld [vmem:[%s14069_s10 + $0x8] sm:$0xff] }
 0x492   : > { %14469 = vst [vmem:[#allocation100_spill] sm:$0xff] %v11613_v43 }
 0x493   : > { %v7812_v35 = vpop.eup %7811  ;;  %3837 = vst.msk [vmem:[#allocation3 + $0xe8] sm:$0xff] %vm14220_vm14, %v3805_v60  ;;  %v11618_v60 = vld [vmem:[%s14070_s11] sm:$0xff] }
 0x494   : > { %v7814_v56 = vpop.eup %7813  ;;  %v3647_v32 = vadd.f32 1.0, %v7812_v35  ;;  %v3435_v11 = vpop.f32.mrf.mxu3  ;;  %14470 = vst [vmem:[#allocation101_spill] sm:$0xff] %v11618_v60  ;;  %v11628_v35 = vld [vmem:[%s14070_s11 + $0x10] sm:$0xff] }
 0x495   : > { %v3709_v54 = vmul.f32 0.6931472, %v7814_v56  ;;  %v3436_v49 = vadd.f32 %v3435_v11, %v9774_v40  ;;  %14472 = vst [vmem:[#allocation103_spill] sm:$0xff] %v11628_v35  ;;  %v11638_v56 = vld [vmem:[%s14070_s11 + $0x20] sm:$0xff]  ;;  %v11648_v11 = vld [vmem:[%s14070_s11 + $0x30] sm:$0xff] }
 0x496   : > { %7815 = vlog2.f32 %v3647_v32  ;;  %14474 = vst [vmem:[#allocation105_spill] sm:$0xff] %v11638_v56  ;;  %v11643_v32 = vld [vmem:[%s14070_s11 + $0x28] sm:$0xff] }
 0x497   : > { %v3742_v20 = vadd.f32 %v3709_v54, %v3486_v5  ;;  %4025 = vst.msk [vmem:[#allocation5 + $0xc8] sm:$0xff] %vm14220_vm14, %v3436_v49  ;;  %v11653_v5 = vld [vmem:[%s14070_s11 + $0x38] sm:$0xff] }
 0x498   : > { %v3927_v4 = vpop.permute.xlu2 %3926  ;;  %14475 = vst [vmem:[#allocation106_spill] sm:$0xff] %v11643_v32 }
 0x499   : > { %3995 = vst.msk [vmem:[#allocation4 + $0xd8] sm:$0xff] %vm14220_vm14, %v3927_v4  ;;  %v3806_v36 = vmul.f32 %v3742_v20, %v11475_v15  ;;  %v11623_v4 = vld [vmem:[%s14070_s11 + $0x8] sm:$0xff] }
 0x49a   : > { %v3923_v1 = vpop.permute.xlu1 %3922  ;;  %3774 = vst.msk [vmem:[#allocation2 + $0xf0] sm:$0xff] %vm14220_vm14, %v3742_v20  ;;  %v11660_v20 = vmov 0.0  }
 0x49b   : > { %3993 = vst.msk [vmem:[#allocation4 + $0xc8] sm:$0xff] %vm14220_vm14, %v3923_v1  ;;  %v11633_v1 = vld [vmem:[%s14070_s11 + $0x18] sm:$0xff] }
 0x49c   : > { %3838 = vst.msk [vmem:[#allocation3 + $0xf0] sm:$0xff] %vm14220_vm14, %v3806_v36  ;;  %v7816_v47 = vpop.eup %7815  ;;  %v3438_v48 = vpop.f32.mrf.mxu3  ;;  %v11662_v36 = vmov 0.0  }
 0x49d   : > { %v3711_v2 = vmul.f32 0.6931472, %v7816_v47  ;;  %v3439_v17 = vadd.f32 %v3438_v48, %v9774_v40  ;;  %14471 = vst [vmem:[#allocation102_spill] sm:$0xff] %v11623_v4 }
 0x49e   : > { %14473 = vst [vmem:[#allocation104_spill] sm:$0xff] %v11633_v1 }
 0x49f   : > { %v3743_v24 = vadd.f32 %v3711_v2, %v3487_v25  ;;  %4026 = vst.msk [vmem:[#allocation5 + $0xd0] sm:$0xff] %vm14220_vm14, %v3439_v17 }
 0x4a0   : > { %14476 = vst [vmem:[#allocation107_spill] sm:$0xff] %v11648_v11 }
 0x4a1   : > { %3775 = vst.msk [vmem:[#allocation2 + $0xf8] sm:$0xff] %vm14220_vm14, %v3743_v24  ;;  %v3807_v12 = vmul.f32 %v3743_v24, %v11487_v34 }
 0x4a2   : > { %14477 = vst [vmem:[#allocation108_spill] sm:$0xff] %v11653_v5 }
 0x4a3   : > { %3839 = vst.msk [vmem:[#allocation3 + $0xf8] sm:$0xff] %vm14220_vm14, %v3807_v12 }
 0x4a4   : > { %v3441_v44 = vpop.f32.mrf.mxu3 }
 0x4a5   : > { %v3442_v45 = vadd.f32 %v3441_v44, %v9774_v40 }
 0x4a7   : > { %4027 = vst.msk [vmem:[#allocation5 + $0xd8] sm:$0xff] %vm14220_vm14, %v3442_v45 }
 0x4a8   : > { %v3925_v23 = vpop.permute.xlu0 %3924 }
 0x4a9   : > { %3994 = vst.msk [vmem:[#allocation4 + $0xd0] sm:$0xff] %vm14220_vm14, %v3925_v23 }
 0x4ac   : > { %v3444_v42 = vpop.f32.mrf.mxu3 }
 0x4ad   : > { %v3445_v52 = vadd.f32 %v3444_v42, %v9774_v40 }
 0x4af   : > { %4028 = vst.msk [vmem:[#allocation5 + $0xe0] sm:$0xff] %vm14220_vm14, %v3445_v52 }
 0x4b4   : > { %v3447_v26 = vpop.f32.mrf.mxu3 }
 0x4b5   : > { %v3448_v21 = vadd.f32 %v3447_v26, %v9774_v40 }
 0x4b7   : > { %4029 = vst.msk [vmem:[#allocation5 + $0xe8] sm:$0xff] %vm14220_vm14, %v3448_v21 }
 0x4b8   : > { %v3929_v19 = vpop.permute.xlu1 %3928 }
 0x4b9   : > { %3996 = vst.msk [vmem:[#allocation4 + $0xe0] sm:$0xff] %vm14220_vm14, %v3929_v19 }
 0x4bc   : > { %v3450_v8 = vpop.f32.mrf.mxu3 }
 0x4bd   : > { %v3451_v61 = vadd.f32 %v3450_v8, %v9774_v40 }
 0x4bf   : > { %4030 = vst.msk [vmem:[#allocation5 + $0xf0] sm:$0xff] %vm14220_vm14, %v3451_v61 }
 0x4c4   : > { %v3453_v0 = vpop.f32.mrf.mxu3 }
 0x4c5   : > { %v3454_v22 = vadd.f32 %v3453_v0, %v9774_v40  ;;  %v11608_v40 = vld [vmem:[%s14069_s10] sm:$0xff] }
 0x4c6   : > { %14468 = vst [vmem:[#allocation99_spill] sm:$0xff] %v11608_v40 }
 0x4c7   : > { %4031 = vst.msk [vmem:[#allocation5 + $0xf8] sm:$0xff] %vm14220_vm14, %v3454_v22 }
 0x4d9   : > { %v3933_v58 = vpop.permute.xlu2 %3932 }
 0x4da   : > { %3998 = vst.msk [vmem:[#allocation4 + $0xf0] sm:$0xff] %vm14220_vm14, %v3933_v58 }
 0x4e9   : > { %v3931_v54 = vpop.permute.xlu0 %3930 }
 0x4ea   : > { %3997 = vst.msk [vmem:[#allocation4 + $0xe8] sm:$0xff] %vm14220_vm14, %v3931_v54 }
 0x4f9   : > { %v3935_v49 = vpop.permute.xlu1 %3934 }
 0x4fa   : > { %3999 = vst.msk [vmem:[#allocation4 + $0xf8] sm:$0xff] %vm14220_vm14, %v3935_v49 }
 0x4fb LB: >> { %v14478_v60 = vld [vmem:[#allocation101_spill] sm:$0xff]  ;;  %v14480_v43 = vld [vmem:[#allocation100_spill] sm:$0xff]  ;;  %v14481_v40 = vld [vmem:[#allocation99_spill] sm:$0xff]  ;;  %s11682_s19 = sshll.u32 %s8154_s30, 3  ;;  %vm4773_vm11 = vcmask 1040384   ;;  %vm4775_vm12 = vcmask 1041408   ;;  %v8146_v20 = vphi %v11660_v20, %v4729_v20   ;;  %s8154_s30 = sphi %s11664_s30, %s4049_s30   ;;  %v8150_v36 = vphi %v11662_v36, %v14488_v36  }
 0x4fc   : >> { %v14479_v56 = vld [vmem:[#allocation105_spill] sm:$0xff]  ;;  %v14482_v35 = vld [vmem:[#allocation103_spill] sm:$0xff]  ;;  %v14483_v32 = vld [vmem:[#allocation106_spill] sm:$0xff]  ;;  %s4057_s20 = scalar_lea.vmem [#allocation4], %s11682_s19  ;;  %s4059_s21 = scalar_lea.vmem [#allocation5], %s11682_s19  ;;  %vm4778_vm15 = vcmask 1043456  }
 0x4fd   : >> { %v14484_v11 = vld [vmem:[#allocation107_spill] sm:$0xff]  ;;  %v14485_v5 = vld [vmem:[#allocation108_spill] sm:$0xff]  ;;  %v14486_v4 = vld [vmem:[#allocation102_spill] sm:$0xff]  ;;  %s4053_s25 = scalar_lea.vmem [#allocation2], %s11682_s19  ;;  %s4055_s22 = scalar_lea.vmem [#allocation3], %s11682_s19 }
 0x4fe   : >> { %v14487_v1 = vld [vmem:[#allocation104_spill] sm:$0xff]  ;;  %4085 = vmatpush.msra.mxu0 %v14485_v5  ;;  %4174 = vmatpush.msra.mxu2 %v14485_v5  ;;  %v11702_v2 = vld [vmem:[%s4059_s21] sm:$0xff]  ;;  %s4783_s27 = scalar_lea.vmem [#allocation6], %s11682_s19  ;;  %s4049_s30 = sadd.s32 1, %s8154_s30  }
 0x4ff   : >> { %4124 = vmatpush.msra.mxu1 %v14485_v5  ;;  %4213 = vmatpush.msra.mxu3 %v14485_v5  ;;  %v4107_v12 = vperm.slane %v11702_v2, 0  ;;  %v4196_v23 = vperm.slane %v11702_v2, 1  ;;  %v4285_v22 = vperm.slane %v11702_v2, 2  ;;  %v4374_v58 = vperm.slane %v11702_v2, 3  ;;  %p4046_p11 = scmp.ge.s32.totalorder %s4049_s30, 32  }
 0x500   : >> { %4086 = vmatpush.msra.mxu0 %v14484_v11  ;;  %4175 = vmatpush.msra.mxu2 %v14484_v11  ;;  %s14516_s29 = smov (%p4046_p11), 64   ;;  %s7099_s19 = sshll.u32 (%p4046_p11), %s11658_s0, 4  ;;  %s7100_s19 = int_to_ptr.vmem [resolvable:$true] %s7099_s19 }
 0x501   : >> { %4125 = vmatpush.msra.mxu1 %v14484_v11  ;;  %4214 = vmatpush.msra.mxu3 %v14484_v11  ;;  %v11689_v47 = vld [vmem:[%s4057_s20] sm:$0xff]  ;;  %v4108_v44 = vmul.f32 %v4107_v12, %v14481_v40  ;;  %v4197_v45 = vmul.f32 %v4196_v23, %v14481_v40  ;;  %v4109_v19 = vmul.f32 %v4107_v12, %v14480_v43  ;;  %s8088_s1 = scalar_lea.hbm (%p4046_p11), %s14075_s16, 512 }
 0x502   : >> { %4087 = vmatpush.msra.mxu0 %v14483_v32  ;;  %4176 = vmatpush.msra.mxu2 %v14483_v32  ;;  %v4068_v48 = vperm.slane %v11689_v47, 0  ;;  %v4157_v25 = vperm.slane %v11689_v47, 1  ;;  %v4198_v26 = vmul.f32 %v4196_v23, %v14480_v43  ;;  %v4246_v21 = vperm.slane %v11689_v47, 2 }
 0x503   : >> { %4126 = vmatpush.msra.mxu1 %v14483_v32  ;;  %4215 = vmatpush.msra.mxu3 %v14483_v32  ;;  %v4335_v8 = vperm.slane %v11689_v47, 3  ;;  %v4286_v54 = vmul.f32 %v4285_v22, %v14481_v40  ;;  %v4375_v49 = vmul.f32 %v4374_v58, %v14481_v40  ;;  %v4424_v12 = vperm.slane %v11689_v47, 4 }
 0x504   : >> { %4088 = vmatpush.msra.mxu0 %v14479_v56  ;;  %4177 = vmatpush.msra.mxu2 %v14479_v56  ;;  %v4069_v17 = vmul.f32 %v4068_v48, %v14481_v40  ;;  %v4158_v24 = vmul.f32 %v4157_v25, %v14481_v40  ;;  %v4070_v42 = vmul.f32 %v4068_v48, %v14480_v43  ;;  %v4513_v23 = vperm.slane %v11689_v47, 5 }
 0x505   : >> { %4127 = vmatpush.msra.mxu1 %v14479_v56  ;;  %4216 = vmatpush.msra.mxu3 %v14479_v56  ;;  %v4159_v52 = vmul.f32 %v4157_v25, %v14480_v43  ;;  %v4247_v61 = vmul.f32 %v4246_v21, %v14481_v40  ;;  %v4336_v0 = vmul.f32 %v4335_v8, %v14481_v40 }
 0x506   : >> { %4089 = vmatpush.msra.mxu0 %v14487_v1  ;;  %4178 = vmatpush.msra.mxu2 %v14487_v1  ;;  %v4248_v48 = vmul.f32 %v4246_v21, %v14480_v43  ;;  %v4337_v25 = vmul.f32 %v4335_v8, %v14480_v43  ;;  %v4426_v21 = vmul.f32 %v4424_v12, %v14480_v43 }
 0x507   : >> { %4128 = vmatpush.msra.mxu1 %v14487_v1  ;;  %4217 = vmatpush.msra.mxu3 %v14487_v1  ;;  %v4515_v8 = vmul.f32 %v4513_v23, %v14480_v43 }
 0x508   : >> { %4090 = vmatpush.msra.mxu0 %v14482_v35  ;;  %4179 = vmatpush.msra.mxu2 %v14482_v35 }
 0x509   : >> { %4129 = vmatpush.msra.mxu1 %v14482_v35  ;;  %4218 = vmatpush.msra.mxu3 %v14482_v35 }
 0x50a   : >> { %4091 = vmatpush.msra.mxu0 %v14486_v4  ;;  %4180 = vmatpush.msra.mxu2 %v14486_v4 }
 0x50b   : >> { %4130 = vmatpush.msra.mxu1 %v14486_v4  ;;  %4219 = vmatpush.msra.mxu3 %v14486_v4 }
 0x50c   : >> { %4092 = vmatpush.msra.mxu0 %v14478_v60  ;;  %4181 = vmatpush.msra.mxu2 %v14478_v60 }
 0x50d   : >> { %7289 = vmatmul.msk.f32.vlgmr.msra.gmra.mxu0 %vm14220_vm14, %v4069_v17  ;;  %7293 = vmatmul.msk.f32.vlgmr.msra.gmra.mxu2 %vm14220_vm14, %v4158_v24  ;;  %v4287_v17 = vmul.f32 %v4285_v22, %v14480_v43  ;;  %v4376_v24 = vmul.f32 %v4374_v58, %v14480_v43  ;;  %v4602_v22 = vperm.slane %v11689_v47, 6  ;;  %v4691_v58 = vperm.slane %v11689_v47, 7 }
 0x50e   : >> { %4352 = vmatpush.msrb.mxu2 %v14485_v5  ;;  %4263 = vmatpush.msrb.mxu0 %v14485_v5 }
 0x50f   : >> { %4131 = vmatpush.msra.mxu1 %v14478_v60  ;;  %4220 = vmatpush.msra.mxu3 %v14478_v60  ;;  %v4692_v47 = vmul.f32 %v4691_v58, %v14481_v40 }
 0x510   : >> { %4353 = vmatpush.msrb.mxu2 %v14484_v11  ;;  %4264 = vmatpush.msrb.mxu0 %v14484_v11 }
 0x511   : >> { %7291 = vmatmul.msk.f32.vlgmr.msra.gmra.mxu1 %vm14220_vm14, %v4108_v44  ;;  %7295 = vmatmul.msk.f32.vlgmr.msra.gmra.mxu3 %vm14220_vm14, %v4197_v45  ;;  %v4425_v44 = vmul.f32 %v4424_v12, %v14481_v40  ;;  %v4514_v45 = vmul.f32 %v4513_v23, %v14481_v40 }
 0x512   : >> { %4354 = vmatpush.msrb.mxu2 %v14483_v32  ;;  %4391 = vmatpush.msrb.mxu3 %v14485_v5 }
 0x513   : >> { %4265 = vmatpush.msrb.mxu0 %v14483_v32  ;;  %4302 = vmatpush.msrb.mxu1 %v14485_v5 }
 0x514   : >> { %4355 = vmatpush.msrb.mxu2 %v14479_v56  ;;  %4392 = vmatpush.msrb.mxu3 %v14484_v11 }
 0x515   : >> { %4266 = vmatpush.msrb.mxu0 %v14479_v56  ;;  %4303 = vmatpush.msrb.mxu1 %v14484_v11 }
 0x516   : >> { %7290 = vmatmul.msk.f32.gmra.mxu0 %vm14220_vm14, %v4070_v42  ;;  %7294 = vmatmul.msk.f32.gmra.mxu2 %vm14220_vm14, %v4159_v52  ;;  %v4463_v42 = vperm.slane %v11702_v2, 4  ;;  %v4552_v52 = vperm.slane %v11702_v2, 5 }
 0x517   : >> { %4356 = vmatpush.msrb.mxu2 %v14487_v1  ;;  %4393 = vmatpush.msrb.mxu3 %v14483_v32 }
 0x518   : >> { %4267 = vmatpush.msrb.mxu0 %v14487_v1  ;;  %4304 = vmatpush.msrb.mxu1 %v14483_v32 }
 0x519   : >> { %4357 = vmatpush.msrb.mxu2 %v14482_v35  ;;  %4394 = vmatpush.msrb.mxu3 %v14479_v56 }
 0x51a   : >> { %4268 = vmatpush.msrb.mxu0 %v14482_v35  ;;  %4305 = vmatpush.msrb.mxu1 %v14479_v56 }
 0x51b   : >> { %7292 = vmatmul.msk.f32.gmra.mxu1 %vm14220_vm14, %v4109_v19  ;;  %7296 = vmatmul.msk.f32.gmra.mxu3 %vm14220_vm14, %v4198_v26  ;;  %v4464_v19 = vmul.f32 %v4463_v42, %v14481_v40  ;;  %v4553_v26 = vmul.f32 %v4552_v52, %v14481_v40 }
 0x51c   : >> { %4358 = vmatpush.msrb.mxu2 %v14486_v4  ;;  %4395 = vmatpush.msrb.mxu3 %v14487_v1 }
 0x51d   : >> { %4269 = vmatpush.msrb.mxu0 %v14486_v4  ;;  %4306 = vmatpush.msrb.mxu1 %v14487_v1 }
 0x51e   : >> { %4359 = vmatpush.msrb.mxu2 %v14478_v60  ;;  %4396 = vmatpush.msrb.mxu3 %v14482_v35 }
 0x51f   : >> { %4270 = vmatpush.msrb.mxu0 %v14478_v60  ;;  %4307 = vmatpush.msrb.mxu1 %v14482_v35 }
 0x520   : >> { %7297 = vmatmul.msk.f32.vlgmr.msrb.gmra.mxu0 %vm14220_vm14, %v4247_v61  ;;  %7301 = vmatmul.msk.f32.vlgmr.msrb.gmra.mxu2 %vm14220_vm14, %v4336_v0  ;;  %v4465_v61 = vmul.f32 %v4463_v42, %v14480_v43  ;;  %v4554_v0 = vmul.f32 %v4552_v52, %v14480_v43 }
 0x521   : >> { %4397 = vmatpush.msrb.mxu3 %v14486_v4  ;;  %4530 = vmatpush.msra.mxu2 %v14485_v5 }
 0x522   : >> { %4308 = vmatpush.msrb.mxu1 %v14486_v4  ;;  %4441 = vmatpush.msra.mxu0 %v14485_v5 }
 0x523   : >> { %4398 = vmatpush.msrb.mxu3 %v14478_v60  ;;  %4531 = vmatpush.msra.mxu2 %v14484_v11 }
 0x524   : >> { %4309 = vmatpush.msrb.mxu1 %v14478_v60  ;;  %4442 = vmatpush.msra.mxu0 %v14484_v11 }
 0x525   : >> { %7299 = vmatmul.msk.f32.vlgmr.msrb.gmra.mxu1 %vm14220_vm14, %v4286_v54  ;;  %7303 = vmatmul.msk.f32.vlgmr.msrb.gmra.mxu3 %vm14220_vm14, %v4375_v49  ;;  %v4603_v54 = vmul.f32 %v4602_v22, %v14481_v40  ;;  %v4641_v49 = vperm.slane %v11702_v2, 6 }
 0x526   : >> { %4532 = vmatpush.msra.mxu2 %v14483_v32  ;;  %4569 = vmatpush.msra.mxu3 %v14485_v5 }
 0x527   : >> { %4443 = vmatpush.msra.mxu0 %v14483_v32  ;;  %4480 = vmatpush.msra.mxu1 %v14485_v5  ;;  %v4643_v12 = vmul.f32 %v4641_v49, %v14480_v43 }
 0x528   : >> { %4533 = vmatpush.msra.mxu2 %v14479_v56  ;;  %4570 = vmatpush.msra.mxu3 %v14484_v11 }
 0x529   : >> { %4444 = vmatpush.msra.mxu0 %v14479_v56  ;;  %4481 = vmatpush.msra.mxu1 %v14484_v11 }
 0x52a   : >> { %7298 = vmatmul.msk.f32.gmra.mxu0 %vm14220_vm14, %v4248_v48  ;;  %7302 = vmatmul.msk.f32.gmra.mxu2 %vm14220_vm14, %v4337_v25  ;;  %v4730_v48 = vperm.slane %v11702_v2, 7  ;;  %v4642_v25 = vmul.f32 %v4641_v49, %v14481_v40 }
 0x52b   : >> { %4534 = vmatpush.msra.mxu2 %v14487_v1  ;;  %4571 = vmatpush.msra.mxu3 %v14483_v32 }
 0x52c   : >> { %4445 = vmatpush.msra.mxu0 %v14487_v1  ;;  %4482 = vmatpush.msra.mxu1 %v14483_v32  ;;  %v4731_v2 = vmul.f32 %v4730_v48, %v14481_v40  ;;  %v4732_v23 = vmul.f32 %v4730_v48, %v14480_v43 }
 0x52d   : >> { %4535 = vmatpush.msra.mxu2 %v14482_v35  ;;  %4572 = vmatpush.msra.mxu3 %v14479_v56 }
 0x52e   : >> { %4446 = vmatpush.msra.mxu0 %v14482_v35  ;;  %4483 = vmatpush.msra.mxu1 %v14479_v56 }
 0x52f   : >> { %7300 = vmatmul.msk.f32.gmra.mxu1 %vm14220_vm14, %v4287_v17  ;;  %7304 = vmatmul.msk.f32.gmra.mxu3 %vm14220_vm14, %v4376_v24  ;;  %v4604_v17 = vmul.f32 %v4602_v22, %v14480_v43  ;;  %v4693_v24 = vmul.f32 %v4691_v58, %v14480_v43 }
 0x530   : >> { %4536 = vmatpush.msra.mxu2 %v14486_v4  ;;  %4573 = vmatpush.msra.mxu3 %v14487_v1 }
 0x531   : >> { %4447 = vmatpush.msra.mxu0 %v14486_v4  ;;  %4484 = vmatpush.msra.mxu1 %v14487_v1 }
 0x532   : >> { %4537 = vmatpush.msra.mxu2 %v14478_v60  ;;  %4574 = vmatpush.msra.mxu3 %v14482_v35 }
 0x533   : >> { %4448 = vmatpush.msra.mxu0 %v14478_v60  ;;  %4485 = vmatpush.msra.mxu1 %v14482_v35 }
 0x534   : >> { %7305 = vmatmul.msk.f32.vlgmr.msra.gmra.mxu0 %vm14220_vm14, %v4425_v44  ;;  %7309 = vmatmul.msk.f32.vlgmr.msra.gmra.mxu2 %vm14220_vm14, %v4514_v45  ;;  %v11893_v44 = vld [vmem:[%s4053_s25] sm:$0xff] }
 0x535   : >> { %4575 = vmatpush.msra.mxu3 %v14486_v4  ;;  %4708 = vmatpush.msrb.mxu2 %v14485_v5  ;;  %v4061_v45 = vperm.slane %v11893_v44, 0 }
 0x536   : >> { %4486 = vmatpush.msra.mxu1 %v14486_v4  ;;  %4619 = vmatpush.msrb.mxu0 %v14485_v5 }
 0x537   : >> { %4576 = vmatpush.msra.mxu3 %v14478_v60  ;;  %4709 = vmatpush.msrb.mxu2 %v14484_v11  ;;  %v4062_v52 = vmul.f32 %v4061_v45, %v11598_v41 }
 0x538   : >> { %4487 = vmatpush.msra.mxu1 %v14478_v60  ;;  %4620 = vmatpush.msrb.mxu0 %v14484_v11 }
 0x539   : >> { %7307 = vmatmul.msk.f32.vlgmr.msra.gmra.mxu1 %vm14220_vm14, %v4464_v19  ;;  %7311 = vmatmul.msk.f32.vlgmr.msra.gmra.mxu3 %vm14220_vm14, %v4553_v26 }
 0x53a   : >> { %4710 = vmatpush.msrb.mxu2 %v14483_v32  ;;  %4747 = vmatpush.msrb.mxu3 %v14485_v5 }
 0x53b   : >> { %4621 = vmatpush.msrb.mxu0 %v14483_v32  ;;  %4658 = vmatpush.msrb.mxu1 %v14485_v5 }
 0x53c   : >> { %4711 = vmatpush.msrb.mxu2 %v14479_v56  ;;  %4748 = vmatpush.msrb.mxu3 %v14484_v11 }
 0x53d   : >> { %4622 = vmatpush.msrb.mxu0 %v14479_v56  ;;  %4659 = vmatpush.msrb.mxu1 %v14484_v11 }
 0x53e   : >> { %7306 = vmatmul.msk.f32.gmra.mxu0 %vm14220_vm14, %v4426_v21  ;;  %7310 = vmatmul.msk.f32.gmra.mxu2 %vm14220_vm14, %v4515_v8  ;;  %v4064_v21 = vmul.f32 1.442695, %v4062_v52  ;;  %v4150_v8 = vperm.slane %v11893_v44, 1 }
 0x53f   : >> { %4712 = vmatpush.msrb.mxu2 %v14487_v1  ;;  %4749 = vmatpush.msrb.mxu3 %v14483_v32 }
 0x540   : >> { %4623 = vmatpush.msrb.mxu0 %v14487_v1  ;;  %4660 = vmatpush.msrb.mxu1 %v14483_v32  ;;  %7839 = vpow2.f32 %v4064_v21  ;;  %v4151_v58 = vmul.f32 %v4150_v8, %v11598_v41  ;;  %v4152_v49 = vmul.f32 %v4150_v8, %v11603_v3 }
 0x541   : >> { %4713 = vmatpush.msrb.mxu2 %v14482_v35  ;;  %4750 = vmatpush.msrb.mxu3 %v14479_v56 }
 0x542   : >> { %4624 = vmatpush.msrb.mxu0 %v14482_v35  ;;  %4661 = vmatpush.msrb.mxu1 %v14479_v56 }
 0x543   : >> { %7308 = vmatmul.msk.f32.gmra.mxu1 %vm14220_vm14, %v4465_v61  ;;  %7312 = vmatmul.msk.f32.gmra.mxu3 %vm14220_vm14, %v4554_v0  ;;  %v4063_v61 = vmul.f32 %v4061_v45, %v11603_v3 }
 0x544   : >> { %4714 = vmatpush.msrb.mxu2 %v14486_v4  ;;  %4751 = vmatpush.msrb.mxu3 %v14487_v1 }
 0x545   : >> { %4625 = vmatpush.msrb.mxu0 %v14486_v4  ;;  %4662 = vmatpush.msrb.mxu1 %v14487_v1 }
 0x546   : >> { %4715 = vmatpush.msrb.mxu2 %v14478_v60  ;;  %4752 = vmatpush.msrb.mxu3 %v14482_v35 }
 0x547   : >> { %4626 = vmatpush.msrb.mxu0 %v14478_v60  ;;  %4663 = vmatpush.msrb.mxu1 %v14482_v35 }
 0x548   : >> { %7313 = vmatmul.msk.f32.vlgmr.msrb.gmra.mxu0 %vm14220_vm14, %v4603_v54  ;;  %7317 = vmatmul.msk.f32.vlgmr.msrb.gmra.mxu2 %vm14220_vm14, %v4692_v47  ;;  %v4066_v54 = vmul.f32 1.442695, %v4063_v61  ;;  %v11905_v47 = vld [vmem:[%s4055_s22] sm:$0xff] }
 0x549   : >> { %4753 = vmatpush.msrb.mxu3 %v14486_v4  ;;  %4664 = vmatpush.msrb.mxu1 %v14486_v4  ;;  %v4369_v13 = vperm.slane %v11905_v47, 3 }
 0x54a   : >> { %7841 = vpow2.f32 %v4066_v54 }
 0x54b   : >> { %4754 = vmatpush.msrb.mxu3 %v14478_v60  ;;  %4665 = vmatpush.msrb.mxu1 %v14478_v60 }
 0x54c   : >> { %7315 = vmatmul.msk.f32.vlgmr.msrb.gmra.mxu1 %vm14220_vm14, %v4642_v25  ;;  %7319 = vmatmul.msk.f32.vlgmr.msrb.gmra.mxu3 %vm14220_vm14, %v4731_v2  ;;  %v4153_v25 = vmul.f32 1.442695, %v4151_v58  ;;  %v4328_v58 = vperm.slane %v11893_v44, 3 }
 0x54e   : >> { %7843 = vpow2.f32 %v4153_v25  ;;  %v4330_v40 = vmul.f32 %v4328_v58, %v11603_v3 }
 0x550   : >> { %7314 = vmatmul.msk.f32.gmra.mxu0 %vm14220_vm14, %v4604_v17  ;;  %7318 = vmatmul.msk.f32.gmra.mxu2 %vm14220_vm14, %v4693_v24  ;;  %v4239_v17 = vperm.slane %v11893_v44, 2  ;;  %v4102_v24 = vperm.slane %v11905_v47, 0 }
 0x552   : >> { %v4240_v52 = vmul.f32 %v4239_v17, %v11598_v41  ;;  %v4241_v54 = vmul.f32 %v4239_v17, %v11603_v3  ;;  %v4417_v17 = vperm.slane %v11893_v44, 4 }
 0x554   : >> { %7316 = vmatmul.msk.f32.gmra.mxu1 %vm14220_vm14, %v4643_v12  ;;  %7320 = vmatmul.msk.f32.gmra.mxu3 %vm14220_vm14, %v4732_v23  ;;  %v7840_v12 = vpop.eup %7839  ;;  %v4155_v23 = vmul.f32 1.442695, %v4152_v49  ;;  %v4242_v4 = vmul.f32 1.442695, %v4240_v52  ;;  %v4191_v49 = vperm.slane %v11905_v47, 1 }
 0x555   : >> { %v4100_v61 = vmul.f32 %v8150_v36, %v7840_v12  ;;  %v7842_v8 = vpop.eup %7841  ;;  %v4329_v12 = vmul.f32 %v4328_v58, %v11598_v41  ;;  %v4244_v35 = vmul.f32 1.442695, %v4241_v54  ;;  %v4418_v58 = vmul.f32 %v4417_v17, %v11598_v41 }
 0x556   : >> { %7845 = vpow2.f32 %v4155_v23  ;;  %v4101_v11 = vmul.f32 %v8146_v20, %v7842_v8  ;;  %v4280_v8 = vperm.slane %v11905_v47, 2 }
 0x557   : >> { %7847 = vpow2.f32 %v4242_v4  ;;  %v4331_v20 = vmul.f32 1.442695, %v4329_v12  ;;  %v4333_v4 = vmul.f32 1.442695, %v4330_v40  ;;  %v4420_v12 = vmul.f32 1.442695, %v4418_v58 }
 0x558   : >> { %7849 = vpow2.f32 %v4244_v35 }
 0x559   : >> { %7851 = vpow2.f32 %v4331_v20 }
 0x55a   : >> { %7853 = vpow2.f32 %v4333_v4 }
 0x55b   : >> { %7855 = vpow2.f32 %v4420_v12 }
 0x58a   : >> { %v4094_v42 = vpop.f32.mrf.mxu0 }
 0x58b   : >> { %v4103_v21 = vmul.f32 %v4102_v24, %v4094_v42  ;;  %v7844_v42 = vpop.eup %7843 }
 0x58c   : >> { %v7846_v23 = vpop.eup %7845 }
 0x58d   : >> { %v11918_v5 = vadd.f32 %v4103_v21, %v4100_v61  ;;  %v7848_v60 = vpop.eup %7847 }
 0x58e   : >> { %v11897_v19 = vpop.f32.mrf.mxu1 }
 0x58f   : >> { %v4189_v21 = vmul.f32 %v7844_v42, %v11918_v5 }
 0x590   : >> { %v4183_v26 = vpop.f32.mrf.mxu2 }
 0x591   : >> { %v4192_v52 = vmul.f32 %v4191_v49, %v4183_v26  ;;  %v4506_v26 = vperm.slane %v11893_v44, 5 }
 0x593   : >> { %v4097_v0 = vpop.f32.mrf.mxu0  ;;  %v4194_v56 = vadd.f32 %v4192_v52, %v4189_v21  ;;  %v4507_v29 = vmul.f32 %v4506_v26, %v11598_v41 }
 0x594   : >> { %v11901_v22 = vpop.f32.mrf.mxu3  ;;  %v4104_v25 = vmul.f32 %v4102_v24, %v4097_v0 }
 0x595   : >> { %v4509_v4 = vmul.f32 1.442695, %v4507_v29  ;;  %v4684_v29 = vperm.slane %v11893_v44, 7 }
 0x596   : >> { %v11928_v61 = vadd.f32 %v4104_v25, %v4101_v11  ;;  %v4419_v11 = vmul.f32 %v4417_v17, %v11603_v3 }
 0x598   : >> { %v11908_v48 = vpop.f32.mrf.mxu1  ;;  %v4190_v43 = vmul.f32 %v7846_v23, %v11928_v61  ;;  %v4278_v23 = vmul.f32 %v7848_v60, %v4194_v56  ;;  %v4422_v52 = vmul.f32 1.442695, %v4419_v11 }
 0x599   : >> { %v4186_v2 = vpop.f32.mrf.mxu2 }
 0x59a   : >> { %v4193_v24 = vmul.f32 %v4191_v49, %v4186_v2  ;;  %v7850_v2 = vpop.eup %7849  ;;  %7857 = vpow2.f32 %v4422_v52 }
 0x59b   : >> { %v7852_v34 = vpop.eup %7851  ;;  %7859 = vpow2.f32 %v4509_v4 }
 0x59c   : >> { %v4195_v42 = vadd.f32 %v4193_v24, %v4190_v43  ;;  %v7854_v15 = vpop.eup %7853 }
 0x59d   : >> { %v4272_v45 = vpop.f32.mrf.mxu0  ;;  %v7856_v9 = vpop.eup %7855 }
 0x59e   : >> { %v11914_v1 = vpop.f32.mrf.mxu3  ;;  %v4281_v25 = vmul.f32 %v4280_v8, %v4272_v45  ;;  %v4279_v20 = vmul.f32 %v7850_v2, %v4195_v42  ;;  %v4508_v45 = vmul.f32 %v4506_v26, %v11603_v3 }
 0x59f   : >> { %v4229_v4 = vmul.f32 %v11914_v1, %v4195_v42 }
 0x5a0   : >> { %v4283_v21 = vadd.f32 %v4281_v25, %v4278_v23  ;;  %v4511_v11 = vmul.f32 1.442695, %v4508_v45 }
 0x5a2   : >> { %v11922_v32 = vpop.f32.mrf.mxu1  ;;  %v4367_v60 = vmul.f32 %v7852_v34, %v4283_v21  ;;  %7861 = vpow2.f32 %v4511_v11  ;;  %v4547_v34 = vperm.slane %v11905_v47, 5 }
 0x5a3   : >> { %v4361_v36 = vpop.f32.mrf.mxu2  ;;  %v4317_v1 = vmul.f32 %v11922_v32, %v4283_v21  ;;  %v4636_v32 = vperm.slane %v11905_v47, 6 }
 0x5a4   : >> { %v4370_v43 = vmul.f32 %v4369_v13, %v4361_v36 }
 0x5a6   : >> { %v4372_v25 = vadd.f32 %v4370_v43, %v4367_v60 }
 0x5a7   : >> { %v4275_v0 = vpop.f32.mrf.mxu0 }
 0x5a8   : >> { %v11932_v54 = vpop.f32.mrf.mxu3  ;;  %v4282_v40 = vmul.f32 %v4280_v8, %v4275_v0  ;;  %v4458_v0 = vperm.slane %v11905_v47, 4  ;;  %v4595_v8 = vperm.slane %v11893_v44, 6  ;;  %v4140_v44 = vmul.f32 %v11908_v48, %v11928_v61 }
 0x5a9   : >> { %v4406_v61 = vmul.f32 %v11932_v54, %v4372_v25 }
 0x5aa   : >> { %v4284_v17 = vadd.f32 %v4282_v40, %v4279_v20  ;;  %v4596_v40 = vmul.f32 %v4595_v8, %v11598_v41  ;;  %v7858_v20 = vpop.eup %7857 }
 0x5ab   : >> { %v7860_v16 = vpop.eup %7859 }
 0x5ac   : >> { %v4314_v35 = vpop.f32.mrf.mxu1  ;;  %v4368_v2 = vmul.f32 %v7854_v15, %v4284_v17  ;;  %v4598_v60 = vmul.f32 1.442695, %v4596_v40  ;;  %v7862_v55 = vpop.eup %7861  ;;  %v4231_v40 = vsel %vm14220_vm14, %v4229_v4, 0.0 }
 0x5ad   : >> { %v4364_v49 = vpop.f32.mrf.mxu2 }
 0x5ae   : >> { %v4371_v58 = vmul.f32 %v4369_v13, %v4364_v49  ;;  %v4456_v13 = vmul.f32 %v7856_v9, %v4372_v25  ;;  %v4228_v9 = vmul.f32 %v11901_v22, %v4194_v56  ;;  %7863 = vpow2.f32 %v4598_v60 }
 0x5af   : >> { %v4139_v56 = vmul.f32 %v11897_v19, %v11918_v5  ;;  %v4319_v5 = vsel %vm14220_vm14, %v4317_v1, 0.0 }
 0x5b0   : >> { %v4373_v36 = vadd.f32 %v4371_v58, %v4368_v2  ;;  %v4597_v58 = vmul.f32 %v4595_v8, %v11603_v3  ;;  %v4230_v22 = vsel %vm14220_vm14, %v4228_v9, 0.0 }
 0x5b1   : >> { %v4450_v53 = vpop.f32.mrf.mxu0 }
 0x5b2   : >> { %v4403_v24 = vpop.f32.mrf.mxu3  ;;  %v4459_v26 = vmul.f32 %v4458_v0, %v4450_v53  ;;  %v4457_v15 = vmul.f32 %v7858_v20, %v4373_v36  ;;  %v4685_v53 = vmul.f32 %v4684_v29, %v11598_v41 }
 0x5b3   : >> { %v4407_v8 = vmul.f32 %v4403_v24, %v4373_v36  ;;  %v4232_v24 = vadd.f32 %v4231_v40, %v4230_v22  ;;  %v4725_v40 = vperm.slane %v11905_v47, 7 }
 0x5b4   : >> { %v4461_v52 = vadd.f32 %v4459_v26, %v4456_v13  ;;  %v4318_v26 = vmul.f32 %v4314_v35, %v4284_v17  ;;  %v4687_v20 = vmul.f32 1.442695, %v4685_v53  ;;  %v4142_v17 = vsel %vm14220_vm14, %v4140_v44, 0.0 }
 0x5b5   : >> { %v4409_v19 = vsel %vm14220_vm14, %v4407_v8, 0.0 }
 0x5b6   : >> { %v4489_v23 = vpop.f32.mrf.mxu1  ;;  %v4320_v35 = vsel %vm14220_vm14, %v4318_v26, 0.0 }
 0x5b7   : >> { %v4539_v12 = vpop.f32.mrf.mxu2  ;;  %v4495_v36 = vmul.f32 %v4489_v23, %v4461_v52  ;;  %v4321_v54 = vadd.f32 %v4320_v35, %v4319_v5 }
 0x5b8   : >> { %v4548_v2 = vmul.f32 %v4547_v34, %v4539_v12 }
 0x5b9   : >> { %v4497_v9 = vsel %vm14220_vm14, %v4495_v36, 0.0 }
 0x5bb   : >> { %v4453_v49 = vpop.f32.mrf.mxu0 }
 0x5bc   : >> { %v4460_v45 = vmul.f32 %v4458_v0, %v4453_v49  ;;  %v4578_v43 = vpop.f32.mrf.mxu3  ;;  %v4545_v0 = vmul.f32 %v7860_v16, %v4461_v52  ;;  %v4600_v49 = vmul.f32 1.442695, %v4597_v58  ;;  %v4686_v16 = vmul.f32 %v4684_v29, %v11603_v3 }
 0x5bd   : >> { %v4141_v58 = vsel %vm14220_vm14, %v4139_v56, 0.0 }
 0x5be   : >> { %v4462_v11 = vadd.f32 %v4460_v45, %v4457_v15  ;;  %v4550_v12 = vadd.f32 %v4548_v2, %v4545_v0  ;;  %7865 = vpow2.f32 %v4600_v49  ;;  %v4689_v53 = vmul.f32 1.442695, %v4686_v16 }
 0x5bf   : >> { %7867 = vpow2.f32 %v4687_v20  ;;  %v4408_v2 = vsel %vm14220_vm14, %v4406_v61, 0.0  ;;  %v4143_v52 = vadd.f32 %v4142_v17, %v4141_v58  ;;  %v4322_v20 = vrot.slane %v4321_v54, 4 }
 0x5c0   : >> { %v4492_v13 = vpop.f32.mrf.mxu1  ;;  %v4546_v15 = vmul.f32 %v7862_v55, %v4462_v11  ;;  %v4584_v60 = vmul.f32 %v4578_v43, %v4550_v12  ;;  %7869 = vpow2.f32 %v4689_v53 }
 0x5c1   : >> { %v4542_v42 = vpop.f32.mrf.mxu2  ;;  %v4496_v48 = vmul.f32 %v4492_v13, %v4462_v11  ;;  %v4410_v11 = vadd.f32 %v4409_v19, %v4408_v2  ;;  %v4144_v56 = vrot.slane %v4143_v52, 4 }
 0x5c2   : >> { %v4549_v45 = vmul.f32 %v4547_v34, %v4542_v42  ;;  %v7864_v34 = vpop.eup %7863  ;;  %v4586_v43 = vsel %vm14220_vm14, %v4584_v60, 0.0  ;;  %v4233_v42 = vrot.slane %v4232_v24, 4 }
 0x5c3   : >> { %v4498_v25 = vsel %vm14220_vm14, %v4496_v48, 0.0  ;;  %v4634_v13 = vmul.f32 %v7864_v34, %v4550_v12  ;;  %v4411_v22 = vrot.slane %v4410_v11, 4 }
 0x5c4   : >> { %v4551_v21 = vadd.f32 %v4549_v45, %v4546_v15  ;;  %v4499_v0 = vadd.f32 %v4498_v25, %v4497_v9  ;;  %v7866_v1 = vpop.eup %7865  ;;  %v4234_v36 = vadd.f32 %v4233_v42, %v4232_v24 }
 0x5c5   : >> { %v4628_v55 = vpop.f32.mrf.mxu0  ;;  %v7868_v45 = vpop.eup %7867  ;;  %v4412_v25 = vadd.f32 %v4411_v22, %v4410_v11 }
 0x5c6   : >> { %v4581_v29 = vpop.f32.mrf.mxu3  ;;  %v4637_v23 = vmul.f32 %v4636_v32, %v4628_v55  ;;  %v4500_v16 = vrot.slane %v4499_v0, 4  ;;  %v4635_v17 = vmul.f32 %v7866_v1, %v4551_v21  ;;  %v4323_v55 = vadd.f32 %v4322_v20, %v4321_v54  ;;  %v7870_v60 = vpop.eup %7869 }
 0x5c7   : >> { %v4585_v4 = vmul.f32 %v4581_v29, %v4551_v21  ;;  %v4145_v29 = vadd.f32 %v4144_v56, %v4143_v52 }
 0x5c8   : >> { %v4639_v15 = vadd.f32 %v4637_v23, %v4634_v13  ;;  %v4501_v53 = vadd.f32 %v4500_v16, %v4499_v0  ;;  %v4235_v23 = vrot.slane %v4234_v36, 2  ;;  %v4324_v9 = vrot.slane %v4323_v55, 2 }
 0x5c9   : >> { %v4587_v44 = vsel %vm14220_vm14, %v4585_v4, 0.0  ;;  %v4667_v26 = vpop.f32.mrf.mxu1  ;;  %v4413_v13 = vrot.slane %v4412_v25, 2 }
 0x5ca   : >> { %v4588_v49 = vadd.f32 %v4587_v44, %v4586_v43  ;;  %v4673_v47 = vmul.f32 %v4667_v26, %v4639_v15  ;;  %v4723_v5 = vmul.f32 %v7868_v45, %v4639_v15  ;;  %v4146_v43 = vrot.slane %v4145_v29, 2 }
 0x5cb   : >> { %v4717_v8 = vpop.f32.mrf.mxu2  ;;  %v4502_v52 = vrot.slane %v4501_v53, 2  ;;  %v4236_v0 = vadd.f32 %v4235_v23, %v4234_v36  ;;  %v4325_v15 = vadd.f32 %v4324_v9, %v4323_v55  ;;  %v4414_v22 = vadd.f32 %v4413_v13, %v4412_v25 }
 0x5cc   : >> { %v4726_v61 = vmul.f32 %v4725_v40, %v4717_v8  ;;  %v4589_v12 = vrot.slane %v4588_v49, 4  ;;  %v4675_v21 = vsel %vm14220_vm14, %v4673_v47, 0.0  ;;  %v4147_v56 = vadd.f32 %v4146_v43, %v4145_v29 }
 0x5cd   : >> { %v4631_v48 = vpop.f32.mrf.mxu0  ;;  %v4503_v16 = vadd.f32 %v4502_v52, %v4501_v53  ;;  %v4415_v36 = vrot.slane %v4414_v22, 1 }
 0x5ce   : >> { %v4638_v35 = vmul.f32 %v4636_v32, %v4631_v48  ;;  %v11970_v58 = vadd.f32 %v4726_v61, %v4723_v5   ;;  %v4590_v44 = vadd.f32 %v4589_v12, %v4588_v49  ;;  %v4148_v5 = vrot.slane %v4147_v56, 1 }
 0x5cf   : >> { %v4756_v34 = vpop.f32.mrf.mxu3  ;;  %v4416_v9 = vadd.f32 %v4415_v36, %v4414_v22 }
 0x5d0   : >> { %v4640_v19 = vadd.f32 %v4638_v35, %v4635_v17  ;;  %v4762_v11 = vmul.f32 %v4756_v34, %v11970_v58  ;;  %v4591_v42 = vrot.slane %v4590_v44, 2  ;;  %v4237_v35 = vrot.slane %v4236_v0, 1 }
 0x5d1   : >> { %v4670_v4 = vpop.f32.mrf.mxu1  ;;  %v4326_v34 = vrot.slane %v4325_v15, 1  ;;  %v4149_v23 = vadd.f32 %v4148_v5, %v4147_v56  ;;  %v14488_v36 = vmov %v11970_v58  ;;  %v14489_v56 = vld [vmem:[#allocation25_spill] sm:$0xff] (%p4046_p11) }
 0x5d2   : >> { %v4674_v2 = vmul.f32 %v4670_v4, %v4640_v19  ;;  %v4724_v26 = vmul.f32 %v7870_v60, %v4640_v19  ;;  %v4592_v17 = vadd.f32 %v4591_v42, %v4590_v44  ;;  %v4504_v4 = vrot.slane %v4503_v16, 1 }
 0x5d3   : >> { %v4720_v32 = vpop.f32.mrf.mxu2  ;;  %v4238_v55 = vadd.f32 %v4237_v35, %v4236_v0  ;;  %v4327_v25 = vadd.f32 %v4326_v34, %v4325_v15  ;;  %v4902_v15 = vand.u32 (%p4046_p11), 2147483647, %v10225_v51  ;;  %v4886_v22 = vand.u32 (%p4046_p11), 2147483647, %v14489_v56 }
 0x5d4   : >> { %v4676_v24 = vsel %vm14220_vm14, %v4674_v2, 0.0  ;;  %v4727_v54 = vmul.f32 %v4725_v40, %v4720_v32  ;;  %v4764_v40 = vsel %vm14220_vm14, %v4762_v11, 0.0  ;;  %v4593_v2 = vrot.slane %v4592_v17, 1 }
 0x5d5   : >> { %v4677_v1 = vadd.f32 %v4676_v24, %v4675_v21  ;;  %v4505_v44 = vadd.f32 %v4504_v4, %v4503_v16  ;;  %v4774_v21 = vsel %vm4773_vm11, %v4149_v23, %v4238_v55  ;;  %v4906_v55 = vand.u32 (%p4046_p11), 2147483647, %v10788_v28 }
 0x5d6   : >> { %v4729_v20 = vadd.f32 %v4727_v54, %v4724_v26   ;;  %v4594_v24 = vadd.f32 %v4593_v2, %v4592_v17  ;;  %v4776_v26 = vsel %vm4775_vm12, %v4774_v21, %v4327_v25 }
 0x5d7   : >> { %v4678_v8 = vrot.slane %v4677_v1, 4  ;;  %v4759_v45 = vpop.f32.mrf.mxu3  ;;  %v4777_v13 = vsel %vm1584_vm13, %v4776_v26, %v4416_v9  ;;  %v4938_v21 = vsub.f32 (%p4046_p11), 0.0, %v4906_v55 }
 0x5d8   : >> { %v4763_v49 = vmul.f32 %v4759_v45, %v4729_v20  ;;  %v4779_v52 = vsel %vm4778_vm15, %v4777_v13, %v4505_v44  ;;  %v4901_v45 = vand.u32 (%p4046_p11), 2147483647, %v10153_v37 }
 0x5d9   : >> { %v4679_v48 = vadd.f32 %v4678_v8, %v4677_v1  ;;  %v4780_v11 = vsel %vm2213_vm10, %v4779_v52, %v4594_v24 }
 0x5da   : >> { %v4765_v61 = vsel %vm14220_vm14, %v4763_v49, 0.0  ;;  %v4885_v49 = vand.u32 (%p4046_p11), 2147483647, %v8699_v14  ;;  %v4933_v16 = vsub.f32 (%p4046_p11), 0.0, %v4901_v45  ;;  %v12035_v45 = vmul.f32 (%p4046_p11), 1.442695, %v4938_v21 }
 0x5db   : >> { %v4680_v12 = vrot.slane %v4679_v48, 2  ;;  %v4766_v47 = vadd.f32 %v4765_v61, %v4764_v40  ;;  %v4934_v40 = vsub.f32 (%p4046_p11), 0.0, %v4902_v15  ;;  %v14490_v61 = vld [vmem:[#allocation29_spill] sm:$0xff] (%p4046_p11) }
 0x5dc   : > { %v4888_v35 = vand.u32 (%p4046_p11), 2147483647, %v14490_v61  ;;  %v4917_v17 = vsub.f32 (%p4046_p11), 0.0, %v4885_v49 }
 0x5dd   : >> { %v4681_v19 = vadd.f32 %v4680_v12, %v4679_v48  ;;  %v4767_v60 = vrot.slane %v4766_v47, 4  ;;  %v4904_v48 = vand.u32 (%p4046_p11), 2147483647, %v10392_v46  ;;  %v4918_v12 = vsub.f32 (%p4046_p11), 0.0, %v4886_v22 }
 0x5de   : > { %v4983_v34 = vmul.f32 (%p4046_p11), 1.442695, %v4934_v40  ;;  %v4920_v5 = vsub.f32 (%p4046_p11), 0.0, %v4888_v35  ;;  %v4949_v41 = vmul.f32 (%p4046_p11), 1.442695, %v4917_v17 }
 0x5df   : >> { %v4768_v29 = vadd.f32 %v4767_v60, %v4766_v47  ;;  %v4682_v53 = vrot.slane %v4681_v19, 1  ;;  %v4936_v58 = vsub.f32 (%p4046_p11), 0.0, %v4904_v48  ;;  %v4981_v47 = vmul.f32 (%p4046_p11), 1.442695, %v4933_v16 }
 0x5e0   : > { %v4951_v3 = vmul.f32 (%p4046_p11), 1.442695, %v4918_v12  ;;  %v4955_v36 = vmul.f32 (%p4046_p11), 1.442695, %v4920_v5 }
 0x5e1   : >> { %v4769_v32 = vrot.slane %v4768_v29, 2  ;;  %v4683_v43 = vadd.f32 %v4682_v53, %v4681_v19  ;;  %7876 = vpow2.f32 (%p4046_p11), %v4981_v47  ;;  %v4987_v20 = vmul.f32 (%p4046_p11), 1.442695, %v4936_v58  ;;  %v14491_v19 = vld [vmem:[#allocation71_spill] sm:$0xff] (%p4046_p11) }
 0x5e2   : > { %7878 = vpow2.f32 (%p4046_p11), %v4983_v34  ;;  %v4903_v60 = vand.u32 (%p4046_p11), 2147483647, %v14491_v19  ;;  %v14492_v53 = vld [vmem:[#allocation31_spill] sm:$0xff] (%p4046_p11) }
 0x5e3   : >> { %v4770_v54 = vadd.f32 %v4769_v32, %v4768_v29  ;;  %v4781_v42 = vsel %vm2016_vm8, %v4780_v11, %v4683_v43  ;;  %7880 = vpow2.f32 (%p4046_p11), %v4949_v41  ;;  %v4889_v23 = vand.u32 (%p4046_p11), 2147483647, %v14492_v53 }
 0x5e4   : > { %7882 = vpow2.f32 (%p4046_p11), %v4951_v3  ;;  %v4935_v4 = vsub.f32 (%p4046_p11), 0.0, %v4903_v60 }
 0x5e5   : >> { %v4771_v1 = vrot.slane %v4770_v54, 1  ;;  %7884 = vpow2.f32 (%p4046_p11), %v4987_v20 }
 0x5e6   : > { %4048 = sbr.rel (!%p4046_p11) target bundleno = 1275 (0x4fb), region = 131  ;;  %7886 = vpow2.f32 (%p4046_p11), %v4955_v36  ;;  %v4985_v44 = vmul.f32 (%p4046_p11), 1.442695, %v4935_v4 }
 0x5e7   : >> { %v4772_v0 = vadd.f32 %v4771_v1, %v4770_v54  ;;  %v11999_v2 = vpop.eup (%p4046_p11), %7876 }
 0x5e8   : > { %v12001_v29 = vpop.eup (%p4046_p11), %7878  ;;  %v12004_v25 = vadd.f32 (%p4046_p11), 1.0, %v11999_v2 }
 0x5e9   : >> { %v4782_v8 = vsel %vm1819_vm6, %v4781_v42, %v4772_v0  ;;  %v12007_v9 = vpop.eup (%p4046_p11), %7880  ;;  %v12010_v32 = vadd.f32 (%p4046_p11), 1.0, %v12001_v29  ;;  %v12029_v0 = vsub.f32 (%p4046_p11), 0.0, %v4889_v23 }
 0x5ea   : >> { %4784 = vst.msk [vmem:[%s4783_s27] sm:$0xff] %vm14220_vm14, %v4782_v8  ;;  %v12012_v24 = vpop.eup (%p4046_p11), %7882  ;;  %7888 = vrcp.f32 (%p4046_p11), %v12004_v25  ;;  %v5326_v26 = vand.u32 (%p4046_p11), 2147483647, %v12004_v25  ;;  %v5328_v43 = vand.u32 (%p4046_p11), 2147483648, %v12004_v25  ;;  %v12024_v52 = vadd.f32 (%p4046_p11), 1.0, %v12007_v9 }
 0x5eb   : > { %v12015_v54 = vpop.eup %7884  ;;  %7890 = vrcp.f32 %v12010_v32  ;;  %v5341_v1 = vand.u32 2147483647, %v12010_v32  ;;  %v12027_v11 = vadd.f32 1.0, %v12012_v24  ;;  %v5343_v42 = vand.u32 2147483648, %v12010_v32 }
 0x5ec   : > { %v12020_v13 = vpop.eup %7886  ;;  %v12033_v8 = vadd.f32 1.0, %v12015_v54  ;;  %7892 = vpow2.f32 %v4985_v44  ;;  %vm5322_vm13 = vweird.f32 %v12004_v25  ;;  %vm5337_vm6 = vweird.f32 %v12010_v32 }
 0x5ed   : > { %7894 = vrcp.f32 %v12024_v52  ;;  %v5088_v15 = vand.u32 2147483648, %v12024_v52  ;;  %vm12041_vm8 = vcmp.eq.f32.partialorder %v5326_v26, 8.507059e+37  ;;  %v5329_v22 = vor.u32 1.1754944e-38, %v5328_v43 }
 0x5ee   : > { %v5086_v48 = vand.u32 2147483647, %v12024_v52  ;;  %7896 = vrcp.f32 %v12027_v11  ;;  %v12048_v16 = vadd.f32 1.0, %v12020_v13  ;;  %vm12050_vm10 = vcmp.eq.f32.partialorder %v5341_v1, 8.507059e+37 }
 0x5ef   : > { %v5101_v17 = vand.u32 2147483647, %v12027_v11  ;;  %v5103_v12 = vand.u32 2147483648, %v12027_v11  ;;  %7898 = vrcp.f32 %v12033_v8  ;;  %v5344_v34 = vor.u32 1.1754944e-38, %v5343_v42 }
 0x5f0   : > { %v7889_v40 = vpop.eup %7888  ;;  %vm5082_vm1 = vweird.f32 %v12024_v52  ;;  %vm5097_vm2 = vweird.f32 %v12027_v11  ;;  %v12062_v41 = vor.u32 1.1754944e-38, %v5088_v15  ;;  %v5371_v3 = vand.u32 2147483647, %v12033_v8 }
 0x5f1   : > { %v7891_v58 = vpop.eup %7890  ;;  %v5318_v47 = vmul.f32 %v7889_v40, %v12004_v25  ;;  %v5373_v20 = vand.u32 2147483648, %v12033_v8  ;;  %vm5323_vm4 = vweird.f32 %v7889_v40  ;;  %vm12069_vm7 = vcmp.eq.f32.partialorder %v5086_v48, 8.507059e+37 }
 0x5f2   : > { %v5333_v5 = vmul.f32 %v7891_v58, %v12010_v32  ;;  %v12066_v36 = vpop.eup %7892  ;;  %7900 = vrcp.f32 %v12048_v16  ;;  %vm5338_vm11 = vweird.f32 %v7891_v58  ;;  %vm12075_vm12 = vcmp.eq.f32.partialorder %v5101_v17, 8.507059e+37  ;;  %vm12087_vm0 = vmor %vm5322_vm13, %vm5323_vm4 }
 0x5f3   : > { %v5319_v60 = vsub.f32 1.0, %v5318_v47  ;;  %v7895_v55 = vpop.eup %7894  ;;  %v5104_v21 = vor.u32 1.1754944e-38, %v5103_v12  ;;  %vm12080_vm15 = vcmp.eq.f32.partialorder %v5371_v3, 8.507059e+37  ;;  %v5374_v15 = vor.u32 1.1754944e-38, %v5373_v20  ;;  %vm12098_vm9 = vmor %vm5337_vm6, %vm5338_vm11 }
 0x5f4   : > { %v5334_v23 = vsub.f32 1.0, %v5333_v5  ;;  %v7897_v26 = vpop.eup %7896  ;;  %v5078_v1 = vmul.f32 %v7895_v55, %v12024_v52  ;;  %vm5013_vm14 = vcmp.ge.f32.partialorder %v8699_v14, 0.0  ;;  %vm5083_vm5 = vweird.f32 %v7895_v55 }
 0x5f5   : > { %v5320_v43 = vmul.f32 %v7889_v40, %v5319_v60  ;;  %v7899_v48 = vpop.eup %7898  ;;  %v5093_v12 = vmul.f32 %v7897_v26, %v12027_v11  ;;  %v5131_v5 = vand.u32 2147483647, %v12048_v16  ;;  %vm5014_vm13 = vcmp.ge.f32.partialorder %v14489_v56, 0.0  ;;  %vm12117_vm6 = vmor %vm5082_vm1, %vm5083_vm5 }
 0x5f6   : > { %v5335_v17 = vmul.f32 %v7891_v58, %v5334_v23  ;;  %v5079_v20 = vsub.f32 1.0, %v5078_v1  ;;  %v5363_v60 = vmul.f32 %v7899_v48, %v12033_v8  ;;  %v5133_v23 = vand.u32 2147483648, %v12048_v16 }
 0x5f7   : > { %v5321_v3 = vadd.f32 %v7889_v40, %v5320_v43  ;;  %v5094_v33 = vsub.f32 1.0, %v5093_v12  ;;  %vm5098_vm4 = vweird.f32 %v7897_v26  ;;  %vm5368_vm3 = vweird.f32 %v7899_v48 }
 0x5f8   : > { %v5336_v10 = vadd.f32 %v7891_v58, %v5335_v17  ;;  %v7901_v59 = vpop.eup %7900  ;;  %v5080_v32 = vmul.f32 %v7895_v55, %v5079_v20  ;;  %v5364_v18 = vsub.f32 1.0, %v5363_v60  ;;  %v12108_v7 = vadd.f32 1.0, %v12066_v36 }
 0x5f9   : > { %v5325_v43 = vsel %vm12087_vm0, %v7889_v40, %v5321_v3  ;;  %v5095_v47 = vmul.f32 %v7897_v26, %v5094_v33  ;;  %v5123_v40 = vmul.f32 %v7901_v59, %v12048_v16  ;;  %vm12128_vm0 = vmor %vm5097_vm2, %vm5098_vm4  ;;  %vm14514_vm5 = vcmp.ge.f32.partialorder %v10153_v37, 0.0 }
 0x5fa   : > { %v5330_v1 = vsel %vm12041_vm8, %v5329_v22, %v5325_v43  ;;  %v5340_v6 = vsel %vm12098_vm9, %v7891_v58, %v5336_v10  ;;  %v5081_v49 = vadd.f32 %v7895_v55, %v5080_v32  ;;  %v5365_v52 = vmul.f32 %v7899_v48, %v5364_v18 }
 0x5fb   : > { %v5573_v12 = vmul.f32 %v11999_v2, %v5330_v1  ;;  %v5345_v3 = vsel %vm12050_vm10, %v5344_v34, %v5340_v6  ;;  %v5096_v58 = vadd.f32 %v7897_v26, %v5095_v47  ;;  %vm14511_vm8 = vweird.f32 %v12033_v8  ;;  %v14521_v47 = vld [vmem:[#allocation75_spill] sm:$0xff] }
 0x5fc   : > { %v5574_v22 = vmul.f32 %v12001_v29, %v5345_v3  ;;  %vm12136_vm1 = vmor %vm14511_vm8, %vm5368_vm3  ;;  %v5124_v6 = vsub.f32 1.0, %v5123_v40  ;;  %vm5128_vm10 = vweird.f32 %v7901_v59  ;;  %v5085_v11 = vsel %vm12117_vm6, %v7895_v55, %v5081_v49 }
 0x5fd   : > { %v5605_v2 = vsel %vm14514_vm5, %v5330_v1, %v5573_v12  ;;  %v5366_v35 = vadd.f32 %v7899_v48, %v5365_v52  ;;  %7902 = vrcp.f32 %v12108_v7  ;;  %vm14515_vm2 = vcmp.ge.f32.partialorder %v10225_v51, 0.0  ;;  %v14520_v1 = vld [vmem:[#allocation26_spill] sm:$0xff] }
 0x5fe   : > { %v5637_v18 = vmul.f32 %v5605_v2, %v10153_v37  ;;  %v5606_v29 = vsel %vm14515_vm2, %v5345_v3, %v5574_v22  ;;  %v5090_v8 = vsel %vm12069_vm7, %v12062_v41, %v5085_v11  ;;  %v5100_v34 = vsel %vm12128_vm0, %v7897_v26, %v5096_v58  ;;  %v14522_v12 = vld [vmem:[#allocation34_spill] sm:$0xff] }
 0x5ff   : > { %v5638_v25 = vmul.f32 %v5606_v29, %v10225_v51  ;;  %v5557_v20 = vmul.f32 %v12007_v9, %v5090_v8  ;;  %v5105_v55 = vsel %vm12075_vm12, %v5104_v21, %v5100_v34  ;;  %v5370_v37 = vsel %vm12136_vm1, %v7899_v48, %v5366_v35 }
 0x600   : > { %5717 = vrot.lane.b32.xlu0 %v5637_v18, %s14516_s29  ;;  %v5558_v60 = vmul.f32 %v12012_v24, %v5105_v55  ;;  %v5375_v41 = vsel %vm12080_vm15, %v5374_v15, %v5370_v37  ;;  %v5125_v4 = vmul.f32 %v7901_v59, %v5124_v6  ;;  %vm14517_vm3 = vweird.f32 %v12048_v16 }
 0x601   : > { %5719 = vrot.lane.b32.xlu1 %v5638_v25, %s14516_s29  ;;  %v5589_v51 = vsel %vm5013_vm14, %v5090_v8, %v5557_v20  ;;  %vm12169_vm7 = vmor %vm14517_vm3, %vm5128_vm10  ;;  %v5134_v44 = vor.u32 1.1754944e-38, %v5133_v23  ;;  %v4957_v21 = vmul.f32 1.442695, %v12029_v0  ;;  %vm5132_vm9 = vcmp.eq.f32.partialorder %v5131_v5, 8.507059e+37 }
 0x602   : > { %v5590_v24 = vsel %vm5014_vm13, %v5105_v55, %v5558_v60  ;;  %v5126_v26 = vadd.f32 %v7901_v59, %v5125_v4  ;;  %7904 = vpow2.f32 %v12035_v45  ;;  %vm5032_vm14 = vcmp.ge.f32.partialorder %v10392_v46, 0.0 }
 0x603   : > { %v7903_v42 = vpop.eup %7902  ;;  %v5576_v15 = vmul.f32 %v12015_v54, %v5375_v41  ;;  %vm5016_vm11 = vcmp.ge.f32.partialorder %v14490_v61, 0.0  ;;  %vm5352_vm12 = vweird.f32 %v12108_v7  ;;  %v5621_v16 = vmul.f32 %v5589_v51, %v8699_v14 }
 0x604   : > { %v5130_v0 = vsel %vm12169_vm7, %v7901_v59, %v5126_v26  ;;  %v5348_v48 = vmul.f32 %v7903_v42, %v12108_v7  ;;  %v5356_v5 = vand.u32 2147483647, %v12108_v7  ;;  %v5622_v45 = vmul.f32 %v5590_v24, %v14489_v56 }
 0x605   : > { %v5135_v23 = vsel %vm5132_vm9, %v5134_v44, %v5130_v0  ;;  %v5358_v43 = vand.u32 2147483648, %v12108_v7  ;;  %7906 = vpow2.f32 %v4957_v21  ;;  %vm5353_vm15 = vweird.f32 %v7903_v42 }
 0x606   : > { %v5560_v54 = vmul.f32 %v12020_v13, %v5135_v23  ;;  %v5349_v32 = vsub.f32 1.0, %v5348_v48  ;;  %v4887_v17 = vand.u32 2147483647, %v14520_v1  ;;  %v5608_v14 = vsel %vm5032_vm14, %v5375_v41, %v5576_v15  ;;  %v14523_v13 = vld [vmem:[#allocation84_spill] sm:$0xff]  ;;  %vm12202_vm13 = vmor %vm5352_vm12, %vm5353_vm15  ;;  %v14531_v48 = vld [vmem:[#allocation33_spill] sm:$0xff] }
 0x607   : > { %v4907_v59 = vand.u32 2147483647, %v10815_v63  ;;  %v4905_v40 = vand.u32 2147483647, %v14521_v47  ;;  %v4891_v3 = vand.u32 2147483647, %v14522_v12  ;;  %v5640_v11 = vmul.f32 %v5608_v14, %v10392_v46 }
 0x608   : > { %v12195_v56 = vpop.eup %7904  ;;  %5685 = vrot.lane.b32.xlu0 %v5621_v16, %s14516_s29  ;;  %v5350_v49 = vmul.f32 %v7903_v42, %v5349_v32  ;;  %v4919_v10 = vsub.f32 0.0, %v4887_v17  ;;  %v4909_v52 = vand.u32 2147483647, %v14523_v13  ;;  %vm12206_vm4 = vcmp.eq.f32.partialorder %v5356_v5, 8.507059e+37 }
 0x609   : > { %5687 = vrot.lane.b32.xlu1 %v5622_v45, %s14516_s29  ;;  %v5359_v33 = vor.u32 1.1754944e-38, %v5358_v43  ;;  %v5066_v6 = vadd.f32 1.0, %v12195_v56  ;;  %v4939_v2 = vsub.f32 0.0, %v4907_v59  ;;  %v5592_v35 = vsel %vm5016_vm11, %v5135_v23, %v5560_v54 }
 0x60a   : > { %v5351_v18 = vadd.f32 %v7903_v42, %v5350_v49  ;;  %v4953_v29 = vmul.f32 1.442695, %v4919_v10  ;;  %v4937_v8 = vsub.f32 0.0, %v4905_v40  ;;  %v4923_v34 = vsub.f32 0.0, %v4891_v3  ;;  %v14532_v3 = vld [vmem:[#allocation83_spill] sm:$0xff] }
 0x60b   : > { %v12214_v7 = vpop.eup %7906  ;;  %7908 = vrcp.f32 %v5066_v6  ;;  %v4941_v25 = vsub.f32 0.0, %v4909_v52  ;;  %v4993_v37 = vmul.f32 1.442695, %v4939_v2  ;;  %v5624_v46 = vmul.f32 %v5592_v35, %v14490_v61 }
 0x60c   : > { %v5355_v20 = vsel %vm12202_vm13, %v7903_v42, %v5351_v18  ;;  %v12219_v55 = vadd.f32 1.0, %v12214_v7  ;;  %7910 = vpow2.f32 %v4953_v29  ;;  %vm5031_vm6 = vcmp.ge.f32.partialorder %v14491_v19, 0.0  ;;  %v14528_v42 = vld [vmem:[#allocation43_spill] sm:$0xff] }
 0x60d   : > { %v5360_v60 = vsel %vm12206_vm4, %v5359_v33, %v5355_v20  ;;  %v5401_v4 = vand.u32 2147483647, %v5066_v6  ;;  %v5403_v51 = vand.u32 2147483648, %v5066_v6  ;;  %v4989_v9 = vmul.f32 1.442695, %v4937_v8 }
 0x60e   : > { %v5575_v41 = vmul.f32 %v12066_v36, %v5360_v60  ;;  %7912 = vrcp.f32 %v12219_v55  ;;  %v4961_v21 = vmul.f32 1.442695, %v4923_v34  ;;  %v4997_v24 = vmul.f32 1.442695, %v4941_v25 }
 0x60f   : > { %7914 = vpow2.f32 %v4993_v37  ;;  %vm5397_vm0 = vweird.f32 %v5066_v6  ;;  %v4892_v36 = vand.u32 2147483647, %v14528_v42  ;;  %vm12233_vm8 = vcmp.eq.f32.partialorder %v5401_v4, 8.507059e+37 }
 0x610   : > { %5723 = vrot.lane.b32.xlu0 %v5640_v11, %s14516_s29  ;;  %v5607_v44 = vsel %vm5031_vm6, %v5360_v60, %v5575_v41  ;;  %7916 = vpow2.f32 %v4989_v9  ;;  %v4890_v5 = vand.u32 2147483647, %v14531_v48  ;;  %vm5034_vm1 = vcmp.ge.f32.partialorder %v10788_v28, 0.0 }
 0x611   : > { %v7909_v26 = vpop.eup %7908  ;;  %5691 = vrot.lane.b32.xlu1 %v5624_v46, %s14516_s29  ;;  %v5639_v61 = vmul.f32 %v5607_v44, %v14491_v19  ;;  %7918 = vpow2.f32 %v4961_v21  ;;  %v5404_v45 = vor.u32 1.1754944e-38, %v5403_v51  ;;  %v5146_v19 = vand.u32 2147483647, %v12219_v55 }
 0x612   : > { %v12231_v15 = vpop.eup %7910  ;;  %v5393_v16 = vmul.f32 %v7909_v26, %v5066_v6  ;;  %v5148_v23 = vand.u32 2147483648, %v12219_v55  ;;  %vm5398_vm10 = vweird.f32 %v7909_v26  ;;  %7920 = vpow2.f32 %v4997_v24 }
 0x613   : > { %5721 = vrot.lane.b32.xlu2 %v5639_v61, %s14516_s29  ;;  %v12243_v43 = vadd.f32 1.0, %v12231_v15  ;;  %v4924_v17 = vsub.f32 0.0, %v4892_v36  ;;  %v4922_v40 = vsub.f32 0.0, %v4890_v5  ;;  %v4910_v49 = vand.u32 2147483647, %v14532_v3  ;;  %vm12259_vm3 = vmor %vm5397_vm0, %vm5398_vm10 }
 0x614   : > { %v7913_v54 = vpop.eup %7912  ;;  %v5394_v32 = vsub.f32 1.0, %v5393_v16  ;;  %vm5017_vm5 = vcmp.ge.f32.partialorder %v14492_v53, 0.0  ;;  %vm5142_vm2 = vweird.f32 %v12219_v55  ;;  %vm12263_vm9 = vcmp.eq.f32.partialorder %v5146_v19, 8.507059e+37 }
 0x615   : > { %v12245_v14 = vpop.eup %7914  ;;  %v5138_v59 = vmul.f32 %v7913_v54, %v12219_v55  ;;  %7922 = vrcp.f32 %v12243_v43  ;;  %v5116_v52 = vand.u32 2147483647, %v12243_v43  ;;  %vm5143_vm7 = vweird.f32 %v7913_v54 }
 0x616   : > { %v5395_v10 = vmul.f32 %v7909_v26, %v5394_v32  ;;  %v12254_v22 = vadd.f32 1.0, %v12245_v14  ;;  %v12256_v58 = vpop.eup %7916  ;;  %v5118_v35 = vand.u32 2147483648, %v12243_v43  ;;  %v5149_v8 = vor.u32 1.1754944e-38, %v5148_v23  ;;  %vm12284_vm11 = vmor %vm5142_vm2, %vm5143_vm7 }
 0x617   : > { %v5139_v2 = vsub.f32 1.0, %v5138_v59  ;;  %v12268_v18 = vpop.eup %7918  ;;  %vm5112_vm14 = vweird.f32 %v12243_v43  ;;  %v12272_v34 = vmul.f32 1.442695, %v4924_v17  ;;  %v12274_v25 = vmul.f32 1.442695, %v4922_v40 }
 0x618   : > { %v5396_v29 = vadd.f32 %v7909_v26, %v5395_v10  ;;  %7924 = vrcp.f32 %v12254_v22  ;;  %v12276_v20 = vsub.f32 0.0, %v4910_v49  ;;  %v12278_v37 = vpop.eup %7920  ;;  %vm12288_vm12 = vcmp.eq.f32.partialorder %v5116_v52, 8.507059e+37 }
 0x619   : > { %v5140_v6 = vmul.f32 %v7913_v54, %v5139_v2  ;;  %v12293_v4 = vadd.f32 1.0, %v12256_v58  ;;  %v12296_v51 = vadd.f32 1.0, %v12268_v18  ;;  %v5119_v55 = vor.u32 1.1754944e-38, %v5118_v35 }
 0x61a   : > { %v5400_v46 = vsel %vm12259_vm3, %v7909_v26, %v5396_v29  ;;  %v5416_v24 = vand.u32 2147483647, %v12254_v22  ;;  %v5418_v36 = vand.u32 2147483648, %v12254_v22  ;;  %vm5015_vm15 = vcmp.ge.f32.partialorder %v14520_v1, 0.0 }
 0x61b   : > { %v7923_v9 = vpop.eup %7922  ;;  %v5405_v44 = vsel %vm12233_vm8, %v5404_v45, %v5400_v46  ;;  %v5141_v21 = vadd.f32 %v7913_v54, %v5140_v6  ;;  %7926 = vrcp.f32 %v12293_v4  ;;  %v5386_v0 = vand.u32 2147483647, %v12293_v4 }
 0x61c   : > { %v5578_v26 = vmul.f32 %v12195_v56, %v5405_v44  ;;  %v5108_v61 = vmul.f32 %v7923_v9, %v12243_v43  ;;  %vm5113_vm13 = vweird.f32 %v7923_v9  ;;  %v12310_v5 = vadd.f32 1.0, %v12278_v37 }
 0x61d   : > { %v5145_v16 = vsel %vm12284_vm11, %v7913_v54, %v5141_v21  ;;  %7928 = vrcp.f32 %v12296_v51  ;;  %v5388_v59 = vand.u32 2147483648, %v12293_v4  ;;  %vm5035_vm4 = vcmp.ge.f32.partialorder %v10815_v63, 0.0  ;;  %vm12333_vm8 = vmor %vm5112_vm14, %vm5113_vm13 }
 0x61e   : > { %v7925_v45 = vpop.eup %7924  ;;  %v5610_v56 = vsel %vm5034_vm1, %v5405_v44, %v5578_v26  ;;  %v5150_v19 = vsel %vm12263_vm9, %v5149_v8, %v5145_v16  ;;  %v5109_v23 = vsub.f32 1.0, %v5108_v61  ;;  %vm5412_vm6 = vweird.f32 %v12254_v22 }
 0x61f   : > { %v5642_v54 = vmul.f32 %v5610_v56, %v10788_v28  ;;  %v5561_v32 = vmul.f32 %v12214_v7, %v5150_v19  ;;  %v5408_v17 = vmul.f32 %v7925_v45, %v12254_v22  ;;  %vm12323_vm0 = vcmp.eq.f32.partialorder %v5416_v24, 8.507059e+37  ;;  %v14561_v56 = vld [vmem:[#allocation86_spill] sm:$0xff] }
 0x620   : > { %v5110_v40 = vmul.f32 %v7923_v9, %v5109_v23  ;;  %v5419_v10 = vor.u32 1.1754944e-38, %v5418_v36  ;;  %vm5413_vm1 = vweird.f32 %v7925_v45  ;;  %vm5382_vm10 = vweird.f32 %v12293_v4 }
 0x621   : > { %5727 = vrot.lane.b32.xlu1 %v5642_v54, %s14516_s29  ;;  %v5593_v28 = vsel %vm5017_vm5, %v5150_v19, %v5561_v32  ;;  %v5409_v52 = vsub.f32 1.0, %v5408_v17  ;;  %v7927_v33 = vpop.eup %7926  ;;  %v5176_v35 = vand.u32 2147483647, %v12296_v51  ;;  %7930 = vrcp.f32 %v12310_v5  ;;  %vm12351_vm2 = vmor %vm5412_vm6, %vm5413_vm1 }
 0x622   : > { %v5625_v2 = vmul.f32 %v5593_v28, %v14492_v53  ;;  %v5111_v11 = vadd.f32 %v7923_v9, %v5110_v40  ;;  %v5378_v8 = vmul.f32 %v7927_v33, %v12293_v4  ;;  %vm12342_vm5 = vcmp.eq.f32.partialorder %v5386_v0, 8.507059e+37 }
 0x623   : > { %v5410_v29 = vmul.f32 %v7925_v45, %v5409_v52  ;;  %v5389_v6 = vor.u32 1.1754944e-38, %v5388_v59  ;;  %v7929_v46 = vpop.eup %7928  ;;  %vm5033_vm3 = vcmp.ge.f32.partialorder %v14521_v47, 0.0  ;;  %vm5383_vm7 = vweird.f32 %v7927_v33  ;;  %v14555_v52 = vld [vmem:[#allocation82_spill] sm:$0xff] }
 0x624   : > { %5693 = vrot.lane.b32.xlu0 %v5625_v2, %s14516_s29  ;;  %v5115_v60 = vsel %vm12333_vm8, %v7923_v9, %v5111_v11  ;;  %vm5172_vm9 = vweird.f32 %v12296_v51  ;;  %v5178_v44 = vand.u32 2147483648, %v12296_v51  ;;  %v5379_v26 = vsub.f32 1.0, %v5378_v8 }
 0x625   : > { %v5120_v21 = vsel %vm12288_vm12, %v5119_v55, %v5115_v60  ;;  %v5411_v24 = vadd.f32 %v7925_v45, %v5410_v29  ;;  %v5168_v9 = vmul.f32 %v7929_v46, %v12296_v51  ;;  %vm5173_vm14 = vweird.f32 %v7929_v46  ;;  %vm12377_vm12 = vmor %vm5382_vm10, %vm5383_vm7 }
 0x626   : > { %v5559_v22 = vmul.f32 %v12231_v15, %v5120_v21  ;;  %vm12362_vm11 = vcmp.eq.f32.partialorder %v5176_v35, 8.507059e+37  ;;  %vm5442_vm13 = vweird.f32 %v12310_v5  ;;  %v5380_v16 = vmul.f32 %v7927_v33, %v5379_v26 }
 0x627   : > { %v5415_v36 = vsel %vm12351_vm2, %v7925_v45, %v5411_v24  ;;  %v5169_v0 = vsub.f32 1.0, %v5168_v9  ;;  %7932 = vpow2.f32 %v12272_v34  ;;  %v7931_v41 = vpop.eup %7930  ;;  %v5179_v19 = vor.u32 1.1754944e-38, %v5178_v44 }
 0x628   : > { %v5591_v55 = vsel %vm5015_vm15, %v5120_v21, %v5559_v22  ;;  %v5420_v15 = vsel %vm12323_vm0, %v5419_v10, %v5415_v36  ;;  %7934 = vpow2.f32 %v12274_v25  ;;  %v5381_v23 = vadd.f32 %v7927_v33, %v5380_v16  ;;  %vm12387_vm15 = vmor %vm5172_vm9, %vm5173_vm14 }
 0x629   : > { %v5623_v45 = vmul.f32 %v5591_v55, %v14520_v1  ;;  %v5579_v34 = vmul.f32 %v12245_v14, %v5420_v15  ;;  %v5170_v54 = vmul.f32 %v7929_v46, %v5169_v0  ;;  %v5438_v4 = vmul.f32 %v7931_v41, %v12310_v5 }
 0x62a   : > { %v5446_v17 = vand.u32 2147483647, %v12310_v5  ;;  %v5448_v59 = vand.u32 2147483648, %v12310_v5  ;;  %v4999_v25 = vmul.f32 1.442695, %v12276_v20  ;;  %v5385_v14 = vsel %vm12377_vm12, %v7927_v33, %v5381_v23 }
 0x62b   : > { %5689 = vrot.lane.b32.xlu2 %v5623_v45, %s14516_s29  ;;  %v5611_v1 = vsel %vm5035_vm4, %v5420_v15, %v5579_v34  ;;  %v5171_v51 = vadd.f32 %v7929_v46, %v5170_v54  ;;  %vm5443_vm6 = vweird.f32 %v7931_v41  ;;  %v5390_v49 = vsel %vm12342_vm5, %v5389_v6, %v5385_v14  ;;  %v14562_v45 = vld [vmem:[#allocation49_spill] sm:$0xff] }
 0x62c   : > { %v5643_v40 = vmul.f32 %v5611_v1, %v10815_v63  ;;  %v5439_v10 = vsub.f32 1.0, %v5438_v4  ;;  %7936 = vpow2.f32 %v4999_v25  ;;  %v5577_v20 = vmul.f32 %v12256_v58, %v5390_v49  ;;  %vm12426_vm8 = vmor %vm5442_vm13, %vm5443_vm6 }
 0x62d   : > { %v12403_v28 = vpop.eup %7932  ;;  %vm5019_vm0 = vcmp.ge.f32.partialorder %v14522_v12, 0.0  ;;  %v5175_v7 = vsel %vm12387_vm15, %v7929_v46, %v5171_v51  ;;  %v4908_v33 = vand.u32 2147483647, %v14555_v52  ;;  %vm12415_vm4 = vcmp.eq.f32.partialorder %v5446_v17, 8.507059e+37 }
 0x62e   : > { %v12410_v2 = vpop.eup %7934  ;;  %5729 = vrot.lane.b32.xlu0 %v5643_v40, %s14516_s29  ;;  %v5180_v63 = vsel %vm12362_vm11, %v5179_v19, %v5175_v7  ;;  %v5440_v11 = vmul.f32 %v7931_v41, %v5439_v10  ;;  %v5052_v58 = vadd.f32 1.0, %v12403_v28  ;;  %v5609_v29 = vsel %vm5033_vm3, %v5390_v49, %v5577_v20  ;;  %v14567_v10 = vld [vmem:[#allocation45_spill] sm:$0xff] }
 0x62f   : > { %v5563_v8 = vmul.f32 %v12268_v18, %v5180_v63  ;;  %v5449_v6 = vor.u32 1.1754944e-38, %v5448_v59  ;;  %v5050_v46 = vadd.f32 1.0, %v12410_v2  ;;  %v5641_v60 = vmul.f32 %v5609_v29, %v14521_v47  ;;  %v14560_v18 = vld [vmem:[#allocation48_spill] sm:$0xff] }
 0x630   : > { %v5441_v53 = vadd.f32 %v7931_v41, %v5440_v11  ;;  %7938 = vrcp.f32 %v5052_v58  ;;  %v4940_v44 = vsub.f32 0.0, %v4908_v33  ;;  %v4894_v24 = vand.u32 2147483647, %v14560_v18 }
 0x631   : > { %v5595_v21 = vsel %vm5019_vm0, %v5180_v63, %v5563_v8  ;;  %7940 = vrcp.f32 %v5050_v46  ;;  %vm5037_vm1 = vcmp.ge.f32.partialorder %v14523_v13, 0.0  ;;  %v5191_v22 = vand.u32 2147483647, %v5052_v58 }
 0x632   : > { %v12435_v26 = vpop.eup %7936  ;;  %v5627_v5 = vmul.f32 %v5595_v21, %v14522_v12  ;;  %v5445_v9 = vsel %vm12426_vm8, %v7931_v41, %v5441_v53  ;;  %v5193_v61 = vand.u32 2147483648, %v5052_v58  ;;  %v5161_v16 = vand.u32 2147483647, %v5050_v46 }
 0x633   : > { %5725 = vrot.lane.b32.xlu2 %v5641_v60, %s14516_s29  ;;  %v5450_v47 = vsel %vm12415_vm4, %v5449_v6, %v5445_v9  ;;  %v12447_v0 = vadd.f32 1.0, %v12435_v26  ;;  %v4995_v12 = vmul.f32 1.442695, %v4940_v44  ;;  %vm5187_vm10 = vweird.f32 %v5052_v58 }
 0x634   : > { %5697 = vrot.lane.b32.xlu1 %v5627_v5, %s14516_s29  ;;  %v5581_v36 = vmul.f32 %v12278_v37, %v5450_v47  ;;  %vm5157_vm5 = vweird.f32 %v5050_v46  ;;  %v4926_v41 = vsub.f32 0.0, %v4894_v24  ;;  %v4912_v19 = vand.u32 2147483647, %v14561_v56 }
 0x635   : > { %7942 = vrcp.f32 %v12447_v0  ;;  %v4895_v34 = vand.u32 2147483647, %v14562_v45  ;;  %vm12452_vm2 = vcmp.eq.f32.partialorder %v5191_v22, 8.507059e+37  ;;  %v5194_v32 = vor.u32 1.1754944e-38, %v5193_v61 }
 0x636   : > { %v7939_v55 = vpop.eup %7938  ;;  %v5613_v15 = vsel %vm5037_vm1, %v5450_v47, %v5581_v36  ;;  %v5163_v4 = vand.u32 2147483648, %v5050_v46  ;;  %vm5020_vm3 = vcmp.ge.f32.partialorder %v14528_v42, 0.0  ;;  %vm12458_vm7 = vcmp.eq.f32.partialorder %v5161_v16, 8.507059e+37 }
 0x637   : > { %v7941_v23 = vpop.eup %7940  ;;  %v5183_v54 = vmul.f32 %v7939_v55, %v5052_v58  ;;  %v5645_v17 = vmul.f32 %v5613_v15, %v14523_v13  ;;  %7944 = vpow2.f32 %v4995_v12  ;;  %vm5188_vm9 = vweird.f32 %v7939_v55 }
 0x638   : > { %v5153_v59 = vmul.f32 %v7941_v23, %v5050_v46  ;;  %vm5158_vm14 = vweird.f32 %v7941_v23  ;;  %v4967_v14 = vmul.f32 1.442695, %v4926_v41  ;;  %v4944_v40 = vsub.f32 0.0, %v4912_v19  ;;  %vm12466_vm13 = vmor %vm5187_vm10, %vm5188_vm9  ;;  %v14574_v19 = vld [vmem:[#allocation87_spill] sm:$0xff] }
 0x639   : > { %v5184_v1 = vsub.f32 1.0, %v5183_v54  ;;  %v4927_v49 = vsub.f32 0.0, %v4895_v34  ;;  %v4893_v20 = vand.u32 2147483647, %v14567_v10  ;;  %v5164_v33 = vor.u32 1.1754944e-38, %v5163_v4  ;;  %vm12472_vm12 = vmor %vm5157_vm5, %vm5158_vm14 }
 0x63a   : > { %v5154_v51 = vsub.f32 1.0, %v5153_v59  ;;  %vm5457_vm11 = vweird.f32 %v12447_v0  ;;  %7946 = vpow2.f32 %v4967_v14  ;;  %v5003_v35 = vmul.f32 1.442695, %v4944_v40 }
 0x63b   : > { %v5185_v7 = vmul.f32 %v7939_v55, %v5184_v1  ;;  %v7943_v13 = vpop.eup %7942  ;;  %v4969_v29 = vmul.f32 1.442695, %v4927_v49  ;;  %v4925_v8 = vsub.f32 0.0, %v4893_v20  ;;  %v5461_v53 = vand.u32 2147483647, %v12447_v0 }
 0x63c   : > { %5733 = vrot.lane.b32.xlu1 %v5645_v17, %s14516_s29  ;;  %v5155_v11 = vmul.f32 %v7941_v23, %v5154_v51  ;;  %v5453_v60 = vmul.f32 %v7943_v13, %v12447_v0  ;;  %v5463_v58 = vand.u32 2147483648, %v12447_v0  ;;  %vm5458_vm15 = vweird.f32 %v7943_v13  ;;  %v14575_v51 = vld [vmem:[#allocation85_spill] sm:$0xff] }
 0x63d   : > { %v5186_v43 = vadd.f32 %v7939_v55, %v5185_v7  ;;  %v12479_v44 = vpop.eup %7944  ;;  %7948 = vpow2.f32 %v5003_v35  ;;  %v4965_v24 = vmul.f32 1.442695, %v4925_v8  ;;  %vm5018_vm6 = vcmp.ge.f32.partialorder %v14531_v48, 0.0  ;;  %vm12498_vm0 = vmor %vm5457_vm11, %vm5458_vm15 }
 0x63e   : > { %v5156_v21 = vadd.f32 %v7941_v23, %v5155_v11  ;;  %v5454_v46 = vsub.f32 1.0, %v5453_v60  ;;  %v5068_v9 = vadd.f32 1.0, %v12479_v44  ;;  %7950 = vpow2.f32 %v4969_v29 }
 0x63f   : > { %v5190_v5 = vsel %vm12466_vm13, %v7939_v55, %v5186_v43  ;;  %7952 = vpow2.f32 %v4965_v24  ;;  %v5464_v15 = vor.u32 1.1754944e-38, %v5463_v58  ;;  %v4913_v34 = vand.u32 2147483647, %v14574_v19 }
 0x640   : > { %v5195_v47 = vsel %vm12452_vm2, %v5194_v32, %v5190_v5  ;;  %v5160_v22 = vsel %vm12472_vm12, %v7941_v23, %v5156_v21  ;;  %v12489_v61 = vpop.eup %7946  ;;  %v5455_v12 = vmul.f32 %v7943_v13, %v5454_v46  ;;  %7954 = vrcp.f32 %v5068_v9 }
 0x641   : > { %v5564_v36 = vmul.f32 %v12403_v28, %v5195_v47  ;;  %v5165_v16 = vsel %vm12458_vm7, %v5164_v33, %v5160_v22  ;;  %vm5462_vm4 = vcmp.eq.f32.partialorder %v5461_v53, 8.507059e+37  ;;  %v12506_v54 = vadd.f32 1.0, %v12489_v61 }
 0x642   : > { %v5562_v41 = vmul.f32 %v12410_v2, %v5165_v16  ;;  %v5456_v23 = vadd.f32 %v7943_v13, %v5455_v12  ;;  %v5431_v32 = vand.u32 2147483647, %v5068_v9  ;;  %vm5038_vm8 = vcmp.ge.f32.partialorder %v14532_v3, 0.0  ;;  %v5820_v12 = vld [vmem:[%s14071_s12 + $0x38] sm:$0xff] }
 0x643   : > { %v5596_v28 = vsel %vm5020_vm3, %v5195_v47, %v5564_v36  ;;  %v12508_v37 = vpop.eup %7948  ;;  %7956 = vrcp.f32 %v12506_v54  ;;  %v4945_v14 = vsub.f32 0.0, %v4913_v34  ;;  %v4911_v40 = vand.u32 2147483647, %v14575_v51  ;;  %7412 = vmatpush.msra.mxu2 %v5820_v12  ;;  %5964 = vmatpush.msra.mxu0 %v5820_v12 }
 0x644   : > { %v5628_v2 = vmul.f32 %v5596_v28, %v14528_v42  ;;  %v5594_v0 = vsel %vm5018_vm6, %v5165_v16, %v5562_v41  ;;  %v12513_v4 = vpop.eup %7950  ;;  %v5460_v59 = vsel %vm12498_vm0, %v7943_v13, %v5456_v23  ;;  %v12524_v1 = vadd.f32 1.0, %v12508_v37  ;;  %v5819_v41 = vld [vmem:[%s14071_s12 + $0x30] sm:$0xff] }
 0x645   : > { %v5626_v17 = vmul.f32 %v5594_v0, %v14531_v48  ;;  %v12520_v25 = vpop.eup %7952  ;;  %v5465_v42 = vsel %vm5462_vm4, %v5464_v15, %v5460_v59  ;;  %vm5427_vm1 = vweird.f32 %v5068_v9  ;;  %v5433_v20 = vand.u32 2147483648, %v5068_v9  ;;  %7413 = vmatpush.msra.mxu2 %v5819_v41  ;;  %5965 = vmatpush.msra.mxu0 %v5819_v41  ;;  %v14593_v59 = vld [vmem:[#allocation56_spill] sm:$0xff] }
 0x646   : > { %5699 = vrot.lane.b32.xlu0 %v5628_v2, %s14516_s29  ;;  %v7955_v49 = vpop.eup %7954  ;;  %v5582_v48 = vmul.f32 %v12435_v26, %v5465_v42  ;;  %v12530_v7 = vadd.f32 1.0, %v12513_v4  ;;  %vm12532_vm10 = vcmp.eq.f32.partialorder %v5431_v32, 8.507059e+37  ;;  %v5221_v63 = vand.u32 2147483647, %v12506_v54 }
 0x647   : > { %5695 = vrot.lane.b32.xlu2 %v5626_v17, %s14516_s29  ;;  %v5423_v33 = vmul.f32 %v7955_v49, %v5068_v9  ;;  %v5223_v11 = vand.u32 2147483648, %v12506_v54  ;;  %vm5036_vm5 = vcmp.ge.f32.partialorder %v14555_v52, 0.0  ;;  %vm5428_vm2 = vweird.f32 %v7955_v49 }
 0x648   : > { %v5614_v35 = vsel %vm5038_vm8, %v5465_v42, %v5582_v48  ;;  %7958 = vrcp.f32 %v12524_v1  ;;  %v12543_v26 = vadd.f32 1.0, %v12520_v25  ;;  %v5491_v43 = vand.u32 2147483647, %v12524_v1  ;;  %vm12558_vm9 = vmor %vm5427_vm1, %vm5428_vm2 }
 0x649   : > { %v5646_v29 = vmul.f32 %v5614_v35, %v14532_v3  ;;  %v5424_v8 = vsub.f32 1.0, %v5423_v33  ;;  %7960 = vrcp.f32 %v12530_v7  ;;  %v7957_v6 = vpop.eup %7956  ;;  %v5434_v60 = vor.u32 1.1754944e-38, %v5433_v20 }
 0x64a   : > { %v5493_v53 = vand.u32 2147483648, %v12524_v1  ;;  %v5238_v58 = vand.u32 2147483648, %v12530_v7  ;;  %v5005_v21 = vmul.f32 1.442695, %v4945_v14  ;;  %v5213_v5 = vmul.f32 %v7957_v6, %v12506_v54 }
 0x64b   : > { %v5425_v24 = vmul.f32 %v7955_v49, %v5424_v8  ;;  %vm5217_vm3 = vweird.f32 %v12506_v54  ;;  %vm12552_vm7 = vcmp.eq.f32.partialorder %v5221_v63, 8.507059e+37  ;;  %vm5022_vm14 = vcmp.ge.f32.partialorder %v14560_v18, 0.0  ;;  %v14586_v63 = vld [vmem:[#allocation53_spill] sm:$0xff] }
 0x64c   : > { %v5224_v47 = vor.u32 1.1754944e-38, %v5223_v11  ;;  %vm5487_vm11 = vweird.f32 %v12524_v1  ;;  %vm5232_vm13 = vweird.f32 %v12530_v7  ;;  %7962 = vrcp.f32 %v12543_v26 }
 0x64d   : > { %v5426_v22 = vadd.f32 %v7955_v49, %v5425_v24  ;;  %v5214_v36 = vsub.f32 1.0, %v5213_v5  ;;  %vm5218_vm12 = vweird.f32 %v7957_v6  ;;  %vm12567_vm15 = vcmp.eq.f32.partialorder %v5491_v43, 8.507059e+37 }
 0x64e   : > { %5735 = vrot.lane.b32.xlu0 %v5646_v29, %s14516_s29  ;;  %v5236_v16 = vand.u32 2147483647, %v12530_v7  ;;  %v7959_v55 = vpop.eup %7958  ;;  %v5494_v15 = vor.u32 1.1754944e-38, %v5493_v53  ;;  %v5239_v34 = vor.u32 1.1754944e-38, %v5238_v58  ;;  %7964 = vpow2.f32 %v5005_v21  ;;  %vm12587_vm0 = vmor %vm5217_vm3, %vm5218_vm12 }
 0x64f   : > { %v4943_v28 = vsub.f32 0.0, %v4911_v40  ;;  %v7961_v23 = vpop.eup %7960  ;;  %v5430_v2 = vsel %vm12558_vm9, %v7955_v49, %v5426_v22  ;;  %v5215_v0 = vmul.f32 %v7957_v6, %v5214_v36  ;;  %v5483_v32 = vmul.f32 %v7959_v55, %v12524_v1 }
 0x650   : > { %vm5202_vm6 = vweird.f32 %v12543_v26  ;;  %v5435_v17 = vsel %vm12532_vm10, %v5434_v60, %v5430_v2  ;;  %vm5040_vm4 = vcmp.ge.f32.partialorder %v14561_v56, 0.0  ;;  %v5228_v42 = vmul.f32 %v7961_v23, %v12530_v7 }
 0x651   : > { %v5206_v14 = vand.u32 2147483647, %v12543_v26  ;;  %v5208_v40 = vand.u32 2147483648, %v12543_v26  ;;  %v5580_v49 = vmul.f32 %v12479_v44, %v5435_v17  ;;  %v5216_v48 = vadd.f32 %v7957_v6, %v5215_v0 }
 0x652   : > { %v5484_v20 = vsub.f32 1.0, %v5483_v32  ;;  %vm5488_vm8 = vweird.f32 %v7959_v55  ;;  %vm5023_vm1 = vcmp.ge.f32.partialorder %v14562_v45, 0.0  ;;  %v7963_v54 = vpop.eup %7962  ;;  %v5229_v33 = vsub.f32 1.0, %v5228_v42 }
 0x653   : > { %vm5233_vm10 = vweird.f32 %v7961_v23  ;;  %v5001_v13 = vmul.f32 1.442695, %v4943_v28  ;;  %v4897_v11 = vand.u32 2147483647, %v14586_v63  ;;  %v5612_v35 = vsel %vm5036_vm5, %v5435_v17, %v5580_v49  ;;  %vm12610_vm2 = vmor %vm5487_vm11, %vm5488_vm8  ;;  %v5817_v17 = vld [vmem:[%s14071_s12 + $0x20] sm:$0xff] }
 0x654   : > { %v5220_v29 = vsel %vm12587_vm0, %v7957_v6, %v5216_v48  ;;  %v5485_v8 = vmul.f32 %v7959_v55, %v5484_v20  ;;  %v5198_v44 = vmul.f32 %v7963_v54, %v12543_v26  ;;  %v12603_v43 = vpop.eup %7964  ;;  %v5644_v60 = vmul.f32 %v5612_v35, %v14555_v52  ;;  %vm12618_vm3 = vmor %vm5232_vm13, %vm5233_vm10  ;;  %v5815_v35 = vld [vmem:[%s14071_s12 + $0x10] sm:$0xff] }
 0x655   : > { %v5225_v53 = vsel %vm12552_vm7, %v5224_v47, %v5220_v29  ;;  %v5230_v21 = vmul.f32 %v7961_v23, %v5229_v33  ;;  %vm5203_vm5 = vweird.f32 %v7963_v54  ;;  %v12623_v46 = vadd.f32 1.0, %v12603_v43  ;;  %v5816_v33 = vld [vmem:[%s14071_s12 + $0x18] sm:$0xff] }
 0x656   : > { %v5566_v6 = vmul.f32 %v12489_v61, %v5225_v53  ;;  %v5486_v24 = vadd.f32 %v7959_v55, %v5485_v8  ;;  %v5199_v52 = vsub.f32 1.0, %v5198_v44  ;;  %5731 = vrot.lane.b32.xlu2 %v5644_v60, %s14516_s29  ;;  %vm5237_vm7 = vcmp.eq.f32.partialorder %v5236_v16, 8.507059e+37  ;;  %vm12639_vm9 = vmor %vm5202_vm6, %vm5203_vm5 }
 0x657   : > { %v5231_v1 = vadd.f32 %v7961_v23, %v5230_v21  ;;  %7966 = vpow2.f32 %v5001_v13  ;;  %v4929_v3 = vsub.f32 0.0, %v4897_v11  ;;  %v5209_v41 = vor.u32 1.1754944e-38, %v5208_v40 }
 0x658   : > { %v5598_v61 = vsel %vm5022_vm14, %v5225_v53, %v5566_v6  ;;  %v5490_v7 = vsel %vm12610_vm2, %v7959_v55, %v5486_v24  ;;  %v5200_v47 = vmul.f32 %v7963_v54, %v5199_v52  ;;  %7968 = vrcp.f32 %v12623_v46 }
 0x659   : > { %v5630_v22 = vmul.f32 %v5598_v61, %v14560_v18  ;;  %v5495_v36 = vsel %vm12567_vm15, %v5494_v15, %v5490_v7  ;;  %v5235_v12 = vsel %vm12618_vm3, %v7961_v23, %v5231_v1  ;;  %vm5207_vm14 = vcmp.eq.f32.partialorder %v5206_v14, 8.507059e+37  ;;  %v5813_v7 = vld [vmem:[%s14071_s12] sm:$0xff] }
 0x65a   : > { %v5584_v55 = vmul.f32 %v12508_v37, %v5495_v36  ;;  %v5240_v28 = vsel %vm5237_vm7, %v5239_v34, %v5235_v12  ;;  %v5201_v2 = vadd.f32 %v7963_v54, %v5200_v47  ;;  %v4973_v9 = vmul.f32 1.442695, %v4929_v3  ;;  %v12716_v12 = vld [vmem:[%s14068_s9] ss:$0 sm:$0xff] }
 0x65b   : > { %5703 = vrot.lane.b32.xlu1 %v5630_v22, %s14516_s29  ;;  %v5567_v18 = vmul.f32 %v12513_v4, %v5240_v28  ;;  %v4915_v15 = vand.u32 2147483647, %v11379_v39  ;;  %vm5021_vm11 = vcmp.ge.f32.partialorder %v14567_v10, 0.0  ;;  %v5508_v32 = vand.u32 2147483648, %v12623_v46  ;;  %v5818_v4 = vld [vmem:[%s14071_s12 + $0x28] sm:$0xff] }
 0x65c   : > { %v5616_v26 = vsel %vm5040_vm4, %v5495_v36, %v5584_v55  ;;  %v5205_v23 = vsel %vm12639_vm9, %v7963_v54, %v5201_v2  ;;  %v4898_v42 = vand.u32 2147483647, %v14593_v59  ;;  %7970 = vpow2.f32 %v4973_v9  ;;  %7414 = vmatpush.msra.mxu2 %v5818_v4  ;;  %5966 = vmatpush.msra.mxu0 %v5818_v4 }
 0x65d   : > { %v12652_v0 = vpop.eup %7966  ;;  %v5599_v37 = vsel %vm5023_vm1, %v5240_v28, %v5567_v18  ;;  %v5210_v34 = vsel %vm5207_vm14, %v5209_v41, %v5205_v23  ;;  %v5648_v20 = vmul.f32 %v5616_v26, %v14561_v56  ;;  %v4947_v13 = vsub.f32 0.0, %v4915_v15 }
 0x65e   : > { %v7969_v14 = vpop.eup %7968  ;;  %v5631_v40 = vmul.f32 %v5599_v37, %v14562_v45  ;;  %v5565_v49 = vmul.f32 %v12520_v25, %v5210_v34  ;;  %v12667_v48 = vadd.f32 1.0, %v12652_v0  ;;  %vm5502_vm13 = vweird.f32 %v12623_v46  ;;  %7415 = vmatpush.msra.mxu2 %v5817_v17  ;;  %5967 = vmatpush.msra.mxu0 %v5817_v17 }
 0x65f   : > { %v5498_v54 = vmul.f32 %v7969_v14, %v12623_v46  ;;  %v5506_v25 = vand.u32 2147483647, %v12623_v46  ;;  %vm5503_vm12 = vweird.f32 %v7969_v14  ;;  %v5009_v29 = vmul.f32 1.442695, %v4947_v13  ;;  %v5814_v46 = vld [vmem:[%s14071_s12 + $0x8] sm:$0xff] }
 0x660   : > { %5705 = vrot.lane.b32.xlu0 %v5631_v40, %s14516_s29  ;;  %v5597_v45 = vsel %vm5021_vm11, %v5210_v34, %v5565_v49  ;;  %7972 = vrcp.f32 %v12667_v48  ;;  %v5509_v8 = vor.u32 1.1754944e-38, %v5508_v32  ;;  %7416 = vmatpush.msra.mxu2 %v5816_v33  ;;  %v4930_v44 = vsub.f32 0.0, %v4898_v42  ;;  %vm12692_vm15 = vmor %vm5502_vm13, %vm5503_vm12 }
 0x661   : > { %v5629_v56 = vmul.f32 %v5597_v45, %v14567_v10  ;;  %v5499_v11 = vsub.f32 1.0, %v5498_v54  ;;  %v5476_v53 = vand.u32 2147483647, %v12667_v48  ;;  %7974 = vpow2.f32 %v5009_v29  ;;  %v14594_v10 = vld [vmem:[#allocation51_spill] sm:$0xff]  ;;  %5968 = vmatpush.msra.mxu0 %v5816_v33 }
 0x662   : > { %v4896_v58 = vand.u32 2147483647, %v14594_v10  ;;  %v12688_v21 = vpop.eup %7970  ;;  %7417 = vmatpush.msra.mxu2 %v5815_v35  ;;  %v4975_v24 = vmul.f32 1.442695, %v4930_v44  ;;  %v4916_v5 = vand.u32 2147483647, %v11399_v62  ;;  %vm5472_vm4 = vweird.f32 %v12667_v48 }
 0x663   : > { %5739 = vrot.lane.b32.xlu1 %v5648_v20, %s14516_s29  ;;  %5701 = vrot.lane.b32.xlu2 %v5629_v56, %s14516_s29  ;;  %v5500_v60 = vmul.f32 %v7969_v14, %v5499_v11  ;;  %v4914_v52 = vand.u32 2147483647, %v11034_v57  ;;  %vm12698_vm6 = vcmp.eq.f32.partialorder %v5506_v25, 8.507059e+37  ;;  %v12703_v61 = vadd.f32 1.0, %v12688_v21 }
 0x664   : > { %v4928_v47 = vsub.f32 0.0, %v4896_v58  ;;  %vm5041_vm0 = vcmp.ge.f32.partialorder %v14574_v19, 0.0  ;;  %v5478_v36 = vand.u32 2147483648, %v12667_v48  ;;  %7976 = vpow2.f32 %v4975_v24  ;;  %7418 = vmatpush.msra.mxu2 %v5814_v46  ;;  %5969 = vmatpush.msra.mxu0 %v5815_v35 }
 0x665   : > { %v5501_v1 = vadd.f32 %v7969_v14, %v5500_v60  ;;  %v4948_v16 = vsub.f32 0.0, %v4916_v5  ;;  %7978 = vrcp.f32 %v12703_v61  ;;  %vm5039_vm8 = vcmp.ge.f32.partialorder %v14575_v51, 0.0  ;;  %v4802_v5 = vld [vmem:[#allocation6 + $0x88] sm:$0xff] }
 0x666   : > { %v7973_v22 = vpop.eup %7972  ;;  %vm12726_vm10 = vcmp.eq.f32.partialorder %v5476_v53, 8.507059e+37  ;;  %7419 = vmatpush.msra.mxu2 %v5813_v7  ;;  %5970 = vmatpush.msra.mxu0 %v5814_v46  ;;  %v4946_v18 = vsub.f32 0.0, %v4914_v52  ;;  %v4971_v23 = vmul.f32 1.442695, %v4928_v47  ;;  %v5479_v34 = vor.u32 1.1754944e-38, %v5478_v36 }
 0x667   : > { %v5505_v41 = vsel %vm12692_vm15, %v7969_v14, %v5501_v1  ;;  %v5468_v55 = vmul.f32 %v7973_v22, %v12667_v48  ;;  %vm5473_vm1 = vweird.f32 %v7973_v22  ;;  %v12730_v9 = vpop.eup %7974  ;;  %v5011_v37 = vmul.f32 1.442695, %v4948_v16 }
 0x668   : > { %v5510_v28 = vsel %vm12698_vm6, %v5509_v8, %v5505_v41  ;;  %v5266_v32 = vand.u32 2147483647, %v12703_v61  ;;  %v12735_v4 = vadd.f32 1.0, %v12730_v9  ;;  %v4837_v17 = vmul.f32 %v12716_v12, %v10677_v38  ;;  %5971 = vmatpush.msra.mxu0 %v5813_v7  ;;  %vm12748_vm2 = vmor %vm5472_vm4, %vm5473_vm1 }
 0x669   : > { %v5585_v15 = vmul.f32 %v12603_v43, %v5510_v28  ;;  %v5469_v26 = vsub.f32 1.0, %v5468_v55  ;;  %v5268_v40 = vand.u32 2147483648, %v12703_v61  ;;  %v4801_v43 = vld [vmem:[#allocation6 + $0x80] sm:$0xff]  ;;  %7980 = vpow2.f32 %v4971_v23 }
 0x66a   : > { %v12742_v49 = vpop.eup %7976  ;;  %7982 = vrcp.f32 %v12735_v4  ;;  %v5536_v38 = vand.u32 2147483647, %v12735_v4  ;;  %v5007_v33 = vmul.f32 1.442695, %v4946_v18  ;;  %v5538_v25 = vand.u32 2147483648, %v12735_v4 }
 0x66b   : > { %v5617_v42 = vsel %vm5041_vm0, %v5510_v28, %v5585_v15  ;;  %v5470_v14 = vmul.f32 %v7973_v22, %v5469_v26  ;;  %v7979_v13 = vpop.eup %7978  ;;  %v12756_v56 = vadd.f32 1.0, %v12742_v49  ;;  %7984 = vpow2.f32 %v5011_v37  ;;  %v14610_v15 = vld [vmem:[#allocation37_spill] sm:$0xff] }
 0x66c   : > { %v5649_v20 = vmul.f32 %v5617_v42, %v14574_v19  ;;  %v5258_v19 = vmul.f32 %v7979_v13, %v12703_v61  ;;  %vm5262_vm5 = vweird.f32 %v12703_v61  ;;  %vm12761_vm3 = vcmp.eq.f32.partialorder %v5266_v32, 8.507059e+37 }
 0x66d   : > { %v5471_v45 = vadd.f32 %v7973_v22, %v5470_v14  ;;  %v4869_v11 = vadd.f32 %v4837_v17, %v4801_v43  ;;  %vm5025_vm7 = vcmp.ge.f32.partialorder %v14586_v63, 0.0  ;;  %v5269_v29 = vor.u32 1.1754944e-38, %v5268_v40  ;;  %v4785_v17 = vld [vmem:[#allocation6] sm:$0xff] }
 0x66e   : > { %5741 = vrot.lane.b32.xlu0 %v5649_v20, %s14516_s29  ;;  %vm5532_vm9 = vweird.f32 %v12735_v4  ;;  %7986 = vrcp.f32 %v12756_v56  ;;  %v5259_v44 = vsub.f32 1.0, %v5258_v19  ;;  %vm5263_vm14 = vweird.f32 %v7979_v13 }
 0x66f   : > { %v5475_v35 = vsel %vm12748_vm2, %v7973_v22, %v5471_v45  ;;  %v4838_v60 = vmul.f32 %v12716_v12, %v10710_v30  ;;  %v12774_v53 = vpop.eup %7980  ;;  %vm12777_vm11 = vcmp.eq.f32.partialorder %v5536_v38, 8.507059e+37  ;;  %v5539_v24 = vor.u32 1.1754944e-38, %v5538_v25  ;;  %vm12793_vm13 = vmor %vm5262_vm5, %vm5263_vm14 }
 0x670   : > { %v5480_v8 = vsel %vm12726_vm10, %v5479_v34, %v5475_v35  ;;  %7988 = vpow2.f32 %v5007_v33  ;;  %v7983_v52 = vpop.eup %7982  ;;  %v5260_v1 = vmul.f32 %v7979_v13, %v5259_v44  ;;  %v5281_v3 = vand.u32 2147483647, %v12756_v56 }
 0x671   : > { %v5583_v58 = vmul.f32 %v12652_v0, %v5480_v8  ;;  %v5283_v46 = vand.u32 2147483648, %v12756_v56  ;;  %v12784_v30 = vadd.f32 1.0, %v12774_v53  ;;  %v12786_v47 = vpop.eup %7984  ;;  %v5528_v36 = vmul.f32 %v7983_v52, %v12735_v4 }
 0x672   : > { %v5718_v7 = vpop.permute.xlu0 %5717  ;;  %vm5277_vm12 = vweird.f32 %v12756_v56  ;;  %v5261_v55 = vadd.f32 %v7979_v13, %v5260_v1  ;;  %vm5043_vm15 = vcmp.ge.f32.partialorder %v11379_v39, 0.0  ;;  %v4870_v28 = vadd.f32 %v4838_v60, %v4802_v5 }
 0x673   : > { %v5615_v0 = vsel %vm5039_vm8, %v5480_v8, %v5583_v58  ;;  %v5797_v16 = vmul.f32 %v5718_v7, %v4869_v11  ;;  %7990 = vrcp.f32 %v12784_v30  ;;  %v5529_v18 = vsub.f32 1.0, %v5528_v36  ;;  %v5720_v32 = vpop.permute.xlu1 %5719 }
 0x674   : > { %v5647_v41 = vmul.f32 %v5615_v0, %v14575_v51  ;;  %v7987_v2 = vpop.eup %7986  ;;  %vm5533_vm6 = vweird.f32 %v7983_v52  ;;  %vm14609_vm0 = vcmask 523264   ;;  %v12804_v61 = vadd.f32 1.0, %v12786_v47 }
 0x675   : > { %7337 = vmatmul.msk.f32.vlgmr.msra.gmra.mxu2 %vm14609_vm0, %v5797_v16  ;;  %v4821_v26 = vmul.f32 %v12716_v12, %v14610_v15  ;;  %v5265_v51 = vsel %vm12793_vm13, %v7979_v13, %v5261_v55  ;;  %v5273_v23 = vmul.f32 %v7987_v2, %v12756_v56  ;;  %vm12812_vm4 = vcmp.eq.f32.partialorder %v5281_v3, 8.507059e+37  ;;  %vm12827_vm10 = vmor %vm5532_vm9, %vm5533_vm6  ;;  %v14625_v15 = vld [vmem:[#allocation65_spill] sm:$0xff] }
 0x676   : > { %5737 = vrot.lane.b32.xlu2 %v5647_v41, %s14516_s29  ;;  %v5284_v34 = vor.u32 1.1754944e-38, %v5283_v46  ;;  %v12816_v42 = vpop.eup %7988  ;;  %v5270_v14 = vsel %vm12761_vm3, %v5269_v29, %v5265_v51  ;;  %v5530_v40 = vmul.f32 %v7983_v52, %v5529_v18  ;;  %vm5026_vm8 = vcmp.ge.f32.partialorder %v14593_v59, 0.0  ;;  %vm14619_vm14 = vmmov %vm14609_vm0  ;;  %v14626_v51 = vld [vmem:[#allocation64_spill] sm:$0xff] }
 0x677   : > { %vm5247_vm1 = vweird.f32 %v12784_v30  ;;  %v5251_v43 = vand.u32 2147483647, %v12784_v30  ;;  %v5569_v20 = vmul.f32 %v12688_v21, %v5270_v14  ;;  %v5274_v38 = vsub.f32 1.0, %v5273_v23 }
 0x678   : > { %vm5278_vm2 = vweird.f32 %v7987_v2  ;;  %7992 = vrcp.f32 %v12804_v61  ;;  %v5531_v33 = vadd.f32 %v7983_v52, %v5530_v40  ;;  %v5253_v13 = vand.u32 2147483648, %v12784_v30 }
 0x679   : > { %v5798_v45 = vmul.f32 %v5720_v32, %v4870_v28  ;;  %v4853_v25 = vadd.f32 %v4821_v26, %v4785_v17  ;;  %v7991_v19 = vpop.eup %7990  ;;  %v5601_v21 = vsel %vm5025_vm7, %v5270_v14, %v5569_v20  ;;  %v5275_v48 = vmul.f32 %v7987_v2, %v5274_v38  ;;  %vm12844_vm5 = vmor %vm5277_vm12, %vm5278_vm2 }
 0x67a   : > { %v5551_v4 = vand.u32 2147483647, %v12804_v61  ;;  %v5686_v11 = vpop.permute.xlu0 %5685  ;;  %v12837_v35 = vadd.f32 1.0, %v12816_v42  ;;  %v5633_v29 = vmul.f32 %v5601_v21, %v14586_v63  ;;  %v5535_v8 = vsel %vm12827_vm10, %v7983_v52, %v5531_v33  ;;  %vm14622_vm12 = vmmov %vm14609_vm0  ;;  %v14629_v21 = vld [vmem:[#allocation38_spill] sm:$0xff] }
 0x67b   : > { %v5243_v60 = vmul.f32 %v7991_v19, %v12784_v30  ;;  %vm12849_vm3 = vcmp.eq.f32.partialorder %v5251_v43, 8.507059e+37  ;;  %v5540_v5 = vsel %vm12777_vm11, %v5539_v24, %v5535_v8  ;;  %v5276_v1 = vadd.f32 %v7987_v2, %v5275_v48  ;;  %v5688_v44 = vpop.permute.xlu1 %5687 }
 0x67c   : > { %vm5024_vm7 = vcmp.ge.f32.partialorder %v14594_v10, 0.0  ;;  %vm5248_vm9 = vweird.f32 %v7991_v19  ;;  %v5553_v63 = vand.u32 2147483648, %v12804_v61  ;;  %5709 = vrot.lane.b32.xlu1 %v5633_v29, %s14516_s29  ;;  %v5587_v56 = vmul.f32 %v12730_v9, %v5540_v5 }
 0x67d   : > { %v5244_v52 = vsub.f32 1.0, %v5243_v60  ;;  %v5781_v3 = vmul.f32 %v5686_v11, %v4853_v25  ;;  %7338 = vmatmul.msk.f32.gmra.mxu2 %vm14619_vm14, %v5798_v45  ;;  %7994 = vrcp.f32 %v12837_v35  ;;  %v5280_v6 = vsel %vm12844_vm5, %v7987_v2, %v5276_v1  ;;  %vm12879_vm6 = vmor %vm5247_vm1, %vm5248_vm9  ;;  %v5722_v45 = vpop.permute.xlu2 %5721  ;;  %v4803_v25 = vld [vmem:[#allocation6 + $0x90] sm:$0xff] }
 0x67e   : > { %v7993_v46 = vpop.eup %7992  ;;  %v5254_v24 = vor.u32 1.1754944e-38, %v5253_v13  ;;  %vm5547_vm11 = vweird.f32 %v12804_v61  ;;  %vm12864_vm13 = vcmp.eq.f32.partialorder %v5551_v4, 8.507059e+37  ;;  %v5619_v9 = vsel %vm5043_vm15, %v5540_v5, %v5587_v56  ;;  %v14630_v4 = vld [vmem:[#allocation39_spill] sm:$0xff]  ;;  %vm14633_vm5 = vmmov %vm14622_vm12 }
 0x67f   : > { %v5285_v0 = vsel %vm12812_vm4, %v5284_v34, %v5280_v6  ;;  %v5245_v22 = vmul.f32 %v7991_v19, %v5244_v52  ;;  %v5543_v36 = vmul.f32 %v7993_v46, %v12804_v61  ;;  %7321 = vmatmul.msk.f32.vlgmr.msra.gmra.mxu0 %vm14622_vm12, %v5781_v3  ;;  %v5651_v16 = vmul.f32 %v5619_v9, %v11379_v39 }
 0x680   : > { %v5570_v41 = vmul.f32 %v12742_v49, %v5285_v0  ;;  %vm5044_vm15 = vcmp.ge.f32.partialorder %v11399_v62, 0.0  ;;  %v5554_v28 = vor.u32 1.1754944e-38, %v5553_v63  ;;  %vm5517_vm0 = vweird.f32 %v12837_v35  ;;  %v4804_v63 = vld [vmem:[#allocation6 + $0x98] sm:$0xff] }
 0x681   : > { %v5246_v2 = vadd.f32 %v7991_v19, %v5245_v22  ;;  %v5544_v18 = vsub.f32 1.0, %v5543_v36  ;;  %vm5548_vm4 = vweird.f32 %v7993_v46  ;;  %v4900_v26 = vand.u32 2147483647, %v14625_v15 }
 0x682   : > { %v5602_v39 = vsel %vm5026_vm8, %v5285_v0, %v5570_v41  ;;  %v5521_v49 = vand.u32 2147483647, %v12837_v35  ;;  %v5523_v30 = vand.u32 2147483648, %v12837_v35  ;;  %v4899_v23 = vand.u32 2147483647, %v14626_v51  ;;  %vm12898_vm8 = vmor %vm5547_vm11, %vm5548_vm4  ;;  %v5724_v22 = vpop.permute.xlu0 %5723 }
 0x683   : > { %v7995_v37 = vpop.eup %7994  ;;  %v5634_v34 = vmul.f32 %v5602_v39, %v14593_v59  ;;  %v5250_v32 = vsel %vm12879_vm6, %v7991_v19, %v5246_v2  ;;  %v5545_v17 = vmul.f32 %v7993_v46, %v5544_v18  ;;  %v4932_v14 = vsub.f32 0.0, %v4900_v26  ;;  %v4786_v19 = vld [vmem:[#allocation6 + $0x8] sm:$0xff] }
 0x684   : > { %v5255_v40 = vsel %vm12849_vm3, %v5254_v24, %v5250_v32  ;;  %v5513_v20 = vmul.f32 %v7995_v37, %v12837_v35  ;;  %vm5518_vm1 = vweird.f32 %v7995_v37  ;;  %v4931_v54 = vsub.f32 0.0, %v4899_v23  ;;  %5745 = vrot.lane.b32.xlu1 %v5651_v16, %s14516_s29  ;;  %vm14634_vm3 = vmmov %vm14633_vm5  ;;  %v5692_v32 = vpop.permute.xlu1 %5691 }
 0x685   : > { %5711 = vrot.lane.b32.xlu0 %v5634_v34, %s14516_s29  ;;  %v5568_v59 = vmul.f32 %v12774_v53, %v5255_v40  ;;  %v5546_v38 = vadd.f32 %v7993_v46, %v5545_v17  ;;  %v4979_v33 = vmul.f32 1.442695, %v4932_v14  ;;  %v4839_v13 = vmul.f32 %v12716_v12, %v10728_v31  ;;  %vm12925_vm10 = vmor %vm5517_vm0, %vm5518_vm1 }
 0x686   : > { %v5514_v61 = vsub.f32 1.0, %v5513_v20  ;;  %v4822_v48 = vmul.f32 %v12716_v12, %v14629_v21  ;;  %v4823_v11 = vmul.f32 %v12716_v12, %v14630_v4  ;;  %v4840_v29 = vmul.f32 %v12716_v12, %v10750_v50  ;;  %vm14636_vm9 = vmmov %vm14634_vm3  ;;  %v4789_v21 = vld [vmem:[#allocation6 + $0x20] sm:$0xff] }
 0x687   : > { %v5600_v53 = vsel %vm5024_vm7, %v5255_v40, %v5568_v59  ;;  %v5550_v8 = vsel %vm12898_vm8, %v7993_v46, %v5546_v38  ;;  %7996 = vpow2.f32 %v4979_v33  ;;  %v4871_v31 = vadd.f32 %v4839_v13, %v4803_v25  ;;  %v4787_v46 = vld [vmem:[#allocation6 + $0x10] sm:$0xff]  ;;  %vm14637_vm14 = vmmov %vm14634_vm3  ;;  %v4806_v13 = vld [vmem:[#allocation6 + $0xa8] sm:$0xff] }
 0x688   : > { %v5632_v60 = vmul.f32 %v5600_v53, %v14594_v10  ;;  %v5555_v58 = vsel %vm12864_vm13, %v5554_v28, %v5550_v8  ;;  %v5515_v5 = vmul.f32 %v7995_v37, %v5514_v61  ;;  %v4854_v1 = vadd.f32 %v4822_v48, %v4786_v19  ;;  %v14639_v61 = vld [vmem:[#allocation41_spill] sm:$0xff]  ;;  %vm14640_vm12 = vmmov %vm14634_vm3 }
 0x689   : > { %v5588_v56 = vmul.f32 %v12786_v47, %v5555_v58  ;;  %v5524_v52 = vor.u32 1.1754944e-38, %v5523_v30  ;;  %v5799_v3 = vmul.f32 %v5722_v45, %v4871_v31  ;;  %vm5522_vm2 = vcmp.eq.f32.partialorder %v5521_v49, 8.507059e+37  ;;  %v14635_v49 = vld [vmem:[#allocation40_spill] sm:$0xff]  ;;  %v4793_v53 = vld [vmem:[#allocation6 + $0x40] sm:$0xff] }
 0x68a   : > { %5707 = vrot.lane.b32.xlu2 %v5632_v60, %s14516_s29  ;;  %v5516_v10 = vadd.f32 %v7995_v37, %v5515_v5  ;;  %v5782_v6 = vmul.f32 %v5688_v44, %v4854_v1  ;;  %v4977_v24 = vmul.f32 1.442695, %v4931_v54  ;;  %v4872_v47 = vadd.f32 %v4840_v29, %v4804_v63 }
 0x68b   : > { %v5620_v7 = vsel %vm5044_vm15, %v5555_v58, %v5588_v56  ;;  %7339 = vmatmul.msk.f32.gmra.mxu2 %vm14633_vm5, %v5799_v3  ;;  %v4855_v0 = vadd.f32 %v4823_v11, %v4787_v46  ;;  %vm5042_vm7 = vcmp.ge.f32.partialorder %v11034_v57, 0.0  ;;  %v4841_v2 = vmul.f32 %v12716_v12, %v11016_v27  ;;  %vm14643_vm15 = vmmov %vm14634_vm3 }
 0x68c   : > { %v5652_v35 = vmul.f32 %v5620_v7, %v11399_v62  ;;  %v5520_v9 = vsel %vm12925_vm10, %v7995_v37, %v5516_v10  ;;  %7322 = vmatmul.msk.f32.gmra.mxu0 %vm14634_vm3, %v5782_v6  ;;  %7998 = vpow2.f32 %v4977_v24  ;;  %v5690_v62 = vpop.permute.xlu2 %5689  ;;  %v5800_v28 = vmul.f32 %v5724_v22, %v4872_v47  ;;  %v4805_v37 = vld [vmem:[#allocation6 + $0xa0] sm:$0xff]  ;;  %v4807_v47 = vld [vmem:[#allocation6 + $0xb0] sm:$0xff]  ;;  %vm14646_vm5 = vmmov %vm14634_vm3 }
 0x68d   : > { %v12937_v36 = vpop.eup %7996  ;;  %v5525_v16 = vsel %vm5522_vm2, %v5524_v52, %v5520_v9  ;;  %v8158_v18 = vmov 0   ;;  %v5783_v39 = vmul.f32 %v5690_v62, %v4855_v0  ;;  %v4824_v30 = vmul.f32 %v12716_v12, %v14635_v49  ;;  %v14644_v52 = vld [vmem:[#allocation89_spill] sm:$0xff]  ;;  %v14645_v24 = vld [vmem:[#allocation42_spill] sm:$0xff] }
 0x68e   : > { %5747 = vrot.lane.b32.xlu0 %v5652_v35, %s14516_s29  ;;  %v5586_v41 = vmul.f32 %v12816_v42, %v5525_v16  ;;  %v5060_v55 = vadd.f32 1.0, %v12937_v36  ;;  %7871 = vset.pattern.permute.xlu2 %v8158_v18  ;;  %v4788_v42 = vld [vmem:[#allocation6 + $0x18] sm:$0xff]  ;;  %v4873_v17 = vadd.f32 %v4841_v2, %v4805_v37  ;;  %v4825_v45 = vmul.f32 %v12716_v12, %v14639_v61  ;;  %v4790_v0 = vld [vmem:[#allocation6 + $0x28] sm:$0xff] }
 0x68f   : > { %7872 = vset.pattern.permute.xlu0 %v8158_v18  ;;  %v4856_v14 = vadd.f32 %v4824_v30, %v4788_v42  ;;  %vm5028_vm1 = vcmp.ge.f32.partialorder %v14625_v15, 0.0  ;;  %v4843_v3 = vmul.f32 %v12716_v12, %v14644_v52  ;;  %v4826_v7 = vmul.f32 %v12716_v12, %v14645_v24  ;;  %v4791_v42 = vld [vmem:[#allocation6 + $0x30] sm:$0xff]  ;;  %v4792_v61 = vld [vmem:[#allocation6 + $0x38] sm:$0xff] }
 0x690   : > { %v5618_v26 = vsel %vm5042_vm7, %v5525_v16, %v5586_v41  ;;  %8000 = vrcp.f32 %v5060_v55  ;;  %v5313_v59 = vand.u32 2147483648, %v5060_v55  ;;  %vm5307_vm11 = vweird.f32 %v5060_v55 }
 0x691   : > { %v5650_v23 = vmul.f32 %v5618_v26, %v11034_v57  ;;  %v14638_v57 = vld [vmem:[#allocation88_spill] sm:$0xff]  ;;  %v5784_v33 = vmul.f32 %v5692_v32, %v4856_v14  ;;  %v5311_v19 = vand.u32 2147483647, %v5060_v55  ;;  %v4857_v60 = vadd.f32 %v4825_v45, %v4789_v21  ;;  %v14648_v32 = vld [vmem:[#allocation90_spill] sm:$0xff] }
 0x692   : > { %v12948_v34 = vpop.eup %7998  ;;  %v4842_v54 = vmul.f32 %v12716_v12, %v14638_v57  ;;  %v5314_v8 = vor.u32 1.1754944e-38, %v5313_v59  ;;  %v4875_v41 = vadd.f32 %v4843_v3, %v4807_v47  ;;  %vm5027_vm7 = vcmp.ge.f32.partialorder %v14626_v51, 0.0  ;;  %v14651_v57 = vld [vmem:[#allocation91_spill] sm:$0xff]  ;;  %v4809_v59 = vld [vmem:[#allocation6 + $0xc0] sm:$0xff] }
 0x693   : > { %5743 = vrot.lane.b32.xlu2 %v5650_v23, %s14516_s29  ;;  %7340 = vmatmul.msk.f32.gmra.mxu2 %vm14636_vm9, %v5800_v28  ;;  %v5059_v27 = vadd.f32 1.0, %v12948_v34  ;;  %v5728_v44 = vpop.permute.xlu1 %5727  ;;  %vm5312_vm0 = vcmp.eq.f32.partialorder %v5311_v19, 8.507059e+37  ;;  %v4858_v28 = vadd.f32 %v4826_v7, %v4790_v0  ;;  %v14647_v23 = vld [vmem:[#allocation57_spill] sm:$0xff]  ;;  %vm14649_vm9 = vmmov %vm14634_vm3  ;;  %v4794_v3 = vld [vmem:[#allocation6 + $0x48] sm:$0xff] }
 0x694   : > { %7323 = vmatmul.msk.f32.gmra.mxu0 %vm14637_vm14, %v5783_v39  ;;  %v5726_v43 = vpop.permute.xlu2 %5725  ;;  %v4874_v29 = vadd.f32 %v4842_v54, %v4806_v13  ;;  %v4827_v37 = vmul.f32 %v12716_v12, %v14647_v23  ;;  %vm14650_vm14 = vmmov %vm14634_vm3  ;;  %v4845_v54 = vmul.f32 %v12716_v12, %v14651_v57  ;;  %v14663_v7 = vld [vmem:[#allocation61_spill] sm:$0xff]  ;;  %v4795_v0 = vld [vmem:[#allocation6 + $0x50] sm:$0xff] }
 0x695   : > { %8002 = vrcp.f32 %v5059_v27  ;;  %v5801_v38 = vmul.f32 %v5726_v43, %v4873_v17  ;;  %v5298_v5 = vand.u32 2147483648, %v5059_v27  ;;  %vm5292_vm4 = vweird.f32 %v5059_v27  ;;  %v4808_v17 = vld [vmem:[#allocation6 + $0xb8] sm:$0xff]  ;;  %v7874_v43 = vld [vmem:[#allocation7] ss:$0 sm:$0xff] }
 0x696   : > { %v8001_v40 = vpop.eup %8000  ;;  %v5694_v48 = vpop.permute.xlu0 %5693  ;;  %v5296_v63 = vand.u32 2147483647, %v5059_v27  ;;  %v5802_v50 = vmul.f32 %v5728_v44, %v4874_v29  ;;  %v4877_v45 = vadd.f32 %v4845_v54, %v4809_v59  ;;  %v4810_v44 = vld [vmem:[#allocation6 + $0xc8] sm:$0xff]  ;;  %v4831_v47 = vmul.f32 %v12716_v12, %v14663_v7 }
 0x697   : > { %v5303_v20 = vmul.f32 %v8001_v40, %v5060_v55  ;;  %vm5308_vm13 = vweird.f32 %v8001_v40  ;;  %v5785_v6 = vmul.f32 %v5694_v48, %v4857_v60  ;;  %v5299_v9 = vor.u32 1.1754944e-38, %v5298_v5  ;;  %v4814_v54 = vld [vmem:[#allocation6 + $0xe8] sm:$0xff] }
 0x698   : > { %vm12959_vm6 = vmor %vm5307_vm11, %vm5308_vm13  ;;  %vm5297_vm2 = vcmp.eq.f32.partialorder %v5296_v63, 8.507059e+37 }
 0x699   : > { %v5304_v25 = vsub.f32 1.0, %v5303_v20  ;;  %vm14653_vm11 = vmmov %vm14634_vm3 }
 0x69a   : > { %vm14654_vm13 = vmmov %vm14634_vm3 }
 0x69b   : > { %v8003_v4 = vpop.eup %8002  ;;  %v5305_v11 = vmul.f32 %v8001_v40, %v5304_v25  ;;  %7341 = vmatmul.msk.f32.gmra.mxu2 %vm14640_vm12, %v5801_v38  ;;  %v14652_v38 = vld [vmem:[#allocation58_spill] sm:$0xff]  ;;  %vm14657_vm12 = vmmov %vm14634_vm3 }
 0x69c   : > { %v5288_v31 = vmul.f32 %v8003_v4, %v5059_v27  ;;  %7324 = vmatmul.msk.f32.gmra.mxu0 %vm14643_vm15, %v5784_v33  ;;  %vm5293_vm8 = vweird.f32 %v8003_v4  ;;  %v4844_v27 = vmul.f32 %v12716_v12, %v14648_v32  ;;  %v4828_v33 = vmul.f32 %v12716_v12, %v14652_v38  ;;  %vm14659_vm15 = vmmov %vm14634_vm3  ;;  %v4797_v38 = vld [vmem:[#allocation6 + $0x60] sm:$0xff] }
 0x69d   : > { %v5306_v58 = vadd.f32 %v8001_v40, %v5305_v11  ;;  %vm5294_vm10 = vmor %vm5292_vm4, %vm5293_vm8 }
 0x69e   : > { %v5289_v1 = vsub.f32 1.0, %v5288_v31  ;;  %v4860_v19 = vadd.f32 %v4828_v33, %v4792_v61 }
 0x69f   : > { %v5310_v56 = vsel %vm12959_vm6, %v8001_v40, %v5306_v58  ;;  %v4876_v40 = vadd.f32 %v4844_v27, %v4808_v17  ;;  %vm14658_vm6 = vmmov %vm14634_vm3  ;;  %v4796_v27 = vld [vmem:[#allocation6 + $0x58] sm:$0xff] }
 0x6a0   : > { %v5315_v46 = vsel %vm5312_vm0, %v5314_v8, %v5310_v56  ;;  %v5290_v10 = vmul.f32 %v8003_v4, %v5289_v1  ;;  %v5730_v2 = vpop.permute.xlu0 %5729  ;;  %v14656_v8 = vld [vmem:[#allocation92_spill] sm:$0xff]  ;;  %vm14660_vm0 = vmmov %vm14634_vm3 }
 0x6a1   : > { %v5572_v35 = vmul.f32 %v12937_v36, %v5315_v46  ;;  %v5696_v36 = vpop.permute.xlu2 %5695  ;;  %v5803_v39 = vmul.f32 %v5730_v2, %v4875_v41  ;;  %v4846_v31 = vmul.f32 %v12716_v12, %v14656_v8  ;;  %vm14665_vm4 = vmmov %vm14660_vm0 }
 0x6a2   : > { %v5291_v22 = vadd.f32 %v8003_v4, %v5290_v10  ;;  %v5786_v30 = vmul.f32 %v5696_v36, %v4858_v28  ;;  %v4863_v28 = vadd.f32 %v4831_v47, %v4795_v0  ;;  %vm14666_vm8 = vmmov %vm14660_vm0 }
 0x6a3   : > { %v5604_v16 = vsel %vm5028_vm1, %v5315_v46, %v5572_v35  ;;  %7342 = vmatmul.msk.f32.gmra.mxu2 %vm14646_vm5, %v5802_v50  ;;  %v4878_v5 = vadd.f32 %v4846_v31, %v4810_v44  ;;  %v14661_v50 = vld [vmem:[#allocation60_spill] sm:$0xff]  ;;  %v14662_v46 = vld [vmem:[#allocation93_spill] sm:$0xff]  ;;  %vm14667_vm1 = vmmov %vm14660_vm0 }
 0x6a4   : > { %v5636_v55 = vmul.f32 %v5604_v16, %v14625_v15  ;;  %v5295_v62 = vsel %vm5294_vm10, %v8003_v4, %v5291_v22  ;;  %7325 = vmatmul.msk.f32.gmra.mxu0 %vm14634_vm3, %v5785_v6  ;;  %v14655_v4 = vld [vmem:[#allocation59_spill] sm:$0xff]  ;;  %v4830_v52 = vmul.f32 %v12716_v12, %v14661_v50  ;;  %v4847_v10 = vmul.f32 %v12716_v12, %v14662_v46  ;;  %v14664_v16 = vld [vmem:[#allocation94_spill] sm:$0xff]  ;;  %vm14669_vm10 = vmmov %vm14660_vm0 }
 0x6a5   : > { %v5300_v18 = vsel %vm5297_vm2, %v5299_v9, %v5295_v62  ;;  %v4829_v11 = vmul.f32 %v12716_v12, %v14655_v4  ;;  %v4811_v6 = vld [vmem:[#allocation6 + $0xd0] sm:$0xff]  ;;  %v4848_v41 = vmul.f32 %v12716_v12, %v14664_v16  ;;  %v4812_v62 = vld [vmem:[#allocation6 + $0xd8] sm:$0xff]  ;;  %vm14671_vm2 = vmmov %vm14660_vm0 }
 0x6a6   : > { %5715 = vrot.lane.b32.xlu1 %v5636_v55, %s14516_s29  ;;  %v5571_v26 = vmul.f32 %v12948_v34, %v5300_v18  ;;  %v5698_v14 = vpop.permute.xlu1 %5697  ;;  %v4859_v34 = vadd.f32 %v4827_v37, %v4791_v42  ;;  %v4862_v24 = vadd.f32 %v4830_v52, %v4794_v3  ;;  %v4879_v35 = vadd.f32 %v4847_v10, %v4811_v6  ;;  %v4813_v37 = vld [vmem:[#allocation6 + $0xe0] sm:$0xff]  ;;  %vm14673_vm5 = vmmov %vm14660_vm0  ;;  %v4799_v10 = vld [vmem:[#allocation6 + $0x70] sm:$0xff] }
 0x6a7   : > { %v4861_v60 = vadd.f32 %v4829_v11, %v4793_v53  ;;  %v4880_v36 = vadd.f32 %v4848_v41, %v4812_v62  ;;  %vm14675_vm3 = vmmov %vm14660_vm0  ;;  %v14677_v4 = vld [vmem:[#allocation77_spill] sm:$0xff]  ;;  %v4798_v53 = vld [vmem:[#allocation6 + $0x68] sm:$0xff] }
 0x6a8   : > { %v5603_v49 = vsel %vm5027_vm7, %v5300_v18, %v5571_v26  ;;  %v5787_v20 = vmul.f32 %v5698_v14, %v4859_v34  ;;  %v4834_v11 = vmul.f32 %v12716_v12, %v14677_v4  ;;  %vm14678_vm7 = vmmov %vm14660_vm0  ;;  %v14682_v3 = vld [vmem:[#allocation78_spill] sm:$0xff]  ;;  %v14685_v41 = vld [vmem:[#allocation17_spill] sm:$0xff] }
 0x6a9   : > { %v5635_v15 = vmul.f32 %v5603_v49, %v14626_v51  ;;  %v4835_v46 = vmul.f32 %v12716_v12, %v14682_v3  ;;  %v14686_v62 = vld [vmem:[#allocation50_spill] sm:$0xff] }
 0x6aa   : > { %v4866_v31 = vadd.f32 %v4834_v11, %v4798_v53 }
 0x6ab   : > { %5713 = vrot.lane.b32.xlu2 %v5635_v15, %s14516_s29  ;;  %7343 = vmatmul.msk.f32.gmra.mxu2 %vm14649_vm9, %v5803_v39  ;;  %v14670_v15 = vld [vmem:[#allocation62_spill] sm:$0xff]  ;;  %vm14680_vm9 = vmmov %vm14660_vm0  ;;  %v4867_v47 = vadd.f32 %v4835_v46, %v4799_v10  ;;  %s7391_s29 = sshll.u32 %s8270_s15, 8  ;;  %s14853_s15 = sand.u32 1, %s8134_s24  }
 0x6ac   : > { %7326 = vmatmul.msk.f32.gmra.mxu0 %vm14650_vm14, %v5786_v30  ;;  %v14668_v30 = vld [vmem:[#allocation95_spill] sm:$0xff]  ;;  %v4832_v42 = vmul.f32 %v12716_v12, %v14670_v15  ;;  %vm14681_vm14 = vmmov %vm14660_vm0  ;;  %v4800_v15 = vld [vmem:[#allocation6 + $0x78] sm:$0xff]  ;;  %s7098_s30 = scalar_lea.hbm %s14075_s16, %s7391_s29  ;;  %s7087_s21 = scalar_lea.sflag [#allocation9], %s14853_s15 }
 0x6ad   : > { %v4849_v23 = vmul.f32 %v12716_v12, %v14668_v30  ;;  %v14688_v30 = vld [vmem:[#allocation79_spill] sm:$0xff]  ;;  %v14706_v46 = vld [vmem:[#allocation22_spill] sm:$0xff]  ;;  %s7101_s20 = sshll.u32 %s7098_s30, 4  ;;  %s7102_s20 = int_to_ptr.hbm [resolvable:$true] %s7101_s20 }
 0x6ae   : > { %v5734_v25 = vpop.permute.xlu1 %5733  ;;  %v4864_v14 = vadd.f32 %v4832_v42, %v4796_v27  ;;  %s8082_s25 = sshra.s32 %s7102_s20, 4  ;;  %s8083_s25 = int_to_ptr.hbm [resolvable:$true] %s8082_s25 }
 0x6af   : > { %v5805_v21 = vmul.f32 %v5734_v25, %v4877_v45  ;;  %v4881_v32 = vadd.f32 %v4849_v23, %v4813_v37  ;;  %v4836_v23 = vmul.f32 %v12716_v12, %v14688_v30  ;;  %s8084_s22 = scalar_lea.hbm %s8083_s25, 256  ;;  %p8089_p1 = scmp.lt.s32.totalorder %s8083_s25, %s14075_s16 }
 0x6b0   : > { %v5732_v51 = vpop.permute.xlu2 %5731  ;;  %p8085_p12 = scmp.ne.s32.totalorder %s8083_s25, %s8084_s22  ;;  %p8090_p2 = scmp.lt.s32.totalorder %s8088_s1, %s8084_s22 }
 0x6b1   : > { %v5804_v13 = vmul.f32 %v5732_v51, %v4876_v40  ;;  %v14674_v51 = vld [vmem:[#allocation63_spill] sm:$0xff] }
 0x6b2   : > { %v4833_v59 = vmul.f32 %v12716_v12, %v14674_v51  ;;  %p8086_p13 = pnand %p8085_p12, %p8287_p5  ;;  %p8091_p3 = por %p8090_p2, %p8089_p1 }
 0x6b3   : > { %5825 = vperm.xlu2 %7871, %v7874_v43   ;;  %7344 = vmatmul.msk.f32.gmra.mxu2 %vm14654_vm13, %v5804_v13  ;;  %vm14684_vm13 = vmmov %vm14660_vm0 }
 0x6b4   : > { %7327 = vmatmul.msk.f32.gmra.mxu0 %vm14653_vm11, %v5787_v20  ;;  %v14672_v20 = vld [vmem:[#allocation96_spill] sm:$0xff]  ;;  %v4865_v13 = vadd.f32 %v4833_v59, %v4797_v38  ;;  %vm14683_vm11 = vmmov %vm14660_vm0  ;;  %p8087_p0 = pneg %p8086_p13 }
 0x6b5   : > { %v4850_v57 = vmul.f32 %v12716_v12, %v14672_v20  ;;  %v14695_v59 = vld [vmem:[#allocation20_spill] sm:$0xff] }
 0x6b6   : > { %p8092_p4 = pnand %p8091_p3, %p8087_p0 }
 0x6b7   : > { %v4882_v33 = vadd.f32 %v4850_v57, %v4814_v54 }
 0x6b8   : > { %v5700_v48 = vpop.permute.xlu0 %5699 }
 0x6b9   : > { %v5788_v29 = vmul.f32 %v5700_v48, %v4860_v19 }
 0x6bb   : > { %7345 = vmatmul.msk.f32.gmra.mxu2 %vm14658_vm6, %v5805_v21  ;;  %v14676_v21 = vld [vmem:[#allocation97_spill] sm:$0xff] }
 0x6bc   : > { %7328 = vmatmul.msk.f32.gmra.mxu0 %vm14657_vm12, %v5788_v29  ;;  %v4851_v48 = vmul.f32 %v12716_v12, %v14676_v21  ;;  %v4815_v29 = vld [vmem:[#allocation6 + $0xf0] sm:$0xff]  ;;  %vm14689_vm12 = vcmask 261120  }
 0x6bd   : > { %v5702_v58 = vpop.permute.xlu2 %5701  ;;  %vm14690_vm6 = vmmov %vm14689_vm12 }
 0x6be   : > { %v5789_v1 = vmul.f32 %v5702_v58, %v4861_v60  ;;  %v4883_v8 = vadd.f32 %v4851_v48, %v4815_v29  ;;  %v14700_v48 = vld [vmem:[#allocation55_spill] sm:$0xff] }
 0x6c0   : > { %v5736_v63 = vpop.permute.xlu0 %5735 }
 0x6c1   : > { %v5806_v56 = vmul.f32 %v5736_v63, %v4878_v5 }
 0x6c3   : > { %7346 = vmatmul.msk.f32.gmra.mxu2 %vm14660_vm0, %v5806_v56  ;;  %v4816_v56 = vld [vmem:[#allocation6 + $0xf8] sm:$0xff]  ;;  %vm14694_vm0 = vmmov %vm14690_vm6 }
 0x6c4   : > { %7329 = vmatmul.msk.f32.gmra.mxu0 %vm14659_vm15, %v5789_v1  ;;  %v14679_v1 = vld [vmem:[#allocation98_spill] sm:$0xff]  ;;  %vm14691_vm15 = vmmov %vm14690_vm6 }
 0x6c5   : > { %v4852_v63 = vmul.f32 %v12716_v12, %v14679_v1 }
 0x6c7   : > { %v4884_v52 = vadd.f32 %v4852_v63, %v4816_v56  ;;  %v14705_v63 = vld [vmem:[#allocation66_spill] sm:$0xff] }
 0x6cd   : > { %v5704_v9 = vpop.permute.xlu1 %5703 }
 0x6ce   : > { %v5790_v22 = vmul.f32 %v5704_v9, %v4862_v24 }
 0x6d0   : > { %v5738_v55 = vpop.permute.xlu2 %5737  ;;  %7330 = vmatmul.msk.f32.gmra.mxu0 %vm14665_vm4, %v5790_v22  ;;  %vm14696_vm4 = vmmov %vm14694_vm0 }
 0x6d1   : > { %v5807_v2 = vmul.f32 %v5738_v55, %v4879_v35 }
 0x6d2   : > { %v5706_v18 = vpop.permute.xlu0 %5705 }
 0x6d3   : > { %7347 = vmatmul.msk.f32.gmra.mxu2 %vm14666_vm8, %v5807_v2  ;;  %v5791_v26 = vmul.f32 %v5706_v18, %v4863_v28  ;;  %v14687_v2 = vld [vmem:[#allocation18_spill] sm:$0xff]  ;;  %vm14697_vm8 = vmmov %vm14667_vm1 }
 0x6d5   : > { %v5740_v39 = vpop.permute.xlu1 %5739 }
 0x6d6   : > { %v5808_v49 = vmul.f32 %v5740_v39, %v4880_v36 }
 0x6d8   : > { %7331 = vmatmul.msk.f32.gmra.mxu0 %vm14667_vm1, %v5791_v26  ;;  %vm14698_vm1 = vmmov %vm14694_vm0 }
 0x6db   : > { %7348 = vmatmul.msk.f32.gmra.mxu2 %vm14669_vm10, %v5808_v49  ;;  %vm14702_vm10 = vmmov %vm14694_vm0 }
 0x6e0   : > { %v5742_v17 = vpop.permute.xlu0 %5741 }
 0x6e1   : > { %v5809_v34 = vmul.f32 %v5742_v17, %v4881_v32  ;;  %v14692_v17 = vld [vmem:[#allocation52_spill] sm:$0xff] }
 0x6e3   : > { %7349 = vmatmul.msk.f32.gmra.mxu2 %vm14671_vm2, %v5809_v34  ;;  %v14693_v34 = vld [vmem:[#allocation19_spill] sm:$0xff]  ;;  %vm14703_vm2 = vmmov %vm14694_vm0 }
 0x6e4   : > { %v5708_v40 = vpop.permute.xlu2 %5707 }
 0x6e5   : > { %v5792_v43 = vmul.f32 %v5708_v40, %v4864_v14 }
 0x6e7   : > { %7332 = vmatmul.msk.f32.gmra.mxu0 %vm14673_vm5, %v5792_v43  ;;  %v4868_v43 = vadd.f32 %v4836_v23, %v4800_v15  ;;  %vm14704_vm5 = vmmov %vm14694_vm0  ;;  %v14714_v15 = vld [vmem:[#allocation24_spill] sm:$0xff] }
 0x6ed   : > { %v5744_v61 = vpop.permute.xlu2 %5743 }
 0x6ee   : > { %v5810_v45 = vmul.f32 %v5744_v61, %v4882_v33  ;;  %v5710_v25 = vpop.permute.xlu1 %5709 }
 0x6ef   : > { %v5793_v19 = vmul.f32 %v5710_v25, %v4865_v13 }
 0x6f0   : > { %7350 = vmatmul.msk.f32.gmra.mxu2 %vm14675_vm3, %v5810_v45  ;;  %vm14707_vm3 = vmmov %vm14694_vm0 }
 0x6f1   : > { %7333 = vmatmul.msk.f32.gmra.mxu0 %vm14678_vm7, %v5793_v19  ;;  %v14699_v19 = vld [vmem:[#allocation54_spill] sm:$0xff]  ;;  %vm14708_vm7 = vmmov %vm14694_vm0 }
 0x6f6   : > { %v5746_v44 = vpop.permute.xlu1 %5745 }
 0x6f7   : > { %v5712_v60 = vpop.permute.xlu0 %5711  ;;  %v5811_v58 = vmul.f32 %v5746_v44, %v4883_v8  ;;  %v14701_v8 = vld [vmem:[#allocation21_spill] sm:$0xff] }
 0x6f8   : > { %v5794_v5 = vmul.f32 %v5712_v60, %v4866_v31  ;;  %v13032_v50 = vpop.f32.mrf.mxu2 }
 0x6f9   : > { %7351 = vmatmul.msk.f32.gmra.mxu2 %vm14681_vm14, %v5811_v58  ;;  %vm14712_vm14 = vmmov %vm14694_vm0 }
 0x6fa   : > { %7334 = vmatmul.msk.f32.gmra.mxu0 %vm14680_vm9, %v5794_v5  ;;  %vm14711_vm9 = vmmov %vm14694_vm0 }
 0x6fc   : > { %v5973_v6 = vpop.f32.mrf.mxu0 }
 0x700   : > { %v5748_v24 = vpop.permute.xlu0 %5747  ;;  %v6024_v35 = vpop.f32.mrf.mxu2 }
 0x701   : > { %v5812_v7 = vmul.f32 %v5748_v24, %v4884_v52 }
 0x703   : > { %7352 = vmatmul.msk.f32.gmra.mxu2 %vm14683_vm11, %v5812_v7  ;;  %vm14715_vm11 = vmmov %vm14694_vm0 }
 0x705   : > { %v5714_v9 = vpop.permute.xlu2 %5713 }
 0x706   : > { %v5795_v0 = vmul.f32 %v5714_v9, %v4867_v47 }
 0x708   : > { %7335 = vmatmul.msk.f32.gmra.mxu0 %vm14684_vm13, %v5795_v0  ;;  %vm14716_vm13 = vmmov %vm14694_vm0 }
 0x709   : > { %v5976_v22 = vpop.f32.mrf.mxu0 }
 0x70d   : > { %v13038_v16 = vpop.permute.xlu2 %5825 }
 0x70e   : > { %v5828_v55 = vmul.f32 %v13038_v16, %v14685_v41  ;;  %v5845_v28 = vmul.f32 %v13038_v16, %v14686_v62  ;;  %v5829_v18 = vmul.f32 %v13038_v16, %v14687_v2  ;;  %v6027_v36 = vpop.f32.mrf.mxu2  ;;  %v5846_v14 = vmul.f32 %v13038_v16, %v14692_v17  ;;  %v14710_v41 = vld [vmem:[#allocation23_spill] sm:$0xff] }
 0x70f   : > { %v5830_v40 = vmul.f32 %v13038_v16, %v14693_v34  ;;  %v5831_v38 = vmul.f32 %v13038_v16, %v14695_v59  ;;  %v5847_v21 = vmul.f32 %v13038_v16, %v14699_v19  ;;  %v5848_v4 = vmul.f32 %v13038_v16, %v14700_v48  ;;  %v14717_v34 = vld [vmem:[#allocation70_spill] sm:$0xff]  ;;  %v14722_v48 = vld [vmem:[#allocation28_spill] sm:$0xff] }
 0x710   : > { %v13046_v26 = vadd.f32 %v5973_v6, %v5828_v55  ;;  %v13048_v39 = vadd.f32 %v6024_v35, %v5845_v28  ;;  %v13050_v49 = vadd.f32 %v5976_v22, %v5829_v18  ;;  %v13064_v12 = vadd.f32 %v6027_v36, %v5846_v14  ;;  %v14709_v35 = vld [vmem:[#allocation67_spill] sm:$0xff]  ;;  %v14713_v36 = vld [vmem:[#allocation68_spill] sm:$0xff] }
 0x711   : > { %v5979_v37 = vpop.f32.mrf.mxu0  ;;  %v5832_v31 = vmul.f32 %v13038_v16, %v14701_v8  ;;  %v5849_v56 = vmul.f32 %v13038_v16, %v14705_v63  ;;  %v5833_v10 = vmul.f32 %v13038_v16, %v14706_v46  ;;  %v5850_v9 = vmul.f32 %v13038_v16, %v14709_v35 }
 0x712   : > { %v6069_v42 = vsel %vm14689_vm12, %v13046_v26, 0.0  ;;  %v6120_v32 = vsel %vm14690_vm6, %v13048_v39, 0.0  ;;  %v6072_v27 = vsel %vm14691_vm15, %v13050_v49, 0.0  ;;  %v13066_v20 = vadd.f32 %v5979_v37, %v5830_v40  ;;  %vm14719_vm12 = vmmov %vm14694_vm0 }
 0x713   : > { %6070 = vadd.xlane.f32.xlu0 %v6069_v42  ;;  %6121 = vadd.xlane.f32.xlu2 %v6120_v32  ;;  %v6123_v51 = vsel %vm14694_vm0, %v13064_v12, 0.0  ;;  %v5834_v55 = vmul.f32 %v13038_v16, %v14710_v41  ;;  %v5851_v30 = vmul.f32 %v13038_v16, %v14713_v36  ;;  %v5835_v42 = vmul.f32 %v13038_v16, %v14714_v15  ;;  %vm14720_vm6 = vmmov %vm14694_vm0 }
 0x714   : > { %6073 = vadd.xlane.f32.xlu1 %v6072_v27  ;;  %v6075_v13 = vsel %vm14696_vm4, %v13066_v20, 0.0  ;;  %v5852_v40 = vmul.f32 %v13038_v16, %v14717_v34  ;;  %vm14723_vm15 = vmmov %vm14694_vm0 }
 0x715   : > { %vm14726_vm4 = vmmov %vm14694_vm0 }
 0x716   : > { %v6030_v57 = vpop.f32.mrf.mxu2 }
 0x717   : > { %v13083_v29 = vadd.f32 %v6030_v57, %v5847_v21 }
 0x718   : > { %v5716_v54 = vpop.permute.xlu1 %5715 }
 0x719   : > { %v5796_v33 = vmul.f32 %v5716_v54, %v4868_v43  ;;  %v5982_v61 = vpop.f32.mrf.mxu0  ;;  %v6126_v58 = vsel %vm14702_vm10, %v13083_v29, 0.0  ;;  %v14718_v54 = vld [vmem:[#allocation27_spill] sm:$0xff]  ;;  %vm14731_vm10 = vmmov %vm14694_vm0 }
 0x71a   : > { %v13074_v45 = vadd.f32 %v5982_v61, %v5831_v38  ;;  %v14721_v61 = vld [vmem:[#allocation69_spill] sm:$0xff] }
 0x71b   : > { %7336 = vmatmul.msk.f32.gmra.mxu0 %vm14697_vm8, %v5796_v33  ;;  %6124 = vadd.xlane.f32.xlu0 %v6123_v51  ;;  %v5836_v51 = vmul.f32 %v13038_v16, %v14718_v54  ;;  %vm14727_vm8 = vmmov %vm14694_vm0 }
 0x71c   : > { %6076 = vadd.xlane.f32.xlu2 %v6075_v13  ;;  %v6078_v25 = vsel %vm14698_vm1, %v13074_v45, 0.0  ;;  %vm14729_vm1 = vmmov %vm14694_vm0 }
 0x71d   : > { %6079 = vadd.xlane.f32.xlu1 %v6078_v25  ;;  %v5853_v25 = vmul.f32 %v13038_v16, %v14721_v61 }
 0x71e   : > { %v6033_v11 = vpop.f32.mrf.mxu2 }
 0x71f   : > { %v13085_v53 = vadd.f32 %v6033_v11, %v5848_v4  ;;  %v5837_v4 = vmul.f32 %v13038_v16, %v14722_v48 }
 0x721   : > { %v5985_v44 = vpop.f32.mrf.mxu0  ;;  %v6129_v5 = vsel %vm14703_vm2, %v13085_v53, 0.0  ;;  %vm14732_vm2 = vmmov %vm14694_vm0 }
 0x722   : > { %v13089_v60 = vadd.f32 %v5985_v44, %v5832_v31 }
 0x724   : > { %6127 = vadd.xlane.f32.xlu2 %v6126_v58  ;;  %v6081_v1 = vsel %vm14704_vm5, %v13089_v60, 0.0  ;;  %v14724_v58 = vld [vmem:[#allocation30_spill] sm:$0xff]  ;;  %vm14733_vm5 = vmmov %vm14694_vm0 }
 0x725   : > { %6130 = vadd.xlane.f32.xlu1 %v6129_v5  ;;  %6082 = vadd.xlane.f32.xlu0 %v6081_v1  ;;  %v5838_v5 = vmul.f32 %v13038_v16, %v14724_v58  ;;  %v14725_v1 = vld [vmem:[#allocation72_spill] sm:$0xff] }
 0x726   : > { %v6036_v52 = vpop.f32.mrf.mxu2  ;;  %v5854_v63 = vmul.f32 %v13038_v16, %v14725_v1  ;;  %v14737_v1 = vld [vmem:[#allocation74_spill] sm:$0xff] }
 0x727   : > { %v13099_v3 = vadd.f32 %v6036_v52, %v5849_v56 }
 0x729   : > { %v5988_v6 = vpop.f32.mrf.mxu0  ;;  %v6132_v47 = vsel %vm14708_vm7, %v13099_v3, 0.0  ;;  %vm14735_vm7 = vmmov %vm14694_vm0 }
 0x72a   : > { %v13103_v24 = vadd.f32 %v5988_v6, %v5833_v10 }
 0x72c   : > { %v6084_v7 = vsel %vm14707_vm3, %v13103_v24, 0.0  ;;  %vm14734_vm3 = vmmov %vm14694_vm0 }
 0x72d   : > { %6085 = vadd.xlane.f32.xlu2 %v6084_v7  ;;  %6133 = vadd.xlane.f32.xlu0 %v6132_v47  ;;  %v14728_v47 = vld [vmem:[#allocation32_spill] sm:$0xff] }
 0x72e   : > { %v6039_v0 = vpop.f32.mrf.mxu2  ;;  %v5839_v35 = vmul.f32 %v13038_v16, %v14728_v47 }
 0x72f   : > { %v13111_v22 = vadd.f32 %v6039_v0, %v5850_v9 }
 0x731   : > { %v5991_v62 = vpop.f32.mrf.mxu0  ;;  %v6135_v18 = vsel %vm14712_vm14, %v13111_v22, 0.0  ;;  %vm14739_vm14 = vmmov %vm14694_vm0 }
 0x732   : > { %v13115_v28 = vadd.f32 %v5991_v62, %v5834_v55  ;;  %v14730_v62 = vld [vmem:[#allocation14_spill] sm:$0xff] }
 0x734   : > { %v6087_v2 = vsel %vm14711_vm9, %v13115_v28, 0.0  ;;  %vm14738_vm9 = vmmov %vm14694_vm0 }
 0x735   : > { %6088 = vadd.xlane.f32.xlu2 %v6087_v2  ;;  %6136 = vadd.xlane.f32.xlu0 %v6135_v18 }
 0x736   : > { %v6042_v23 = vpop.f32.mrf.mxu2 }
 0x737   : > { %v13123_v37 = vadd.f32 %v6042_v23, %v5851_v30 }
 0x739   : > { %v5994_v32 = vpop.f32.mrf.mxu0  ;;  %v6138_v17 = vsel %vm14715_vm11, %v13123_v37, 0.0  ;;  %vm14741_vm11 = vmmov %vm14694_vm0 }
 0x73a   : > { %v13127_v27 = vadd.f32 %v5994_v32, %v5835_v42  ;;  %6139 = vadd.xlane.f32.xlu1 %v6138_v17 }
 0x73c   : > { %v6090_v14 = vsel %vm14716_vm13, %v13127_v27, 0.0  ;;  %vm14742_vm13 = vmmov %vm14694_vm0 }
 0x73d   : > { %6091 = vadd.xlane.f32.xlu2 %v6090_v14 }
 0x73e   : > { %v6045_v43 = vpop.f32.mrf.mxu2 }
 0x73f   : > { %v13135_v57 = vadd.f32 %v6045_v43, %v5852_v40 }
 0x741   : > { %v5997_v59 = vpop.f32.mrf.mxu0  ;;  %v6141_v33 = vsel %vm14719_vm12, %v13135_v57, 0.0  ;;  %vm14743_vm12 = vmmov %vm14694_vm0 }
 0x742   : > { %v13139_v38 = vadd.f32 %v5997_v59, %v5836_v51 }
 0x744   : > { %v6093_v13 = vsel %vm14720_vm6, %v13139_v38, 0.0  ;;  %vm14744_vm6 = vmmov %vm14694_vm0 }
 0x745   : > { %6142 = vadd.xlane.f32.xlu2 %v6141_v33  ;;  %6094 = vadd.xlane.f32.xlu0 %v6093_v13 }
 0x746   : > { %v6048_v19 = vpop.f32.mrf.mxu2 }
 0x747   : > { %v13147_v21 = vadd.f32 %v6048_v19, %v5853_v25 }
 0x749   : > { %v6144_v11 = vsel %vm14723_vm15, %v13147_v21, 0.0  ;;  %vm14745_vm15 = vmmov %vm14694_vm0 }
 0x74d   : > { %v6000_v8 = vpop.f32.mrf.mxu0  ;;  %6145 = vadd.xlane.f32.xlu0 %v6144_v11 }
 0x74e   : > { %v13153_v31 = vadd.f32 %v6000_v8, %v5837_v4 }
 0x750   : > { %v6096_v44 = vsel %vm14694_vm0, %v13153_v31, 0.0 }
 0x751   : > { %6097 = vadd.xlane.f32.xlu1 %v6096_v44  ;;  %v14736_v44 = vld [vmem:[#allocation73_spill] sm:$0xff] }
 0x755   : > { %v6003_v56 = vpop.f32.mrf.mxu0 }
 0x756   : > { %v6051_v52 = vpop.f32.mrf.mxu2  ;;  %v13161_v46 = vadd.f32 %v6003_v56, %v5838_v5 }
 0x757   : > { %v13163_v10 = vadd.f32 %v6051_v52, %v5854_v63 }
 0x758   : > { %v6099_v6 = vsel %vm14726_vm4, %v13161_v46, 0.0  ;;  %vm14746_vm4 = vmmov %vm14694_vm0 }
 0x759   : > { %6100 = vadd.xlane.f32.xlu2 %v6099_v6  ;;  %v6147_v7 = vsel %vm14727_vm8, %v13163_v10, 0.0  ;;  %vm14749_vm8 = vmmov %vm14694_vm0 }
 0x75a   : > { %6148 = vadd.xlane.f32.xlu1 %v6147_v7 }
 0x75e   : > { %v6054_v40 = vpop.f32.mrf.mxu2 }
 0x764   : > { %v6006_v9 = vpop.f32.mrf.mxu0 }
 0x765   : > { %v13171_v0 = vadd.f32 %v6006_v9, %v5839_v35 }
 0x766   : > { %v6057_v58 = vpop.f32.mrf.mxu2 }
 0x767   : > { %v6102_v41 = vsel %vm14729_vm1, %v13171_v0, 0.0  ;;  %vm14750_vm1 = vmmov %vm14694_vm0 }
 0x768   : > { %6103 = vadd.xlane.f32.xlu0 %v6102_v41 }
 0x76e   : > { %v6009_v35 = vpop.f32.mrf.mxu0 }
 0x786   : > { %v6071_v55 = vpop.xlane.xlu0 %6070  ;;  %v6122_v18 = vpop.xlane.xlu2 %6121 }
 0x787   : > { %v6165_v2 = vmul.f32 %v6071_v55, %v14730_v62  ;;  %v6074_v36 = vpop.xlane.xlu1 %6073  ;;  %v6182_v30 = vmul.f32 %v6122_v18, %v14730_v62 }
 0x788   : > { %v6166_v23 = vmul.f32 %v6074_v36, %v14730_v62 }
 0x789   : > { %v13179_v15 = vsub.f32 %v13046_v26, %v6165_v2  ;;  %v13182_v42 = vsub.f32 %v13048_v39, %v6182_v30  ;;  %v14740_v2 = vld [vmem:[#allocation35_spill] sm:$0xff] }
 0x78a   : > { %v13185_v32 = vsub.f32 %v13050_v49, %v6166_v23  ;;  %v5840_v18 = vmul.f32 %v13038_v16, %v14740_v2  ;;  %v6060_v2 = vpop.f32.mrf.mxu2 }
 0x78b   : > { %v6229_v17 = vmul.f32 %v13179_v15, %v13179_v15  ;;  %v6246_v14 = vmul.f32 %v13182_v42, %v13182_v42 }
 0x78c   : > { %v6230_v39 = vmul.f32 %v13185_v32, %v13185_v32 }
 0x78d   : > { %v6261_v34 = vsel %vm14731_vm10, %v6229_v17, 0.0  ;;  %v6312_v43 = vsel %vm14732_vm2, %v6246_v14, 0.0  ;;  %vm14752_vm10 = vmmov %vm14694_vm0 }
 0x78e   : > { %6262 = vadd.xlane.f32.xlu1 %v6261_v34  ;;  %v6125_v26 = vpop.xlane.xlu0 %6124  ;;  %6313 = vadd.xlane.f32.xlu0 %v6312_v43  ;;  %v6264_v61 = vsel %vm14733_vm5, %v6230_v39, 0.0  ;;  %v6012_v39 = vpop.f32.mrf.mxu0  ;;  %vm14753_vm2 = vmmov %vm14694_vm0 }
 0x78f   : > { %v6077_v54 = vpop.xlane.xlu2 %6076  ;;  %v6183_v59 = vmul.f32 %v6125_v26, %v14730_v62  ;;  %vm14754_vm5 = vmmov %vm14694_vm0 }
 0x790   : > { %v6167_v49 = vmul.f32 %v6077_v54, %v14730_v62  ;;  %v6080_v51 = vpop.xlane.xlu1 %6079 }
 0x791   : > { %v6168_v33 = vmul.f32 %v6080_v51, %v14730_v62  ;;  %v13208_v48 = vsub.f32 %v13064_v12, %v6183_v59  ;;  %v5856_v12 = vmul.f32 %v13038_v16, %v14737_v1 }
 0x792   : > { %v13199_v13 = vsub.f32 %v13066_v20, %v6167_v49 }
 0x793   : > { %v13203_v25 = vsub.f32 %v13074_v45, %v6168_v33  ;;  %v5855_v45 = vmul.f32 %v13038_v16, %v14736_v44  ;;  %v6247_v63 = vmul.f32 %v13208_v48, %v13208_v48  ;;  %v13223_v7 = vadd.f32 %v6057_v58, %v5856_v12 }
 0x794   : > { %v6231_v19 = vmul.f32 %v13199_v13, %v13199_v13 }
 0x795   : > { %v6232_v4 = vmul.f32 %v13203_v25, %v13203_v25  ;;  %v13220_v56 = vadd.f32 %v6054_v40, %v5855_v45  ;;  %v6315_v9 = vsel %vm14738_vm9, %v6247_v63, 0.0  ;;  %v6153_v23 = vsel %vm14741_vm11, %v13223_v7, 0.0  ;;  %vm14757_vm9 = vmmov %vm14694_vm0 }
 0x796   : > { %6265 = vadd.xlane.f32.xlu1 %v6264_v61  ;;  %v6267_v11 = vsel %vm14734_vm3, %v6231_v19, 0.0  ;;  %v6015_v1 = vpop.f32.mrf.mxu0  ;;  %vm14755_vm3 = vmmov %vm14694_vm0 }
 0x797   : > { %6268 = vadd.xlane.f32.xlu2 %v6267_v11  ;;  %v6128_v20 = vpop.xlane.xlu2 %6127  ;;  %v6270_v8 = vsel %vm14735_vm7, %v6232_v4, 0.0  ;;  %v6150_v55 = vsel %vm14739_vm14, %v13220_v56, 0.0  ;;  %vm14756_vm7 = vmmov %vm14694_vm0 }
 0x798   : > { %v6131_v5 = vpop.xlane.xlu1 %6130  ;;  %6271 = vadd.xlane.f32.xlu0 %v6270_v8  ;;  %v6184_v52 = vmul.f32 %v6128_v20, %v14730_v62  ;;  %v6083_v6 = vpop.xlane.xlu0 %6082  ;;  %vm14759_vm14 = vmmov %vm14694_vm0 }
 0x799   : > { %v6185_v47 = vmul.f32 %v6131_v5, %v14730_v62  ;;  %v6169_v30 = vmul.f32 %v6083_v6, %v14730_v62  ;;  %v14747_v5 = vld [vmem:[#allocation36_spill] sm:$0xff]  ;;  %vm14760_vm11 = vmmov %vm14694_vm0 }
 0x79a   : > { %v13228_v41 = vsub.f32 %v13083_v29, %v6184_v52  ;;  %v13240_v29 = vadd.f32 %v6009_v35, %v5840_v18 }
 0x79b   : > { %v13235_v36 = vsub.f32 %v13085_v53, %v6185_v47  ;;  %v13246_v40 = vsub.f32 %v13089_v60, %v6169_v30 }
 0x79c   : > { %v6248_v34 = vmul.f32 %v13228_v41, %v13228_v41  ;;  %v6105_v54 = vsel %vm14742_vm13, %v13240_v29, 0.0  ;;  %vm14762_vm13 = vmmov %vm14694_vm0 }
 0x79d   : > { %v6249_v53 = vmul.f32 %v13235_v36, %v13235_v36  ;;  %v6233_v51 = vmul.f32 %v13246_v40, %v13246_v40 }
 0x79e   : > { %6316 = vadd.xlane.f32.xlu1 %v6315_v9  ;;  %v6318_v49 = vsel %vm14743_vm12, %v6248_v34, 0.0  ;;  %vm14764_vm12 = vmmov %vm14694_vm0 }
 0x79f   : > { %6151 = vadd.xlane.f32.xlu2 %v6150_v55  ;;  %v6321_v59 = vsel %vm14744_vm6, %v6249_v53, 0.0  ;;  %v6273_v19 = vsel %vm14745_vm15, %v6233_v51, 0.0  ;;  %vm14765_vm6 = vmmov %vm14694_vm0 }
 0x7a0   : > { %v6086_v17 = vpop.xlane.xlu2 %6085  ;;  %6154 = vadd.xlane.f32.xlu0 %v6153_v23  ;;  %v6134_v26 = vpop.xlane.xlu0 %6133  ;;  %v14751_v23 = vld [vmem:[#allocation76_spill] sm:$0xff]  ;;  %vm14767_vm15 = vmmov %vm14694_vm0 }
 0x7a1   : > { %v6170_v14 = vmul.f32 %v6086_v17, %v14730_v62  ;;  %v6186_v60 = vmul.f32 %v6134_v26, %v14730_v62  ;;  %v5857_v17 = vmul.f32 %v13038_v16, %v14751_v23 }
 0x7a3   : > { %v13251_v43 = vsub.f32 %v13103_v24, %v6170_v14  ;;  %v13265_v4 = vsub.f32 %v13099_v3, %v6186_v60  ;;  %v5841_v3 = vmul.f32 %v13038_v16, %v14747_v5 }
 0x7a5   : > { %v6234_v24 = vmul.f32 %v13251_v43, %v13251_v43  ;;  %v6250_v44 = vmul.f32 %v13265_v4, %v13265_v4  ;;  %v13280_v52 = vadd.f32 %v6012_v39, %v5841_v3 }
 0x7a6   : > { %6106 = vadd.xlane.f32.xlu1 %v6105_v54  ;;  %v13300_v54 = vadd.f32 %v6060_v2, %v5857_v17  ;;  %v14761_v2 = vld [vmem:[#allocation81_spill] sm:$0xff]  ;;  %v6018_v17 = vpop.f32.mrf.mxu0 }
 0x7a7   : > { %6319 = vadd.xlane.f32.xlu2 %v6318_v49  ;;  %v6276_v20 = vsel %vm14694_vm0, %v6234_v24, 0.0  ;;  %v6324_v9 = vsel %vm14749_vm8, %v6250_v44, 0.0  ;;  %v6108_v30 = vsel %vm14750_vm1, %v13280_v52, 0.0  ;;  %vm14769_vm8 = vmmov %vm14694_vm0 }
 0x7a8   : > { %v6089_v33 = vpop.xlane.xlu2 %6088  ;;  %6322 = vadd.xlane.f32.xlu0 %v6321_v59  ;;  %v6137_v45 = vpop.xlane.xlu0 %6136  ;;  %v6156_v59 = vsel %vm14753_vm2, %v13300_v54, 0.0  ;;  %vm14770_vm1 = vmmov %vm14694_vm0 }
 0x7a9   : > { %v6171_v61 = vmul.f32 %v6089_v33, %v14730_v62  ;;  %v6187_v6 = vmul.f32 %v6137_v45, %v14730_v62 }
 0x7ab   : > { %v13268_v11 = vsub.f32 %v13115_v28, %v6171_v61  ;;  %v14748_v28 = vld [vmem:[#allocation44_spill] sm:$0xff]  ;;  %v13288_v18 = vsub.f32 %v13111_v22, %v6187_v6 }
 0x7ac   : > { %v5842_v63 = vmul.f32 %v13038_v16, %v14748_v28 }
 0x7ad   : > { %v6235_v8 = vmul.f32 %v13268_v11, %v13268_v11  ;;  %v6140_v12 = vpop.xlane.xlu1 %6139  ;;  %v6251_v39 = vmul.f32 %v13288_v18, %v13288_v18 }
 0x7ae   : > { %6274 = vadd.xlane.f32.xlu1 %v6273_v19  ;;  %v13283_v35 = vadd.f32 %v6015_v1, %v5842_v63  ;;  %v6188_v55 = vmul.f32 %v6140_v12, %v14730_v62  ;;  %v14758_v12 = vld [vmem:[#allocation80_spill] sm:$0xff] }
 0x7af   : > { %6277 = vadd.xlane.f32.xlu2 %v6276_v20  ;;  %v6279_v58 = vsel %vm14746_vm4, %v6235_v8, 0.0  ;;  %v6327_v24 = vsel %vm14754_vm5, %v6251_v39, 0.0  ;;  %vm14768_vm4 = vmmov %vm14694_vm0 }
 0x7b0   : > { %6280 = vadd.xlane.f32.xlu0 %v6279_v58  ;;  %v6092_v47 = vpop.xlane.xlu2 %6091  ;;  %v13295_v14 = vsub.f32 %v13123_v37, %v6188_v55  ;;  %v6111_v53 = vsel %vm14752_vm10, %v13283_v35, 0.0 }
 0x7b1   : > { %v6172_v34 = vmul.f32 %v6092_v47, %v14730_v62 }
 0x7b2   : > { %v6252_v37 = vmul.f32 %v13295_v14, %v13295_v14 }
 0x7b3   : > { %v13306_v49 = vsub.f32 %v13127_v27, %v6172_v34 }
 0x7b4   : > { %v6330_v27 = vsel %vm14755_vm3, %v6252_v37, 0.0 }
 0x7b5   : > { %v6236_v61 = vmul.f32 %v13306_v49, %v13306_v49 }
 0x7b6   : > { %6325 = vadd.xlane.f32.xlu1 %v6324_v9 }
 0x7b7   : > { %6109 = vadd.xlane.f32.xlu2 %v6108_v30  ;;  %v6282_v8 = vsel %vm14756_vm7, %v6236_v61, 0.0  ;;  %v5859_v30 = vmul.f32 %v13038_v16, %v14761_v2 }
 0x7b8   : > { %6112 = vadd.xlane.f32.xlu0 %v6111_v53  ;;  %v6095_v26 = vpop.xlane.xlu0 %6094  ;;  %v6143_v51 = vpop.xlane.xlu2 %6142 }
 0x7b9   : > { %v6173_v22 = vmul.f32 %v6095_v26, %v14730_v62  ;;  %v6189_v33 = vmul.f32 %v6143_v51, %v14730_v62 }
 0x7bb   : > { %v13311_v60 = vsub.f32 %v13139_v38, %v6173_v22  ;;  %v6063_v38 = vpop.f32.mrf.mxu2  ;;  %v13323_v20 = vsub.f32 %v13135_v57, %v6189_v33  ;;  %v5858_v57 = vmul.f32 %v13038_v16, %v14758_v12  ;;  %v14763_v22 = vld [vmem:[#allocation46_spill] sm:$0xff] }
 0x7bc   : > { %v5843_v39 = vmul.f32 %v13038_v16, %v14763_v22 }
 0x7bd   : > { %v6237_v19 = vmul.f32 %v13311_v60, %v13311_v60  ;;  %v6253_v3 = vmul.f32 %v13323_v20, %v13323_v20  ;;  %v13337_v63 = vadd.f32 %v6063_v38, %v5858_v57 }
 0x7be   : > { %6157 = vadd.xlane.f32.xlu1 %v6156_v59  ;;  %v13355_v59 = vadd.f32 %v6018_v17, %v5843_v39 }
 0x7bf   : > { %6328 = vadd.xlane.f32.xlu2 %v6327_v24  ;;  %v6285_v45 = vsel %vm14757_vm9, %v6237_v19, 0.0  ;;  %v6333_v47 = vsel %vm14759_vm14, %v6253_v3, 0.0  ;;  %v6159_v53 = vsel %vm14762_vm13, %v13337_v63, 0.0  ;;  %v14766_v19 = vld [vmem:[#allocation47_spill] sm:$0xff] }
 0x7c0   : > { %6331 = vadd.xlane.f32.xlu0 %v6330_v27  ;;  %v6146_v1 = vpop.xlane.xlu0 %6145  ;;  %v6114_v27 = vsel %vm14765_vm6, %v13355_v59, 0.0  ;;  %v5844_v38 = vmul.f32 %v13038_v16, %v14766_v19  ;;  %vm14774_vm6 = vmmov %vm14694_vm0 }
 0x7c1   : > { %v6190_v6 = vmul.f32 %v6146_v1, %v14730_v62 }
 0x7c3   : > { %v6066_v9 = vpop.f32.mrf.mxu2  ;;  %v13345_v34 = vsub.f32 %v13147_v21, %v6190_v6 }
 0x7c4   : > { %v6098_v44 = vpop.xlane.xlu1 %6097  ;;  %v13349_v26 = vadd.f32 %v6066_v9, %v5859_v30  ;;  %v6839_v9 = vld [vmem:[%s14072_s13 + $0x10] sm:$0xff]  ;;  %v6838_v30 = vld [vmem:[%s14072_s13 + $0x8] sm:$0xff] }
 0x7c5   : > { %v6174_v58 = vmul.f32 %v6098_v44, %v14730_v62  ;;  %v6254_v24 = vmul.f32 %v13345_v34, %v13345_v34  ;;  %v13377_v44 = vadd.f32 %v13032_v50, %v5844_v38 }
 0x7c6   : > { %6283 = vadd.xlane.f32.xlu1 %v6282_v8  ;;  %v6162_v61 = vsel %vm14764_vm12, %v13349_v26, 0.0 }
 0x7c7   : > { %v13329_v5 = vsub.f32 %v13153_v31, %v6174_v58  ;;  %6286 = vadd.xlane.f32.xlu2 %v6285_v45  ;;  %v6336_v8 = vsel %vm14767_vm15, %v6254_v24, 0.0  ;;  %v6117_v12 = vsel %vm14769_vm8, %v13377_v44, 0.0 }
 0x7c9   : > { %v6238_v28 = vmul.f32 %v13329_v5, %v13329_v5 }
 0x7cb   : > { %v6288_v31 = vsel %vm14760_vm11, %v6238_v28, 0.0  ;;  %vm14771_vm11 = vmmov %vm14694_vm0 }
 0x7cc   : > { %v6101_v55 = vpop.xlane.xlu2 %6100  ;;  %6289 = vadd.xlane.f32.xlu0 %v6288_v31 }
 0x7cd   : > { %v6149_v23 = vpop.xlane.xlu1 %6148  ;;  %v6175_v37 = vmul.f32 %v6101_v55, %v14730_v62 }
 0x7ce   : > { %6334 = vadd.xlane.f32.xlu1 %v6333_v47  ;;  %v6191_v51 = vmul.f32 %v6149_v23, %v14730_v62  ;;  %v6837_v23 = vld [vmem:[%s14072_s13] sm:$0xff] }
 0x7cf   : > { %6160 = vadd.xlane.f32.xlu2 %v6159_v53  ;;  %v13360_v21 = vsub.f32 %v13161_v46, %v6175_v37 }
 0x7d0   : > { %v13363_v33 = vsub.f32 %v13163_v10, %v6191_v51 }
 0x7d1   : > { %v6239_v46 = vmul.f32 %v13360_v21, %v13360_v21 }
 0x7d2   : > { %v6255_v10 = vmul.f32 %v13363_v33, %v13363_v33 }
 0x7d3   : > { %v6291_v45 = vsel %vm14694_vm0, %v6239_v46, 0.0 }
 0x7d4   : > { %6163 = vadd.xlane.f32.xlu0 %v6162_v61  ;;  %v6339_v3 = vsel %vm14768_vm4, %v6255_v10, 0.0 }
 0x7d6   : > { %6115 = vadd.xlane.f32.xlu1 %v6114_v27 }
 0x7d7   : > { %6337 = vadd.xlane.f32.xlu2 %v6336_v8 }
 0x7db   : > { %v6104_v58 = vpop.xlane.xlu0 %6103 }
 0x7dc   : > { %v6176_v16 = vmul.f32 %v6104_v58, %v14730_v62  ;;  %6340 = vadd.xlane.f32.xlu0 %v6339_v3 }
 0x7de   : > { %6292 = vadd.xlane.f32.xlu1 %v6291_v45  ;;  %v13383_v1 = vsub.f32 %v13171_v0, %v6176_v16  ;;  %v6840_v0 = vld [vmem:[%s14072_s13 + $0x18] sm:$0xff] }
 0x7df   : > { %6118 = vadd.xlane.f32.xlu2 %v6117_v12  ;;  %6953 = vmatpush.msra.mxu1 %v6840_v0 }
 0x7e0   : > { %v6240_v50 = vmul.f32 %v13383_v1, %v13383_v1  ;;  %7420 = vmatpush.msra.mxu3 %v6840_v0 }
 0x7e1   : > { %6954 = vmatpush.msra.mxu1 %v6839_v9 }
 0x7e2   : > { %v6294_v57 = vsel %vm14770_vm1, %v6240_v50, 0.0  ;;  %7421 = vmatpush.msra.mxu3 %v6839_v9  ;;  %vm14777_vm1 = vmmov %vm14694_vm0 }
 0x7e3   : > { %6955 = vmatpush.msra.mxu1 %v6838_v30 }
 0x7e4   : > { %7422 = vmatpush.msra.mxu3 %v6838_v30 }
 0x7e5   : > { %6956 = vmatpush.msra.mxu1 %v6837_v23 }
 0x7e6   : > { %6295 = vadd.xlane.f32.xlu1 %v6294_v57  ;;  %7423 = vmatpush.msra.mxu3 %v6837_v23 }
 0x801   : > { %v6263_v28 = vpop.xlane.xlu1 %6262  ;;  %v6314_v47 = vpop.xlane.xlu0 %6313 }
 0x802   : > { %v6357_v6 = vmul.f32 %v6263_v28, %v14730_v62  ;;  %v6374_v31 = vmul.f32 %v6314_v47, %v14730_v62 }
 0x804   : > { %v6389_v55 = vadd.f32 1e-05, %v6357_v6  ;;  %v13398_v2 = vadd.f32 1e-05, %v6374_v31 }
 0x806   : > { %8004 = vrsqrt.f32 %v6389_v55  ;;  %vm6427_vm10 = vweird.f32 %v6389_v55  ;;  %vm6597_vm5 = vweird.f32 %v13398_v2 }
 0x807   : > { %8006 = vrsqrt.f32 %v13398_v2 }
 0x809   : > { %v6266_v17 = vpop.xlane.xlu1 %6265 }
 0x80a   : > { %v6358_v53 = vmul.f32 %v6266_v17, %v14730_v62  ;;  %v6269_v22 = vpop.xlane.xlu2 %6268 }
 0x80b   : > { %v6359_v39 = vmul.f32 %v6269_v22, %v14730_v62  ;;  %v6272_v37 = vpop.xlane.xlu0 %6271 }
 0x80c   : > { %v8005_v51 = vpop.eup %8004  ;;  %v13409_v24 = vadd.f32 1e-05, %v6358_v53  ;;  %v6360_v61 = vmul.f32 %v6272_v37, %v14730_v62 }
 0x80d   : > { %v8007_v27 = vpop.eup %8006  ;;  %v6422_v19 = vmul.f32 %v8005_v51, %v6389_v55  ;;  %v13412_v38 = vadd.f32 1e-05, %v6359_v39  ;;  %vm6428_vm2 = vweird.f32 %v8005_v51 }
 0x80e   : > { %v6592_v8 = vmul.f32 %v8007_v27, %v13398_v2  ;;  %8008 = vrsqrt.f32 %v13409_v24  ;;  %v13416_v46 = vadd.f32 1e-05, %v6360_v61  ;;  %vm6437_vm3 = vweird.f32 %v13409_v24  ;;  %vm6429_vm9 = vmor %vm6427_vm10, %vm6428_vm2 }
 0x80f   : > { %v6423_v10 = vmul.f32 %v8005_v51, %v6422_v19  ;;  %8010 = vrsqrt.f32 %v13412_v38  ;;  %vm6598_vm7 = vweird.f32 %v8007_v27  ;;  %vm6447_vm15 = vweird.f32 %v13412_v38  ;;  %vm14778_vm10 = vmmov %vm14694_vm0 }
 0x810   : > { %v6593_v45 = vmul.f32 %v8007_v27, %v6592_v8  ;;  %8012 = vrsqrt.f32 %v13416_v46  ;;  %vm6599_vm13 = vmor %vm6597_vm5, %vm6598_vm7  ;;  %vm6457_vm7 = vweird.f32 %v13416_v46 }
 0x811   : > { %v6424_v58 = vmul.f32 0.5, %v6423_v10  ;;  %v6317_v3 = vpop.xlane.xlu1 %6316 }
 0x812   : > { %v6594_v16 = vmul.f32 0.5, %v6593_v45  ;;  %v6375_v12 = vmul.f32 %v6317_v3, %v14730_v62  ;;  %v6152_v50 = vpop.xlane.xlu2 %6151 }
 0x813   : > { %v6425_v57 = vsub.f32 1.5, %v6424_v58  ;;  %v6192_v28 = vmul.f32 %v6152_v50, %v14730_v62  ;;  %v6155_v6 = vpop.xlane.xlu0 %6154 }
 0x814   : > { %v13422_v47 = vpop.eup %8008  ;;  %v6595_v31 = vsub.f32 1.5, %v6594_v16  ;;  %v13425_v0 = vadd.f32 1e-05, %v6375_v12  ;;  %v6193_v9 = vmul.f32 %v6155_v6, %v14730_v62 }
 0x815   : > { %v13428_v30 = vpop.eup %8010  ;;  %v6432_v23 = vmul.f32 %v13422_v47, %v13409_v24  ;;  %v13434_v17 = vsub.f32 %v13220_v56, %v6192_v28  ;;  %v6426_v53 = vmul.f32 %v8005_v51, %v6425_v57  ;;  %vm6438_vm14 = vweird.f32 %v13422_v47 }
 0x816   : > { %v13436_v22 = vpop.eup %8012  ;;  %v6442_v39 = vmul.f32 %v13428_v30, %v13412_v38  ;;  %8014 = vrsqrt.f32 %v13425_v0  ;;  %v13444_v37 = vsub.f32 %v13223_v7, %v6193_v9  ;;  %v6596_v55 = vmul.f32 %v8007_v27, %v6595_v31  ;;  %vm13484_vm4 = vmor %vm6437_vm3, %vm6438_vm14 }
 0x817   : > { %v6433_v56 = vmul.f32 %v13422_v47, %v6432_v23  ;;  %v6452_v61 = vmul.f32 %v13436_v22, %v13416_v46  ;;  %v6430_v19 = vsel %vm6429_vm9, %v8005_v51, %v6426_v53  ;;  %v6256_v8 = vmul.f32 %v13434_v17, %v13434_v17 }
 0x818   : > { %v6443_v10 = vmul.f32 %v13428_v30, %v6442_v39  ;;  %v6741_v45 = vmul.f32 %v6430_v19, %v13179_v15  ;;  %v6257_v7 = vmul.f32 %v13444_v37, %v13444_v37  ;;  %vm6448_vm12 = vweird.f32 %v13428_v30  ;;  %v14772_v15 = vld [vmem:[#allocation15_spill] sm:$0xff]  ;;  %v14773_v19 = vld [vmem:[#allocation16_spill] sm:$0xff] }
 0x819   : > { %v6434_v58 = vmul.f32 0.5, %v6433_v56  ;;  %v6107_v3 = vpop.xlane.xlu1 %6106  ;;  %v6453_v16 = vmul.f32 %v13436_v22, %v6452_v61  ;;  %v6342_v12 = vsel %vm14771_vm11, %v6256_v8, 0.0  ;;  %v6600_v6 = vsel %vm6599_vm13, %v8007_v27, %v6596_v55  ;;  %vm6449_vm8 = vmor %vm6447_vm15, %vm6448_vm12 }
 0x81a   : > { %v6444_v51 = vmul.f32 0.5, %v6443_v10  ;;  %v6177_v50 = vmul.f32 %v6107_v3, %v14730_v62  ;;  %v6773_v57 = vmul.f32 %v14772_v15, %v6741_v45  ;;  %v6320_v28 = vpop.xlane.xlu2 %6319  ;;  %6343 = vadd.xlane.f32.xlu2 %v6342_v12  ;;  %v6758_v53 = vmul.f32 %v6600_v6, %v13182_v42  ;;  %vm14779_vm11 = vmmov %vm14694_vm0 }
 0x81b   : > { %v6435_v31 = vsub.f32 1.5, %v6434_v58  ;;  %v6454_v9 = vmul.f32 0.5, %v6453_v16  ;;  %v6376_v23 = vmul.f32 %v6320_v28, %v14730_v62  ;;  %v6323_v39 = vpop.xlane.xlu0 %6322  ;;  %v6345_v10 = vsel %vm14774_vm6, %v6257_v7, 0.0 }
 0x81c   : > { %v8015_v56 = vpop.eup %8014  ;;  %v6445_v2 = vsub.f32 1.5, %v6444_v51  ;;  %v13467_v61 = vsub.f32 %v13240_v29, %v6177_v50  ;;  %v6805_v8 = vadd.f32 %v14773_v19, %v6773_v57  ;;  %v6790_v55 = vmul.f32 %v14772_v15, %v6758_v53  ;;  %6346 = vadd.xlane.f32.xlu1 %v6345_v10 }
 0x81d   : > { %v6602_v27 = vmul.f32 %v8015_v56, %v13425_v0  ;;  %v13473_v45 = vadd.f32 1e-05, %v6376_v23  ;;  %v6436_v29 = vmul.f32 %v13422_v47, %v6435_v31  ;;  %v6377_v58 = vmul.f32 %v6323_v39, %v14730_v62 }
 0x81e   : > { %7353 = vmatmul.msk.f32.vlgmr.msra.gmra.mxu1 %vm14694_vm0, %v6805_v8  ;;  %v6241_v42 = vmul.f32 %v13467_v61, %v13467_v61  ;;  %v6446_v3 = vmul.f32 %v13428_v30, %v6445_v2  ;;  %v6455_v12 = vsub.f32 1.5, %v6454_v9  ;;  %v6822_v51 = vadd.f32 %v14773_v19, %v6790_v55 }
 0x81f   : > { %v6603_v16 = vmul.f32 %v8015_v56, %v6602_v27  ;;  %8016 = vrsqrt.f32 %v13473_v45  ;;  %v6440_v50 = vsel %vm13484_vm4, %v13422_v47, %v6436_v29  ;;  %v13500_v57 = vadd.f32 1e-05, %v6377_v58 }
 0x820   : > { %v6297_v24 = vsel %vm14777_vm1, %v6241_v42, 0.0  ;;  %v6450_v28 = vsel %vm6449_vm8, %v13428_v30, %v6446_v3  ;;  %7370 = vmatmul.msk.f32.vlgmr.msra.gmra.mxu3 %vm14778_vm10, %v6822_v51  ;;  %v6742_v9 = vmul.f32 %v6440_v50, %v13185_v32  ;;  %vm6608_vm2 = vweird.f32 %v8015_v56  ;;  %vm14780_vm1 = vmmov %vm14694_vm0 }
 0x821   : > { %v6604_v6 = vmul.f32 0.5, %v6603_v16  ;;  %6298 = vadd.xlane.f32.xlu0 %v6297_v24  ;;  %v6275_v31 = vpop.xlane.xlu1 %6274  ;;  %8018 = vrsqrt.f32 %v13500_v57  ;;  %v6743_v53 = vmul.f32 %v6450_v28, %v13199_v13  ;;  %v6456_v8 = vmul.f32 %v13436_v22, %v6455_v12  ;;  %vm14781_vm10 = vmmov %vm14694_vm0 }
 0x822   : > { %v6361_v38 = vmul.f32 %v6275_v31, %v14730_v62  ;;  %v6278_v23 = vpop.xlane.xlu2 %6277  ;;  %v6774_v39 = vmul.f32 %v14772_v15, %v6742_v9  ;;  %vm6607_vm5 = vweird.f32 %v13425_v0  ;;  %vm6458_vm3 = vweird.f32 %v13436_v22 }
 0x823   : > { %v6605_v47 = vsub.f32 1.5, %v6604_v6  ;;  %v6362_v30 = vmul.f32 %v6278_v23, %v14730_v62  ;;  %v6281_v2 = vpop.xlane.xlu0 %6280  ;;  %vm6609_vm9 = vmor %vm6607_vm5, %vm6608_vm2  ;;  %v6775_v46 = vmul.f32 %v14772_v15, %v6743_v53  ;;  %vm6617_vm13 = vweird.f32 %v13473_v45 }
 0x824   : > { %v13512_v10 = vadd.f32 1e-05, %v6361_v38  ;;  %v6363_v32 = vmul.f32 %v6281_v2, %v14730_v62  ;;  %v6806_v13 = vadd.f32 %v14773_v19, %v6774_v39  ;;  %vm6459_vm14 = vmor %vm6457_vm7, %vm6458_vm3  ;;  %vm6627_vm15 = vweird.f32 %v13500_v57 }
 0x825   : > { %v13516_v27 = vpop.eup %8016  ;;  %v13520_v55 = vadd.f32 1e-05, %v6362_v30  ;;  %v6606_v42 = vmul.f32 %v8015_v56, %v6605_v47  ;;  %v6460_v58 = vsel %vm6459_vm14, %v13436_v22, %v6456_v8  ;;  %vm14782_vm3 = vmmov %vm14694_vm0 }
 0x826   : > { %v6612_v0 = vmul.f32 %v13516_v27, %v13473_v45  ;;  %8020 = vrsqrt.f32 %v13512_v10  ;;  %v13526_v29 = vadd.f32 1e-05, %v6363_v32  ;;  %7354 = vmatmul.msk.f32.gmra.mxu1 %vm14779_vm11, %v6806_v13  ;;  %v6744_v50 = vmul.f32 %v6460_v58, %v13203_v25  ;;  %vm14783_vm14 = vmmov %vm14694_vm0 }
 0x827   : > { %8022 = vrsqrt.f32 %v13520_v55  ;;  %v6610_v7 = vsel %vm6609_vm9, %v8015_v56, %v6606_v42  ;;  %v13532_v3 = vpop.eup %8018  ;;  %vm6467_vm12 = vweird.f32 %v13512_v10  ;;  %vm6618_vm6 = vweird.f32 %v13516_v27 }
 0x828   : > { %v6613_v16 = vmul.f32 %v13516_v27, %v6612_v0  ;;  %v6759_v12 = vmul.f32 %v6610_v7, %v13208_v48  ;;  %8024 = vrsqrt.f32 %v13526_v29  ;;  %v6622_v24 = vmul.f32 %v13532_v3, %v13500_v57  ;;  %vm6619_vm5 = vmor %vm6617_vm13, %vm6618_vm6 }
 0x829   : > { %v6326_v51 = vpop.xlane.xlu1 %6325  ;;  %v6807_v48 = vadd.f32 %v14773_v19, %v6775_v46  ;;  %v6776_v38 = vmul.f32 %v14772_v15, %v6744_v50  ;;  %vm6628_vm4 = vweird.f32 %v13532_v3  ;;  %vm6477_vm8 = vweird.f32 %v13520_v55  ;;  %vm14786_vm13 = vmmov %vm14694_vm0 }
 0x82a   : > { %v6614_v28 = vmul.f32 0.5, %v6613_v16  ;;  %v6378_v56 = vmul.f32 %v6326_v51, %v14730_v62  ;;  %v6791_v22 = vmul.f32 %v14772_v15, %v6759_v12  ;;  %v6110_v6 = vpop.xlane.xlu2 %6109  ;;  %v6623_v31 = vmul.f32 %v13532_v3, %v6622_v24  ;;  %vm13628_vm11 = vmor %vm6627_vm15, %vm6628_vm4 }
 0x82b   : > { %v6178_v9 = vmul.f32 %v6110_v6, %v14730_v62  ;;  %v6113_v23 = vpop.xlane.xlu0 %6112  ;;  %v6808_v58 = vadd.f32 %v14773_v19, %v6776_v38  ;;  %vm6487_vm6 = vweird.f32 %v13526_v29  ;;  %vm14787_vm15 = vmmov %vm14694_vm0 }
 0x82c   : > { %v13547_v53 = vpop.eup %8020  ;;  %v6615_v25 = vsub.f32 1.5, %v6614_v28  ;;  %v13549_v47 = vadd.f32 1e-05, %v6378_v56  ;;  %v6823_v39 = vadd.f32 %v14773_v19, %v6791_v22  ;;  %v6179_v30 = vmul.f32 %v6113_v23, %v14730_v62 }
 0x82d   : > { %v13553_v2 = vpop.eup %8022  ;;  %v6462_v8 = vmul.f32 %v13547_v53, %v13512_v10  ;;  %v6624_v32 = vmul.f32 0.5, %v6623_v31  ;;  %v13559_v13 = vsub.f32 %v13280_v52, %v6178_v9  ;;  %vm6468_vm2 = vweird.f32 %v13547_v53 }
 0x82e   : > { %v13562_v42 = vpop.eup %8024  ;;  %v6472_v0 = vmul.f32 %v13553_v2, %v13520_v55  ;;  %8026 = vrsqrt.f32 %v13549_v47  ;;  %7371 = vmatmul.msk.f32.gmra.mxu3 %vm14694_vm0, %v6823_v39  ;;  %v13570_v46 = vsub.f32 %v13283_v35, %v6179_v30  ;;  %7355 = vmatmul.msk.f32.gmra.mxu1 %vm14780_vm1, %v6807_v48  ;;  %v6616_v51 = vmul.f32 %v13516_v27, %v6615_v25  ;;  %vm6469_vm9 = vmor %vm6467_vm12, %vm6468_vm2 }
 0x82f   : > { %v6463_v52 = vmul.f32 %v13547_v53, %v6462_v8  ;;  %v6482_v7 = vmul.f32 %v13562_v42, %v13526_v29  ;;  %v6242_v16 = vmul.f32 %v13559_v13, %v13559_v13  ;;  %v6625_v35 = vsub.f32 1.5, %v6624_v32 }
 0x830   : > { %v6473_v12 = vmul.f32 %v13553_v2, %v6472_v0  ;;  %v6243_v24 = vmul.f32 %v13570_v46, %v13570_v46  ;;  %v6620_v9 = vsel %vm6619_vm5, %v13516_v27, %v6616_v51  ;;  %vm6478_vm7 = vweird.f32 %v13553_v2 }
 0x831   : > { %v6464_v50 = vmul.f32 0.5, %v6463_v52  ;;  %v6158_v28 = vpop.xlane.xlu1 %6157  ;;  %v6483_v56 = vmul.f32 %v13562_v42, %v6482_v7  ;;  %v6300_v22 = vsel %vm14781_vm10, %v6242_v16, 0.0  ;;  %v6760_v30 = vmul.f32 %v6620_v9, %v13228_v41  ;;  %vm6479_vm12 = vmor %vm6477_vm8, %vm6478_vm7 }
 0x832   : > { %v6474_v6 = vmul.f32 0.5, %v6473_v12  ;;  %v6194_v31 = vmul.f32 %v6158_v28, %v14730_v62  ;;  %v6329_v48 = vpop.xlane.xlu2 %6328  ;;  %6301 = vadd.xlane.f32.xlu2 %v6300_v22  ;;  %v6303_v38 = vsel %vm14782_vm3, %v6243_v24, 0.0  ;;  %v6626_v41 = vmul.f32 %v13532_v3, %v6625_v35  ;;  %vm14790_vm10 = vmmov %vm14782_vm3 }
 0x833   : > { %v6465_v23 = vsub.f32 1.5, %v6464_v50  ;;  %v6484_v25 = vmul.f32 0.5, %v6483_v56  ;;  %v6379_v39 = vmul.f32 %v6329_v48, %v14730_v62  ;;  %6304 = vadd.xlane.f32.xlu1 %v6303_v38  ;;  %v6332_v8 = vpop.xlane.xlu0 %6331  ;;  %vm6488_vm0 = vweird.f32 %v13562_v42 }
 0x834   : > { %v13597_v32 = vpop.eup %8026  ;;  %v6475_v45 = vsub.f32 1.5, %v6474_v6  ;;  %v13600_v0 = vsub.f32 %v13300_v54, %v6194_v31  ;;  %v6380_v52 = vmul.f32 %v6332_v8, %v14730_v62  ;;  %v6792_v54 = vmul.f32 %v14772_v15, %v6760_v30  ;;  %vm13659_vm4 = vmor %vm6487_vm6, %vm6488_vm0 }
 0x835   : > { %v6632_v27 = vmul.f32 %v13597_v32, %v13549_v47  ;;  %v13606_v7 = vadd.f32 1e-05, %v6379_v39  ;;  %v6466_v16 = vmul.f32 %v13547_v53, %v6465_v23  ;;  %v6485_v28 = vsub.f32 1.5, %v6484_v25  ;;  %vm14792_vm0 = vmmov %vm14782_vm3 }
 0x836   : > { %v6258_v12 = vmul.f32 %v13600_v0, %v13600_v0  ;;  %v13617_v51 = vadd.f32 1e-05, %v6380_v52  ;;  %v6476_v24 = vmul.f32 %v13553_v2, %v6475_v45  ;;  %7356 = vmatmul.msk.f32.gmra.mxu1 %vm14783_vm14, %v6808_v58  ;;  %v6824_v6 = vadd.f32 %v14773_v19, %v6792_v54 }
 0x837   : > { %v6633_v50 = vmul.f32 %v13597_v32, %v6632_v27  ;;  %8028 = vrsqrt.f32 %v13606_v7  ;;  %v6470_v35 = vsel %vm6469_vm9, %v13547_v53, %v6466_v16  ;;  %vm6638_vm8 = vweird.f32 %v13597_v32 }
 0x838   : > { %v6348_v56 = vsel %vm14786_vm13, %v6258_v12, 0.0  ;;  %v6745_v22 = vmul.f32 %v6470_v35, %v13246_v40  ;;  %8030 = vrsqrt.f32 %v13617_v51  ;;  %v6480_v58 = vsel %vm6479_vm12, %v13553_v2, %v6476_v24  ;;  %7372 = vmatmul.msk.f32.gmra.mxu3 %vm14787_vm15, %v6824_v6  ;;  %vm14791_vm12 = vmmov %vm14782_vm3 }
 0x839   : > { %v6634_v53 = vmul.f32 0.5, %v6633_v50  ;;  %6349 = vadd.xlane.f32.xlu0 %v6348_v56  ;;  %v6284_v57 = vpop.xlane.xlu1 %6283  ;;  %v6630_v40 = vsel %vm13628_vm11, %v13532_v3, %v6626_v41  ;;  %v6746_v55 = vmul.f32 %v6480_v58, %v13251_v43  ;;  %v6486_v2 = vmul.f32 %v13562_v42, %v6485_v28 }
 0x83a   : > { %v6364_v31 = vmul.f32 %v6284_v57, %v14730_v62  ;;  %v6777_v48 = vmul.f32 %v14772_v15, %v6745_v22  ;;  %v6287_v9 = vpop.xlane.xlu2 %6286  ;;  %v6761_v38 = vmul.f32 %v6630_v40, %v13235_v36  ;;  %vm6637_vm1 = vweird.f32 %v13549_v47 }
 0x83b   : > { %v6635_v23 = vsub.f32 1.5, %v6634_v53  ;;  %v6365_v25 = vmul.f32 %v6287_v9, %v14730_v62  ;;  %v6490_v45 = vsel %vm13659_vm4, %v13562_v42, %v6486_v2  ;;  %v6778_v16 = vmul.f32 %v14772_v15, %v6746_v55  ;;  %vm6639_vm2 = vmor %vm6637_vm1, %vm6638_vm8 }
 0x83c   : > { %v13653_v39 = vadd.f32 1e-05, %v6364_v31  ;;  %v6809_v3 = vadd.f32 %v14773_v19, %v6777_v48  ;;  %v6793_v30 = vmul.f32 %v14772_v15, %v6761_v38  ;;  %v6747_v24 = vmul.f32 %v6490_v45, %v13268_v11  ;;  %vm14793_vm8 = vmmov %vm14792_vm0 }
 0x83d   : > { %v13663_v36 = vpop.eup %8028  ;;  %v13665_v43 = vadd.f32 1e-05, %v6365_v25  ;;  %v6636_v52 = vmul.f32 %v13597_v32, %v6635_v23  ;;  %vm6647_vm5 = vweird.f32 %v13606_v7  ;;  %v6810_v11 = vadd.f32 %v14773_v19, %v6778_v16 }
 0x83e   : > { %v13672_v27 = vpop.eup %8030  ;;  %8032 = vrsqrt.f32 %v13653_v39  ;;  %v6642_v29 = vmul.f32 %v13663_v36, %v13606_v7  ;;  %7357 = vmatmul.msk.f32.gmra.mxu1 %vm14790_vm10, %v6809_v3  ;;  %v6825_v41 = vadd.f32 %v14773_v19, %v6793_v30  ;;  %v6779_v58 = vmul.f32 %v14772_v15, %v6747_v24 }
 0x83f   : > { %8034 = vrsqrt.f32 %v13665_v43  ;;  %v6652_v42 = vmul.f32 %v13672_v27, %v13617_v51  ;;  %v6290_v12 = vpop.xlane.xlu0 %6289  ;;  %v6640_v50 = vsel %vm6639_vm2, %v13597_v32, %v6636_v52  ;;  %vm6657_vm7 = vweird.f32 %v13617_v51  ;;  %vm14798_vm2 = vmmov %vm14792_vm0 }
 0x840   : > { %v6643_v47 = vmul.f32 %v13663_v36, %v6642_v29  ;;  %v6366_v54 = vmul.f32 %v6290_v12, %v14730_v62  ;;  %v6762_v10 = vmul.f32 %v6640_v50, %v13265_v4  ;;  %7373 = vmatmul.msk.f32.gmra.mxu3 %vm14782_vm3, %v6825_v41  ;;  %vm6497_vm9 = vweird.f32 %v13653_v39 }
 0x841   : > { %v6335_v28 = vpop.xlane.xlu1 %6334  ;;  %v6653_v35 = vmul.f32 %v13672_v27, %v6652_v42  ;;  %vm6648_vm14 = vweird.f32 %v13663_v36  ;;  %vm6507_vm11 = vweird.f32 %v13665_v43  ;;  %vm6658_vm13 = vweird.f32 %v13672_v27 }
 0x842   : > { %v6644_v56 = vmul.f32 0.5, %v6643_v47  ;;  %v6381_v22 = vmul.f32 %v6335_v28, %v14730_v62  ;;  %v6161_v6 = vpop.xlane.xlu2 %6160  ;;  %v13693_v53 = vadd.f32 1e-05, %v6366_v54  ;;  %v6794_v48 = vmul.f32 %v14772_v15, %v6762_v10  ;;  %vm6649_vm15 = vmor %vm6647_vm5, %vm6648_vm14 }
 0x843   : > { %v6654_v57 = vmul.f32 0.5, %v6653_v35  ;;  %v6195_v32 = vmul.f32 %v6161_v6, %v14730_v62  ;;  %v6811_v3 = vadd.f32 %v14773_v19, %v6779_v58  ;;  %vm13766_vm1 = vmor %vm6657_vm7, %vm6658_vm13 }
 0x844   : > { %v13698_v40 = vpop.eup %8032  ;;  %v6645_v4 = vsub.f32 1.5, %v6644_v56  ;;  %v13700_v31 = vadd.f32 1e-05, %v6381_v22  ;;  %8036 = vrsqrt.f32 %v13693_v53  ;;  %v6826_v52 = vadd.f32 %v14773_v19, %v6794_v48  ;;  %vm14799_vm5 = vmmov %vm14792_vm0 }
 0x845   : > { %v13705_v9 = vpop.eup %8034  ;;  %v6492_v55 = vmul.f32 %v13698_v40, %v13653_v39  ;;  %v13711_v38 = vsub.f32 %v13337_v63, %v6195_v32  ;;  %v6655_v25 = vsub.f32 1.5, %v6654_v57  ;;  %vm6498_vm6 = vweird.f32 %v13698_v40  ;;  %vm14800_vm7 = vmmov %vm14792_vm0 }
 0x846   : > { %8038 = vrsqrt.f32 %v13700_v31  ;;  %v6502_v23 = vmul.f32 %v13705_v9, %v13665_v43  ;;  %7358 = vmatmul.msk.f32.gmra.mxu1 %vm14791_vm12, %v6810_v11  ;;  %v6646_v8 = vmul.f32 %v13663_v36, %v6645_v4  ;;  %vm6508_vm4 = vweird.f32 %v13705_v9  ;;  %vm13776_vm10 = vmor %vm6497_vm9, %vm6498_vm6 }
 0x847   : > { %v6493_v2 = vmul.f32 %v13698_v40, %v6492_v55  ;;  %v6259_v63 = vmul.f32 %v13711_v38, %v13711_v38  ;;  %v6164_v30 = vpop.xlane.xlu0 %6163  ;;  %v6656_v56 = vmul.f32 %v13672_v27, %v6655_v25  ;;  %vm6509_vm3 = vmor %vm6507_vm11, %vm6508_vm4  ;;  %vm6517_vm11 = vweird.f32 %v13693_v53 }
 0x848   : > { %v6503_v45 = vmul.f32 %v13705_v9, %v6502_v23  ;;  %v6196_v29 = vmul.f32 %v6164_v30, %v14730_v62  ;;  %v6650_v12 = vsel %vm6649_vm15, %v13663_v36, %v6646_v8  ;;  %7374 = vmatmul.msk.f32.gmra.mxu3 %vm14793_vm8, %v6826_v52  ;;  %vm14801_vm9 = vmmov %vm14792_vm0  ;;  %vm6667_vm13 = vweird.f32 %v13700_v31 }
 0x849   : > { %v6494_v42 = vmul.f32 0.5, %v6493_v2  ;;  %v6116_v16 = vpop.xlane.xlu1 %6115  ;;  %v6351_v41 = vsel %vm14792_vm0, %v6259_v63, 0.0  ;;  %v6763_v28 = vmul.f32 %v6650_v12, %v13288_v18  ;;  %v6660_v39 = vsel %vm13766_vm1, %v13672_v27, %v6656_v56  ;;  %vm14804_vm6 = vmmov %vm14792_vm0 }
 0x84a   : > { %v13736_v47 = vpop.eup %8036  ;;  %v6504_v54 = vmul.f32 0.5, %v6503_v45  ;;  %v6180_v24 = vmul.f32 %v6116_v16, %v14730_v62  ;;  %6352 = vadd.xlane.f32.xlu2 %v6351_v41  ;;  %v6338_v50 = vpop.xlane.xlu2 %6337  ;;  %v13741_v7 = vsub.f32 %v13349_v26, %v6196_v29  ;;  %vm14805_vm4 = vmmov %vm14798_vm2 }
 0x84b   : > { %v6495_v35 = vsub.f32 1.5, %v6494_v42  ;;  %v6512_v36 = vmul.f32 %v13736_v47, %v13693_v53  ;;  %v6382_v10 = vmul.f32 %v6338_v50, %v14730_v62  ;;  %v6795_v11 = vmul.f32 %v14772_v15, %v6763_v28  ;;  %vm14806_vm8 = vmmov %vm14798_vm2 }
 0x84c   : > { %v13748_v22 = vpop.eup %8038  ;;  %v6505_v6 = vsub.f32 1.5, %v6504_v54  ;;  %v13751_v57 = vsub.f32 %v13355_v59, %v6180_v24  ;;  %v6260_v26 = vmul.f32 %v13741_v7, %v13741_v7  ;;  %vm6518_vm14 = vweird.f32 %v13736_v47 }
 0x84d   : > { %v6662_v18 = vmul.f32 %v13748_v22, %v13700_v31  ;;  %v6513_v32 = vmul.f32 %v13736_v47, %v6512_v36  ;;  %v13759_v58 = vadd.f32 1e-05, %v6382_v10  ;;  %v6496_v4 = vmul.f32 %v13698_v40, %v6495_v35  ;;  %vm13824_vm12 = vmor %vm6517_vm11, %vm6518_vm14 }
 0x84e   : > { %v6244_v48 = vmul.f32 %v13751_v57, %v13751_v57  ;;  %v6827_v23 = vadd.f32 %v14773_v19, %v6795_v11  ;;  %v6354_v25 = vsel %vm14798_vm2, %v6260_v26, 0.0  ;;  %v6506_v51 = vmul.f32 %v13705_v9, %v6505_v6  ;;  %7359 = vmatmul.msk.f32.gmra.mxu1 %vm14799_vm5, %v6811_v3 }
 0x84f   : > { %v6663_v2 = vmul.f32 %v13748_v22, %v6662_v18  ;;  %v6514_v63 = vmul.f32 0.5, %v6513_v32  ;;  %8040 = vrsqrt.f32 %v13759_v58  ;;  %6355 = vadd.xlane.f32.xlu1 %v6354_v25  ;;  %v6341_v30 = vpop.xlane.xlu0 %6340  ;;  %v6500_v45 = vsel %vm13776_vm10, %v13698_v40, %v6496_v4 }
 0x850   : > { %v6306_v8 = vsel %vm14800_vm7, %v6244_v48, 0.0  ;;  %v6383_v3 = vmul.f32 %v6341_v30, %v14730_v62  ;;  %v6510_v52 = vsel %vm6509_vm3, %v13705_v9, %v6506_v51  ;;  %v6748_v43 = vmul.f32 %v6500_v45, %v13306_v49  ;;  %7375 = vmatmul.msk.f32.gmra.mxu3 %vm14801_vm9, %v6827_v23  ;;  %vm14807_vm3 = vmmov %vm14798_vm2 }
 0x851   : > { %v6664_v29 = vmul.f32 0.5, %v6663_v2  ;;  %v6515_v42 = vsub.f32 1.5, %v6514_v63  ;;  %6307 = vadd.xlane.f32.xlu0 %v6306_v8  ;;  %v6293_v16 = vpop.xlane.xlu1 %6292  ;;  %v6749_v54 = vmul.f32 %v6510_v52, %v13311_v60  ;;  %v6764_v40 = vmul.f32 %v6660_v39, %v13295_v14 }
 0x852   : > { %v6367_v41 = vmul.f32 %v6293_v16, %v14730_v62  ;;  %v6119_v27 = vpop.xlane.xlu2 %6118  ;;  %v13802_v12 = vadd.f32 1e-05, %v6383_v3  ;;  %v6780_v9 = vmul.f32 %v14772_v15, %v6748_v43  ;;  %vm6668_vm15 = vweird.f32 %v13748_v22 }
 0x853   : > { %v6665_v24 = vsub.f32 1.5, %v6664_v29  ;;  %v6181_v50 = vmul.f32 %v6119_v27, %v14730_v62  ;;  %v6796_v28 = vmul.f32 %v14772_v15, %v6764_v40  ;;  %v6516_v36 = vmul.f32 %v13736_v47, %v6515_v42  ;;  %vm6669_vm0 = vmor %vm6667_vm13, %vm6668_vm15 }
 0x854   : > { %v13810_v49 = vadd.f32 1e-05, %v6367_v41  ;;  %8042 = vrsqrt.f32 %v13802_v12  ;;  %v6812_v14 = vadd.f32 %v14773_v19, %v6780_v9  ;;  %v6781_v10 = vmul.f32 %v14772_v15, %v6749_v54  ;;  %vm14809_vm15 = vmmov %vm14798_vm2 }
 0x855   : > { %v8041_v35 = vpop.eup %8040  ;;  %v13817_v60 = vsub.f32 %v13377_v44, %v6181_v50  ;;  %v6828_v56 = vadd.f32 %v14773_v19, %v6796_v28  ;;  %v6520_v11 = vsel %vm13824_vm12, %v13736_v47, %v6516_v36  ;;  %v6666_v26 = vmul.f32 %v13748_v22, %v6665_v24 }
 0x856   : > { %8044 = vrsqrt.f32 %v13810_v49  ;;  %v6672_v53 = vmul.f32 %v8041_v35, %v13759_v58  ;;  %7360 = vmatmul.msk.f32.gmra.mxu1 %vm14804_vm6, %v6812_v14  ;;  %v6750_v47 = vmul.f32 %v6520_v11, %v13329_v5  ;;  %v6813_v31 = vadd.f32 %v14773_v19, %v6781_v10  ;;  %vm14808_vm6 = vmmov %vm14798_vm2 }
 0x857   : > { %v6245_v44 = vmul.f32 %v13817_v60, %v13817_v60  ;;  %v6670_v59 = vsel %vm6669_vm0, %v13748_v22, %v6666_v26  ;;  %vm6678_vm1 = vweird.f32 %v8041_v35  ;;  %vm6677_vm10 = vweird.f32 %v13759_v58 }
 0x858   : > { %v6673_v18 = vmul.f32 %v8041_v35, %v6672_v53  ;;  %7376 = vmatmul.msk.f32.gmra.mxu3 %vm14806_vm8, %v6828_v56  ;;  %v6765_v25 = vmul.f32 %v6670_v59, %v13323_v20  ;;  %v6782_v5 = vmul.f32 %v14772_v15, %v6750_v47  ;;  %vm6679_vm5 = vmor %vm6677_vm10, %vm6678_vm1  ;;  %vm6687_vm14 = vweird.f32 %v13802_v12 }
 0x859   : > { %v6296_v32 = vpop.xlane.xlu1 %6295  ;;  %v6309_v4 = vsel %vm14805_vm4, %v6245_v44, 0.0  ;;  %vm6527_vm11 = vweird.f32 %v13810_v49  ;;  %vm14810_vm1 = vmmov %vm14798_vm2 }
 0x85a   : > { %v8043_v48 = vpop.eup %8042  ;;  %v6674_v55 = vmul.f32 0.5, %v6673_v18  ;;  %v6368_v23 = vmul.f32 %v6296_v32, %v14730_v62  ;;  %6310 = vadd.xlane.f32.xlu2 %v6309_v4  ;;  %v6797_v22 = vmul.f32 %v14772_v15, %v6765_v25  ;;  %v6814_v41 = vadd.f32 %v14773_v19, %v6782_v5  ;;  %vm14811_vm10 = vmmov %vm14810_vm1 }
 0x85b   : > { %v6682_v51 = vmul.f32 %v8043_v48, %v13802_v12  ;;  %vm6688_vm7 = vweird.f32 %v8043_v48 }
 0x85c   : > { %v8045_v2 = vpop.eup %8044  ;;  %v6675_v63 = vsub.f32 1.5, %v6674_v55  ;;  %v6400_v30 = vadd.f32 1e-05, %v6368_v23  ;;  %v6829_v52 = vadd.f32 %v14773_v19, %v6797_v22  ;;  %vm6689_vm13 = vmor %vm6687_vm14, %vm6688_vm7 }
 0x85d   : > { %v6522_v39 = vmul.f32 %v8045_v2, %v13810_v49  ;;  %v6683_v8 = vmul.f32 %v8043_v48, %v6682_v51  ;;  %vm6528_vm9 = vweird.f32 %v8045_v2  ;;  %v13879_v51 = vld [vmem:[%s14073_s14] ss:$0 sm:$0xff] }
 0x85e   : > { %8046 = vrsqrt.f32 %v6400_v30  ;;  %v6676_v45 = vmul.f32 %v8041_v35, %v6675_v63  ;;  %7361 = vmatmul.msk.f32.gmra.mxu1 %vm14798_vm2, %v6813_v31  ;;  %vm6529_vm12 = vmor %vm6527_vm11, %vm6528_vm9  ;;  %vm6537_vm4 = vweird.f32 %v6400_v30 }
 0x85f   : > { %v6523_v20 = vmul.f32 %v8045_v2, %v6522_v39  ;;  %v6684_v3 = vmul.f32 0.5, %v6683_v8  ;;  %vm14812_vm2 = vmmov %vm14810_vm1 }
 0x860   : > { %v6680_v29 = vsel %vm6679_vm5, %v8041_v35, %v6676_v45  ;;  %7377 = vmatmul.msk.f32.gmra.mxu3 %vm14807_vm3, %v6829_v52  ;;  %vm14813_vm5 = vmmov %vm14810_vm1 }
 0x861   : > { %v6524_v42 = vmul.f32 0.5, %v6523_v20  ;;  %v6685_v16 = vsub.f32 1.5, %v6684_v3  ;;  %v6766_v43 = vmul.f32 %v6680_v29, %v13345_v34 }
 0x863   : > { %v6525_v58 = vsub.f32 1.5, %v6524_v42  ;;  %v6798_v27 = vmul.f32 %v14772_v15, %v6766_v43  ;;  %v6686_v54 = vmul.f32 %v8043_v48, %v6685_v16 }
 0x864   : > { %v8047_v40 = vpop.eup %8046 }
 0x865   : > { %v6532_v24 = vmul.f32 %v8047_v40, %v6400_v30  ;;  %v6526_v9 = vmul.f32 %v8045_v2, %v6525_v58  ;;  %v6830_v34 = vadd.f32 %v14773_v19, %v6798_v27  ;;  %v6690_v50 = vsel %vm6689_vm13, %v8043_v48, %v6686_v54 }
 0x866   : > { %7362 = vmatmul.msk.f32.gmra.mxu1 %vm14808_vm6, %v6814_v41  ;;  %v6767_v14 = vmul.f32 %v6690_v50, %v13363_v33  ;;  %vm6538_vm0 = vweird.f32 %v8047_v40  ;;  %vm14814_vm6 = vmmov %vm14810_vm1 }
 0x867   : > { %v6533_v28 = vmul.f32 %v8047_v40, %v6532_v24  ;;  %v6530_v35 = vsel %vm6529_vm12, %v8045_v2, %v6526_v9  ;;  %vm6539_vm8 = vmor %vm6537_vm4, %vm6538_vm0 }
 0x868   : > { %v6751_v36 = vmul.f32 %v6530_v35, %v13360_v21  ;;  %7378 = vmatmul.msk.f32.gmra.mxu3 %vm14809_vm15, %v6830_v34  ;;  %v6799_v49 = vmul.f32 %v14772_v15, %v6767_v14  ;;  %vm14815_vm0 = vmmov %vm14810_vm1 }
 0x869   : > { %v6534_v53 = vmul.f32 0.5, %v6533_v28 }
 0x86a   : > { %v6783_v12 = vmul.f32 %v14772_v15, %v6751_v36  ;;  %v6831_v44 = vadd.f32 %v14773_v19, %v6799_v49 }
 0x86b   : > { %v6535_v10 = vsub.f32 1.5, %v6534_v53 }
 0x86c   : > { %v6815_v56 = vadd.f32 %v14773_v19, %v6783_v12 }
 0x86d   : > { %v6536_v6 = vmul.f32 %v8047_v40, %v6535_v10 }
 0x86e   : > { %7363 = vmatmul.msk.f32.gmra.mxu1 %vm14810_vm1, %v6815_v56  ;;  %vm14817_vm1 = vmmov %vm14815_vm0 }
 0x86f   : > { %v6540_v33 = vsel %vm6539_vm8, %v8047_v40, %v6536_v6  ;;  %vm14816_vm8 = vmmov %vm14815_vm0 }
 0x870   : > { %v6752_v21 = vmul.f32 %v6540_v33, %v13383_v1  ;;  %7379 = vmatmul.msk.f32.gmra.mxu3 %vm14811_vm10, %v6831_v44  ;;  %vm14818_vm10 = vmmov %vm14815_vm0 }
 0x872   : > { %v6784_v11 = vmul.f32 %v14772_v15, %v6752_v21 }
 0x874   : > { %v6816_v26 = vadd.f32 %v14773_v19, %v6784_v11 }
 0x876   : > { %7364 = vmatmul.msk.f32.gmra.mxu1 %vm14812_vm2, %v6816_v26  ;;  %vm14819_vm2 = vmmov %vm14815_vm0 }
 0x88d   : > { %v6344_v18 = vpop.xlane.xlu2 %6343 }
 0x88e   : > { %v6384_v32 = vmul.f32 %v6344_v18, %v14730_v62 }
 0x88f   : > { %v6347_v59 = vpop.xlane.xlu1 %6346 }
 0x890   : > { %v6416_v4 = vadd.f32 1e-05, %v6384_v32  ;;  %v6385_v48 = vmul.f32 %v6347_v59, %v14730_v62 }
 0x892   : > { %8048 = vrsqrt.f32 %v6416_v4  ;;  %v6417_v55 = vadd.f32 1e-05, %v6385_v48  ;;  %vm6697_vm7 = vweird.f32 %v6416_v4 }
 0x894   : > { %v6299_v23 = vpop.xlane.xlu0 %6298  ;;  %8050 = vrsqrt.f32 %v6417_v55  ;;  %vm6707_vm11 = vweird.f32 %v6417_v55 }
 0x895   : > { %v6369_v1 = vmul.f32 %v6299_v23, %v14730_v62 }
 0x897   : > { %v6401_v47 = vadd.f32 1e-05, %v6369_v1 }
 0x898   : > { %v8049_v25 = vpop.eup %8048 }
 0x899   : > { %v6692_v31 = vmul.f32 %v8049_v25, %v6416_v4  ;;  %8052 = vrsqrt.f32 %v6401_v47  ;;  %vm6698_vm3 = vweird.f32 %v8049_v25  ;;  %vm6547_vm15 = vweird.f32 %v6401_v47 }
 0x89a   : > { %v8051_v2 = vpop.eup %8050  ;;  %vm6699_vm9 = vmor %vm6697_vm7, %vm6698_vm3 }
 0x89b   : > { %v6693_v63 = vmul.f32 %v8049_v25, %v6692_v31  ;;  %v6958_v30 = vpop.f32.mrf.mxu1  ;;  %v6702_v39 = vmul.f32 %v8051_v2, %v6417_v55  ;;  %vm6708_vm14 = vweird.f32 %v8051_v2  ;;  %vm14821_vm3 = vmmov %vm14815_vm0 }
 0x89c   : > { %v6959_v22 = vadd.f32 %v13879_v51, %v6958_v30  ;;  %vm6709_vm12 = vmor %vm6707_vm11, %vm6708_vm14 }
 0x89d   : > { %v6694_v8 = vmul.f32 0.5, %v6693_v63  ;;  %v6703_v5 = vmul.f32 %v8051_v2, %v6702_v39 }
 0x89e   : > { %7054 = vst.msk [vmem:[%s11658_s0] sm:$0xff] %vm14813_vm5, %v6959_v22  ;;  %vm14820_vm5 = vmmov %vm14815_vm0 }
 0x89f   : > { %v8053_v45 = vpop.eup %8052  ;;  %v6695_v20 = vsub.f32 1.5, %v6694_v8  ;;  %v6704_v52 = vmul.f32 0.5, %v6703_v5 }
 0x8a0   : > { %v6542_v3 = vmul.f32 %v8053_v45, %v6401_v47  ;;  %vm6548_vm13 = vweird.f32 %v8053_v45 }
 0x8a1   : > { %v6696_v29 = vmul.f32 %v8049_v25, %v6695_v20  ;;  %v6705_v16 = vsub.f32 1.5, %v6704_v52  ;;  %vm6549_vm4 = vmor %vm6547_vm15, %vm6548_vm13 }
 0x8a2   : > { %v6543_v42 = vmul.f32 %v8053_v45, %v6542_v3  ;;  %vm14822_vm15 = vmmov %vm14815_vm0 }
 0x8a3   : > { %v6700_v43 = vsel %vm6699_vm9, %v8049_v25, %v6696_v29  ;;  %v6961_v58 = vpop.f32.mrf.mxu1  ;;  %v7009_v27 = vpop.f32.mrf.mxu3  ;;  %v6706_v40 = vmul.f32 %v8051_v2, %v6705_v16 }
 0x8a4   : > { %v6544_v41 = vmul.f32 0.5, %v6543_v42  ;;  %v6768_v54 = vmul.f32 %v6700_v43, %v13434_v17  ;;  %v6962_v24 = vadd.f32 %v13879_v51, %v6961_v58  ;;  %v7010_v9 = vadd.f32 %v13879_v51, %v7009_v27 }
 0x8a5   : > { %v6302_v34 = vpop.xlane.xlu2 %6301  ;;  %v6710_v36 = vsel %vm6709_vm12, %v8051_v2, %v6706_v40 }
 0x8a6   : > { %v6545_v50 = vsub.f32 1.5, %v6544_v41  ;;  %v6370_v28 = vmul.f32 %v6302_v34, %v14730_v62  ;;  %v6800_v35 = vmul.f32 %v14772_v15, %v6768_v54  ;;  %v6305_v14 = vpop.xlane.xlu1 %6304  ;;  %7055 = vst.msk [vmem:[%s11658_s0 + $0x8] sm:$0xff] %vm14814_vm6, %v6962_v24  ;;  %v6769_v53 = vmul.f32 %v6710_v36, %v13444_v37 }
 0x8a7   : > { %v6371_v17 = vmul.f32 %v6305_v14, %v14730_v62  ;;  %7071 = vst.msk [vmem:[%s11658_s0 + $0x88] sm:$0xff] %vm14815_vm0, %v7010_v9 }
 0x8a8   : > { %v6402_v12 = vadd.f32 1e-05, %v6370_v28  ;;  %v6546_v49 = vmul.f32 %v8053_v45, %v6545_v50  ;;  %v6832_v10 = vadd.f32 %v14773_v19, %v6800_v35  ;;  %v6801_v44 = vmul.f32 %v14772_v15, %v6769_v53 }
 0x8a9   : > { %v6403_v56 = vadd.f32 1e-05, %v6371_v17 }
 0x8aa   : > { %8054 = vrsqrt.f32 %v6402_v12  ;;  %v6550_v6 = vsel %vm6549_vm4, %v8053_v45, %v6546_v49  ;;  %7380 = vmatmul.msk.f32.gmra.mxu3 %vm14816_vm8, %v6832_v10  ;;  %v6833_v32 = vadd.f32 %v14773_v19, %v6801_v44  ;;  %vm6557_vm14 = vweird.f32 %v6402_v12  ;;  %vm14823_vm4 = vmmov %vm14817_vm1 }
 0x8ab   : > { %v6753_v33 = vmul.f32 %v6550_v6, %v13467_v61  ;;  %8056 = vrsqrt.f32 %v6403_v56  ;;  %v6964_v37 = vpop.f32.mrf.mxu1  ;;  %vm6567_vm11 = vweird.f32 %v6403_v56 }
 0x8ac   : > { %v6350_v21 = vpop.xlane.xlu0 %6349  ;;  %v6965_v11 = vadd.f32 %v13879_v51, %v6964_v37 }
 0x8ad   : > { %v6386_v26 = vmul.f32 %v6350_v21, %v14730_v62  ;;  %v6785_v18 = vmul.f32 %v14772_v15, %v6753_v33 }
 0x8ae   : > { %7056 = vst.msk [vmem:[%s11658_s0 + $0x10] sm:$0xff] %vm14817_vm1, %v6965_v11 }
 0x8af   : > { %v6418_v4 = vadd.f32 1e-05, %v6386_v26  ;;  %v6817_v59 = vadd.f32 %v14773_v19, %v6785_v18 }
 0x8b0   : > { %v8055_v48 = vpop.eup %8054 }
 0x8b1   : > { %v8057_v55 = vpop.eup %8056  ;;  %v6552_v61 = vmul.f32 %v8055_v48, %v6402_v12  ;;  %8058 = vrsqrt.f32 %v6418_v4  ;;  %7365 = vmatmul.msk.f32.gmra.mxu1 %vm14818_vm10, %v6817_v59  ;;  %v7012_v23 = vpop.f32.mrf.mxu3  ;;  %vm6558_vm7 = vweird.f32 %v8055_v48  ;;  %vm6717_vm0 = vweird.f32 %v6418_v4  ;;  %vm14824_vm10 = vmmov %vm14817_vm1 }
 0x8b2   : > { %v7013_v1 = vadd.f32 %v13879_v51, %v7012_v23  ;;  %v6562_v47 = vmul.f32 %v8057_v55, %v6403_v56  ;;  %7381 = vmatmul.msk.f32.gmra.mxu3 %vm14819_vm2, %v6833_v32  ;;  %vm6568_vm9 = vweird.f32 %v8057_v55  ;;  %vm6559_vm13 = vmor %vm6557_vm14, %vm6558_vm7 }
 0x8b3   : > { %v6553_v25 = vmul.f32 %v8055_v48, %v6552_v61  ;;  %v6967_v31 = vpop.f32.mrf.mxu1  ;;  %vm6569_vm12 = vmor %vm6567_vm11, %vm6568_vm9 }
 0x8b4   : > { %7072 = vst.msk [vmem:[%s11658_s0 + $0x90] sm:$0xff] %vm14820_vm5, %v7013_v1  ;;  %v6563_v2 = vmul.f32 %v8057_v55, %v6562_v47  ;;  %v6968_v30 = vadd.f32 %v13879_v51, %v6967_v31  ;;  %vm14825_vm2 = vmmov %vm14817_vm1 }
 0x8b5   : > { %v6554_v63 = vmul.f32 0.5, %v6553_v25  ;;  %vm14826_vm5 = vmmov %vm14817_vm1 }
 0x8b6   : > { %v6564_v22 = vmul.f32 0.5, %v6563_v2  ;;  %7057 = vst.msk [vmem:[%s11658_s0 + $0x18] sm:$0xff] %vm14821_vm3, %v6968_v30  ;;  %vm14827_vm3 = vmmov %vm14817_vm1 }
 0x8b7   : > { %v8059_v39 = vpop.eup %8058  ;;  %v6555_v8 = vsub.f32 1.5, %v6554_v63  ;;  %vm14828_vm7 = vmmov %vm14817_vm1 }
 0x8b8   : > { %v6712_v5 = vmul.f32 %v8059_v39, %v6418_v4  ;;  %v6565_v45 = vsub.f32 1.5, %v6564_v22  ;;  %vm6718_vm6 = vweird.f32 %v8059_v39  ;;  %vm14829_vm14 = vmmov %vm14817_vm1 }
 0x8b9   : > { %v6556_v20 = vmul.f32 %v8055_v48, %v6555_v8  ;;  %vm6719_vm8 = vmor %vm6717_vm0, %vm6718_vm6 }
 0x8ba   : > { %v6713_v3 = vmul.f32 %v8059_v39, %v6712_v5  ;;  %v6566_v52 = vmul.f32 %v8057_v55, %v6565_v45  ;;  %vm14830_vm0 = vmmov %vm14817_vm1 }
 0x8bb   : > { %v6560_v29 = vsel %vm6559_vm13, %v8055_v48, %v6556_v20  ;;  %v6970_v16 = vpop.f32.mrf.mxu1  ;;  %v7015_v27 = vpop.f32.mrf.mxu3 }
 0x8bc   : > { %v6714_v42 = vmul.f32 0.5, %v6713_v3  ;;  %v6754_v43 = vmul.f32 %v6560_v29, %v13559_v13  ;;  %v6570_v41 = vsel %vm6569_vm12, %v8057_v55, %v6566_v52  ;;  %v6971_v58 = vadd.f32 %v13879_v51, %v6970_v16 }
 0x8bd   : > { %v6353_v54 = vpop.xlane.xlu2 %6352  ;;  %v6755_v40 = vmul.f32 %v6570_v41, %v13570_v46  ;;  %v7016_v9 = vadd.f32 %v13879_v51, %v7015_v27 }
 0x8be   : > { %v6715_v24 = vsub.f32 1.5, %v6714_v42  ;;  %v6387_v34 = vmul.f32 %v6353_v54, %v14730_v62  ;;  %v6786_v50 = vmul.f32 %v14772_v15, %v6754_v43  ;;  %7058 = vst.msk [vmem:[%s11658_s0 + $0x20] sm:$0xff] %vm14822_vm15, %v6971_v58 }
 0x8bf   : > { %7073 = vst.msk [vmem:[%s11658_s0 + $0x98] sm:$0xff] %vm14823_vm4, %v7016_v9  ;;  %v6787_v36 = vmul.f32 %v14772_v15, %v6755_v40 }
 0x8c0   : > { %v6419_v13 = vadd.f32 1e-05, %v6387_v34  ;;  %v6818_v28 = vadd.f32 %v14773_v19, %v6786_v50  ;;  %v6716_v35 = vmul.f32 %v8059_v39, %v6715_v24 }
 0x8c1   : > { %v6819_v21 = vadd.f32 %v14773_v19, %v6787_v36 }
 0x8c2   : > { %8060 = vrsqrt.f32 %v6419_v13  ;;  %7366 = vmatmul.msk.f32.gmra.mxu1 %vm14817_vm1, %v6818_v28  ;;  %v6720_v46 = vsel %vm6719_vm8, %v8059_v39, %v6716_v35  ;;  %v6356_v14 = vpop.xlane.xlu1 %6355  ;;  %vm6727_vm11 = vweird.f32 %v6419_v13  ;;  %vm14831_vm1 = vmmov %vm14830_vm0 }
 0x8c3   : > { %v6770_v17 = vmul.f32 %v6720_v46, %v13600_v0  ;;  %v6388_v53 = vmul.f32 %v6356_v14, %v14730_v62  ;;  %v6973_v12 = vpop.f32.mrf.mxu1  ;;  %v7018_v6 = vpop.f32.mrf.mxu3 }
 0x8c4   : > { %v6308_v49 = vpop.xlane.xlu0 %6307  ;;  %v6974_v10 = vadd.f32 %v13879_v51, %v6973_v12  ;;  %v7019_v37 = vadd.f32 %v13879_v51, %v7018_v6 }
 0x8c5   : > { %v6372_v56 = vmul.f32 %v6308_v49, %v14730_v62  ;;  %v6802_v44 = vmul.f32 %v14772_v15, %v6770_v17  ;;  %v6420_v33 = vadd.f32 1e-05, %v6388_v53 }
 0x8c6   : > { %7059 = vst.msk [vmem:[%s11658_s0 + $0x28] sm:$0xff] %vm14824_vm10, %v6974_v10 }
 0x8c7   : > { %v6404_v0 = vadd.f32 1e-05, %v6372_v56  ;;  %v6834_v11 = vadd.f32 %v14773_v19, %v6802_v44  ;;  %8062 = vrsqrt.f32 %v6420_v33  ;;  %7074 = vst.msk [vmem:[%s11658_s0 + $0xa0] sm:$0xff] %vm14825_vm2, %v7019_v37  ;;  %vm6737_vm6 = vweird.f32 %v6420_v33  ;;  %vm14832_vm2 = vmmov %vm14830_vm0 }
 0x8c8   : > { %v8061_v26 = vpop.eup %8060 }
 0x8c9   : > { %v6722_v18 = vmul.f32 %v8061_v26, %v6419_v13  ;;  %8064 = vrsqrt.f32 %v6404_v0  ;;  %7382 = vmatmul.msk.f32.gmra.mxu3 %vm14826_vm5, %v6834_v11  ;;  %vm6728_vm9 = vweird.f32 %v8061_v26  ;;  %vm6577_vm8 = vweird.f32 %v6404_v0  ;;  %vm14833_vm5 = vmmov %vm14830_vm0 }
 0x8ca   : > { %7367 = vmatmul.msk.f32.gmra.mxu1 %vm14827_vm3, %v6819_v21  ;;  %vm6729_vm13 = vmor %vm6727_vm11, %vm6728_vm9 }
 0x8cb   : > { %v6723_v32 = vmul.f32 %v8061_v26, %v6722_v18  ;;  %v6976_v4 = vpop.f32.mrf.mxu1  ;;  %v7021_v61 = vpop.f32.mrf.mxu3  ;;  %vm14836_vm11 = vmmov %vm14830_vm0 }
 0x8cc   : > { %v6977_v55 = vadd.f32 %v13879_v51, %v6976_v4  ;;  %v7022_v47 = vadd.f32 %v13879_v51, %v7021_v61 }
 0x8cd   : > { %v8063_v59 = vpop.eup %8062  ;;  %v6724_v48 = vmul.f32 0.5, %v6723_v32  ;;  %v6311_v23 = vpop.xlane.xlu2 %6310 }
 0x8ce   : > { %v6732_v1 = vmul.f32 %v8063_v59, %v6420_v33  ;;  %v6373_v25 = vmul.f32 %v6311_v23, %v14730_v62  ;;  %7060 = vst.msk [vmem:[%s11658_s0 + $0x30] sm:$0xff] %vm14828_vm7, %v6977_v55  ;;  %vm6738_vm12 = vweird.f32 %v8063_v59  ;;  %vm14834_vm7 = vmmov %vm14830_vm0 }
 0x8cf   : > { %v8065_v31 = vpop.eup %8064  ;;  %v6725_v2 = vsub.f32 1.5, %v6724_v48  ;;  %7075 = vst.msk [vmem:[%s11658_s0 + $0xa8] sm:$0xff] %vm14829_vm14, %v7022_v47  ;;  %vm6739_vm4 = vmor %vm6737_vm6, %vm6738_vm12 }
 0x8d0   : > { %v6572_v63 = vmul.f32 %v8065_v31, %v6404_v0  ;;  %v6733_v30 = vmul.f32 %v8063_v59, %v6732_v1  ;;  %v6405_v22 = vadd.f32 1e-05, %v6373_v25  ;;  %vm6578_vm15 = vweird.f32 %v8065_v31  ;;  %vm14835_vm14 = vmmov %vm14830_vm0 }
 0x8d1   : > { %v6726_v39 = vmul.f32 %v8061_v26, %v6725_v2  ;;  %vm6579_vm10 = vmor %vm6577_vm8, %vm6578_vm15 }
 0x8d2   : > { %v6573_v8 = vmul.f32 %v8065_v31, %v6572_v63  ;;  %v6734_v5 = vmul.f32 0.5, %v6733_v30  ;;  %8066 = vrsqrt.f32 %v6405_v22  ;;  %vm6587_vm9 = vweird.f32 %v6405_v22  ;;  %vm14837_vm12 = vmmov %vm14830_vm0 }
 0x8d3   : > { %v6730_v45 = vsel %vm6729_vm13, %v8061_v26, %v6726_v39  ;;  %v6979_v3 = vpop.f32.mrf.mxu1  ;;  %v7024_v42 = vpop.f32.mrf.mxu3  ;;  %vm14838_vm6 = vmmov %vm14830_vm0 }
 0x8d4   : > { %v6574_v20 = vmul.f32 0.5, %v6573_v8  ;;  %v6735_v62 = vsub.f32 1.5, %v6734_v5  ;;  %v6771_v52 = vmul.f32 %v6730_v45, %v13711_v38  ;;  %v6980_v29 = vadd.f32 %v13879_v51, %v6979_v3  ;;  %vm14839_vm15 = vmmov %vm14830_vm0 }
 0x8d5   : > { %v7025_v43 = vadd.f32 %v13879_v51, %v7024_v42  ;;  %vm14841_vm8 = vmmov %vm14830_vm0 }
 0x8d6   : > { %v6575_v16 = vsub.f32 1.5, %v6574_v20  ;;  %v6803_v41 = vmul.f32 %v14772_v15, %v6771_v52  ;;  %v6736_v58 = vmul.f32 %v8063_v59, %v6735_v62  ;;  %7061 = vst.msk [vmem:[%s11658_s0 + $0x38] sm:$0xff] %vm14830_vm0, %v6980_v29 }
 0x8d7   : > { %7076 = vst.msk [vmem:[%s11658_s0 + $0xb0] sm:$0xff] %vm14831_vm1, %v7025_v43  ;;  %vm14842_vm1 = vmmov %vm14830_vm0 }
 0x8d8   : > { %v8067_v27 = vpop.eup %8066  ;;  %v6576_v38 = vmul.f32 %v8065_v31, %v6575_v16  ;;  %v6835_v54 = vadd.f32 %v14773_v19, %v6803_v41  ;;  %v6740_v40 = vsel %vm6739_vm4, %v8063_v59, %v6736_v58  ;;  %vm14840_vm4 = vmmov %vm14830_vm0 }
 0x8d9   : > { %v6582_v24 = vmul.f32 %v8067_v27, %v6405_v22  ;;  %v6772_v9 = vmul.f32 %v6740_v40, %v13741_v7  ;;  %vm6588_vm3 = vweird.f32 %v8067_v27 }
 0x8da   : > { %v6580_v34 = vsel %vm6579_vm10, %v8065_v31, %v6576_v38  ;;  %7383 = vmatmul.msk.f32.gmra.mxu3 %vm14832_vm2, %v6835_v54  ;;  %vm6589_vm13 = vmor %vm6587_vm9, %vm6588_vm3 }
 0x8db   : > { %v6583_v50 = vmul.f32 %v8067_v27, %v6582_v24  ;;  %v6756_v13 = vmul.f32 %v6580_v34, %v13751_v57  ;;  %v6804_v28 = vmul.f32 %v14772_v15, %v6772_v9  ;;  %v6982_v35 = vpop.f32.mrf.mxu1  ;;  %v7027_v17 = vpop.f32.mrf.mxu3  ;;  %vm14843_vm10 = vmmov %vm14830_vm0 }
 0x8dc   : > { %v6983_v14 = vadd.f32 %v13879_v51, %v6982_v35  ;;  %v7028_v53 = vadd.f32 %v13879_v51, %v7027_v17  ;;  %vm14844_vm2 = vmmov %vm14830_vm0 }
 0x8dd   : > { %v6584_v46 = vmul.f32 0.5, %v6583_v50  ;;  %v6788_v36 = vmul.f32 %v14772_v15, %v6756_v13  ;;  %v6836_v7 = vadd.f32 %v14773_v19, %v6804_v28  ;;  %vm14846_vm3 = vmmov %vm14830_vm0 }
 0x8de   : > { %7062 = vst.msk [vmem:[%s11658_s0 + $0x40] sm:$0xff] %vm14833_vm5, %v6983_v14  ;;  %vm14845_vm5 = vmmov %vm14830_vm0 }
 0x8df   : > { %v6585_v12 = vsub.f32 1.5, %v6584_v46  ;;  %v6820_v49 = vadd.f32 %v14773_v19, %v6788_v36  ;;  %7077 = vst.msk [vmem:[%s11658_s0 + $0xb8] sm:$0xff] %vm14834_vm7, %v7028_v53  ;;  %vm14847_vm7 = vmmov %vm14830_vm0 }
 0x8e0   : > { %vm14848_vm9 = vmmov %vm14830_vm0 }
 0x8e1   : > { %7368 = vmatmul.msk.f32.gmra.mxu1 %vm14835_vm14, %v6820_v49  ;;  %v6586_v57 = vmul.f32 %v8067_v27, %v6585_v12  ;;  %vm14849_vm14 = vmmov %vm14830_vm0 }
 0x8e2   : > { %7384 = vmatmul.msk.f32.gmra.mxu3 %vm14836_vm11, %v6836_v7  ;;  %vm14850_vm11 = vmmov %vm14830_vm0 }
 0x8e3   : > { %v6590_v10 = vsel %vm6589_vm13, %v8067_v27, %v6586_v57  ;;  %v6985_v56 = vpop.f32.mrf.mxu1  ;;  %v7030_v33 = vpop.f32.mrf.mxu3  ;;  %vm14851_vm13 = vmmov %vm14830_vm0 }
 0x8e4   : > { %v6757_v6 = vmul.f32 %v6590_v10, %v13817_v60  ;;  %v6986_v44 = vadd.f32 %v13879_v51, %v6985_v56  ;;  %v7031_v37 = vadd.f32 %v13879_v51, %v7030_v33 }
 0x8e6   : > { %v6789_v21 = vmul.f32 %v14772_v15, %v6757_v6  ;;  %7063 = vst.msk [vmem:[%s11658_s0 + $0x48] sm:$0xff] %vm14837_vm12, %v6986_v44  ;;  %vm14852_vm12 = vmmov %vm14830_vm0 }
 0x8e7   : > { %7078 = vst.msk [vmem:[%s11658_s0 + $0xc0] sm:$0xff] %vm14838_vm6, %v7031_v37 }
 0x8e8   : > { %v6821_v0 = vadd.f32 %v14773_v19, %v6789_v21 }
 0x8ea   : > { %7369 = vmatmul.msk.f32.gmra.mxu1 %vm14839_vm15, %v6821_v0 }
 0x8eb   : > { %v6988_v11 = vpop.f32.mrf.mxu1  ;;  %v7033_v26 = vpop.f32.mrf.mxu3 }
 0x8ec   : > { %v6989_v60 = vadd.f32 %v13879_v51, %v6988_v11  ;;  %v7034_v18 = vadd.f32 %v13879_v51, %v7033_v26 }
 0x8ee   : > { %7064 = vst.msk [vmem:[%s11658_s0 + $0x50] sm:$0xff] %vm14830_vm0, %v6989_v60 }
 0x8ef   : > { %7079 = vst.msk [vmem:[%s11658_s0 + $0xc8] sm:$0xff] %vm14840_vm4, %v7034_v18 }
 0x8f3   : > { %v6991_v15 = vpop.f32.mrf.mxu1  ;;  %v7036_v19 = vpop.f32.mrf.mxu3 }
 0x8f4   : > { %v6992_v32 = vadd.f32 %v13879_v51, %v6991_v15  ;;  %v7037_v4 = vadd.f32 %v13879_v51, %v7036_v19 }
 0x8f6   : > { %7065 = vst.msk [vmem:[%s11658_s0 + $0x58] sm:$0xff] %vm14841_vm8, %v6992_v32 }
 0x8f7   : > { %7080 = vst.msk [vmem:[%s11658_s0 + $0xd0] sm:$0xff] %vm14842_vm1, %v7037_v4 }
 0x92d   : > { %v7039_v59 = vpop.f32.mrf.mxu3 }
 0x92e   : > { %v6994_v48 = vpop.f32.mrf.mxu1  ;;  %v7040_v55 = vadd.f32 %v13879_v51, %v7039_v59 }
 0x92f   : > { %v6995_v61 = vadd.f32 %v13879_v51, %v6994_v48 }
 0x930   : > { %7081 = vst.msk [vmem:[%s11658_s0 + $0xd8] sm:$0xff] %vm14843_vm10, %v7040_v55 }
 0x931   : > { %7066 = vst.msk [vmem:[%s11658_s0 + $0x60] sm:$0xff] %vm14844_vm2, %v6995_v61 }
 0x935   : > { %v7042_v23 = vpop.f32.mrf.mxu3 }
 0x936   : > { %v7043_v1 = vadd.f32 %v13879_v51, %v7042_v23 }
 0x938   : > { %7082 = vst.msk [vmem:[%s11658_s0 + $0xe0] sm:$0xff] %vm14845_vm5, %v7043_v1 }
 0x93f   : > { %v6997_v47 = vpop.f32.mrf.mxu1 }
 0x940   : > { %v6998_v25 = vadd.f32 %v13879_v51, %v6997_v47 }
 0x942   : > { %7067 = vst.msk [vmem:[%s11658_s0 + $0x68] sm:$0xff] %vm14846_vm3, %v6998_v25 }
 0x947   : > { %v7000_v31 = vpop.f32.mrf.mxu1 }
 0x948   : > { %v7001_v2 = vadd.f32 %v13879_v51, %v7000_v31 }
 0x94a   : > { %7068 = vst.msk [vmem:[%s11658_s0 + $0x70] sm:$0xff] %vm14847_vm7, %v7001_v2 }
 0x94c   : > { %v7045_v63 = vpop.f32.mrf.mxu3 }
 0x94d   : > { %v7046_v30 = vadd.f32 %v13879_v51, %v7045_v63 }
 0x94f   : > { %7083 = vst.msk [vmem:[%s11658_s0 + $0xe8] sm:$0xff] %vm14848_vm9, %v7046_v30 }
 0x95d   : > { %v7048_v22 = vpop.f32.mrf.mxu3 }
 0x95e   : > { %v7003_v39 = vpop.f32.mrf.mxu1  ;;  %v7049_v8 = vadd.f32 %v13879_v51, %v7048_v22 }
 0x95f   : > { %v7004_v5 = vadd.f32 %v13879_v51, %v7003_v39 }
 0x960   : > { %7084 = vst.msk [vmem:[%s11658_s0 + $0xf0] sm:$0xff] %vm14849_vm14, %v7049_v8 }
 0x961   : > { %7069 = vst.msk [vmem:[%s11658_s0 + $0x78] sm:$0xff] %vm14850_vm11, %v7004_v5 }
 0x965   : > { %v7051_v45 = vpop.f32.mrf.mxu3 }
 0x966   : > { %v7052_v20 = vadd.f32 %v13879_v51, %v7051_v45 }
 0x967   : > { %v7006_v62 = vpop.f32.mrf.mxu1 }
 0x968   : > { %7085 = vst.msk [vmem:[%s11658_s0 + $0xf8] sm:$0xff] %vm14851_vm13, %v7052_v20  ;;  %v7007_v3 = vadd.f32 %v13879_v51, %v7006_v62 }
 0x96a   : > { %7070 = vst.msk [vmem:[%s11658_s0 + $0x80] sm:$0xff] %vm14852_vm12, %v7007_v3 }
 0x96b   : > { %8095 = shalt.err (!%p8092_p4)
}
 0x96c   : > { %s8159_s0 = smov 128   ;;  %s8160_s15 = smov 8  }
 0x96d   : > { %7424 = dma.vmem_to_hbm [thread:$0]  (%p8287_p5), %s7100_s19, 4096, %s7102_s20, %s7087_s21, %s8159_s0, %s8159_s0, %s8160_s15  }
 0x96e PF: > { %p7430_p7 = scmp.ge.s32.totalorder %s8142_s26, 2  ;;  %s7116_s27 = sand.u32 1, %s8130_s23  }
 0x96f   : > { %s7117_s29 = scalar_lea.sflag [#allocation9], %s7116_s27 }
 0x970   : > { %p7427_p8 = pnand %p7430_p7, %p8291_p6 }
 0x972   : > { %p7428_p9 = pneg %p7427_p8 }
 0x974   : > { %8125 = dma.done.wait (%p7428_p9), %s7117_s29, 4096  }
 0x975   : > { %8127 = vsyncadd (%p7428_p9), %s7117_s29, 4294963200  ;;  %s14854_s26 = sld [smem:[#allocation12_spill]]  ;;  %s14857_s23 = smov %s8134_s24 }
 0x976   : > { %s14855_s25 = sld [smem:[#allocation11_spill]] }
 0x977   : > { %s14856_s22 = sld [smem:[#allocation13_spill]] }
 0x97b   : > { %p28_p10 = scmp.ge.s32.totalorder %s14854_s26, 4  }
 0x97c   : > { %s14858_s24 = smov %s14855_s25 }
 0x97d   : > { %s14859_s25 = smov %s14856_s22  ;;  %30 = sbr.rel (!%p28_p10) target bundleno = 6 (0x6), region = 142 }
 0x982   :  { %7123 = vsyncpa [#allocation9], 1 }
 0x983   :  { %7125 = vsyncpa [#allocation9 + $0x1], 1 }

</bundles_post_ra>
